<compile_context>
chip_gen: v6e
topology: v6e:2x2x1
jax: 0.10.0
libtpu: 0.0.40
codegen_flags: <defaults>
</compile_context>

<pallas_src>
import functools

import jax
import jax.numpy as jnp
from jax.experimental import pallas as pl
from jax.experimental.pallas import tpu as pltpu

# Modest scoped-VMEM limit: tiles below are <= ~2 MiB, safe on v5e/v6e and on
# v7x's smaller 64 MiB VMEM.
_VMEM_LIMIT = 32 * 1024 * 1024


def _round_up(x, m):
    return -(-x // m) * m


def _pick_tile(padded, candidates):
    for c in candidates:
        if c <= padded and padded % c == 0:
            return c
    return padded


def _vspec():
    return pl.BlockSpec(memory_space=pltpu.MemorySpace.VMEM)


# ----------------------------------------------------------------------------
# Tiled MXU matmul kernels (conv workhorse).
#   grid = (N-tiles, M-tiles, K-tiles), K innermost; f32 VMEM accumulator.
#   Variant A: fused bias + ReLU epilogue (custom feature-extractor convs).
#   Variant B: fused BatchNorm pass-1 (per-channel sum / sumsq) epilogue
#              (all ResNet convs; they have no bias and feed a BN).
# NOTE: at this model's sizes the two "parallel" axes are usually 1 (megacore
# on v7x gets no split); unavoidable without batching more images.
# ----------------------------------------------------------------------------
def _mm_bias_kernel(x_ref, w_ref, b_ref, o_ref, acc_ref, *, relu):
    @pl.when(pl.program_id(2) == 0)
    def _():
        acc_ref[...] = jnp.zeros_like(acc_ref)

    acc_ref[...] += jnp.dot(x_ref[...], w_ref[...], preferred_element_type=jnp.float32)

    @pl.when(pl.program_id(2) == pl.num_programs(2) - 1)
    def _():
        y = acc_ref[...] + b_ref[...]
        if relu:
            y = jnp.maximum(y, 0.0)
        o_ref[...] = y.astype(o_ref.dtype)


def _mm_stats_kernel(x_ref, w_ref, o_ref, s0_ref, s1_ref, acc_ref):
    i = pl.program_id(1)
    k = pl.program_id(2)

    @pl.when(k == 0)
    def _():
        acc_ref[...] = jnp.zeros_like(acc_ref)

    @pl.when((i == 0) & (k == 0))
    def _():
        s0_ref[...] = jnp.zeros_like(s0_ref)
        s1_ref[...] = jnp.zeros_like(s1_ref)

    acc_ref[...] += jnp.dot(x_ref[...], w_ref[...], preferred_element_type=jnp.float32)

    @pl.when(k == pl.num_programs(2) - 1)
    def _():
        y = acc_ref[...]
        o_ref[...] = y.astype(o_ref.dtype)
        # BN pass-1 fused here: padded rows/lanes are exactly zero (no bias),
        # so they contribute nothing; the caller divides by the true row count.
        s0_ref[...] += jnp.sum(y, axis=0, keepdims=True)
        s1_ref[...] += jnp.sum(y * y, axis=0, keepdims=True)


def matmul_conv(patches, w2d, bias=None, *, relu=False, with_stats=False):
    """patches: (M, K) bf16; w2d: (Kp, Np) bf16 pre-padded; bias: (1, Np) f32."""
    M, K = patches.shape
    Kp, Np = w2d.shape
    Mp = _round_up(M, 8)
    xp = patches
    if Mp != M or Kp != K:
        xp = jnp.pad(patches, ((0, Mp - M), (0, Kp - K)))

    tm = _pick_tile(Mp, (512, 256, 128, 64, 32, 16, 8))
    tn = _pick_tile(Np, (512, 256, 128))
    tk = _pick_tile(Kp, (512, 256, 128))
    grid = (Np // tn, Mp // tm, Kp // tk)

    x_spec = pl.BlockSpec((tm, tk), lambda j, i, k: (i, k))
    w_spec = pl.BlockSpec((tk, tn), lambda j, i, k: (k, j))
    o_spec = pl.BlockSpec((tm, tn), lambda j, i, k: (i, j))
    s_spec = pl.BlockSpec((1, tn), lambda j, i, k: (0, j))

    if with_stats:
        y, s0, s1 = pl.pallas_call(
            _mm_stats_kernel,
            out_shape=(
                jax.ShapeDtypeStruct((Mp, Np), jnp.bfloat16),
                jax.ShapeDtypeStruct((1, Np), jnp.float32),
                jax.ShapeDtypeStruct((1, Np), jnp.float32),
            ),
            grid=grid,
            in_specs=[x_spec, w_spec],
            out_specs=(o_spec, s_spec, s_spec),
            scratch_shapes=[pltpu.VMEM((tm, tn), jnp.float32)],
            compiler_params=pltpu.CompilerParams(
                # stats block is resident across the M-tile axis -> arbitrary.
                dimension_semantics=("parallel", "arbitrary", "arbitrary"),
                vmem_limit_bytes=_VMEM_LIMIT,
            ),
        )(xp, w2d)
        return y, s0, s1

    b_spec = pl.BlockSpec((1, tn), lambda j, i, k: (0, j))
    y = pl.pallas_call(
        functools.partial(_mm_bias_kernel, relu=relu),
        out_shape=jax.ShapeDtypeStruct((Mp, Np), jnp.bfloat16),
        grid=grid,
        in_specs=[x_spec, w_spec, b_spec],
        out_specs=o_spec,
        scratch_shapes=[pltpu.VMEM((tm, tn), jnp.float32)],
        compiler_params=pltpu.CompilerParams(
            dimension_semantics=("parallel", "parallel", "arbitrary"),
            vmem_limit_bytes=_VMEM_LIMIT,
        ),
    )(xp, w2d, bias)
    return y


# ----------------------------------------------------------------------------
# Convolution = im2col glue (XLA) + tiled Pallas matmul.
# ----------------------------------------------------------------------------
def _im2col(x, kh, kw, stride, padding):
    # TODO(synk): implicit im2col -- fold the kh*kw taps into the matmul K axis
    # (window-shifted loads) so this patch tensor never hits HBM.
    if padding:
        x = jnp.pad(x, ((0, 0), (padding, padding), (padding, padding), (0, 0)))
    N, Hp, Wp, C = x.shape
    Ho = (Hp - kh) // stride + 1
    Wo = (Wp - kw) // stride + 1
    cols = []
    for i in range(kh):
        for j in range(kw):
            cols.append(
                x[:, i : (Ho - 1) * stride + i + 1 : stride,
                  j : (Wo - 1) * stride + j + 1 : stride, :]
            )
    patches = jnp.concatenate(cols, axis=-1)  # (N, Ho, Wo, kh*kw*C), tap-major
    return patches.reshape(N * Ho * Wo, kh * kw * C), (N, Ho, Wo)


def _make_patches(x, kh, kw, stride, padding):
    if kh == 1 and kw == 1 and padding == 0:
        xs = x[:, ::stride, ::stride, :]  # 1x1 conv: no patch expansion
        N, Ho, Wo, cin = xs.shape
        return xs.reshape(N * Ho * Wo, cin), (N, Ho, Wo)
    return _im2col(x, kh, kw, stride, padding)


def conv_bias_relu(x, w2d, bias, *, kh, kw, cout, stride=1, padding=0):
    """Custom feature-extractor conv: bias + ReLU fused into the matmul epilogue."""
    patches, (N, Ho, Wo) = _make_patches(x, kh, kw, stride, padding)
    y = matmul_conv(patches, w2d, bias, relu=True, with_stats=False)
    M = N * Ho * Wo
    return y[:M, :cout].reshape(N, Ho, Wo, cout)


def conv_stats(x, w2d, *, kh, kw, stride, padding):
    """ResNet conv (no bias) with BN pass-1 statistics fused into the epilogue."""
    patches, (N, Ho, Wo) = _make_patches(x, kh, kw, stride, padding)
    y, s0, s1 = matmul_conv(patches, w2d, with_stats=True)
    return y, s0, s1, (N, Ho, Wo)


# ----------------------------------------------------------------------------
# BatchNorm apply = per-channel affine (scale/shift precomputed from the fused
# conv statistics), with fused residual add / ReLU / global-average-pool.
# These operate on whole (small) arrays resident in VMEM; at production sizes
# they would be row-tiled.  Padded channel lanes have scale=shift=0 -> output 0.
# ----------------------------------------------------------------------------
def bn_scale_shift(s0, s1, gamma, beta, count, eps=1e-5):
    npad = s0.shape[1]
    c = gamma.shape[0]
    mean = s0 / count
    var = jnp.maximum(s1 / count - mean * mean, 0.0)  # clamp (catastrophic cancellation)
    g = jnp.pad(gamma, (0, npad - c)).reshape(1, npad).astype(jnp.float32)
    b = jnp.pad(beta, (0, npad - c)).reshape(1, npad).astype(jnp.float32)
    scale = g * jax.lax.rsqrt(var + eps)
    shift = b - mean * scale
    return scale, shift  # (1, Np) f32


def _affine_kernel(x_ref, sc_ref, sh_ref, o_ref, *, relu):
    y = x_ref[...].astype(jnp.float32) * sc_ref[...] + sh_ref[...]
    if relu:
        y = jnp.maximum(y, 0.0)
    o_ref[...] = y.astype(o_ref.dtype)


def _affine_res_kernel(x_ref, sc_ref, sh_ref, r_ref, o_ref, *, relu):
    y = x_ref[...].astype(jnp.float32) * sc_ref[...] + sh_ref[...]
    y = y + r_ref[...].astype(jnp.float32)
    if relu:
        y = jnp.maximum(y, 0.0)
    o_ref[...] = y.astype(o_ref.dtype)


def _dual_affine_kernel(x_ref, sc_ref, sh_ref, r_ref, rsc_ref, rsh_ref, o_ref, *, relu):
    y = x_ref[...].astype(jnp.float32) * sc_ref[...] + sh_ref[...]
    y = y + r_ref[...].astype(jnp.float32) * rsc_ref[...] + rsh_ref[...]
    if relu:
        y = jnp.maximum(y, 0.0)
    o_ref[...] = y.astype(o_ref.dtype)


def _affine_res_gap_kernel(x_ref, sc_ref, sh_ref, r_ref, o_ref):
    # bn2 + identity residual + ReLU + global average pool (over axis 1 = HW).
    y = x_ref[...].astype(jnp.float32) * sc_ref[...] + sh_ref[...]
    y = jnp.maximum(y + r_ref[...].astype(jnp.float32), 0.0)
    o_ref[...] = jnp.mean(y, axis=1).astype(o_ref.dtype)


def bn_apply(y2d, scale, shift, *, relu=False):
    return pl.pallas_call(
        functools.partial(_affine_kernel, relu=relu),
        out_shape=jax.ShapeDtypeStruct(y2d.shape, jnp.bfloat16),
        in_specs=[_vspec()] * 3,
        out_specs=_vspec(),
    )(y2d, scale, shift)


def bn_apply_res(y2d, scale, shift, res2d, *, relu=True):
    return pl.pallas_call(
        functools.partial(_affine_res_kernel, relu=relu),
        out_shape=jax.ShapeDtypeStruct(y2d.shape, jnp.bfloat16),
        in_specs=[_vspec()] * 4,
        out_specs=_vspec(),
    )(y2d, scale, shift, res2d)


def bn_apply_dual(y2d, scale, shift, res2d, rscale, rshift, *, relu=True):
    return pl.pallas_call(
        functools.partial(_dual_affine_kernel, relu=relu),
        out_shape=jax.ShapeDtypeStruct(y2d.shape, jnp.bfloat16),
        in_specs=[_vspec()] * 6,
        out_specs=_vspec(),
    )(y2d, scale, shift, res2d, rscale, rshift)


def bn_apply_res_relu_gap(y3d, scale, shift, res3d):
    n, _, npad = y3d.shape
    return pl.pallas_call(
        _affine_res_gap_kernel,
        out_shape=jax.ShapeDtypeStruct((n, npad), jnp.bfloat16),
        in_specs=[_vspec()] * 4,
        out_specs=_vspec(),
    )(y3d, scale, shift, res3d)


# ----------------------------------------------------------------------------
# MaxPool: elementwise max over the k*k phase slices on a lane-dense view.
# ----------------------------------------------------------------------------
def _max_kernel(*refs):
    o_ref = refs[-1]
    m = refs[0][...]
    for r in refs[1:-1]:
        m = jnp.maximum(m, r[...])
    o_ref[...] = m


def maxpool2d(x, k):
    """Non-overlapping k x k max pool (stride = k), matching nn.MaxPool2d(k)."""
    N, H, W, C = x.shape
    Ho, Wo = H // k, W // k
    M = N * Ho * Wo
    view = ((M * C) // 128, 128) if (M * C) % 128 == 0 else (M, C)
    slices = []
    for i in range(k):
        for j in range(k):
            s = x[:, i : (Ho - 1) * k + i + 1 : k, j : (Wo - 1) * k + j + 1 : k, :]
            slices.append(s.reshape(view))
    # TODO(synk): for production sizes, tile the row axis and read x once with
    # strided in-kernel loads instead of k^2 XLA phase slices.
    y = pl.pallas_call(
        _max_kernel,
        out_shape=jax.ShapeDtypeStruct(view, x.dtype),
        in_specs=[_vspec()] * len(slices),
        out_specs=_vspec(),
    )(*slices)
    return y.reshape(N, Ho, Wo, C)


# ----------------------------------------------------------------------------
# Fused MLP head (single pallas_call; batch is tiny -> launch-bound).
# ----------------------------------------------------------------------------
def _mlp_kernel(*refs, n_layers):
    x_ref = refs[0]
    o_ref = refs[-1]
    h = x_ref[...]
    for l in range(n_layers):
        w_ref = refs[1 + 2 * l]
        b_ref = refs[2 + 2 * l]
        h = jnp.dot(h.astype(w_ref.dtype), w_ref[...],
                    preferred_element_type=jnp.float32) + b_ref[...]
        if l < n_layers - 1:
            h = jnp.maximum(h, 0.0)
    o_ref[...] = h.astype(o_ref.dtype)


def mlp_forward(feat, mlp_params, out_classes):
    B, _ = feat.shape
    Bp = _round_up(B, 8)
    args = [jnp.pad(feat, ((0, Bp - B), (0, 0)))]
    for w, b in mlp_params:  # weights/biases are pre-padded bf16 / f32 at init
        args += [w, b]
    last_np = mlp_params[-1][0].shape[1]
    out = pl.pallas_call(
        functools.partial(_mlp_kernel, n_layers=len(mlp_params)),
        out_shape=jax.ShapeDtypeStruct((Bp, last_np), jnp.float32),
        in_specs=[_vspec()] * len(args),
        out_specs=_vspec(),
    )(*args)
    return out[:B, :out_classes]


# ----------------------------------------------------------------------------
# Parameter initialization (deterministic synthetic weights; torchvision
# weights=None).  Weights are stored already reshaped / lane-padded / bf16.
# ----------------------------------------------------------------------------
RESNET_LAYERS = (
    ("layer1", 64, 64, 1),
    ("layer2", 64, 128, 2),
    ("layer3", 128, 256, 2),
    ("layer4", 256, 512, 2),
)


class KeyGen:
    def __init__(self, key):
        self.key = key
        self.i = 0

    def __call__(self):
        self.i += 1
        return jax.random.fold_in(self.key, self.i)


def _prep_conv_w(w_hwio):
    kh, kw, cin, cout = w_hwio.shape
    K = kh * kw * cin
    Kp = _round_up(K, 128)
    Np = _round_up(cout, 128)
    w2d = w_hwio.reshape(K, cout)
    return jnp.pad(w2d, ((0, Kp - K), (0, Np - cout))).astype(jnp.bfloat16)


def _prep_bias(b):
    c = b.shape[0]
    Np = _round_up(c, 128)
    return jnp.pad(b, (0, Np - c)).astype(jnp.float32).reshape(1, Np)


def _bn_params(c):
    return jnp.ones((c,), jnp.float32), jnp.zeros((c,), jnp.float32)


def init_params(key, in_channels, channels, hidden_dims, out_classes, conv_k):
    kg = KeyGen(key)
    params = {}

    # Custom feature extractor: [(CONV -> ReLU)*P -> MaxPool]*(N/P)
    fe = []
    cprev = in_channels
    for c in channels:
        w = 0.05 * jax.random.normal(kg(), (conv_k, conv_k, cprev, c), jnp.float32)
        b = 0.01 * jax.random.normal(kg(), (c,), jnp.float32)
        fe.append({"w2d": _prep_conv_w(w), "b": _prep_bias(b)})
        cprev = c
    params["feature_extractor"] = fe

    # ResNet18 feature extractor (conv1 takes channels[-1] inputs, maxpool=Identity,
    # fc removed).  Strides / kernel sizes are static (RESNET_LAYERS), never traced.
    rp = {"conv1_w2d": _prep_conv_w(
        0.05 * jax.random.normal(kg(), (7, 7, channels[-1], 64), jnp.float32))}
    rp["bn1_g"], rp["bn1_b"] = _bn_params(64)

    def make_block(cin, cout, downsample):
        blk = {"conv1_w2d": _prep_conv_w(
            0.05 * jax.random.normal(kg(), (3, 3, cin, cout), jnp.float32))}
        blk["bn1_g"], blk["bn1_b"] = _bn_params(cout)
        blk["conv2_w2d"] = _prep_conv_w(
            0.05 * jax.random.normal(kg(), (3, 3, cout, cout), jnp.float32))
        blk["bn2_g"], blk["bn2_b"] = _bn_params(cout)
        if downsample:
            blk["down_w2d"] = _prep_conv_w(
                0.05 * jax.random.normal(kg(), (1, 1, cin, cout), jnp.float32))
            blk["down_g"], blk["down_b"] = _bn_params(cout)
        return blk

    for name, cin, cout, stride in RESNET_LAYERS:
        rp[name] = [
            make_block(cin, cout, downsample=(stride != 1 or cin != cout)),
            make_block(cout, cout, downsample=False),
        ]
    params["resnet"] = rp

    # MLP: (FC -> ReLU)*M -> FC, in_features = 512 (resnet avgpool output).
    mlp = []
    fin, fin_p = 512, 512
    for d in list(hidden_dims) + [out_classes]:
        w = 0.05 * jax.random.normal(kg(), (fin, d), jnp.float32)
        b = 0.01 * jax.random.normal(kg(), (d,), jnp.float32)
        dp = _round_up(d, 128)
        wp = jnp.pad(w, ((0, fin_p - fin), (0, dp - d))).astype(jnp.bfloat16)
        bp = jnp.pad(b, (0, dp - d)).astype(jnp.float32).reshape(1, dp)
        mlp.append((wp, bp))
        fin, fin_p = d, dp
    params["mlp"] = mlp
    return params


# ----------------------------------------------------------------------------
# Forward pass.
# ----------------------------------------------------------------------------
def basic_block(x, blk, *, stride, final_gap=False):
    N, H, W, C = x.shape
    cout = blk["bn1_g"].shape[0]
    downsample = "down_w2d" in blk

    # conv1 (stats fused) -> bn1 + ReLU
    y1, s0, s1, (_, Ho, Wo) = conv_stats(x, blk["conv1_w2d"], kh=3, kw=3,
                                         stride=stride, padding=1)
    M = N * Ho * Wo
    sc1, sh1 = bn_scale_shift(s0, s1, blk["bn1_g"], blk["bn1_b"], float(M))
    h1 = bn_apply(y1, sc1, sh1, relu=True)[:M, :cout].reshape(N, Ho, Wo, cout)

    # conv2 (stats fused); bn2 + residual + ReLU fused below
    y2, t0, t1, _ = conv_stats(h1, blk["conv2_w2d"], kh=3, kw=3, stride=1, padding=1)
    sc2, sh2 = bn_scale_shift(t0, t1, blk["bn2_g"], blk["bn2_b"], float(M))
    Mp, Np = y2.shape

    if downsample:
        yd, d0, d1, _ = conv_stats(x, blk["down_w2d"], kh=1, kw=1,
                                   stride=stride, padding=0)
        scd, shd = bn_scale_shift(d0, d1, blk["down_g"], blk["down_b"], float(M))
        out2d = bn_apply_dual(y2, sc2, sh2, yd, scd, shd, relu=True)
        return out2d[:M, :cout].reshape(N, Ho, Wo, cout)

    if final_gap:
        # bn2 + identity residual + ReLU + global average pool fused in one call.
        hw = Ho * Wo
        x3 = y2[:M].reshape(N, hw, Np)
        r3 = x.reshape(N, hw, C)
        if Np > C:
            r3 = jnp.pad(r3, ((0, 0), (0, 0), (0, Np - C)))
        feat = bn_apply_res_relu_gap(x3, sc2.reshape(1, 1, Np),
                                     sh2.reshape(1, 1, Np), r3)
        return feat[:, :cout]  # (N, cout)

    r2d = x.reshape(M, C)
    if Mp > M or Np > C:
        r2d = jnp.pad(r2d, ((0, Mp - M), (0, Np - C)))
    out2d = bn_apply_res(y2, sc2, sh2, r2d, relu=True)
    return out2d[:M, :cout].reshape(N, Ho, Wo, cout)


def resnet18_features(x, rp):
    N = x.shape[0]
    y, s0, s1, (_, Ho, Wo) = conv_stats(x, rp["conv1_w2d"], kh=7, kw=7,
                                        stride=2, padding=3)
    M = N * Ho * Wo
    sc, sh = bn_scale_shift(s0, s1, rp["bn1_g"], rp["bn1_b"], float(M))
    x = bn_apply(y, sc, sh, relu=True)[:M, :64].reshape(N, Ho, Wo, 64)
    # resnet.maxpool was replaced with nn.Identity() in the reference module.
    for name, _cin, _cout, stride in RESNET_LAYERS:
        blocks = rp[name]
        is_last = name == "layer4"
        x = basic_block(x, blocks[0], stride=stride)
        x = basic_block(x, blocks[1], stride=1, final_gap=is_last)
    return x  # (N, 512) bf16 features (GAP fused into the last block)


def cnn_forward(x_nchw, params, *, channels, conv_k, conv_padding,
                pool_every, pool_k, out_classes):
    # PyTorch NCHW -> NHWC, cast to bf16 once at entry.
    x = jnp.transpose(x_nchw, (0, 2, 3, 1)).astype(jnp.bfloat16)
    # [(CONV -> ReLU)*P -> MaxPool]*(N/P)
    for i, layer in enumerate(params["feature_extractor"]):
        x = conv_bias_relu(x, layer["w2d"], layer["b"], kh=conv_k, kw=conv_k,
                           cout=channels[i], stride=1, padding=conv_padding)
        if (i + 1) % pool_every == 0:
            x = maxpool2d(x, pool_k)
    # ResNet18 feature extractor (through fused global avg-pool) -> (N, 512)
    feat = resnet18_features(x, params["resnet"])
    # Fused MLP head: (FC -> ReLU)*M -> FC
    return mlp_forward(feat, params["mlp"], out_classes)


# ----------------------------------------------------------------------------
if __name__ == "__main__":
    # Small config consistent with the module:
    #   in_size=(3,16,16), channels=[8,8], pool_every=2, hidden_dims=[32],
    #   conv_params={'kernel_size':3,'padding':1}, pooling_params={'kernel_size':2},
    #   activation='relu', pooling='max', out_classes=10, batch=2.
    in_size = (3, 16, 16)
    channels = [8, 8]
    pool_every = 2
    hidden_dims = [32]
    out_classes = 10
    conv_k, conv_pad = 3, 1
    pool_k = 2
    batch = 2

    key = jax.random.PRNGKey(0)
    kx, kp = jax.random.split(key)
    x = jax.random.normal(kx, (batch,) + in_size, dtype=jnp.float32)  # NCHW like PyTorch

    params = init_params(kp, in_size[0], channels, hidden_dims, out_classes, conv_k)

    fwd = jax.jit(
        functools.partial(
            cnn_forward,
            channels=tuple(channels),
            conv_k=conv_k,
            conv_padding=conv_pad,
            pool_every=pool_every,
            pool_k=pool_k,
            out_classes=out_classes,
        )
    )
    out = jax.block_until_ready(fwd(x, params))

    assert out.shape == (batch, out_classes), out.shape
    assert bool(jnp.all(jnp.isfinite(out)))
    print("KERNEL_OK")
</pallas_src>

<mosaic_0001>
module attributes {stable_mosaic.version = 11 : i64} {
  func.func @_mm_bias_kernel(%arg0: i32, %arg1: i32, %arg2: i32, %arg3: memref<512x128xbf16, #tpu.memory_space<vmem>>, %arg4: memref<128x128xbf16, #tpu.memory_space<vmem>>, %arg5: memref<1x128xf32, #tpu.memory_space<vmem>>, %arg6: memref<512x128xbf16, #tpu.memory_space<vmem>>, %arg7: memref<512x128xf32, #tpu.memory_space<vmem>>) attributes {dimension_semantics = [#tpu.dimension_semantics<parallel>, #tpu.dimension_semantics<parallel>, #tpu.dimension_semantics<arbitrary>], iteration_bounds = array<i64: 1, 1, 1>, scalar_prefetch = 0 : i64, scratch_operands = 1 : i64, tpu.core_type = #tpu.core_type<tc>, window_params = [{transform_indices = @transform_0, window_bounds = array<i64: 512, 128>}, {transform_indices = @transform_1, window_bounds = array<i64: 128, 128>}, {transform_indices = @transform_2, window_bounds = array<i64: 1, 128>}, {transform_indices = @transform_3, window_bounds = array<i64: 512, 128>}]} {
    %c0_i32 = arith.constant 0 : i32
    %0 = arith.cmpi eq, %arg2, %c0_i32 : i32
    %1 = arith.extui %0 : i1 to i32
    %c0_i32_0 = arith.constant 0 : i32
    %2 = arith.cmpi ne, %1, %c0_i32_0 : i32
    scf.if %2 {
      %cst_10 = arith.constant 0.000000e+00 : f32
      %12 = vector.broadcast %cst_10 : f32 to vector<512x128xf32>
      %c0_11 = arith.constant 0 : index
      %c0_12 = arith.constant 0 : index
      %13 = vector.load %arg7[%c0_11, %c0_12] : memref<512x128xf32, #tpu.memory_space<vmem>>, vector<512x128xf32>
      tpu.vector_store %arg7[%c0_11, %c0_12], %12 {strides = array<i32>} : memref<512x128xf32, #tpu.memory_space<vmem>>, vector<512x128xf32>,
    } else {
    }
    %c0 = arith.constant 0 : index
    %c0_1 = arith.constant 0 : index
    %3 = vector.load %arg7[%c0, %c0_1] : memref<512x128xf32, #tpu.memory_space<vmem>>, vector<512x128xf32>
    %c0_2 = arith.constant 0 : index
    %c0_3 = arith.constant 0 : index
    %4 = vector.load %arg3[%c0_2, %c0_3] : memref<512x128xbf16, #tpu.memory_space<vmem>>, vector<512x128xbf16>
    %c0_4 = arith.constant 0 : index
    %c0_5 = arith.constant 0 : index
    %5 = vector.load %arg4[%c0_4, %c0_5] : memref<128x128xbf16, #tpu.memory_space<vmem>>, vector<128x128xbf16>
    %cst = arith.constant dense<0.000000e+00> : vector<512x128xf32>
    %6 = tpu.matmul %4, %5, %cst {dimension_numbers = #tpu.dot_dimension_numbers<[1], [0], [0], [1], [0, 0, 1, 1], [], []>} : vector<512x128xbf16>, vector<128x128xbf16>, vector<512x128xf32> -> vector<512x128xf32>
    %7 = arith.addf %3, %6 : vector<512x128xf32>
    %c0_6 = arith.constant 0 : index
    %c0_7 = arith.constant 0 : index
    %8 = vector.load %arg7[%c0_6, %c0_7] : memref<512x128xf32, #tpu.memory_space<vmem>>, vector<512x128xf32>
    tpu.vector_store %arg7[%c0_6, %c0_7], %7 {strides = array<i32>} : memref<512x128xf32, #tpu.memory_space<vmem>>, vector<512x128xf32>,
    %c0_i32_8 = arith.constant 0 : i32
    %9 = arith.cmpi eq, %arg2, %c0_i32_8 : i32
    %10 = arith.extui %9 : i1 to i32
    %c0_i32_9 = arith.constant 0 : i32
    %11 = arith.cmpi ne, %10, %c0_i32_9 : i32
    scf.if %11 {
      %c0_10 = arith.constant 0 : index
      %c0_11 = arith.constant 0 : index
      %12 = vector.load %arg7[%c0_10, %c0_11] : memref<512x128xf32, #tpu.memory_space<vmem>>, vector<512x128xf32>
      %c0_12 = arith.constant 0 : index
      %c0_13 = arith.constant 0 : index
      %13 = vector.load %arg5[%c0_12, %c0_13] : memref<1x128xf32, #tpu.memory_space<vmem>>, vector<1x128xf32>
      %14 = vector.broadcast %13 : vector<1x128xf32> to vector<512x128xf32>
      %15 = arith.addf %12, %14 : vector<512x128xf32>
      %cst_14 = arith.constant 0.000000e+00 : f32
      %16 = vector.broadcast %cst_14 : f32 to vector<512x128xf32>
      %17 = arith.maximumf %15, %16 : vector<512x128xf32>
      %18 = arith.truncf %17 : vector<512x128xf32> to vector<512x128xbf16>
      %c0_15 = arith.constant 0 : index
      %c0_16 = arith.constant 0 : index
      %19 = vector.load %arg6[%c0_15, %c0_16] : memref<512x128xbf16, #tpu.memory_space<vmem>>, vector<512x128xbf16>
      tpu.vector_store %arg6[%c0_15, %c0_16], %18 {strides = array<i32>} : memref<512x128xbf16, #tpu.memory_space<vmem>>, vector<512x128xbf16>,
    } else {
    }
    return
  }
  func.func @transform_0(%arg0: i32, %arg1: i32, %arg2: i32) -> (i32, i32) {
    %c0_i32 = arith.constant 0 : i32
    return %arg1, %arg2 : i32, i32
  }
  func.func @transform_1(%arg0: i32, %arg1: i32, %arg2: i32) -> (i32, i32) {
    %c0_i32 = arith.constant 0 : i32
    return %arg2, %arg0 : i32, i32
  }
  func.func @transform_2(%arg0: i32, %arg1: i32, %arg2: i32) -> (i32, i32) {
    %c0_i32 = arith.constant 0 : i32
    %c0_i32_0 = arith.constant 0 : i32
    return %c0_i32, %arg0 : i32, i32
  }
  func.func @transform_3(%arg0: i32, %arg1: i32, %arg2: i32) -> (i32, i32) {
    %c0_i32 = arith.constant 0 : i32
    return %arg1, %arg0 : i32, i32
  }
}

module attributes {stable_mosaic.version = 11 : i64} {
  func.func @_mm_bias_kernel(%arg0: i32, %arg1: i32, %arg2: i32, %arg3: memref<512x128xbf16, #tpu.memory_space<vmem>>, %arg4: memref<128x128xbf16, #tpu.memory_space<vmem>>, %arg5: memref<1x128xf32, #tpu.memory_space<vmem>>, %arg6: memref<512x128xbf16, #tpu.memory_space<vmem>>, %arg7: memref<512x128xf32, #tpu.memory_space<vmem>>) attributes {dimension_semantics = [#tpu.dimension_semantics<parallel>, #tpu.dimension_semantics<parallel>, #tpu.dimension_semantics<arbitrary>], iteration_bounds = array<i64: 1, 1, 1>, scalar_prefetch = 0 : i64, scratch_operands = 1 : i64, tpu.core_type = #tpu.core_type<tc>, window_params = [{transform_indices = @transform_0, window_bounds = array<i64: 512, 128>}, {transform_indices = @transform_1, window_bounds = array<i64: 128, 128>}, {transform_indices = @transform_2, window_bounds = array<i64: 1, 128>}, {transform_indices = @transform_3, window_bounds = array<i64: 512, 128>}]} {
    %c0_i32 = arith.constant 0 : i32
    %0 = arith.cmpi eq, %arg2, %c0_i32 : i32
    %1 = arith.extui %0 : i1 to i32
    %c0_i32_0 = arith.constant 0 : i32
    %2 = arith.cmpi ne, %1, %c0_i32_0 : i32
    scf.if %2 {
      %cst_10 = arith.constant 0.000000e+00 : f32
      %12 = vector.broadcast %cst_10 : f32 to vector<512x128xf32>
      %c0_11 = arith.constant 0 : index
      %c0_12 = arith.constant 0 : index
      %13 = vector.load %arg7[%c0_11, %c0_12] : memref<512x128xf32, #tpu.memory_space<vmem>>, vector<512x128xf32>
      tpu.vector_store %arg7[%c0_11, %c0_12], %12 {strides = array<i32>} : memref<512x128xf32, #tpu.memory_space<vmem>>, vector<512x128xf32>,
    } else {
    }
    %c0 = arith.constant 0 : index
    %c0_1 = arith.constant 0 : index
    %3 = vector.load %arg7[%c0, %c0_1] : memref<512x128xf32, #tpu.memory_space<vmem>>, vector<512x128xf32>
    %c0_2 = arith.constant 0 : index
    %c0_3 = arith.constant 0 : index
    %4 = vector.load %arg3[%c0_2, %c0_3] : memref<512x128xbf16, #tpu.memory_space<vmem>>, vector<512x128xbf16>
    %c0_4 = arith.constant 0 : index
    %c0_5 = arith.constant 0 : index
    %5 = vector.load %arg4[%c0_4, %c0_5] : memref<128x128xbf16, #tpu.memory_space<vmem>>, vector<128x128xbf16>
    %cst = arith.constant dense<0.000000e+00> : vector<512x128xf32>
    %6 = tpu.matmul %4, %5, %cst {dimension_numbers = #tpu.dot_dimension_numbers<[1], [0], [0], [1], [0, 0, 1, 1], [], []>} : vector<512x128xbf16>, vector<128x128xbf16>, vector<512x128xf32> -> vector<512x128xf32>
    %7 = arith.addf %3, %6 : vector<512x128xf32>
    %c0_6 = arith.constant 0 : index
    %c0_7 = arith.constant 0 : index
    %8 = vector.load %arg7[%c0_6, %c0_7] : memref<512x128xf32, #tpu.memory_space<vmem>>, vector<512x128xf32>
    tpu.vector_store %arg7[%c0_6, %c0_7], %7 {strides = array<i32>} : memref<512x128xf32, #tpu.memory_space<vmem>>, vector<512x128xf32>,
    %c0_i32_8 = arith.constant 0 : i32
    %9 = arith.cmpi eq, %arg2, %c0_i32_8 : i32
    %10 = arith.extui %9 : i1 to i32
    %c0_i32_9 = arith.constant 0 : i32
    %11 = arith.cmpi ne, %10, %c0_i32_9 : i32
    scf.if %11 {
      %c0_10 = arith.constant 0 : index
      %c0_11 = arith.constant 0 : index
      %12 = vector.load %arg7[%c0_10, %c0_11] : memref<512x128xf32, #tpu.memory_space<vmem>>, vector<512x128xf32>
      %c0_12 = arith.constant 0 : index
      %c0_13 = arith.constant 0 : index
      %13 = vector.load %arg5[%c0_12, %c0_13] : memref<1x128xf32, #tpu.memory_space<vmem>>, vector<1x128xf32>
      %14 = vector.broadcast %13 : vector<1x128xf32> to vector<512x128xf32>
      %15 = arith.addf %12, %14 : vector<512x128xf32>
      %cst_14 = arith.constant 0.000000e+00 : f32
      %16 = vector.broadcast %cst_14 : f32 to vector<512x128xf32>
      %17 = arith.maximumf %15, %16 : vector<512x128xf32>
      %18 = arith.truncf %17 : vector<512x128xf32> to vector<512x128xbf16>
      %c0_15 = arith.constant 0 : index
      %c0_16 = arith.constant 0 : index
      %19 = vector.load %arg6[%c0_15, %c0_16] : memref<512x128xbf16, #tpu.memory_space<vmem>>, vector<512x128xbf16>
      tpu.vector_store %arg6[%c0_15, %c0_16], %18 {strides = array<i32>} : memref<512x128xbf16, #tpu.memory_space<vmem>>, vector<512x128xbf16>,
    } else {
    }
    return
  }
  func.func @transform_0(%arg0: i32, %arg1: i32, %arg2: i32) -> (i32, i32) {
    %c0_i32 = arith.constant 0 : i32
    return %arg1, %arg2 : i32, i32
  }
  func.func @transform_1(%arg0: i32, %arg1: i32, %arg2: i32) -> (i32, i32) {
    %c0_i32 = arith.constant 0 : i32
    return %arg2, %arg0 : i32, i32
  }
  func.func @transform_2(%arg0: i32, %arg1: i32, %arg2: i32) -> (i32, i32) {
    %c0_i32 = arith.constant 0 : i32
    %c0_i32_0 = arith.constant 0 : i32
    return %c0_i32, %arg0 : i32, i32
  }
  func.func @transform_3(%arg0: i32, %arg1: i32, %arg2: i32) -> (i32, i32) {
    %c0_i32 = arith.constant 0 : i32
    return %arg1, %arg0 : i32, i32
  }
}

module attributes {stable_mosaic.version = 11 : i64} {
  func.func @_max_kernel(%arg0: memref<8x128xbf16, #tpu.memory_space<vmem>>, %arg1: memref<8x128xbf16, #tpu.memory_space<vmem>>, %arg2: memref<8x128xbf16, #tpu.memory_space<vmem>>, %arg3: memref<8x128xbf16, #tpu.memory_space<vmem>>, %arg4: memref<8x128xbf16, #tpu.memory_space<vmem>>) attributes {dimension_semantics = [], scalar_prefetch = 0 : i64, scratch_operands = 0 : i64, tpu.core_type = #tpu.core_type<tc>} {
    %c0 = arith.constant 0 : index
    %c0_0 = arith.constant 0 : index
    %0 = vector.load %arg0[%c0, %c0_0] : memref<8x128xbf16, #tpu.memory_space<vmem>>, vector<8x128xbf16>
    %c0_1 = arith.constant 0 : index
    %c0_2 = arith.constant 0 : index
    %1 = vector.load %arg1[%c0_1, %c0_2] : memref<8x128xbf16, #tpu.memory_space<vmem>>, vector<8x128xbf16>
    %2 = arith.maximumf %0, %1 : vector<8x128xbf16>
    %c0_3 = arith.constant 0 : index
    %c0_4 = arith.constant 0 : index
    %3 = vector.load %arg2[%c0_3, %c0_4] : memref<8x128xbf16, #tpu.memory_space<vmem>>, vector<8x128xbf16>
    %4 = arith.maximumf %2, %3 : vector<8x128xbf16>
    %c0_5 = arith.constant 0 : index
    %c0_6 = arith.constant 0 : index
    %5 = vector.load %arg3[%c0_5, %c0_6] : memref<8x128xbf16, #tpu.memory_space<vmem>>, vector<8x128xbf16>
    %6 = arith.maximumf %4, %5 : vector<8x128xbf16>
    %c0_7 = arith.constant 0 : index
    %c0_8 = arith.constant 0 : index
    %7 = vector.load %arg4[%c0_7, %c0_8] : memref<8x128xbf16, #tpu.memory_space<vmem>>, vector<8x128xbf16>
    tpu.vector_store %arg4[%c0_7, %c0_8], %6 {strides = array<i32>} : memref<8x128xbf16, #tpu.memory_space<vmem>>, vector<8x128xbf16>,
    return
  }
}

module attributes {stable_mosaic.version = 11 : i64} {
  func.func @_mm_stats_kernel(%arg0: i32, %arg1: i32, %arg2: i32, %arg3: memref<32x512xbf16, #tpu.memory_space<vmem>>, %arg4: memref<512x128xbf16, #tpu.memory_space<vmem>>, %arg5: memref<32x128xbf16, #tpu.memory_space<vmem>>, %arg6: memref<1x128xf32, #tpu.memory_space<vmem>>, %arg7: memref<1x128xf32, #tpu.memory_space<vmem>>, %arg8: memref<32x128xf32, #tpu.memory_space<vmem>>) attributes {dimension_semantics = [#tpu.dimension_semantics<parallel>, #tpu.dimension_semantics<arbitrary>, #tpu.dimension_semantics<arbitrary>], iteration_bounds = array<i64: 1, 1, 1>, scalar_prefetch = 0 : i64, scratch_operands = 1 : i64, tpu.core_type = #tpu.core_type<tc>, window_params = [{transform_indices = @transform_0, window_bounds = array<i64: 32, 512>}, {transform_indices = @transform_1, window_bounds = array<i64: 512, 128>}, {transform_indices = @transform_2, window_bounds = array<i64: 32, 128>}, {transform_indices = @transform_3, window_bounds = array<i64: 1, 128>}, {transform_indices = @transform_4, window_bounds = array<i64: 1, 128>}]} {
    %c0_i32 = arith.constant 0 : i32
    %0 = arith.cmpi eq, %arg2, %c0_i32 : i32
    %1 = arith.extui %0 : i1 to i32
    %c0_i32_0 = arith.constant 0 : i32
    %2 = arith.cmpi ne, %1, %c0_i32_0 : i32
    scf.if %2 {
      %cst_13 = arith.constant 0.000000e+00 : f32
      %17 = vector.broadcast %cst_13 : f32 to vector<32x128xf32>
      %c0_14 = arith.constant 0 : index
      %c0_15 = arith.constant 0 : index
      %18 = vector.load %arg8[%c0_14, %c0_15] : memref<32x128xf32, #tpu.memory_space<vmem>>, vector<32x128xf32>
      tpu.vector_store %arg8[%c0_14, %c0_15], %17 {strides = array<i32>} : memref<32x128xf32, #tpu.memory_space<vmem>>, vector<32x128xf32>,
    } else {
    }
    %c0_i32_1 = arith.constant 0 : i32
    %3 = arith.cmpi eq, %arg1, %c0_i32_1 : i32
    %c0_i32_2 = arith.constant 0 : i32
    %4 = arith.cmpi eq, %arg2, %c0_i32_2 : i32
    %5 = arith.andi %3, %4 : i1
    %6 = arith.extui %5 : i1 to i32
    %c0_i32_3 = arith.constant 0 : i32
    %7 = arith.cmpi ne, %6, %c0_i32_3 : i32
    scf.if %7 {
      %cst_13 = arith.constant 0.000000e+00 : f32
      %17 = vector.broadcast %cst_13 : f32 to vector<1x128xf32>
      %c0_14 = arith.constant 0 : index
      %c0_15 = arith.constant 0 : index
      %18 = vector.load %arg6[%c0_14, %c0_15] : memref<1x128xf32, #tpu.memory_space<vmem>>, vector<1x128xf32>
      tpu.vector_store %arg6[%c0_14, %c0_15], %17 {strides = array<i32>} : memref<1x128xf32, #tpu.memory_space<vmem>>, vector<1x128xf32>,
      %cst_16 = arith.constant 0.000000e+00 : f32
      %19 = vector.broadcast %cst_16 : f32 to vector<1x128xf32>
      %c0_17 = arith.constant 0 : index
      %c0_18 = arith.constant 0 : index
      %20 = vector.load %arg7[%c0_17, %c0_18] : memref<1x128xf32, #tpu.memory_space<vmem>>, vector<1x128xf32>
      tpu.vector_store %arg7[%c0_17, %c0_18], %19 {strides = array<i32>} : memref<1x128xf32, #tpu.memory_space<vmem>>, vector<1x128xf32>,
    } else {
    }
    %c0 = arith.constant 0 : index
    %c0_4 = arith.constant 0 : index
    %8 = vector.load %arg8[%c0, %c0_4] : memref<32x128xf32, #tpu.memory_space<vmem>>, vector<32x128xf32>
    %c0_5 = arith.constant 0 : index
    %c0_6 = arith.constant 0 : index
    %9 = vector.load %arg3[%c0_5, %c0_6] : memref<32x512xbf16, #tpu.memory_space<vmem>>, vector<32x512xbf16>
    %c0_7 = arith.constant 0 : index
    %c0_8 = arith.constant 0 : index
    %10 = vector.load %arg4[%c0_7, %c0_8] : memref<512x128xbf16, #tpu.memory_space<vmem>>, vector<512x128xbf16>
    %cst = arith.constant dense<0.000000e+00> : vector<32x128xf32>
    %11 = tpu.matmul %9, %10, %cst {dimension_numbers = #tpu.dot_dimension_numbers<[1], [0], [0], [1], [0, 0, 1, 1], [], []>} : vector<32x512xbf16>, vector<512x128xbf16>, vector<32x128xf32> -> vector<32x128xf32>
    %12 = arith.addf %8, %11 : vector<32x128xf32>
    %c0_9 = arith.constant 0 : index
    %c0_10 = arith.constant 0 : index
    %13 = vector.load %arg8[%c0_9, %c0_10] : memref<32x128xf32, #tpu.memory_space<vmem>>, vector<32x128xf32>
    tpu.vector_store %arg8[%c0_9, %c0_10], %12 {strides = array<i32>} : memref<32x128xf32, #tpu.memory_space<vmem>>, vector<32x128xf32>,
    %c0_i32_11 = arith.constant 0 : i32
    %14 = arith.cmpi eq, %arg2, %c0_i32_11 : i32
    %15 = arith.extui %14 : i1 to i32
    %c0_i32_12 = arith.constant 0 : i32
    %16 = arith.cmpi ne, %15, %c0_i32_12 : i32
    scf.if %16 {
      %c0_13 = arith.constant 0 : index
      %c0_14 = arith.constant 0 : index
      %17 = vector.load %arg8[%c0_13, %c0_14] : memref<32x128xf32, #tpu.memory_space<vmem>>, vector<32x128xf32>
      %18 = arith.truncf %17 : vector<32x128xf32> to vector<32x128xbf16>
      %c0_15 = arith.constant 0 : index
      %c0_16 = arith.constant 0 : index
      %19 = vector.load %arg5[%c0_15, %c0_16] : memref<32x128xbf16, #tpu.memory_space<vmem>>, vector<32x128xbf16>
      tpu.vector_store %arg5[%c0_15, %c0_16], %18 {strides = array<i32>} : memref<32x128xbf16, #tpu.memory_space<vmem>>, vector<32x128xbf16>,
      %c0_17 = arith.constant 0 : index
      %c0_18 = arith.constant 0 : index
      %20 = vector.load %arg6[%c0_17, %c0_18] : memref<1x128xf32, #tpu.memory_space<vmem>>, vector<1x128xf32>
      %cst_19 = arith.constant dense<0.000000e+00> : vector<128xf32>
      %21 = vector.multi_reduction <add>, %17, %cst_19 [0] : vector<32x128xf32> to vector<128xf32>
      %22 = vector.shape_cast %21 : vector<128xf32> to vector<1x128xf32>
      %23 = arith.addf %20, %22 : vector<1x128xf32>
      %c0_20 = arith.constant 0 : index
      %c0_21 = arith.constant 0 : index
      %24 = vector.load %arg6[%c0_20, %c0_21] : memref<1x128xf32, #tpu.memory_space<vmem>>, vector<1x128xf32>
      tpu.vector_store %arg6[%c0_20, %c0_21], %23 {strides = array<i32>} : memref<1x128xf32, #tpu.memory_space<vmem>>, vector<1x128xf32>,
      %c0_22 = arith.constant 0 : index
      %c0_23 = arith.constant 0 : index
      %25 = vector.load %arg7[%c0_22, %c0_23] : memref<1x128xf32, #tpu.memory_space<vmem>>, vector<1x128xf32>
      %26 = arith.mulf %17, %17 : vector<32x128xf32>
      %cst_24 = arith.constant dense<0.000000e+00> : vector<128xf32>
      %27 = vector.multi_reduction <add>, %26, %cst_24 [0] : vector<32x128xf32> to vector<128xf32>
      %28 = vector.shape_cast %27 : vector<128xf32> to vector<1x128xf32>
      %29 = arith.addf %25, %28 : vector<1x128xf32>
      %c0_25 = arith.constant 0 : index
      %c0_26 = arith.constant 0 : index
      %30 = vector.load %arg7[%c0_25, %c0_26] : memref<1x128xf32, #tpu.memory_space<vmem>>, vector<1x128xf32>
      tpu.vector_store %arg7[%c0_25, %c0_26], %29 {strides = array<i32>} : memref<1x128xf32, #tpu.memory_space<vmem>>, vector<1x128xf32>,
    } else {
    }
    return
  }
  func.func @transform_0(%arg0: i32, %arg1: i32, %arg2: i32) -> (i32, i32) {
    %c0_i32 = arith.constant 0 : i32
    return %arg1, %arg2 : i32, i32
  }
  func.func @transform_1(%arg0: i32, %arg1: i32, %arg2: i32) -> (i32, i32) {
    %c0_i32 = arith.constant 0 : i32
    return %arg2, %arg0 : i32, i32
  }
  func.func @transform_2(%arg0: i32, %arg1: i32, %arg2: i32) -> (i32, i32) {
    %c0_i32 = arith.constant 0 : i32
    return %arg1, %arg0 : i32, i32
  }
  func.func @transform_3(%arg0: i32, %arg1: i32, %arg2: i32) -> (i32, i32) {
    %c0_i32 = arith.constant 0 : i32
    %c0_i32_0 = arith.constant 0 : i32
    return %c0_i32, %arg0 : i32, i32
  }
  func.func @transform_4(%arg0: i32, %arg1: i32, %arg2: i32) -> (i32, i32) {
    %c0_i32 = arith.constant 0 : i32
    %c0_i32_0 = arith.constant 0 : i32
    return %c0_i32, %arg0 : i32, i32
  }
}

module attributes {stable_mosaic.version = 11 : i64} {
  func.func @_affine_kernel(%arg0: memref<32x128xbf16, #tpu.memory_space<vmem>>, %arg1: memref<1x128xf32, #tpu.memory_space<vmem>>, %arg2: memref<1x128xf32, #tpu.memory_space<vmem>>, %arg3: memref<32x128xbf16, #tpu.memory_space<vmem>>) attributes {dimension_semantics = [], scalar_prefetch = 0 : i64, scratch_operands = 0 : i64, tpu.core_type = #tpu.core_type<tc>} {
    %c0 = arith.constant 0 : index
    %c0_0 = arith.constant 0 : index
    %0 = vector.load %arg0[%c0, %c0_0] : memref<32x128xbf16, #tpu.memory_space<vmem>>, vector<32x128xbf16>
    %1 = arith.extf %0 : vector<32x128xbf16> to vector<32x128xf32>
    %c0_1 = arith.constant 0 : index
    %c0_2 = arith.constant 0 : index
    %2 = vector.load %arg1[%c0_1, %c0_2] : memref<1x128xf32, #tpu.memory_space<vmem>>, vector<1x128xf32>
    %3 = vector.broadcast %2 : vector<1x128xf32> to vector<32x128xf32>
    %4 = arith.mulf %1, %3 : vector<32x128xf32>
    %c0_3 = arith.constant 0 : index
    %c0_4 = arith.constant 0 : index
    %5 = vector.load %arg2[%c0_3, %c0_4] : memref<1x128xf32, #tpu.memory_space<vmem>>, vector<1x128xf32>
    %6 = vector.broadcast %5 : vector<1x128xf32> to vector<32x128xf32>
    %7 = arith.addf %4, %6 : vector<32x128xf32>
    %cst = arith.constant 0.000000e+00 : f32
    %8 = vector.broadcast %cst : f32 to vector<32x128xf32>
    %9 = arith.maximumf %7, %8 : vector<32x128xf32>
    %10 = arith.truncf %9 : vector<32x128xf32> to vector<32x128xbf16>
    %c0_5 = arith.constant 0 : index
    %c0_6 = arith.constant 0 : index
    %11 = vector.load %arg3[%c0_5, %c0_6] : memref<32x128xbf16, #tpu.memory_space<vmem>>, vector<32x128xbf16>
    tpu.vector_store %arg3[%c0_5, %c0_6], %10 {strides = array<i32>} : memref<32x128xbf16, #tpu.memory_space<vmem>>, vector<32x128xbf16>,
    return
  }
}

module attributes {stable_mosaic.version = 11 : i64} {
  func.func @_mm_stats_kernel(%arg0: i32, %arg1: i32, %arg2: i32, %arg3: memref<32x128xbf16, #tpu.memory_space<vmem>>, %arg4: memref<128x128xbf16, #tpu.memory_space<vmem>>, %arg5: memref<32x128xbf16, #tpu.memory_space<vmem>>, %arg6: memref<1x128xf32, #tpu.memory_space<vmem>>, %arg7: memref<1x128xf32, #tpu.memory_space<vmem>>, %arg8: memref<32x128xf32, #tpu.memory_space<vmem>>) attributes {dimension_semantics = [#tpu.dimension_semantics<parallel>, #tpu.dimension_semantics<arbitrary>, #tpu.dimension_semantics<arbitrary>], iteration_bounds = array<i64: 1, 1, 5>, scalar_prefetch = 0 : i64, scratch_operands = 1 : i64, tpu.core_type = #tpu.core_type<tc>, window_params = [{transform_indices = @transform_0, window_bounds = array<i64: 32, 128>}, {transform_indices = @transform_1, window_bounds = array<i64: 128, 128>}, {transform_indices = @transform_2, window_bounds = array<i64: 32, 128>}, {transform_indices = @transform_3, window_bounds = array<i64: 1, 128>}, {transform_indices = @transform_4, window_bounds = array<i64: 1, 128>}]} {
    %c0_i32 = arith.constant 0 : i32
    %0 = arith.cmpi eq, %arg2, %c0_i32 : i32
    %1 = arith.extui %0 : i1 to i32
    %c0_i32_0 = arith.constant 0 : i32
    %2 = arith.cmpi ne, %1, %c0_i32_0 : i32
    scf.if %2 {
      %cst_12 = arith.constant 0.000000e+00 : f32
      %17 = vector.broadcast %cst_12 : f32 to vector<32x128xf32>
      %c0_13 = arith.constant 0 : index
      %c0_14 = arith.constant 0 : index
      %18 = vector.load %arg8[%c0_13, %c0_14] : memref<32x128xf32, #tpu.memory_space<vmem>>, vector<32x128xf32>
      tpu.vector_store %arg8[%c0_13, %c0_14], %17 {strides = array<i32>} : memref<32x128xf32, #tpu.memory_space<vmem>>, vector<32x128xf32>,
    } else {
    }
    %c0_i32_1 = arith.constant 0 : i32
    %3 = arith.cmpi eq, %arg1, %c0_i32_1 : i32
    %c0_i32_2 = arith.constant 0 : i32
    %4 = arith.cmpi eq, %arg2, %c0_i32_2 : i32
    %5 = arith.andi %3, %4 : i1
    %6 = arith.extui %5 : i1 to i32
    %c0_i32_3 = arith.constant 0 : i32
    %7 = arith.cmpi ne, %6, %c0_i32_3 : i32
    scf.if %7 {
      %cst_12 = arith.constant 0.000000e+00 : f32
      %17 = vector.broadcast %cst_12 : f32 to vector<1x128xf32>
      %c0_13 = arith.constant 0 : index
      %c0_14 = arith.constant 0 : index
      %18 = vector.load %arg6[%c0_13, %c0_14] : memref<1x128xf32, #tpu.memory_space<vmem>>, vector<1x128xf32>
      tpu.vector_store %arg6[%c0_13, %c0_14], %17 {strides = array<i32>} : memref<1x128xf32, #tpu.memory_space<vmem>>, vector<1x128xf32>,
      %cst_15 = arith.constant 0.000000e+00 : f32
      %19 = vector.broadcast %cst_15 : f32 to vector<1x128xf32>
      %c0_16 = arith.constant 0 : index
      %c0_17 = arith.constant 0 : index
      %20 = vector.load %arg7[%c0_16, %c0_17] : memref<1x128xf32, #tpu.memory_space<vmem>>, vector<1x128xf32>
      tpu.vector_store %arg7[%c0_16, %c0_17], %19 {strides = array<i32>} : memref<1x128xf32, #tpu.memory_space<vmem>>, vector<1x128xf32>,
    } else {
    }
    %c0 = arith.constant 0 : index
    %c0_4 = arith.constant 0 : index
    %8 = vector.load %arg8[%c0, %c0_4] : memref<32x128xf32, #tpu.memory_space<vmem>>, vector<32x128xf32>
    %c0_5 = arith.constant 0 : index
    %c0_6 = arith.constant 0 : index
    %9 = vector.load %arg3[%c0_5, %c0_6] : memref<32x128xbf16, #tpu.memory_space<vmem>>, vector<32x128xbf16>
    %c0_7 = arith.constant 0 : index
    %c0_8 = arith.constant 0 : index
    %10 = vector.load %arg4[%c0_7, %c0_8] : memref<128x128xbf16, #tpu.memory_space<vmem>>, vector<128x128xbf16>
    %cst = arith.constant dense<0.000000e+00> : vector<32x128xf32>
    %11 = tpu.matmul %9, %10, %cst {dimension_numbers = #tpu.dot_dimension_numbers<[1], [0], [0], [1], [0, 0, 1, 1], [], []>} : vector<32x128xbf16>, vector<128x128xbf16>, vector<32x128xf32> -> vector<32x128xf32>
    %12 = arith.addf %8, %11 : vector<32x128xf32>
    %c0_9 = arith.constant 0 : index
    %c0_10 = arith.constant 0 : index
    %13 = vector.load %arg8[%c0_9, %c0_10] : memref<32x128xf32, #tpu.memory_space<vmem>>, vector<32x128xf32>
    tpu.vector_store %arg8[%c0_9, %c0_10], %12 {strides = array<i32>} : memref<32x128xf32, #tpu.memory_space<vmem>>, vector<32x128xf32>,
    %c4_i32 = arith.constant 4 : i32
    %14 = arith.cmpi eq, %arg2, %c4_i32 : i32
    %15 = arith.extui %14 : i1 to i32
    %c0_i32_11 = arith.constant 0 : i32
    %16 = arith.cmpi ne, %15, %c0_i32_11 : i32
    scf.if %16 {
      %c0_12 = arith.constant 0 : index
      %c0_13 = arith.constant 0 : index
      %17 = vector.load %arg8[%c0_12, %c0_13] : memref<32x128xf32, #tpu.memory_space<vmem>>, vector<32x128xf32>
      %18 = arith.truncf %17 : vector<32x128xf32> to vector<32x128xbf16>
      %c0_14 = arith.constant 0 : index
      %c0_15 = arith.constant 0 : index
      %19 = vector.load %arg5[%c0_14, %c0_15] : memref<32x128xbf16, #tpu.memory_space<vmem>>, vector<32x128xbf16>
      tpu.vector_store %arg5[%c0_14, %c0_15], %18 {strides = array<i32>} : memref<32x128xbf16, #tpu.memory_space<vmem>>, vector<32x128xbf16>,
      %c0_16 = arith.constant 0 : index
      %c0_17 = arith.constant 0 : index
      %20 = vector.load %arg6[%c0_16, %c0_17] : memref<1x128xf32, #tpu.memory_space<vmem>>, vector<1x128xf32>
      %cst_18 = arith.constant dense<0.000000e+00> : vector<128xf32>
      %21 = vector.multi_reduction <add>, %17, %cst_18 [0] : vector<32x128xf32> to vector<128xf32>
      %22 = vector.shape_cast %21 : vector<128xf32> to vector<1x128xf32>
      %23 = arith.addf %20, %22 : vector<1x128xf32>
      %c0_19 = arith.constant 0 : index
      %c0_20 = arith.constant 0 : index
      %24 = vector.load %arg6[%c0_19, %c0_20] : memref<1x128xf32, #tpu.memory_space<vmem>>, vector<1x128xf32>
      tpu.vector_store %arg6[%c0_19, %c0_20], %23 {strides = array<i32>} : memref<1x128xf32, #tpu.memory_space<vmem>>, vector<1x128xf32>,
      %c0_21 = arith.constant 0 : index
      %c0_22 = arith.constant 0 : index
      %25 = vector.load %arg7[%c0_21, %c0_22] : memref<1x128xf32, #tpu.memory_space<vmem>>, vector<1x128xf32>
      %26 = arith.mulf %17, %17 : vector<32x128xf32>
      %cst_23 = arith.constant dense<0.000000e+00> : vector<128xf32>
      %27 = vector.multi_reduction <add>, %26, %cst_23 [0] : vector<32x128xf32> to vector<128xf32>
      %28 = vector.shape_cast %27 : vector<128xf32> to vector<1x128xf32>
      %29 = arith.addf %25, %28 : vector<1x128xf32>
      %c0_24 = arith.constant 0 : index
      %c0_25 = arith.constant 0 : index
      %30 = vector.load %arg7[%c0_24, %c0_25] : memref<1x128xf32, #tpu.memory_space<vmem>>, vector<1x128xf32>
      tpu.vector_store %arg7[%c0_24, %c0_25], %29 {strides = array<i32>} : memref<1x128xf32, #tpu.memory_space<vmem>>, vector<1x128xf32>,
    } else {
    }
    return
  }
  func.func @transform_0(%arg0: i32, %arg1: i32, %arg2: i32) -> (i32, i32) {
    %c0_i32 = arith.constant 0 : i32
    return %arg1, %arg2 : i32, i32
  }
  func.func @transform_1(%arg0: i32, %arg1: i32, %arg2: i32) -> (i32, i32) {
    %c0_i32 = arith.constant 0 : i32
    return %arg2, %arg0 : i32, i32
  }
  func.func @transform_2(%arg0: i32, %arg1: i32, %arg2: i32) -> (i32, i32) {
    %c0_i32 = arith.constant 0 : i32
    return %arg1, %arg0 : i32, i32
  }
  func.func @transform_3(%arg0: i32, %arg1: i32, %arg2: i32) -> (i32, i32) {
    %c0_i32 = arith.constant 0 : i32
    %c0_i32_0 = arith.constant 0 : i32
    return %c0_i32, %arg0 : i32, i32
  }
  func.func @transform_4(%arg0: i32, %arg1: i32, %arg2: i32) -> (i32, i32) {
    %c0_i32 = arith.constant 0 : i32
    %c0_i32_0 = arith.constant 0 : i32
    return %c0_i32, %arg0 : i32, i32
  }
}

module attributes {stable_mosaic.version = 11 : i64} {
  func.func @_affine_res_kernel(%arg0: memref<32x128xbf16, #tpu.memory_space<vmem>>, %arg1: memref<1x128xf32, #tpu.memory_space<vmem>>, %arg2: memref<1x128xf32, #tpu.memory_space<vmem>>, %arg3: memref<32x128xbf16, #tpu.memory_space<vmem>>, %arg4: memref<32x128xbf16, #tpu.memory_space<vmem>>) attributes {dimension_semantics = [], scalar_prefetch = 0 : i64, scratch_operands = 0 : i64, tpu.core_type = #tpu.core_type<tc>} {
    %c0 = arith.constant 0 : index
    %c0_0 = arith.constant 0 : index
    %0 = vector.load %arg0[%c0, %c0_0] : memref<32x128xbf16, #tpu.memory_space<vmem>>, vector<32x128xbf16>
    %1 = arith.extf %0 : vector<32x128xbf16> to vector<32x128xf32>
    %c0_1 = arith.constant 0 : index
    %c0_2 = arith.constant 0 : index
    %2 = vector.load %arg1[%c0_1, %c0_2] : memref<1x128xf32, #tpu.memory_space<vmem>>, vector<1x128xf32>
    %3 = vector.broadcast %2 : vector<1x128xf32> to vector<32x128xf32>
    %4 = arith.mulf %1, %3 : vector<32x128xf32>
    %c0_3 = arith.constant 0 : index
    %c0_4 = arith.constant 0 : index
    %5 = vector.load %arg2[%c0_3, %c0_4] : memref<1x128xf32, #tpu.memory_space<vmem>>, vector<1x128xf32>
    %6 = vector.broadcast %5 : vector<1x128xf32> to vector<32x128xf32>
    %7 = arith.addf %4, %6 : vector<32x128xf32>
    %c0_5 = arith.constant 0 : index
    %c0_6 = arith.constant 0 : index
    %8 = vector.load %arg3[%c0_5, %c0_6] : memref<32x128xbf16, #tpu.memory_space<vmem>>, vector<32x128xbf16>
    %9 = arith.extf %8 : vector<32x128xbf16> to vector<32x128xf32>
    %10 = arith.addf %7, %9 : vector<32x128xf32>
    %cst = arith.constant 0.000000e+00 : f32
    %11 = vector.broadcast %cst : f32 to vector<32x128xf32>
    %12 = arith.maximumf %10, %11 : vector<32x128xf32>
    %13 = arith.truncf %12 : vector<32x128xf32> to vector<32x128xbf16>
    %c0_7 = arith.constant 0 : index
    %c0_8 = arith.constant 0 : index
    %14 = vector.load %arg4[%c0_7, %c0_8] : memref<32x128xbf16, #tpu.memory_space<vmem>>, vector<32x128xbf16>
    tpu.vector_store %arg4[%c0_7, %c0_8], %13 {strides = array<i32>} : memref<32x128xbf16, #tpu.memory_space<vmem>>, vector<32x128xbf16>,
    return
  }
}

module attributes {stable_mosaic.version = 11 : i64} {
  func.func @_mm_stats_kernel(%arg0: i32, %arg1: i32, %arg2: i32, %arg3: memref<8x128xbf16, #tpu.memory_space<vmem>>, %arg4: memref<128x128xbf16, #tpu.memory_space<vmem>>, %arg5: memref<8x128xbf16, #tpu.memory_space<vmem>>, %arg6: memref<1x128xf32, #tpu.memory_space<vmem>>, %arg7: memref<1x128xf32, #tpu.memory_space<vmem>>, %arg8: memref<8x128xf32, #tpu.memory_space<vmem>>) attributes {dimension_semantics = [#tpu.dimension_semantics<parallel>, #tpu.dimension_semantics<arbitrary>, #tpu.dimension_semantics<arbitrary>], iteration_bounds = array<i64: 1, 1, 5>, scalar_prefetch = 0 : i64, scratch_operands = 1 : i64, tpu.core_type = #tpu.core_type<tc>, window_params = [{transform_indices = @transform_0, window_bounds = array<i64: 8, 128>}, {transform_indices = @transform_1, window_bounds = array<i64: 128, 128>}, {transform_indices = @transform_2, window_bounds = array<i64: 8, 128>}, {transform_indices = @transform_3, window_bounds = array<i64: 1, 128>}, {transform_indices = @transform_4, window_bounds = array<i64: 1, 128>}]} {
    %c0_i32 = arith.constant 0 : i32
    %0 = arith.cmpi eq, %arg2, %c0_i32 : i32
    %1 = arith.extui %0 : i1 to i32
    %c0_i32_0 = arith.constant 0 : i32
    %2 = arith.cmpi ne, %1, %c0_i32_0 : i32
    scf.if %2 {
      %cst_12 = arith.constant 0.000000e+00 : f32
      %17 = vector.broadcast %cst_12 : f32 to vector<8x128xf32>
      %c0_13 = arith.constant 0 : index
      %c0_14 = arith.constant 0 : index
      %18 = vector.load %arg8[%c0_13, %c0_14] : memref<8x128xf32, #tpu.memory_space<vmem>>, vector<8x128xf32>
      tpu.vector_store %arg8[%c0_13, %c0_14], %17 {strides = array<i32>} : memref<8x128xf32, #tpu.memory_space<vmem>>, vector<8x128xf32>,
    } else {
    }
    %c0_i32_1 = arith.constant 0 : i32
    %3 = arith.cmpi eq, %arg1, %c0_i32_1 : i32
    %c0_i32_2 = arith.constant 0 : i32
    %4 = arith.cmpi eq, %arg2, %c0_i32_2 : i32
    %5 = arith.andi %3, %4 : i1
    %6 = arith.extui %5 : i1 to i32
    %c0_i32_3 = arith.constant 0 : i32
    %7 = arith.cmpi ne, %6, %c0_i32_3 : i32
    scf.if %7 {
      %cst_12 = arith.constant 0.000000e+00 : f32
      %17 = vector.broadcast %cst_12 : f32 to vector<1x128xf32>
      %c0_13 = arith.constant 0 : index
      %c0_14 = arith.constant 0 : index
      %18 = vector.load %arg6[%c0_13, %c0_14] : memref<1x128xf32, #tpu.memory_space<vmem>>, vector<1x128xf32>
      tpu.vector_store %arg6[%c0_13, %c0_14], %17 {strides = array<i32>} : memref<1x128xf32, #tpu.memory_space<vmem>>, vector<1x128xf32>,
      %cst_15 = arith.constant 0.000000e+00 : f32
      %19 = vector.broadcast %cst_15 : f32 to vector<1x128xf32>
      %c0_16 = arith.constant 0 : index
      %c0_17 = arith.constant 0 : index
      %20 = vector.load %arg7[%c0_16, %c0_17] : memref<1x128xf32, #tpu.memory_space<vmem>>, vector<1x128xf32>
      tpu.vector_store %arg7[%c0_16, %c0_17], %19 {strides = array<i32>} : memref<1x128xf32, #tpu.memory_space<vmem>>, vector<1x128xf32>,
    } else {
    }
    %c0 = arith.constant 0 : index
    %c0_4 = arith.constant 0 : index
    %8 = vector.load %arg8[%c0, %c0_4] : memref<8x128xf32, #tpu.memory_space<vmem>>, vector<8x128xf32>
    %c0_5 = arith.constant 0 : index
    %c0_6 = arith.constant 0 : index
    %9 = vector.load %arg3[%c0_5, %c0_6] : memref<8x128xbf16, #tpu.memory_space<vmem>>, vector<8x128xbf16>
    %c0_7 = arith.constant 0 : index
    %c0_8 = arith.constant 0 : index
    %10 = vector.load %arg4[%c0_7, %c0_8] : memref<128x128xbf16, #tpu.memory_space<vmem>>, vector<128x128xbf16>
    %cst = arith.constant dense<0.000000e+00> : vector<8x128xf32>
    %11 = tpu.matmul %9, %10, %cst {dimension_numbers = #tpu.dot_dimension_numbers<[1], [0], [0], [1], [0, 0, 1, 1], [], []>} : vector<8x128xbf16>, vector<128x128xbf16>, vector<8x128xf32> -> vector<8x128xf32>
    %12 = arith.addf %8, %11 : vector<8x128xf32>
    %c0_9 = arith.constant 0 : index
    %c0_10 = arith.constant 0 : index
    %13 = vector.load %arg8[%c0_9, %c0_10] : memref<8x128xf32, #tpu.memory_space<vmem>>, vector<8x128xf32>
    tpu.vector_store %arg8[%c0_9, %c0_10], %12 {strides = array<i32>} : memref<8x128xf32, #tpu.memory_space<vmem>>, vector<8x128xf32>,
    %c4_i32 = arith.constant 4 : i32
    %14 = arith.cmpi eq, %arg2, %c4_i32 : i32
    %15 = arith.extui %14 : i1 to i32
    %c0_i32_11 = arith.constant 0 : i32
    %16 = arith.cmpi ne, %15, %c0_i32_11 : i32
    scf.if %16 {
      %c0_12 = arith.constant 0 : index
      %c0_13 = arith.constant 0 : index
      %17 = vector.load %arg8[%c0_12, %c0_13] : memref<8x128xf32, #tpu.memory_space<vmem>>, vector<8x128xf32>
      %18 = arith.truncf %17 : vector<8x128xf32> to vector<8x128xbf16>
      %c0_14 = arith.constant 0 : index
      %c0_15 = arith.constant 0 : index
      %19 = vector.load %arg5[%c0_14, %c0_15] : memref<8x128xbf16, #tpu.memory_space<vmem>>, vector<8x128xbf16>
      tpu.vector_store %arg5[%c0_14, %c0_15], %18 {strides = array<i32>} : memref<8x128xbf16, #tpu.memory_space<vmem>>, vector<8x128xbf16>,
      %c0_16 = arith.constant 0 : index
      %c0_17 = arith.constant 0 : index
      %20 = vector.load %arg6[%c0_16, %c0_17] : memref<1x128xf32, #tpu.memory_space<vmem>>, vector<1x128xf32>
      %cst_18 = arith.constant dense<0.000000e+00> : vector<128xf32>
      %21 = vector.multi_reduction <add>, %17, %cst_18 [0] : vector<8x128xf32> to vector<128xf32>
      %22 = vector.shape_cast %21 : vector<128xf32> to vector<1x128xf32>
      %23 = arith.addf %20, %22 : vector<1x128xf32>
      %c0_19 = arith.constant 0 : index
      %c0_20 = arith.constant 0 : index
      %24 = vector.load %arg6[%c0_19, %c0_20] : memref<1x128xf32, #tpu.memory_space<vmem>>, vector<1x128xf32>
      tpu.vector_store %arg6[%c0_19, %c0_20], %23 {strides = array<i32>} : memref<1x128xf32, #tpu.memory_space<vmem>>, vector<1x128xf32>,
      %c0_21 = arith.constant 0 : index
      %c0_22 = arith.constant 0 : index
      %25 = vector.load %arg7[%c0_21, %c0_22] : memref<1x128xf32, #tpu.memory_space<vmem>>, vector<1x128xf32>
      %26 = arith.mulf %17, %17 : vector<8x128xf32>
      %cst_23 = arith.constant dense<0.000000e+00> : vector<128xf32>
      %27 = vector.multi_reduction <add>, %26, %cst_23 [0] : vector<8x128xf32> to vector<128xf32>
      %28 = vector.shape_cast %27 : vector<128xf32> to vector<1x128xf32>
      %29 = arith.addf %25, %28 : vector<1x128xf32>
      %c0_24 = arith.constant 0 : index
      %c0_25 = arith.constant 0 : index
      %30 = vector.load %arg7[%c0_24, %c0_25] : memref<1x128xf32, #tpu.memory_space<vmem>>, vector<1x128xf32>
      tpu.vector_store %arg7[%c0_24, %c0_25], %29 {strides = array<i32>} : memref<1x128xf32, #tpu.memory_space<vmem>>, vector<1x128xf32>,
    } else {
    }
    return
  }
  func.func @transform_0(%arg0: i32, %arg1: i32, %arg2: i32) -> (i32, i32) {
    %c0_i32 = arith.constant 0 : i32
    return %arg1, %arg2 : i32, i32
  }
  func.func @transform_1(%arg0: i32, %arg1: i32, %arg2: i32) -> (i32, i32) {
    %c0_i32 = arith.constant 0 : i32
    return %arg2, %arg0 : i32, i32
  }
  func.func @transform_2(%arg0: i32, %arg1: i32, %arg2: i32) -> (i32, i32) {
    %c0_i32 = arith.constant 0 : i32
    return %arg1, %arg0 : i32, i32
  }
  func.func @transform_3(%arg0: i32, %arg1: i32, %arg2: i32) -> (i32, i32) {
    %c0_i32 = arith.constant 0 : i32
    %c0_i32_0 = arith.constant 0 : i32
    return %c0_i32, %arg0 : i32, i32
  }
  func.func @transform_4(%arg0: i32, %arg1: i32, %arg2: i32) -> (i32, i32) {
    %c0_i32 = arith.constant 0 : i32
    %c0_i32_0 = arith.constant 0 : i32
    return %c0_i32, %arg0 : i32, i32
  }
}

module attributes {stable_mosaic.version = 11 : i64} {
  func.func @_affine_kernel(%arg0: memref<8x128xbf16, #tpu.memory_space<vmem>>, %arg1: memref<1x128xf32, #tpu.memory_space<vmem>>, %arg2: memref<1x128xf32, #tpu.memory_space<vmem>>, %arg3: memref<8x128xbf16, #tpu.memory_space<vmem>>) attributes {dimension_semantics = [], scalar_prefetch = 0 : i64, scratch_operands = 0 : i64, tpu.core_type = #tpu.core_type<tc>} {
    %c0 = arith.constant 0 : index
    %c0_0 = arith.constant 0 : index
    %0 = vector.load %arg0[%c0, %c0_0] : memref<8x128xbf16, #tpu.memory_space<vmem>>, vector<8x128xbf16>
    %1 = arith.extf %0 : vector<8x128xbf16> to vector<8x128xf32>
    %c0_1 = arith.constant 0 : index
    %c0_2 = arith.constant 0 : index
    %2 = vector.load %arg1[%c0_1, %c0_2] : memref<1x128xf32, #tpu.memory_space<vmem>>, vector<1x128xf32>
    %3 = vector.broadcast %2 : vector<1x128xf32> to vector<8x128xf32>
    %4 = arith.mulf %1, %3 : vector<8x128xf32>
    %c0_3 = arith.constant 0 : index
    %c0_4 = arith.constant 0 : index
    %5 = vector.load %arg2[%c0_3, %c0_4] : memref<1x128xf32, #tpu.memory_space<vmem>>, vector<1x128xf32>
    %6 = vector.broadcast %5 : vector<1x128xf32> to vector<8x128xf32>
    %7 = arith.addf %4, %6 : vector<8x128xf32>
    %cst = arith.constant 0.000000e+00 : f32
    %8 = vector.broadcast %cst : f32 to vector<8x128xf32>
    %9 = arith.maximumf %7, %8 : vector<8x128xf32>
    %10 = arith.truncf %9 : vector<8x128xf32> to vector<8x128xbf16>
    %c0_5 = arith.constant 0 : index
    %c0_6 = arith.constant 0 : index
    %11 = vector.load %arg3[%c0_5, %c0_6] : memref<8x128xbf16, #tpu.memory_space<vmem>>, vector<8x128xbf16>
    tpu.vector_store %arg3[%c0_5, %c0_6], %10 {strides = array<i32>} : memref<8x128xbf16, #tpu.memory_space<vmem>>, vector<8x128xbf16>,
    return
  }
}

module attributes {stable_mosaic.version = 11 : i64} {
  func.func @_mm_stats_kernel(%arg0: i32, %arg1: i32, %arg2: i32, %arg3: memref<8x128xbf16, #tpu.memory_space<vmem>>, %arg4: memref<128x128xbf16, #tpu.memory_space<vmem>>, %arg5: memref<8x128xbf16, #tpu.memory_space<vmem>>, %arg6: memref<1x128xf32, #tpu.memory_space<vmem>>, %arg7: memref<1x128xf32, #tpu.memory_space<vmem>>, %arg8: memref<8x128xf32, #tpu.memory_space<vmem>>) attributes {dimension_semantics = [#tpu.dimension_semantics<parallel>, #tpu.dimension_semantics<arbitrary>, #tpu.dimension_semantics<arbitrary>], iteration_bounds = array<i64: 1, 1, 9>, scalar_prefetch = 0 : i64, scratch_operands = 1 : i64, tpu.core_type = #tpu.core_type<tc>, window_params = [{transform_indices = @transform_0, window_bounds = array<i64: 8, 128>}, {transform_indices = @transform_1, window_bounds = array<i64: 128, 128>}, {transform_indices = @transform_2, window_bounds = array<i64: 8, 128>}, {transform_indices = @transform_3, window_bounds = array<i64: 1, 128>}, {transform_indices = @transform_4, window_bounds = array<i64: 1, 128>}]} {
    %c0_i32 = arith.constant 0 : i32
    %0 = arith.cmpi eq, %arg2, %c0_i32 : i32
    %1 = arith.extui %0 : i1 to i32
    %c0_i32_0 = arith.constant 0 : i32
    %2 = arith.cmpi ne, %1, %c0_i32_0 : i32
    scf.if %2 {
      %cst_12 = arith.constant 0.000000e+00 : f32
      %17 = vector.broadcast %cst_12 : f32 to vector<8x128xf32>
      %c0_13 = arith.constant 0 : index
      %c0_14 = arith.constant 0 : index
      %18 = vector.load %arg8[%c0_13, %c0_14] : memref<8x128xf32, #tpu.memory_space<vmem>>, vector<8x128xf32>
      tpu.vector_store %arg8[%c0_13, %c0_14], %17 {strides = array<i32>} : memref<8x128xf32, #tpu.memory_space<vmem>>, vector<8x128xf32>,
    } else {
    }
    %c0_i32_1 = arith.constant 0 : i32
    %3 = arith.cmpi eq, %arg1, %c0_i32_1 : i32
    %c0_i32_2 = arith.constant 0 : i32
    %4 = arith.cmpi eq, %arg2, %c0_i32_2 : i32
    %5 = arith.andi %3, %4 : i1
    %6 = arith.extui %5 : i1 to i32
    %c0_i32_3 = arith.constant 0 : i32
    %7 = arith.cmpi ne, %6, %c0_i32_3 : i32
    scf.if %7 {
      %cst_12 = arith.constant 0.000000e+00 : f32
      %17 = vector.broadcast %cst_12 : f32 to vector<1x128xf32>
      %c0_13 = arith.constant 0 : index
      %c0_14 = arith.constant 0 : index
      %18 = vector.load %arg6[%c0_13, %c0_14] : memref<1x128xf32, #tpu.memory_space<vmem>>, vector<1x128xf32>
      tpu.vector_store %arg6[%c0_13, %c0_14], %17 {strides = array<i32>} : memref<1x128xf32, #tpu.memory_space<vmem>>, vector<1x128xf32>,
      %cst_15 = arith.constant 0.000000e+00 : f32
      %19 = vector.broadcast %cst_15 : f32 to vector<1x128xf32>
      %c0_16 = arith.constant 0 : index
      %c0_17 = arith.constant 0 : index
      %20 = vector.load %arg7[%c0_16, %c0_17] : memref<1x128xf32, #tpu.memory_space<vmem>>, vector<1x128xf32>
      tpu.vector_store %arg7[%c0_16, %c0_17], %19 {strides = array<i32>} : memref<1x128xf32, #tpu.memory_space<vmem>>, vector<1x128xf32>,
    } else {
    }
    %c0 = arith.constant 0 : index
    %c0_4 = arith.constant 0 : index
    %8 = vector.load %arg8[%c0, %c0_4] : memref<8x128xf32, #tpu.memory_space<vmem>>, vector<8x128xf32>
    %c0_5 = arith.constant 0 : index
    %c0_6 = arith.constant 0 : index
    %9 = vector.load %arg3[%c0_5, %c0_6] : memref<8x128xbf16, #tpu.memory_space<vmem>>, vector<8x128xbf16>
    %c0_7 = arith.constant 0 : index
    %c0_8 = arith.constant 0 : index
    %10 = vector.load %arg4[%c0_7, %c0_8] : memref<128x128xbf16, #tpu.memory_space<vmem>>, vector<128x128xbf16>
    %cst = arith.constant dense<0.000000e+00> : vector<8x128xf32>
    %11 = tpu.matmul %9, %10, %cst {dimension_numbers = #tpu.dot_dimension_numbers<[1], [0], [0], [1], [0, 0, 1, 1], [], []>} : vector<8x128xbf16>, vector<128x128xbf16>, vector<8x128xf32> -> vector<8x128xf32>
    %12 = arith.addf %8, %11 : vector<8x128xf32>
    %c0_9 = arith.constant 0 : index
    %c0_10 = arith.constant 0 : index
    %13 = vector.load %arg8[%c0_9, %c0_10] : memref<8x128xf32, #tpu.memory_space<vmem>>, vector<8x128xf32>
    tpu.vector_store %arg8[%c0_9, %c0_10], %12 {strides = array<i32>} : memref<8x128xf32, #tpu.memory_space<vmem>>, vector<8x128xf32>,
    %c8_i32 = arith.constant 8 : i32
    %14 = arith.cmpi eq, %arg2, %c8_i32 : i32
    %15 = arith.extui %14 : i1 to i32
    %c0_i32_11 = arith.constant 0 : i32
    %16 = arith.cmpi ne, %15, %c0_i32_11 : i32
    scf.if %16 {
      %c0_12 = arith.constant 0 : index
      %c0_13 = arith.constant 0 : index
      %17 = vector.load %arg8[%c0_12, %c0_13] : memref<8x128xf32, #tpu.memory_space<vmem>>, vector<8x128xf32>
      %18 = arith.truncf %17 : vector<8x128xf32> to vector<8x128xbf16>
      %c0_14 = arith.constant 0 : index
      %c0_15 = arith.constant 0 : index
      %19 = vector.load %arg5[%c0_14, %c0_15] : memref<8x128xbf16, #tpu.memory_space<vmem>>, vector<8x128xbf16>
      tpu.vector_store %arg5[%c0_14, %c0_15], %18 {strides = array<i32>} : memref<8x128xbf16, #tpu.memory_space<vmem>>, vector<8x128xbf16>,
      %c0_16 = arith.constant 0 : index
      %c0_17 = arith.constant 0 : index
      %20 = vector.load %arg6[%c0_16, %c0_17] : memref<1x128xf32, #tpu.memory_space<vmem>>, vector<1x128xf32>
      %cst_18 = arith.constant dense<0.000000e+00> : vector<128xf32>
      %21 = vector.multi_reduction <add>, %17, %cst_18 [0] : vector<8x128xf32> to vector<128xf32>
      %22 = vector.shape_cast %21 : vector<128xf32> to vector<1x128xf32>
      %23 = arith.addf %20, %22 : vector<1x128xf32>
      %c0_19 = arith.constant 0 : index
      %c0_20 = arith.constant 0 : index
      %24 = vector.load %arg6[%c0_19, %c0_20] : memref<1x128xf32, #tpu.memory_space<vmem>>, vector<1x128xf32>
      tpu.vector_store %arg6[%c0_19, %c0_20], %23 {strides = array<i32>} : memref<1x128xf32, #tpu.memory_space<vmem>>, vector<1x128xf32>,
      %c0_21 = arith.constant 0 : index
      %c0_22 = arith.constant 0 : index
      %25 = vector.load %arg7[%c0_21, %c0_22] : memref<1x128xf32, #tpu.memory_space<vmem>>, vector<1x128xf32>
      %26 = arith.mulf %17, %17 : vector<8x128xf32>
      %cst_23 = arith.constant dense<0.000000e+00> : vector<128xf32>
      %27 = vector.multi_reduction <add>, %26, %cst_23 [0] : vector<8x128xf32> to vector<128xf32>
      %28 = vector.shape_cast %27 : vector<128xf32> to vector<1x128xf32>
      %29 = arith.addf %25, %28 : vector<1x128xf32>
      %c0_24 = arith.constant 0 : index
      %c0_25 = arith.constant 0 : index
      %30 = vector.load %arg7[%c0_24, %c0_25] : memref<1x128xf32, #tpu.memory_space<vmem>>, vector<1x128xf32>
      tpu.vector_store %arg7[%c0_24, %c0_25], %29 {strides = array<i32>} : memref<1x128xf32, #tpu.memory_space<vmem>>, vector<1x128xf32>,
    } else {
    }
    return
  }
  func.func @transform_0(%arg0: i32, %arg1: i32, %arg2: i32) -> (i32, i32) {
    %c0_i32 = arith.constant 0 : i32
    return %arg1, %arg2 : i32, i32
  }
  func.func @transform_1(%arg0: i32, %arg1: i32, %arg2: i32) -> (i32, i32) {
    %c0_i32 = arith.constant 0 : i32
    return %arg2, %arg0 : i32, i32
  }
  func.func @transform_2(%arg0: i32, %arg1: i32, %arg2: i32) -> (i32, i32) {
    %c0_i32 = arith.constant 0 : i32
    return %arg1, %arg0 : i32, i32
  }
  func.func @transform_3(%arg0: i32, %arg1: i32, %arg2: i32) -> (i32, i32) {
    %c0_i32 = arith.constant 0 : i32
    %c0_i32_0 = arith.constant 0 : i32
    return %c0_i32, %arg0 : i32, i32
  }
  func.func @transform_4(%arg0: i32, %arg1: i32, %arg2: i32) -> (i32, i32) {
    %c0_i32 = arith.constant 0 : i32
    %c0_i32_0 = arith.constant 0 : i32
    return %c0_i32, %arg0 : i32, i32
  }
}

module attributes {stable_mosaic.version = 11 : i64} {
  func.func @_mm_stats_kernel(%arg0: i32, %arg1: i32, %arg2: i32, %arg3: memref<8x128xbf16, #tpu.memory_space<vmem>>, %arg4: memref<128x128xbf16, #tpu.memory_space<vmem>>, %arg5: memref<8x128xbf16, #tpu.memory_space<vmem>>, %arg6: memref<1x128xf32, #tpu.memory_space<vmem>>, %arg7: memref<1x128xf32, #tpu.memory_space<vmem>>, %arg8: memref<8x128xf32, #tpu.memory_space<vmem>>) attributes {dimension_semantics = [#tpu.dimension_semantics<parallel>, #tpu.dimension_semantics<arbitrary>, #tpu.dimension_semantics<arbitrary>], iteration_bounds = array<i64: 1, 1, 1>, scalar_prefetch = 0 : i64, scratch_operands = 1 : i64, tpu.core_type = #tpu.core_type<tc>, window_params = [{transform_indices = @transform_0, window_bounds = array<i64: 8, 128>}, {transform_indices = @transform_1, window_bounds = array<i64: 128, 128>}, {transform_indices = @transform_2, window_bounds = array<i64: 8, 128>}, {transform_indices = @transform_3, window_bounds = array<i64: 1, 128>}, {transform_indices = @transform_4, window_bounds = array<i64: 1, 128>}]} {
    %c0_i32 = arith.constant 0 : i32
    %0 = arith.cmpi eq, %arg2, %c0_i32 : i32
    %1 = arith.extui %0 : i1 to i32
    %c0_i32_0 = arith.constant 0 : i32
    %2 = arith.cmpi ne, %1, %c0_i32_0 : i32
    scf.if %2 {
      %cst_13 = arith.constant 0.000000e+00 : f32
      %17 = vector.broadcast %cst_13 : f32 to vector<8x128xf32>
      %c0_14 = arith.constant 0 : index
      %c0_15 = arith.constant 0 : index
      %18 = vector.load %arg8[%c0_14, %c0_15] : memref<8x128xf32, #tpu.memory_space<vmem>>, vector<8x128xf32>
      tpu.vector_store %arg8[%c0_14, %c0_15], %17 {strides = array<i32>} : memref<8x128xf32, #tpu.memory_space<vmem>>, vector<8x128xf32>,
    } else {
    }
    %c0_i32_1 = arith.constant 0 : i32
    %3 = arith.cmpi eq, %arg1, %c0_i32_1 : i32
    %c0_i32_2 = arith.constant 0 : i32
    %4 = arith.cmpi eq, %arg2, %c0_i32_2 : i32
    %5 = arith.andi %3, %4 : i1
    %6 = arith.extui %5 : i1 to i32
    %c0_i32_3 = arith.constant 0 : i32
    %7 = arith.cmpi ne, %6, %c0_i32_3 : i32
    scf.if %7 {
      %cst_13 = arith.constant 0.000000e+00 : f32
      %17 = vector.broadcast %cst_13 : f32 to vector<1x128xf32>
      %c0_14 = arith.constant 0 : index
      %c0_15 = arith.constant 0 : index
      %18 = vector.load %arg6[%c0_14, %c0_15] : memref<1x128xf32, #tpu.memory_space<vmem>>, vector<1x128xf32>
      tpu.vector_store %arg6[%c0_14, %c0_15], %17 {strides = array<i32>} : memref<1x128xf32, #tpu.memory_space<vmem>>, vector<1x128xf32>,
      %cst_16 = arith.constant 0.000000e+00 : f32
      %19 = vector.broadcast %cst_16 : f32 to vector<1x128xf32>
      %c0_17 = arith.constant 0 : index
      %c0_18 = arith.constant 0 : index
      %20 = vector.load %arg7[%c0_17, %c0_18] : memref<1x128xf32, #tpu.memory_space<vmem>>, vector<1x128xf32>
      tpu.vector_store %arg7[%c0_17, %c0_18], %19 {strides = array<i32>} : memref<1x128xf32, #tpu.memory_space<vmem>>, vector<1x128xf32>,
    } else {
    }
    %c0 = arith.constant 0 : index
    %c0_4 = arith.constant 0 : index
    %8 = vector.load %arg8[%c0, %c0_4] : memref<8x128xf32, #tpu.memory_space<vmem>>, vector<8x128xf32>
    %c0_5 = arith.constant 0 : index
    %c0_6 = arith.constant 0 : index
    %9 = vector.load %arg3[%c0_5, %c0_6] : memref<8x128xbf16, #tpu.memory_space<vmem>>, vector<8x128xbf16>
    %c0_7 = arith.constant 0 : index
    %c0_8 = arith.constant 0 : index
    %10 = vector.load %arg4[%c0_7, %c0_8] : memref<128x128xbf16, #tpu.memory_space<vmem>>, vector<128x128xbf16>
    %cst = arith.constant dense<0.000000e+00> : vector<8x128xf32>
    %11 = tpu.matmul %9, %10, %cst {dimension_numbers = #tpu.dot_dimension_numbers<[1], [0], [0], [1], [0, 0, 1, 1], [], []>} : vector<8x128xbf16>, vector<128x128xbf16>, vector<8x128xf32> -> vector<8x128xf32>
    %12 = arith.addf %8, %11 : vector<8x128xf32>
    %c0_9 = arith.constant 0 : index
    %c0_10 = arith.constant 0 : index
    %13 = vector.load %arg8[%c0_9, %c0_10] : memref<8x128xf32, #tpu.memory_space<vmem>>, vector<8x128xf32>
    tpu.vector_store %arg8[%c0_9, %c0_10], %12 {strides = array<i32>} : memref<8x128xf32, #tpu.memory_space<vmem>>, vector<8x128xf32>,
    %c0_i32_11 = arith.constant 0 : i32
    %14 = arith.cmpi eq, %arg2, %c0_i32_11 : i32
    %15 = arith.extui %14 : i1 to i32
    %c0_i32_12 = arith.constant 0 : i32
    %16 = arith.cmpi ne, %15, %c0_i32_12 : i32
    scf.if %16 {
      %c0_13 = arith.constant 0 : index
      %c0_14 = arith.constant 0 : index
      %17 = vector.load %arg8[%c0_13, %c0_14] : memref<8x128xf32, #tpu.memory_space<vmem>>, vector<8x128xf32>
      %18 = arith.truncf %17 : vector<8x128xf32> to vector<8x128xbf16>
      %c0_15 = arith.constant 0 : index
      %c0_16 = arith.constant 0 : index
      %19 = vector.load %arg5[%c0_15, %c0_16] : memref<8x128xbf16, #tpu.memory_space<vmem>>, vector<8x128xbf16>
      tpu.vector_store %arg5[%c0_15, %c0_16], %18 {strides = array<i32>} : memref<8x128xbf16, #tpu.memory_space<vmem>>, vector<8x128xbf16>,
      %c0_17 = arith.constant 0 : index
      %c0_18 = arith.constant 0 : index
      %20 = vector.load %arg6[%c0_17, %c0_18] : memref<1x128xf32, #tpu.memory_space<vmem>>, vector<1x128xf32>
      %cst_19 = arith.constant dense<0.000000e+00> : vector<128xf32>
      %21 = vector.multi_reduction <add>, %17, %cst_19 [0] : vector<8x128xf32> to vector<128xf32>
      %22 = vector.shape_cast %21 : vector<128xf32> to vector<1x128xf32>
      %23 = arith.addf %20, %22 : vector<1x128xf32>
      %c0_20 = arith.constant 0 : index
      %c0_21 = arith.constant 0 : index
      %24 = vector.load %arg6[%c0_20, %c0_21] : memref<1x128xf32, #tpu.memory_space<vmem>>, vector<1x128xf32>
      tpu.vector_store %arg6[%c0_20, %c0_21], %23 {strides = array<i32>} : memref<1x128xf32, #tpu.memory_space<vmem>>, vector<1x128xf32>,
      %c0_22 = arith.constant 0 : index
      %c0_23 = arith.constant 0 : index
      %25 = vector.load %arg7[%c0_22, %c0_23] : memref<1x128xf32, #tpu.memory_space<vmem>>, vector<1x128xf32>
      %26 = arith.mulf %17, %17 : vector<8x128xf32>
      %cst_24 = arith.constant dense<0.000000e+00> : vector<128xf32>
      %27 = vector.multi_reduction <add>, %26, %cst_24 [0] : vector<8x128xf32> to vector<128xf32>
      %28 = vector.shape_cast %27 : vector<128xf32> to vector<1x128xf32>
      %29 = arith.addf %25, %28 : vector<1x128xf32>
      %c0_25 = arith.constant 0 : index
      %c0_26 = arith.constant 0 : index
      %30 = vector.load %arg7[%c0_25, %c0_26] : memref<1x128xf32, #tpu.memory_space<vmem>>, vector<1x128xf32>
      tpu.vector_store %arg7[%c0_25, %c0_26], %29 {strides = array<i32>} : memref<1x128xf32, #tpu.memory_space<vmem>>, vector<1x128xf32>,
    } else {
    }
    return
  }
  func.func @transform_0(%arg0: i32, %arg1: i32, %arg2: i32) -> (i32, i32) {
    %c0_i32 = arith.constant 0 : i32
    return %arg1, %arg2 : i32, i32
  }
  func.func @transform_1(%arg0: i32, %arg1: i32, %arg2: i32) -> (i32, i32) {
    %c0_i32 = arith.constant 0 : i32
    return %arg2, %arg0 : i32, i32
  }
  func.func @transform_2(%arg0: i32, %arg1: i32, %arg2: i32) -> (i32, i32) {
    %c0_i32 = arith.constant 0 : i32
    return %arg1, %arg0 : i32, i32
  }
  func.func @transform_3(%arg0: i32, %arg1: i32, %arg2: i32) -> (i32, i32) {
    %c0_i32 = arith.constant 0 : i32
    %c0_i32_0 = arith.constant 0 : i32
    return %c0_i32, %arg0 : i32, i32
  }
  func.func @transform_4(%arg0: i32, %arg1: i32, %arg2: i32) -> (i32, i32) {
    %c0_i32 = arith.constant 0 : i32
    %c0_i32_0 = arith.constant 0 : i32
    return %c0_i32, %arg0 : i32, i32
  }
}

module attributes {stable_mosaic.version = 11 : i64} {
  func.func @_dual_affine_kernel(%arg0: memref<8x128xbf16, #tpu.memory_space<vmem>>, %arg1: memref<1x128xf32, #tpu.memory_space<vmem>>, %arg2: memref<1x128xf32, #tpu.memory_space<vmem>>, %arg3: memref<8x128xbf16, #tpu.memory_space<vmem>>, %arg4: memref<1x128xf32, #tpu.memory_space<vmem>>, %arg5: memref<1x128xf32, #tpu.memory_space<vmem>>, %arg6: memref<8x128xbf16, #tpu.memory_space<vmem>>) attributes {dimension_semantics = [], scalar_prefetch = 0 : i64, scratch_operands = 0 : i64, tpu.core_type = #tpu.core_type<tc>} {
    %c0 = arith.constant 0 : index
    %c0_0 = arith.constant 0 : index
    %0 = vector.load %arg0[%c0, %c0_0] : memref<8x128xbf16, #tpu.memory_space<vmem>>, vector<8x128xbf16>
    %1 = arith.extf %0 : vector<8x128xbf16> to vector<8x128xf32>
    %c0_1 = arith.constant 0 : index
    %c0_2 = arith.constant 0 : index
    %2 = vector.load %arg1[%c0_1, %c0_2] : memref<1x128xf32, #tpu.memory_space<vmem>>, vector<1x128xf32>
    %3 = vector.broadcast %2 : vector<1x128xf32> to vector<8x128xf32>
    %4 = arith.mulf %1, %3 : vector<8x128xf32>
    %c0_3 = arith.constant 0 : index
    %c0_4 = arith.constant 0 : index
    %5 = vector.load %arg2[%c0_3, %c0_4] : memref<1x128xf32, #tpu.memory_space<vmem>>, vector<1x128xf32>
    %6 = vector.broadcast %5 : vector<1x128xf32> to vector<8x128xf32>
    %7 = arith.addf %4, %6 : vector<8x128xf32>
    %c0_5 = arith.constant 0 : index
    %c0_6 = arith.constant 0 : index
    %8 = vector.load %arg3[%c0_5, %c0_6] : memref<8x128xbf16, #tpu.memory_space<vmem>>, vector<8x128xbf16>
    %9 = arith.extf %8 : vector<8x128xbf16> to vector<8x128xf32>
    %c0_7 = arith.constant 0 : index
    %c0_8 = arith.constant 0 : index
    %10 = vector.load %arg4[%c0_7, %c0_8] : memref<1x128xf32, #tpu.memory_space<vmem>>, vector<1x128xf32>
    %11 = vector.broadcast %10 : vector<1x128xf32> to vector<8x128xf32>
    %12 = arith.mulf %9, %11 : vector<8x128xf32>
    %13 = arith.addf %7, %12 : vector<8x128xf32>
    %c0_9 = arith.constant 0 : index
    %c0_10 = arith.constant 0 : index
    %14 = vector.load %arg5[%c0_9, %c0_10] : memref<1x128xf32, #tpu.memory_space<vmem>>, vector<1x128xf32>
    %15 = vector.broadcast %14 : vector<1x128xf32> to vector<8x128xf32>
    %16 = arith.addf %13, %15 : vector<8x128xf32>
    %cst = arith.constant 0.000000e+00 : f32
    %17 = vector.broadcast %cst : f32 to vector<8x128xf32>
    %18 = arith.maximumf %16, %17 : vector<8x128xf32>
    %19 = arith.truncf %18 : vector<8x128xf32> to vector<8x128xbf16>
    %c0_11 = arith.constant 0 : index
    %c0_12 = arith.constant 0 : index
    %20 = vector.load %arg6[%c0_11, %c0_12] : memref<8x128xbf16, #tpu.memory_space<vmem>>, vector<8x128xbf16>
    tpu.vector_store %arg6[%c0_11, %c0_12], %19 {strides = array<i32>} : memref<8x128xbf16, #tpu.memory_space<vmem>>, vector<8x128xbf16>,
    return
  }
}

module attributes {stable_mosaic.version = 11 : i64} {
  func.func @_affine_res_kernel(%arg0: memref<8x128xbf16, #tpu.memory_space<vmem>>, %arg1: memref<1x128xf32, #tpu.memory_space<vmem>>, %arg2: memref<1x128xf32, #tpu.memory_space<vmem>>, %arg3: memref<8x128xbf16, #tpu.memory_space<vmem>>, %arg4: memref<8x128xbf16, #tpu.memory_space<vmem>>) attributes {dimension_semantics = [], scalar_prefetch = 0 : i64, scratch_operands = 0 : i64, tpu.core_type = #tpu.core_type<tc>} {
    %c0 = arith.constant 0 : index
    %c0_0 = arith.constant 0 : index
    %0 = vector.load %arg0[%c0, %c0_0] : memref<8x128xbf16, #tpu.memory_space<vmem>>, vector<8x128xbf16>
    %1 = arith.extf %0 : vector<8x128xbf16> to vector<8x128xf32>
    %c0_1 = arith.constant 0 : index
    %c0_2 = arith.constant 0 : index
    %2 = vector.load %arg1[%c0_1, %c0_2] : memref<1x128xf32, #tpu.memory_space<vmem>>, vector<1x128xf32>
    %3 = vector.broadcast %2 : vector<1x128xf32> to vector<8x128xf32>
    %4 = arith.mulf %1, %3 : vector<8x128xf32>
    %c0_3 = arith.constant 0 : index
    %c0_4 = arith.constant 0 : index
    %5 = vector.load %arg2[%c0_3, %c0_4] : memref<1x128xf32, #tpu.memory_space<vmem>>, vector<1x128xf32>
    %6 = vector.broadcast %5 : vector<1x128xf32> to vector<8x128xf32>
    %7 = arith.addf %4, %6 : vector<8x128xf32>
    %c0_5 = arith.constant 0 : index
    %c0_6 = arith.constant 0 : index
    %8 = vector.load %arg3[%c0_5, %c0_6] : memref<8x128xbf16, #tpu.memory_space<vmem>>, vector<8x128xbf16>
    %9 = arith.extf %8 : vector<8x128xbf16> to vector<8x128xf32>
    %10 = arith.addf %7, %9 : vector<8x128xf32>
    %cst = arith.constant 0.000000e+00 : f32
    %11 = vector.broadcast %cst : f32 to vector<8x128xf32>
    %12 = arith.maximumf %10, %11 : vector<8x128xf32>
    %13 = arith.truncf %12 : vector<8x128xf32> to vector<8x128xbf16>
    %c0_7 = arith.constant 0 : index
    %c0_8 = arith.constant 0 : index
    %14 = vector.load %arg4[%c0_7, %c0_8] : memref<8x128xbf16, #tpu.memory_space<vmem>>, vector<8x128xbf16>
    tpu.vector_store %arg4[%c0_7, %c0_8], %13 {strides = array<i32>} : memref<8x128xbf16, #tpu.memory_space<vmem>>, vector<8x128xbf16>,
    return
  }
}

module attributes {stable_mosaic.version = 11 : i64} {
  func.func @_affine_kernel(%arg0: memref<8x256xbf16, #tpu.memory_space<vmem>>, %arg1: memref<1x256xf32, #tpu.memory_space<vmem>>, %arg2: memref<1x256xf32, #tpu.memory_space<vmem>>, %arg3: memref<8x256xbf16, #tpu.memory_space<vmem>>) attributes {dimension_semantics = [], scalar_prefetch = 0 : i64, scratch_operands = 0 : i64, tpu.core_type = #tpu.core_type<tc>} {
    %c0 = arith.constant 0 : index
    %c0_0 = arith.constant 0 : index
    %0 = vector.load %arg0[%c0, %c0_0] : memref<8x256xbf16, #tpu.memory_space<vmem>>, vector<8x256xbf16>
    %1 = arith.extf %0 : vector<8x256xbf16> to vector<8x256xf32>
    %c0_1 = arith.constant 0 : index
    %c0_2 = arith.constant 0 : index
    %2 = vector.load %arg1[%c0_1, %c0_2] : memref<1x256xf32, #tpu.memory_space<vmem>>, vector<1x256xf32>
    %3 = vector.broadcast %2 : vector<1x256xf32> to vector<8x256xf32>
    %4 = arith.mulf %1, %3 : vector<8x256xf32>
    %c0_3 = arith.constant 0 : index
    %c0_4 = arith.constant 0 : index
    %5 = vector.load %arg2[%c0_3, %c0_4] : memref<1x256xf32, #tpu.memory_space<vmem>>, vector<1x256xf32>
    %6 = vector.broadcast %5 : vector<1x256xf32> to vector<8x256xf32>
    %7 = arith.addf %4, %6 : vector<8x256xf32>
    %cst = arith.constant 0.000000e+00 : f32
    %8 = vector.broadcast %cst : f32 to vector<8x256xf32>
    %9 = arith.maximumf %7, %8 : vector<8x256xf32>
    %10 = arith.truncf %9 : vector<8x256xf32> to vector<8x256xbf16>
    %c0_5 = arith.constant 0 : index
    %c0_6 = arith.constant 0 : index
    %11 = vector.load %arg3[%c0_5, %c0_6] : memref<8x256xbf16, #tpu.memory_space<vmem>>, vector<8x256xbf16>
    tpu.vector_store %arg3[%c0_5, %c0_6], %10 {strides = array<i32>} : memref<8x256xbf16, #tpu.memory_space<vmem>>, vector<8x256xbf16>,
    return
  }
}

module attributes {stable_mosaic.version = 11 : i64} {
  func.func @_mm_stats_kernel(%arg0: i32, %arg1: i32, %arg2: i32, %arg3: memref<8x128xbf16, #tpu.memory_space<vmem>>, %arg4: memref<128x256xbf16, #tpu.memory_space<vmem>>, %arg5: memref<8x256xbf16, #tpu.memory_space<vmem>>, %arg6: memref<1x256xf32, #tpu.memory_space<vmem>>, %arg7: memref<1x256xf32, #tpu.memory_space<vmem>>, %arg8: memref<8x256xf32, #tpu.memory_space<vmem>>) attributes {dimension_semantics = [#tpu.dimension_semantics<parallel>, #tpu.dimension_semantics<arbitrary>, #tpu.dimension_semantics<arbitrary>], iteration_bounds = array<i64: 1, 1, 1>, scalar_prefetch = 0 : i64, scratch_operands = 1 : i64, tpu.core_type = #tpu.core_type<tc>, window_params = [{transform_indices = @transform_0, window_bounds = array<i64: 8, 128>}, {transform_indices = @transform_1, window_bounds = array<i64: 128, 256>}, {transform_indices = @transform_2, window_bounds = array<i64: 8, 256>}, {transform_indices = @transform_3, window_bounds = array<i64: 1, 256>}, {transform_indices = @transform_4, window_bounds = array<i64: 1, 256>}]} {
    %c0_i32 = arith.constant 0 : i32
    %0 = arith.cmpi eq, %arg2, %c0_i32 : i32
    %1 = arith.extui %0 : i1 to i32
    %c0_i32_0 = arith.constant 0 : i32
    %2 = arith.cmpi ne, %1, %c0_i32_0 : i32
    scf.if %2 {
      %cst_13 = arith.constant 0.000000e+00 : f32
      %17 = vector.broadcast %cst_13 : f32 to vector<8x256xf32>
      %c0_14 = arith.constant 0 : index
      %c0_15 = arith.constant 0 : index
      %18 = vector.load %arg8[%c0_14, %c0_15] : memref<8x256xf32, #tpu.memory_space<vmem>>, vector<8x256xf32>
      tpu.vector_store %arg8[%c0_14, %c0_15], %17 {strides = array<i32>} : memref<8x256xf32, #tpu.memory_space<vmem>>, vector<8x256xf32>,
    } else {
    }
    %c0_i32_1 = arith.constant 0 : i32
    %3 = arith.cmpi eq, %arg1, %c0_i32_1 : i32
    %c0_i32_2 = arith.constant 0 : i32
    %4 = arith.cmpi eq, %arg2, %c0_i32_2 : i32
    %5 = arith.andi %3, %4 : i1
    %6 = arith.extui %5 : i1 to i32
    %c0_i32_3 = arith.constant 0 : i32
    %7 = arith.cmpi ne, %6, %c0_i32_3 : i32
    scf.if %7 {
      %cst_13 = arith.constant 0.000000e+00 : f32
      %17 = vector.broadcast %cst_13 : f32 to vector<1x256xf32>
      %c0_14 = arith.constant 0 : index
      %c0_15 = arith.constant 0 : index
      %18 = vector.load %arg6[%c0_14, %c0_15] : memref<1x256xf32, #tpu.memory_space<vmem>>, vector<1x256xf32>
      tpu.vector_store %arg6[%c0_14, %c0_15], %17 {strides = array<i32>} : memref<1x256xf32, #tpu.memory_space<vmem>>, vector<1x256xf32>,
      %cst_16 = arith.constant 0.000000e+00 : f32
      %19 = vector.broadcast %cst_16 : f32 to vector<1x256xf32>
      %c0_17 = arith.constant 0 : index
      %c0_18 = arith.constant 0 : index
      %20 = vector.load %arg7[%c0_17, %c0_18] : memref<1x256xf32, #tpu.memory_space<vmem>>, vector<1x256xf32>
      tpu.vector_store %arg7[%c0_17, %c0_18], %19 {strides = array<i32>} : memref<1x256xf32, #tpu.memory_space<vmem>>, vector<1x256xf32>,
    } else {
    }
    %c0 = arith.constant 0 : index
    %c0_4 = arith.constant 0 : index
    %8 = vector.load %arg8[%c0, %c0_4] : memref<8x256xf32, #tpu.memory_space<vmem>>, vector<8x256xf32>
    %c0_5 = arith.constant 0 : index
    %c0_6 = arith.constant 0 : index
    %9 = vector.load %arg3[%c0_5, %c0_6] : memref<8x128xbf16, #tpu.memory_space<vmem>>, vector<8x128xbf16>
    %c0_7 = arith.constant 0 : index
    %c0_8 = arith.constant 0 : index
    %10 = vector.load %arg4[%c0_7, %c0_8] : memref<128x256xbf16, #tpu.memory_space<vmem>>, vector<128x256xbf16>
    %cst = arith.constant dense<0.000000e+00> : vector<8x256xf32>
    %11 = tpu.matmul %9, %10, %cst {dimension_numbers = #tpu.dot_dimension_numbers<[1], [0], [0], [1], [0, 0, 1, 1], [], []>} : vector<8x128xbf16>, vector<128x256xbf16>, vector<8x256xf32> -> vector<8x256xf32>
    %12 = arith.addf %8, %11 : vector<8x256xf32>
    %c0_9 = arith.constant 0 : index
    %c0_10 = arith.constant 0 : index
    %13 = vector.load %arg8[%c0_9, %c0_10] : memref<8x256xf32, #tpu.memory_space<vmem>>, vector<8x256xf32>
    tpu.vector_store %arg8[%c0_9, %c0_10], %12 {strides = array<i32>} : memref<8x256xf32, #tpu.memory_space<vmem>>, vector<8x256xf32>,
    %c0_i32_11 = arith.constant 0 : i32
    %14 = arith.cmpi eq, %arg2, %c0_i32_11 : i32
    %15 = arith.extui %14 : i1 to i32
    %c0_i32_12 = arith.constant 0 : i32
    %16 = arith.cmpi ne, %15, %c0_i32_12 : i32
    scf.if %16 {
      %c0_13 = arith.constant 0 : index
      %c0_14 = arith.constant 0 : index
      %17 = vector.load %arg8[%c0_13, %c0_14] : memref<8x256xf32, #tpu.memory_space<vmem>>, vector<8x256xf32>
      %18 = arith.truncf %17 : vector<8x256xf32> to vector<8x256xbf16>
      %c0_15 = arith.constant 0 : index
      %c0_16 = arith.constant 0 : index
      %19 = vector.load %arg5[%c0_15, %c0_16] : memref<8x256xbf16, #tpu.memory_space<vmem>>, vector<8x256xbf16>
      tpu.vector_store %arg5[%c0_15, %c0_16], %18 {strides = array<i32>} : memref<8x256xbf16, #tpu.memory_space<vmem>>, vector<8x256xbf16>,
      %c0_17 = arith.constant 0 : index
      %c0_18 = arith.constant 0 : index
      %20 = vector.load %arg6[%c0_17, %c0_18] : memref<1x256xf32, #tpu.memory_space<vmem>>, vector<1x256xf32>
      %cst_19 = arith.constant dense<0.000000e+00> : vector<256xf32>
      %21 = vector.multi_reduction <add>, %17, %cst_19 [0] : vector<8x256xf32> to vector<256xf32>
      %22 = vector.shape_cast %21 : vector<256xf32> to vector<1x256xf32>
      %23 = arith.addf %20, %22 : vector<1x256xf32>
      %c0_20 = arith.constant 0 : index
      %c0_21 = arith.constant 0 : index
      %24 = vector.load %arg6[%c0_20, %c0_21] : memref<1x256xf32, #tpu.memory_space<vmem>>, vector<1x256xf32>
      tpu.vector_store %arg6[%c0_20, %c0_21], %23 {strides = array<i32>} : memref<1x256xf32, #tpu.memory_space<vmem>>, vector<1x256xf32>,
      %c0_22 = arith.constant 0 : index
      %c0_23 = arith.constant 0 : index
      %25 = vector.load %arg7[%c0_22, %c0_23] : memref<1x256xf32, #tpu.memory_space<vmem>>, vector<1x256xf32>
      %26 = arith.mulf %17, %17 : vector<8x256xf32>
      %cst_24 = arith.constant dense<0.000000e+00> : vector<256xf32>
      %27 = vector.multi_reduction <add>, %26, %cst_24 [0] : vector<8x256xf32> to vector<256xf32>
      %28 = vector.shape_cast %27 : vector<256xf32> to vector<1x256xf32>
      %29 = arith.addf %25, %28 : vector<1x256xf32>
      %c0_25 = arith.constant 0 : index
      %c0_26 = arith.constant 0 : index
      %30 = vector.load %arg7[%c0_25, %c0_26] : memref<1x256xf32, #tpu.memory_space<vmem>>, vector<1x256xf32>
      tpu.vector_store %arg7[%c0_25, %c0_26], %29 {strides = array<i32>} : memref<1x256xf32, #tpu.memory_space<vmem>>, vector<1x256xf32>,
    } else {
    }
    return
  }
  func.func @transform_0(%arg0: i32, %arg1: i32, %arg2: i32) -> (i32, i32) {
    %c0_i32 = arith.constant 0 : i32
    return %arg1, %arg2 : i32, i32
  }
  func.func @transform_1(%arg0: i32, %arg1: i32, %arg2: i32) -> (i32, i32) {
    %c0_i32 = arith.constant 0 : i32
    return %arg2, %arg0 : i32, i32
  }
  func.func @transform_2(%arg0: i32, %arg1: i32, %arg2: i32) -> (i32, i32) {
    %c0_i32 = arith.constant 0 : i32
    return %arg1, %arg0 : i32, i32
  }
  func.func @transform_3(%arg0: i32, %arg1: i32, %arg2: i32) -> (i32, i32) {
    %c0_i32 = arith.constant 0 : i32
    %c0_i32_0 = arith.constant 0 : i32
    return %c0_i32, %arg0 : i32, i32
  }
  func.func @transform_4(%arg0: i32, %arg1: i32, %arg2: i32) -> (i32, i32) {
    %c0_i32 = arith.constant 0 : i32
    %c0_i32_0 = arith.constant 0 : i32
    return %c0_i32, %arg0 : i32, i32
  }
}

module attributes {stable_mosaic.version = 11 : i64} {
  func.func @_mm_stats_kernel(%arg0: i32, %arg1: i32, %arg2: i32, %arg3: memref<8x128xbf16, #tpu.memory_space<vmem>>, %arg4: memref<128x256xbf16, #tpu.memory_space<vmem>>, %arg5: memref<8x256xbf16, #tpu.memory_space<vmem>>, %arg6: memref<1x256xf32, #tpu.memory_space<vmem>>, %arg7: memref<1x256xf32, #tpu.memory_space<vmem>>, %arg8: memref<8x256xf32, #tpu.memory_space<vmem>>) attributes {dimension_semantics = [#tpu.dimension_semantics<parallel>, #tpu.dimension_semantics<arbitrary>, #tpu.dimension_semantics<arbitrary>], iteration_bounds = array<i64: 1, 1, 9>, scalar_prefetch = 0 : i64, scratch_operands = 1 : i64, tpu.core_type = #tpu.core_type<tc>, window_params = [{transform_indices = @transform_0, window_bounds = array<i64: 8, 128>}, {transform_indices = @transform_1, window_bounds = array<i64: 128, 256>}, {transform_indices = @transform_2, window_bounds = array<i64: 8, 256>}, {transform_indices = @transform_3, window_bounds = array<i64: 1, 256>}, {transform_indices = @transform_4, window_bounds = array<i64: 1, 256>}]} {
    %c0_i32 = arith.constant 0 : i32
    %0 = arith.cmpi eq, %arg2, %c0_i32 : i32
    %1 = arith.extui %0 : i1 to i32
    %c0_i32_0 = arith.constant 0 : i32
    %2 = arith.cmpi ne, %1, %c0_i32_0 : i32
    scf.if %2 {
      %cst_12 = arith.constant 0.000000e+00 : f32
      %17 = vector.broadcast %cst_12 : f32 to vector<8x256xf32>
      %c0_13 = arith.constant 0 : index
      %c0_14 = arith.constant 0 : index
      %18 = vector.load %arg8[%c0_13, %c0_14] : memref<8x256xf32, #tpu.memory_space<vmem>>, vector<8x256xf32>
      tpu.vector_store %arg8[%c0_13, %c0_14], %17 {strides = array<i32>} : memref<8x256xf32, #tpu.memory_space<vmem>>, vector<8x256xf32>,
    } else {
    }
    %c0_i32_1 = arith.constant 0 : i32
    %3 = arith.cmpi eq, %arg1, %c0_i32_1 : i32
    %c0_i32_2 = arith.constant 0 : i32
    %4 = arith.cmpi eq, %arg2, %c0_i32_2 : i32
    %5 = arith.andi %3, %4 : i1
    %6 = arith.extui %5 : i1 to i32
    %c0_i32_3 = arith.constant 0 : i32
    %7 = arith.cmpi ne, %6, %c0_i32_3 : i32
    scf.if %7 {
      %cst_12 = arith.constant 0.000000e+00 : f32
      %17 = vector.broadcast %cst_12 : f32 to vector<1x256xf32>
      %c0_13 = arith.constant 0 : index
      %c0_14 = arith.constant 0 : index
      %18 = vector.load %arg6[%c0_13, %c0_14] : memref<1x256xf32, #tpu.memory_space<vmem>>, vector<1x256xf32>
      tpu.vector_store %arg6[%c0_13, %c0_14], %17 {strides = array<i32>} : memref<1x256xf32, #tpu.memory_space<vmem>>, vector<1x256xf32>,
      %cst_15 = arith.constant 0.000000e+00 : f32
      %19 = vector.broadcast %cst_15 : f32 to vector<1x256xf32>
      %c0_16 = arith.constant 0 : index
      %c0_17 = arith.constant 0 : index
      %20 = vector.load %arg7[%c0_16, %c0_17] : memref<1x256xf32, #tpu.memory_space<vmem>>, vector<1x256xf32>
      tpu.vector_store %arg7[%c0_16, %c0_17], %19 {strides = array<i32>} : memref<1x256xf32, #tpu.memory_space<vmem>>, vector<1x256xf32>,
    } else {
    }
    %c0 = arith.constant 0 : index
    %c0_4 = arith.constant 0 : index
    %8 = vector.load %arg8[%c0, %c0_4] : memref<8x256xf32, #tpu.memory_space<vmem>>, vector<8x256xf32>
    %c0_5 = arith.constant 0 : index
    %c0_6 = arith.constant 0 : index
    %9 = vector.load %arg3[%c0_5, %c0_6] : memref<8x128xbf16, #tpu.memory_space<vmem>>, vector<8x128xbf16>
    %c0_7 = arith.constant 0 : index
    %c0_8 = arith.constant 0 : index
    %10 = vector.load %arg4[%c0_7, %c0_8] : memref<128x256xbf16, #tpu.memory_space<vmem>>, vector<128x256xbf16>
    %cst = arith.constant dense<0.000000e+00> : vector<8x256xf32>
    %11 = tpu.matmul %9, %10, %cst {dimension_numbers = #tpu.dot_dimension_numbers<[1], [0], [0], [1], [0, 0, 1, 1], [], []>} : vector<8x128xbf16>, vector<128x256xbf16>, vector<8x256xf32> -> vector<8x256xf32>
    %12 = arith.addf %8, %11 : vector<8x256xf32>
    %c0_9 = arith.constant 0 : index
    %c0_10 = arith.constant 0 : index
    %13 = vector.load %arg8[%c0_9, %c0_10] : memref<8x256xf32, #tpu.memory_space<vmem>>, vector<8x256xf32>
    tpu.vector_store %arg8[%c0_9, %c0_10], %12 {strides = array<i32>} : memref<8x256xf32, #tpu.memory_space<vmem>>, vector<8x256xf32>,
    %c8_i32 = arith.constant 8 : i32
    %14 = arith.cmpi eq, %arg2, %c8_i32 : i32
    %15 = arith.extui %14 : i1 to i32
    %c0_i32_11 = arith.constant 0 : i32
    %16 = arith.cmpi ne, %15, %c0_i32_11 : i32
    scf.if %16 {
      %c0_12 = arith.constant 0 : index
      %c0_13 = arith.constant 0 : index
      %17 = vector.load %arg8[%c0_12, %c0_13] : memref<8x256xf32, #tpu.memory_space<vmem>>, vector<8x256xf32>
      %18 = arith.truncf %17 : vector<8x256xf32> to vector<8x256xbf16>
      %c0_14 = arith.constant 0 : index
      %c0_15 = arith.constant 0 : index
      %19 = vector.load %arg5[%c0_14, %c0_15] : memref<8x256xbf16, #tpu.memory_space<vmem>>, vector<8x256xbf16>
      tpu.vector_store %arg5[%c0_14, %c0_15], %18 {strides = array<i32>} : memref<8x256xbf16, #tpu.memory_space<vmem>>, vector<8x256xbf16>,
      %c0_16 = arith.constant 0 : index
      %c0_17 = arith.constant 0 : index
      %20 = vector.load %arg6[%c0_16, %c0_17] : memref<1x256xf32, #tpu.memory_space<vmem>>, vector<1x256xf32>
      %cst_18 = arith.constant dense<0.000000e+00> : vector<256xf32>
      %21 = vector.multi_reduction <add>, %17, %cst_18 [0] : vector<8x256xf32> to vector<256xf32>
      %22 = vector.shape_cast %21 : vector<256xf32> to vector<1x256xf32>
      %23 = arith.addf %20, %22 : vector<1x256xf32>
      %c0_19 = arith.constant 0 : index
      %c0_20 = arith.constant 0 : index
      %24 = vector.load %arg6[%c0_19, %c0_20] : memref<1x256xf32, #tpu.memory_space<vmem>>, vector<1x256xf32>
      tpu.vector_store %arg6[%c0_19, %c0_20], %23 {strides = array<i32>} : memref<1x256xf32, #tpu.memory_space<vmem>>, vector<1x256xf32>,
      %c0_21 = arith.constant 0 : index
      %c0_22 = arith.constant 0 : index
      %25 = vector.load %arg7[%c0_21, %c0_22] : memref<1x256xf32, #tpu.memory_space<vmem>>, vector<1x256xf32>
      %26 = arith.mulf %17, %17 : vector<8x256xf32>
      %cst_23 = arith.constant dense<0.000000e+00> : vector<256xf32>
      %27 = vector.multi_reduction <add>, %26, %cst_23 [0] : vector<8x256xf32> to vector<256xf32>
      %28 = vector.shape_cast %27 : vector<256xf32> to vector<1x256xf32>
      %29 = arith.addf %25, %28 : vector<1x256xf32>
      %c0_24 = arith.constant 0 : index
      %c0_25 = arith.constant 0 : index
      %30 = vector.load %arg7[%c0_24, %c0_25] : memref<1x256xf32, #tpu.memory_space<vmem>>, vector<1x256xf32>
      tpu.vector_store %arg7[%c0_24, %c0_25], %29 {strides = array<i32>} : memref<1x256xf32, #tpu.memory_space<vmem>>, vector<1x256xf32>,
    } else {
    }
    return
  }
  func.func @transform_0(%arg0: i32, %arg1: i32, %arg2: i32) -> (i32, i32) {
    %c0_i32 = arith.constant 0 : i32
    return %arg1, %arg2 : i32, i32
  }
  func.func @transform_1(%arg0: i32, %arg1: i32, %arg2: i32) -> (i32, i32) {
    %c0_i32 = arith.constant 0 : i32
    return %arg2, %arg0 : i32, i32
  }
  func.func @transform_2(%arg0: i32, %arg1: i32, %arg2: i32) -> (i32, i32) {
    %c0_i32 = arith.constant 0 : i32
    return %arg1, %arg0 : i32, i32
  }
  func.func @transform_3(%arg0: i32, %arg1: i32, %arg2: i32) -> (i32, i32) {
    %c0_i32 = arith.constant 0 : i32
    %c0_i32_0 = arith.constant 0 : i32
    return %c0_i32, %arg0 : i32, i32
  }
  func.func @transform_4(%arg0: i32, %arg1: i32, %arg2: i32) -> (i32, i32) {
    %c0_i32 = arith.constant 0 : i32
    %c0_i32_0 = arith.constant 0 : i32
    return %c0_i32, %arg0 : i32, i32
  }
}

module attributes {stable_mosaic.version = 11 : i64} {
  func.func @_mm_stats_kernel(%arg0: i32, %arg1: i32, %arg2: i32, %arg3: memref<8x256xbf16, #tpu.memory_space<vmem>>, %arg4: memref<256x256xbf16, #tpu.memory_space<vmem>>, %arg5: memref<8x256xbf16, #tpu.memory_space<vmem>>, %arg6: memref<1x256xf32, #tpu.memory_space<vmem>>, %arg7: memref<1x256xf32, #tpu.memory_space<vmem>>, %arg8: memref<8x256xf32, #tpu.memory_space<vmem>>) attributes {dimension_semantics = [#tpu.dimension_semantics<parallel>, #tpu.dimension_semantics<arbitrary>, #tpu.dimension_semantics<arbitrary>], iteration_bounds = array<i64: 1, 1, 9>, scalar_prefetch = 0 : i64, scratch_operands = 1 : i64, tpu.core_type = #tpu.core_type<tc>, window_params = [{transform_indices = @transform_0, window_bounds = array<i64: 8, 256>}, {transform_indices = @transform_1, window_bounds = array<i64: 256, 256>}, {transform_indices = @transform_2, window_bounds = array<i64: 8, 256>}, {transform_indices = @transform_3, window_bounds = array<i64: 1, 256>}, {transform_indices = @transform_4, window_bounds = array<i64: 1, 256>}]} {
    %c0_i32 = arith.constant 0 : i32
    %0 = arith.cmpi eq, %arg2, %c0_i32 : i32
    %1 = arith.extui %0 : i1 to i32
    %c0_i32_0 = arith.constant 0 : i32
    %2 = arith.cmpi ne, %1, %c0_i32_0 : i32
    scf.if %2 {
      %cst_12 = arith.constant 0.000000e+00 : f32
      %17 = vector.broadcast %cst_12 : f32 to vector<8x256xf32>
      %c0_13 = arith.constant 0 : index
      %c0_14 = arith.constant 0 : index
      %18 = vector.load %arg8[%c0_13, %c0_14] : memref<8x256xf32, #tpu.memory_space<vmem>>, vector<8x256xf32>
      tpu.vector_store %arg8[%c0_13, %c0_14], %17 {strides = array<i32>} : memref<8x256xf32, #tpu.memory_space<vmem>>, vector<8x256xf32>,
    } else {
    }
    %c0_i32_1 = arith.constant 0 : i32
    %3 = arith.cmpi eq, %arg1, %c0_i32_1 : i32
    %c0_i32_2 = arith.constant 0 : i32
    %4 = arith.cmpi eq, %arg2, %c0_i32_2 : i32
    %5 = arith.andi %3, %4 : i1
    %6 = arith.extui %5 : i1 to i32
    %c0_i32_3 = arith.constant 0 : i32
    %7 = arith.cmpi ne, %6, %c0_i32_3 : i32
    scf.if %7 {
      %cst_12 = arith.constant 0.000000e+00 : f32
      %17 = vector.broadcast %cst_12 : f32 to vector<1x256xf32>
      %c0_13 = arith.constant 0 : index
      %c0_14 = arith.constant 0 : index
      %18 = vector.load %arg6[%c0_13, %c0_14] : memref<1x256xf32, #tpu.memory_space<vmem>>, vector<1x256xf32>
      tpu.vector_store %arg6[%c0_13, %c0_14], %17 {strides = array<i32>} : memref<1x256xf32, #tpu.memory_space<vmem>>, vector<1x256xf32>,
      %cst_15 = arith.constant 0.000000e+00 : f32
      %19 = vector.broadcast %cst_15 : f32 to vector<1x256xf32>
      %c0_16 = arith.constant 0 : index
      %c0_17 = arith.constant 0 : index
      %20 = vector.load %arg7[%c0_16, %c0_17] : memref<1x256xf32, #tpu.memory_space<vmem>>, vector<1x256xf32>
      tpu.vector_store %arg7[%c0_16, %c0_17], %19 {strides = array<i32>} : memref<1x256xf32, #tpu.memory_space<vmem>>, vector<1x256xf32>,
    } else {
    }
    %c0 = arith.constant 0 : index
    %c0_4 = arith.constant 0 : index
    %8 = vector.load %arg8[%c0, %c0_4] : memref<8x256xf32, #tpu.memory_space<vmem>>, vector<8x256xf32>
    %c0_5 = arith.constant 0 : index
    %c0_6 = arith.constant 0 : index
    %9 = vector.load %arg3[%c0_5, %c0_6] : memref<8x256xbf16, #tpu.memory_space<vmem>>, vector<8x256xbf16>
    %c0_7 = arith.constant 0 : index
    %c0_8 = arith.constant 0 : index
    %10 = vector.load %arg4[%c0_7, %c0_8] : memref<256x256xbf16, #tpu.memory_space<vmem>>, vector<256x256xbf16>
    %cst = arith.constant dense<0.000000e+00> : vector<8x256xf32>
    %11 = tpu.matmul %9, %10, %cst {dimension_numbers = #tpu.dot_dimension_numbers<[1], [0], [0], [1], [0, 0, 1, 1], [], []>} : vector<8x256xbf16>, vector<256x256xbf16>, vector<8x256xf32> -> vector<8x256xf32>
    %12 = arith.addf %8, %11 : vector<8x256xf32>
    %c0_9 = arith.constant 0 : index
    %c0_10 = arith.constant 0 : index
    %13 = vector.load %arg8[%c0_9, %c0_10] : memref<8x256xf32, #tpu.memory_space<vmem>>, vector<8x256xf32>
    tpu.vector_store %arg8[%c0_9, %c0_10], %12 {strides = array<i32>} : memref<8x256xf32, #tpu.memory_space<vmem>>, vector<8x256xf32>,
    %c8_i32 = arith.constant 8 : i32
    %14 = arith.cmpi eq, %arg2, %c8_i32 : i32
    %15 = arith.extui %14 : i1 to i32
    %c0_i32_11 = arith.constant 0 : i32
    %16 = arith.cmpi ne, %15, %c0_i32_11 : i32
    scf.if %16 {
      %c0_12 = arith.constant 0 : index
      %c0_13 = arith.constant 0 : index
      %17 = vector.load %arg8[%c0_12, %c0_13] : memref<8x256xf32, #tpu.memory_space<vmem>>, vector<8x256xf32>
      %18 = arith.truncf %17 : vector<8x256xf32> to vector<8x256xbf16>
      %c0_14 = arith.constant 0 : index
      %c0_15 = arith.constant 0 : index
      %19 = vector.load %arg5[%c0_14, %c0_15] : memref<8x256xbf16, #tpu.memory_space<vmem>>, vector<8x256xbf16>
      tpu.vector_store %arg5[%c0_14, %c0_15], %18 {strides = array<i32>} : memref<8x256xbf16, #tpu.memory_space<vmem>>, vector<8x256xbf16>,
      %c0_16 = arith.constant 0 : index
      %c0_17 = arith.constant 0 : index
      %20 = vector.load %arg6[%c0_16, %c0_17] : memref<1x256xf32, #tpu.memory_space<vmem>>, vector<1x256xf32>
      %cst_18 = arith.constant dense<0.000000e+00> : vector<256xf32>
      %21 = vector.multi_reduction <add>, %17, %cst_18 [0] : vector<8x256xf32> to vector<256xf32>
      %22 = vector.shape_cast %21 : vector<256xf32> to vector<1x256xf32>
      %23 = arith.addf %20, %22 : vector<1x256xf32>
      %c0_19 = arith.constant 0 : index
      %c0_20 = arith.constant 0 : index
      %24 = vector.load %arg6[%c0_19, %c0_20] : memref<1x256xf32, #tpu.memory_space<vmem>>, vector<1x256xf32>
      tpu.vector_store %arg6[%c0_19, %c0_20], %23 {strides = array<i32>} : memref<1x256xf32, #tpu.memory_space<vmem>>, vector<1x256xf32>,
      %c0_21 = arith.constant 0 : index
      %c0_22 = arith.constant 0 : index
      %25 = vector.load %arg7[%c0_21, %c0_22] : memref<1x256xf32, #tpu.memory_space<vmem>>, vector<1x256xf32>
      %26 = arith.mulf %17, %17 : vector<8x256xf32>
      %cst_23 = arith.constant dense<0.000000e+00> : vector<256xf32>
      %27 = vector.multi_reduction <add>, %26, %cst_23 [0] : vector<8x256xf32> to vector<256xf32>
      %28 = vector.shape_cast %27 : vector<256xf32> to vector<1x256xf32>
      %29 = arith.addf %25, %28 : vector<1x256xf32>
      %c0_24 = arith.constant 0 : index
      %c0_25 = arith.constant 0 : index
      %30 = vector.load %arg7[%c0_24, %c0_25] : memref<1x256xf32, #tpu.memory_space<vmem>>, vector<1x256xf32>
      tpu.vector_store %arg7[%c0_24, %c0_25], %29 {strides = array<i32>} : memref<1x256xf32, #tpu.memory_space<vmem>>, vector<1x256xf32>,
    } else {
    }
    return
  }
  func.func @transform_0(%arg0: i32, %arg1: i32, %arg2: i32) -> (i32, i32) {
    %c0_i32 = arith.constant 0 : i32
    return %arg1, %arg2 : i32, i32
  }
  func.func @transform_1(%arg0: i32, %arg1: i32, %arg2: i32) -> (i32, i32) {
    %c0_i32 = arith.constant 0 : i32
    return %arg2, %arg0 : i32, i32
  }
  func.func @transform_2(%arg0: i32, %arg1: i32, %arg2: i32) -> (i32, i32) {
    %c0_i32 = arith.constant 0 : i32
    return %arg1, %arg0 : i32, i32
  }
  func.func @transform_3(%arg0: i32, %arg1: i32, %arg2: i32) -> (i32, i32) {
    %c0_i32 = arith.constant 0 : i32
    %c0_i32_0 = arith.constant 0 : i32
    return %c0_i32, %arg0 : i32, i32
  }
  func.func @transform_4(%arg0: i32, %arg1: i32, %arg2: i32) -> (i32, i32) {
    %c0_i32 = arith.constant 0 : i32
    %c0_i32_0 = arith.constant 0 : i32
    return %c0_i32, %arg0 : i32, i32
  }
}

module attributes {stable_mosaic.version = 11 : i64} {
  func.func @_dual_affine_kernel(%arg0: memref<8x256xbf16, #tpu.memory_space<vmem>>, %arg1: memref<1x256xf32, #tpu.memory_space<vmem>>, %arg2: memref<1x256xf32, #tpu.memory_space<vmem>>, %arg3: memref<8x256xbf16, #tpu.memory_space<vmem>>, %arg4: memref<1x256xf32, #tpu.memory_space<vmem>>, %arg5: memref<1x256xf32, #tpu.memory_space<vmem>>, %arg6: memref<8x256xbf16, #tpu.memory_space<vmem>>) attributes {dimension_semantics = [], scalar_prefetch = 0 : i64, scratch_operands = 0 : i64, tpu.core_type = #tpu.core_type<tc>} {
    %c0 = arith.constant 0 : index
    %c0_0 = arith.constant 0 : index
    %0 = vector.load %arg0[%c0, %c0_0] : memref<8x256xbf16, #tpu.memory_space<vmem>>, vector<8x256xbf16>
    %1 = arith.extf %0 : vector<8x256xbf16> to vector<8x256xf32>
    %c0_1 = arith.constant 0 : index
    %c0_2 = arith.constant 0 : index
    %2 = vector.load %arg1[%c0_1, %c0_2] : memref<1x256xf32, #tpu.memory_space<vmem>>, vector<1x256xf32>
    %3 = vector.broadcast %2 : vector<1x256xf32> to vector<8x256xf32>
    %4 = arith.mulf %1, %3 : vector<8x256xf32>
    %c0_3 = arith.constant 0 : index
    %c0_4 = arith.constant 0 : index
    %5 = vector.load %arg2[%c0_3, %c0_4] : memref<1x256xf32, #tpu.memory_space<vmem>>, vector<1x256xf32>
    %6 = vector.broadcast %5 : vector<1x256xf32> to vector<8x256xf32>
    %7 = arith.addf %4, %6 : vector<8x256xf32>
    %c0_5 = arith.constant 0 : index
    %c0_6 = arith.constant 0 : index
    %8 = vector.load %arg3[%c0_5, %c0_6] : memref<8x256xbf16, #tpu.memory_space<vmem>>, vector<8x256xbf16>
    %9 = arith.extf %8 : vector<8x256xbf16> to vector<8x256xf32>
    %c0_7 = arith.constant 0 : index
    %c0_8 = arith.constant 0 : index
    %10 = vector.load %arg4[%c0_7, %c0_8] : memref<1x256xf32, #tpu.memory_space<vmem>>, vector<1x256xf32>
    %11 = vector.broadcast %10 : vector<1x256xf32> to vector<8x256xf32>
    %12 = arith.mulf %9, %11 : vector<8x256xf32>
    %13 = arith.addf %7, %12 : vector<8x256xf32>
    %c0_9 = arith.constant 0 : index
    %c0_10 = arith.constant 0 : index
    %14 = vector.load %arg5[%c0_9, %c0_10] : memref<1x256xf32, #tpu.memory_space<vmem>>, vector<1x256xf32>
    %15 = vector.broadcast %14 : vector<1x256xf32> to vector<8x256xf32>
    %16 = arith.addf %13, %15 : vector<8x256xf32>
    %cst = arith.constant 0.000000e+00 : f32
    %17 = vector.broadcast %cst : f32 to vector<8x256xf32>
    %18 = arith.maximumf %16, %17 : vector<8x256xf32>
    %19 = arith.truncf %18 : vector<8x256xf32> to vector<8x256xbf16>
    %c0_11 = arith.constant 0 : index
    %c0_12 = arith.constant 0 : index
    %20 = vector.load %arg6[%c0_11, %c0_12] : memref<8x256xbf16, #tpu.memory_space<vmem>>, vector<8x256xbf16>
    tpu.vector_store %arg6[%c0_11, %c0_12], %19 {strides = array<i32>} : memref<8x256xbf16, #tpu.memory_space<vmem>>, vector<8x256xbf16>,
    return
  }
}

module attributes {stable_mosaic.version = 11 : i64} {
  func.func @_affine_res_kernel(%arg0: memref<8x256xbf16, #tpu.memory_space<vmem>>, %arg1: memref<1x256xf32, #tpu.memory_space<vmem>>, %arg2: memref<1x256xf32, #tpu.memory_space<vmem>>, %arg3: memref<8x256xbf16, #tpu.memory_space<vmem>>, %arg4: memref<8x256xbf16, #tpu.memory_space<vmem>>) attributes {dimension_semantics = [], scalar_prefetch = 0 : i64, scratch_operands = 0 : i64, tpu.core_type = #tpu.core_type<tc>} {
    %c0 = arith.constant 0 : index
    %c0_0 = arith.constant 0 : index
    %0 = vector.load %arg0[%c0, %c0_0] : memref<8x256xbf16, #tpu.memory_space<vmem>>, vector<8x256xbf16>
    %1 = arith.extf %0 : vector<8x256xbf16> to vector<8x256xf32>
    %c0_1 = arith.constant 0 : index
    %c0_2 = arith.constant 0 : index
    %2 = vector.load %arg1[%c0_1, %c0_2] : memref<1x256xf32, #tpu.memory_space<vmem>>, vector<1x256xf32>
    %3 = vector.broadcast %2 : vector<1x256xf32> to vector<8x256xf32>
    %4 = arith.mulf %1, %3 : vector<8x256xf32>
    %c0_3 = arith.constant 0 : index
    %c0_4 = arith.constant 0 : index
    %5 = vector.load %arg2[%c0_3, %c0_4] : memref<1x256xf32, #tpu.memory_space<vmem>>, vector<1x256xf32>
    %6 = vector.broadcast %5 : vector<1x256xf32> to vector<8x256xf32>
    %7 = arith.addf %4, %6 : vector<8x256xf32>
    %c0_5 = arith.constant 0 : index
    %c0_6 = arith.constant 0 : index
    %8 = vector.load %arg3[%c0_5, %c0_6] : memref<8x256xbf16, #tpu.memory_space<vmem>>, vector<8x256xbf16>
    %9 = arith.extf %8 : vector<8x256xbf16> to vector<8x256xf32>
    %10 = arith.addf %7, %9 : vector<8x256xf32>
    %cst = arith.constant 0.000000e+00 : f32
    %11 = vector.broadcast %cst : f32 to vector<8x256xf32>
    %12 = arith.maximumf %10, %11 : vector<8x256xf32>
    %13 = arith.truncf %12 : vector<8x256xf32> to vector<8x256xbf16>
    %c0_7 = arith.constant 0 : index
    %c0_8 = arith.constant 0 : index
    %14 = vector.load %arg4[%c0_7, %c0_8] : memref<8x256xbf16, #tpu.memory_space<vmem>>, vector<8x256xbf16>
    tpu.vector_store %arg4[%c0_7, %c0_8], %13 {strides = array<i32>} : memref<8x256xbf16, #tpu.memory_space<vmem>>, vector<8x256xbf16>,
    return
  }
}

module attributes {stable_mosaic.version = 11 : i64} {
  func.func @_mm_stats_kernel(%arg0: i32, %arg1: i32, %arg2: i32, %arg3: memref<8x256xbf16, #tpu.memory_space<vmem>>, %arg4: memref<256x512xbf16, #tpu.memory_space<vmem>>, %arg5: memref<8x512xbf16, #tpu.memory_space<vmem>>, %arg6: memref<1x512xf32, #tpu.memory_space<vmem>>, %arg7: memref<1x512xf32, #tpu.memory_space<vmem>>, %arg8: memref<8x512xf32, #tpu.memory_space<vmem>>) attributes {dimension_semantics = [#tpu.dimension_semantics<parallel>, #tpu.dimension_semantics<arbitrary>, #tpu.dimension_semantics<arbitrary>], iteration_bounds = array<i64: 1, 1, 1>, scalar_prefetch = 0 : i64, scratch_operands = 1 : i64, tpu.core_type = #tpu.core_type<tc>, window_params = [{transform_indices = @transform_0, window_bounds = array<i64: 8, 256>}, {transform_indices = @transform_1, window_bounds = array<i64: 256, 512>}, {transform_indices = @transform_2, window_bounds = array<i64: 8, 512>}, {transform_indices = @transform_3, window_bounds = array<i64: 1, 512>}, {transform_indices = @transform_4, window_bounds = array<i64: 1, 512>}]} {
    %c0_i32 = arith.constant 0 : i32
    %0 = arith.cmpi eq, %arg2, %c0_i32 : i32
    %1 = arith.extui %0 : i1 to i32
    %c0_i32_0 = arith.constant 0 : i32
    %2 = arith.cmpi ne, %1, %c0_i32_0 : i32
    scf.if %2 {
      %cst_13 = arith.constant 0.000000e+00 : f32
      %17 = vector.broadcast %cst_13 : f32 to vector<8x512xf32>
      %c0_14 = arith.constant 0 : index
      %c0_15 = arith.constant 0 : index
      %18 = vector.load %arg8[%c0_14, %c0_15] : memref<8x512xf32, #tpu.memory_space<vmem>>, vector<8x512xf32>
      tpu.vector_store %arg8[%c0_14, %c0_15], %17 {strides = array<i32>} : memref<8x512xf32, #tpu.memory_space<vmem>>, vector<8x512xf32>,
    } else {
    }
    %c0_i32_1 = arith.constant 0 : i32
    %3 = arith.cmpi eq, %arg1, %c0_i32_1 : i32
    %c0_i32_2 = arith.constant 0 : i32
    %4 = arith.cmpi eq, %arg2, %c0_i32_2 : i32
    %5 = arith.andi %3, %4 : i1
    %6 = arith.extui %5 : i1 to i32
    %c0_i32_3 = arith.constant 0 : i32
    %7 = arith.cmpi ne, %6, %c0_i32_3 : i32
    scf.if %7 {
      %cst_13 = arith.constant 0.000000e+00 : f32
      %17 = vector.broadcast %cst_13 : f32 to vector<1x512xf32>
      %c0_14 = arith.constant 0 : index
      %c0_15 = arith.constant 0 : index
      %18 = vector.load %arg6[%c0_14, %c0_15] : memref<1x512xf32, #tpu.memory_space<vmem>>, vector<1x512xf32>
      tpu.vector_store %arg6[%c0_14, %c0_15], %17 {strides = array<i32>} : memref<1x512xf32, #tpu.memory_space<vmem>>, vector<1x512xf32>,
      %cst_16 = arith.constant 0.000000e+00 : f32
      %19 = vector.broadcast %cst_16 : f32 to vector<1x512xf32>
      %c0_17 = arith.constant 0 : index
      %c0_18 = arith.constant 0 : index
      %20 = vector.load %arg7[%c0_17, %c0_18] : memref<1x512xf32, #tpu.memory_space<vmem>>, vector<1x512xf32>
      tpu.vector_store %arg7[%c0_17, %c0_18], %19 {strides = array<i32>} : memref<1x512xf32, #tpu.memory_space<vmem>>, vector<1x512xf32>,
    } else {
    }
    %c0 = arith.constant 0 : index
    %c0_4 = arith.constant 0 : index
    %8 = vector.load %arg8[%c0, %c0_4] : memref<8x512xf32, #tpu.memory_space<vmem>>, vector<8x512xf32>
    %c0_5 = arith.constant 0 : index
    %c0_6 = arith.constant 0 : index
    %9 = vector.load %arg3[%c0_5, %c0_6] : memref<8x256xbf16, #tpu.memory_space<vmem>>, vector<8x256xbf16>
    %c0_7 = arith.constant 0 : index
    %c0_8 = arith.constant 0 : index
    %10 = vector.load %arg4[%c0_7, %c0_8] : memref<256x512xbf16, #tpu.memory_space<vmem>>, vector<256x512xbf16>
    %cst = arith.constant dense<0.000000e+00> : vector<8x512xf32>
    %11 = tpu.matmul %9, %10, %cst {dimension_numbers = #tpu.dot_dimension_numbers<[1], [0], [0], [1], [0, 0, 1, 1], [], []>} : vector<8x256xbf16>, vector<256x512xbf16>, vector<8x512xf32> -> vector<8x512xf32>
    %12 = arith.addf %8, %11 : vector<8x512xf32>
    %c0_9 = arith.constant 0 : index
    %c0_10 = arith.constant 0 : index
    %13 = vector.load %arg8[%c0_9, %c0_10] : memref<8x512xf32, #tpu.memory_space<vmem>>, vector<8x512xf32>
    tpu.vector_store %arg8[%c0_9, %c0_10], %12 {strides = array<i32>} : memref<8x512xf32, #tpu.memory_space<vmem>>, vector<8x512xf32>,
    %c0_i32_11 = arith.constant 0 : i32
    %14 = arith.cmpi eq, %arg2, %c0_i32_11 : i32
    %15 = arith.extui %14 : i1 to i32
    %c0_i32_12 = arith.constant 0 : i32
    %16 = arith.cmpi ne, %15, %c0_i32_12 : i32
    scf.if %16 {
      %c0_13 = arith.constant 0 : index
      %c0_14 = arith.constant 0 : index
      %17 = vector.load %arg8[%c0_13, %c0_14] : memref<8x512xf32, #tpu.memory_space<vmem>>, vector<8x512xf32>
      %18 = arith.truncf %17 : vector<8x512xf32> to vector<8x512xbf16>
      %c0_15 = arith.constant 0 : index
      %c0_16 = arith.constant 0 : index
      %19 = vector.load %arg5[%c0_15, %c0_16] : memref<8x512xbf16, #tpu.memory_space<vmem>>, vector<8x512xbf16>
      tpu.vector_store %arg5[%c0_15, %c0_16], %18 {strides = array<i32>} : memref<8x512xbf16, #tpu.memory_space<vmem>>, vector<8x512xbf16>,
      %c0_17 = arith.constant 0 : index
      %c0_18 = arith.constant 0 : index
      %20 = vector.load %arg6[%c0_17, %c0_18] : memref<1x512xf32, #tpu.memory_space<vmem>>, vector<1x512xf32>
      %cst_19 = arith.constant dense<0.000000e+00> : vector<512xf32>
      %21 = vector.multi_reduction <add>, %17, %cst_19 [0] : vector<8x512xf32> to vector<512xf32>
      %22 = vector.shape_cast %21 : vector<512xf32> to vector<1x512xf32>
      %23 = arith.addf %20, %22 : vector<1x512xf32>
      %c0_20 = arith.constant 0 : index
      %c0_21 = arith.constant 0 : index
      %24 = vector.load %arg6[%c0_20, %c0_21] : memref<1x512xf32, #tpu.memory_space<vmem>>, vector<1x512xf32>
      tpu.vector_store %arg6[%c0_20, %c0_21], %23 {strides = array<i32>} : memref<1x512xf32, #tpu.memory_space<vmem>>, vector<1x512xf32>,
      %c0_22 = arith.constant 0 : index
      %c0_23 = arith.constant 0 : index
      %25 = vector.load %arg7[%c0_22, %c0_23] : memref<1x512xf32, #tpu.memory_space<vmem>>, vector<1x512xf32>
      %26 = arith.mulf %17, %17 : vector<8x512xf32>
      %cst_24 = arith.constant dense<0.000000e+00> : vector<512xf32>
      %27 = vector.multi_reduction <add>, %26, %cst_24 [0] : vector<8x512xf32> to vector<512xf32>
      %28 = vector.shape_cast %27 : vector<512xf32> to vector<1x512xf32>
      %29 = arith.addf %25, %28 : vector<1x512xf32>
      %c0_25 = arith.constant 0 : index
      %c0_26 = arith.constant 0 : index
      %30 = vector.load %arg7[%c0_25, %c0_26] : memref<1x512xf32, #tpu.memory_space<vmem>>, vector<1x512xf32>
      tpu.vector_store %arg7[%c0_25, %c0_26], %29 {strides = array<i32>} : memref<1x512xf32, #tpu.memory_space<vmem>>, vector<1x512xf32>,
    } else {
    }
    return
  }
  func.func @transform_0(%arg0: i32, %arg1: i32, %arg2: i32) -> (i32, i32) {
    %c0_i32 = arith.constant 0 : i32
    return %arg1, %arg2 : i32, i32
  }
  func.func @transform_1(%arg0: i32, %arg1: i32, %arg2: i32) -> (i32, i32) {
    %c0_i32 = arith.constant 0 : i32
    return %arg2, %arg0 : i32, i32
  }
  func.func @transform_2(%arg0: i32, %arg1: i32, %arg2: i32) -> (i32, i32) {
    %c0_i32 = arith.constant 0 : i32
    return %arg1, %arg0 : i32, i32
  }
  func.func @transform_3(%arg0: i32, %arg1: i32, %arg2: i32) -> (i32, i32) {
    %c0_i32 = arith.constant 0 : i32
    %c0_i32_0 = arith.constant 0 : i32
    return %c0_i32, %arg0 : i32, i32
  }
  func.func @transform_4(%arg0: i32, %arg1: i32, %arg2: i32) -> (i32, i32) {
    %c0_i32 = arith.constant 0 : i32
    %c0_i32_0 = arith.constant 0 : i32
    return %c0_i32, %arg0 : i32, i32
  }
}

module attributes {stable_mosaic.version = 11 : i64} {
  func.func @_affine_kernel(%arg0: memref<8x512xbf16, #tpu.memory_space<vmem>>, %arg1: memref<1x512xf32, #tpu.memory_space<vmem>>, %arg2: memref<1x512xf32, #tpu.memory_space<vmem>>, %arg3: memref<8x512xbf16, #tpu.memory_space<vmem>>) attributes {dimension_semantics = [], scalar_prefetch = 0 : i64, scratch_operands = 0 : i64, tpu.core_type = #tpu.core_type<tc>} {
    %c0 = arith.constant 0 : index
    %c0_0 = arith.constant 0 : index
    %0 = vector.load %arg0[%c0, %c0_0] : memref<8x512xbf16, #tpu.memory_space<vmem>>, vector<8x512xbf16>
    %1 = arith.extf %0 : vector<8x512xbf16> to vector<8x512xf32>
    %c0_1 = arith.constant 0 : index
    %c0_2 = arith.constant 0 : index
    %2 = vector.load %arg1[%c0_1, %c0_2] : memref<1x512xf32, #tpu.memory_space<vmem>>, vector<1x512xf32>
    %3 = vector.broadcast %2 : vector<1x512xf32> to vector<8x512xf32>
    %4 = arith.mulf %1, %3 : vector<8x512xf32>
    %c0_3 = arith.constant 0 : index
    %c0_4 = arith.constant 0 : index
    %5 = vector.load %arg2[%c0_3, %c0_4] : memref<1x512xf32, #tpu.memory_space<vmem>>, vector<1x512xf32>
    %6 = vector.broadcast %5 : vector<1x512xf32> to vector<8x512xf32>
    %7 = arith.addf %4, %6 : vector<8x512xf32>
    %cst = arith.constant 0.000000e+00 : f32
    %8 = vector.broadcast %cst : f32 to vector<8x512xf32>
    %9 = arith.maximumf %7, %8 : vector<8x512xf32>
    %10 = arith.truncf %9 : vector<8x512xf32> to vector<8x512xbf16>
    %c0_5 = arith.constant 0 : index
    %c0_6 = arith.constant 0 : index
    %11 = vector.load %arg3[%c0_5, %c0_6] : memref<8x512xbf16, #tpu.memory_space<vmem>>, vector<8x512xbf16>
    tpu.vector_store %arg3[%c0_5, %c0_6], %10 {strides = array<i32>} : memref<8x512xbf16, #tpu.memory_space<vmem>>, vector<8x512xbf16>,
    return
  }
}

module attributes {stable_mosaic.version = 11 : i64} {
  func.func @_mm_stats_kernel(%arg0: i32, %arg1: i32, %arg2: i32, %arg3: memref<8x256xbf16, #tpu.memory_space<vmem>>, %arg4: memref<256x512xbf16, #tpu.memory_space<vmem>>, %arg5: memref<8x512xbf16, #tpu.memory_space<vmem>>, %arg6: memref<1x512xf32, #tpu.memory_space<vmem>>, %arg7: memref<1x512xf32, #tpu.memory_space<vmem>>, %arg8: memref<8x512xf32, #tpu.memory_space<vmem>>) attributes {dimension_semantics = [#tpu.dimension_semantics<parallel>, #tpu.dimension_semantics<arbitrary>, #tpu.dimension_semantics<arbitrary>], iteration_bounds = array<i64: 1, 1, 9>, scalar_prefetch = 0 : i64, scratch_operands = 1 : i64, tpu.core_type = #tpu.core_type<tc>, window_params = [{transform_indices = @transform_0, window_bounds = array<i64: 8, 256>}, {transform_indices = @transform_1, window_bounds = array<i64: 256, 512>}, {transform_indices = @transform_2, window_bounds = array<i64: 8, 512>}, {transform_indices = @transform_3, window_bounds = array<i64: 1, 512>}, {transform_indices = @transform_4, window_bounds = array<i64: 1, 512>}]} {
    %c0_i32 = arith.constant 0 : i32
    %0 = arith.cmpi eq, %arg2, %c0_i32 : i32
    %1 = arith.extui %0 : i1 to i32
    %c0_i32_0 = arith.constant 0 : i32
    %2 = arith.cmpi ne, %1, %c0_i32_0 : i32
    scf.if %2 {
      %cst_12 = arith.constant 0.000000e+00 : f32
      %17 = vector.broadcast %cst_12 : f32 to vector<8x512xf32>
      %c0_13 = arith.constant 0 : index
      %c0_14 = arith.constant 0 : index
      %18 = vector.load %arg8[%c0_13, %c0_14] : memref<8x512xf32, #tpu.memory_space<vmem>>, vector<8x512xf32>
      tpu.vector_store %arg8[%c0_13, %c0_14], %17 {strides = array<i32>} : memref<8x512xf32, #tpu.memory_space<vmem>>, vector<8x512xf32>,
    } else {
    }
    %c0_i32_1 = arith.constant 0 : i32
    %3 = arith.cmpi eq, %arg1, %c0_i32_1 : i32
    %c0_i32_2 = arith.constant 0 : i32
    %4 = arith.cmpi eq, %arg2, %c0_i32_2 : i32
    %5 = arith.andi %3, %4 : i1
    %6 = arith.extui %5 : i1 to i32
    %c0_i32_3 = arith.constant 0 : i32
    %7 = arith.cmpi ne, %6, %c0_i32_3 : i32
    scf.if %7 {
      %cst_12 = arith.constant 0.000000e+00 : f32
      %17 = vector.broadcast %cst_12 : f32 to vector<1x512xf32>
      %c0_13 = arith.constant 0 : index
      %c0_14 = arith.constant 0 : index
      %18 = vector.load %arg6[%c0_13, %c0_14] : memref<1x512xf32, #tpu.memory_space<vmem>>, vector<1x512xf32>
      tpu.vector_store %arg6[%c0_13, %c0_14], %17 {strides = array<i32>} : memref<1x512xf32, #tpu.memory_space<vmem>>, vector<1x512xf32>,
      %cst_15 = arith.constant 0.000000e+00 : f32
      %19 = vector.broadcast %cst_15 : f32 to vector<1x512xf32>
      %c0_16 = arith.constant 0 : index
      %c0_17 = arith.constant 0 : index
      %20 = vector.load %arg7[%c0_16, %c0_17] : memref<1x512xf32, #tpu.memory_space<vmem>>, vector<1x512xf32>
      tpu.vector_store %arg7[%c0_16, %c0_17], %19 {strides = array<i32>} : memref<1x512xf32, #tpu.memory_space<vmem>>, vector<1x512xf32>,
    } else {
    }
    %c0 = arith.constant 0 : index
    %c0_4 = arith.constant 0 : index
    %8 = vector.load %arg8[%c0, %c0_4] : memref<8x512xf32, #tpu.memory_space<vmem>>, vector<8x512xf32>
    %c0_5 = arith.constant 0 : index
    %c0_6 = arith.constant 0 : index
    %9 = vector.load %arg3[%c0_5, %c0_6] : memref<8x256xbf16, #tpu.memory_space<vmem>>, vector<8x256xbf16>
    %c0_7 = arith.constant 0 : index
    %c0_8 = arith.constant 0 : index
    %10 = vector.load %arg4[%c0_7, %c0_8] : memref<256x512xbf16, #tpu.memory_space<vmem>>, vector<256x512xbf16>
    %cst = arith.constant dense<0.000000e+00> : vector<8x512xf32>
    %11 = tpu.matmul %9, %10, %cst {dimension_numbers = #tpu.dot_dimension_numbers<[1], [0], [0], [1], [0, 0, 1, 1], [], []>} : vector<8x256xbf16>, vector<256x512xbf16>, vector<8x512xf32> -> vector<8x512xf32>
    %12 = arith.addf %8, %11 : vector<8x512xf32>
    %c0_9 = arith.constant 0 : index
    %c0_10 = arith.constant 0 : index
    %13 = vector.load %arg8[%c0_9, %c0_10] : memref<8x512xf32, #tpu.memory_space<vmem>>, vector<8x512xf32>
    tpu.vector_store %arg8[%c0_9, %c0_10], %12 {strides = array<i32>} : memref<8x512xf32, #tpu.memory_space<vmem>>, vector<8x512xf32>,
    %c8_i32 = arith.constant 8 : i32
    %14 = arith.cmpi eq, %arg2, %c8_i32 : i32
    %15 = arith.extui %14 : i1 to i32
    %c0_i32_11 = arith.constant 0 : i32
    %16 = arith.cmpi ne, %15, %c0_i32_11 : i32
    scf.if %16 {
      %c0_12 = arith.constant 0 : index
      %c0_13 = arith.constant 0 : index
      %17 = vector.load %arg8[%c0_12, %c0_13] : memref<8x512xf32, #tpu.memory_space<vmem>>, vector<8x512xf32>
      %18 = arith.truncf %17 : vector<8x512xf32> to vector<8x512xbf16>
      %c0_14 = arith.constant 0 : index
      %c0_15 = arith.constant 0 : index
      %19 = vector.load %arg5[%c0_14, %c0_15] : memref<8x512xbf16, #tpu.memory_space<vmem>>, vector<8x512xbf16>
      tpu.vector_store %arg5[%c0_14, %c0_15], %18 {strides = array<i32>} : memref<8x512xbf16, #tpu.memory_space<vmem>>, vector<8x512xbf16>,
      %c0_16 = arith.constant 0 : index
      %c0_17 = arith.constant 0 : index
      %20 = vector.load %arg6[%c0_16, %c0_17] : memref<1x512xf32, #tpu.memory_space<vmem>>, vector<1x512xf32>
      %cst_18 = arith.constant dense<0.000000e+00> : vector<512xf32>
      %21 = vector.multi_reduction <add>, %17, %cst_18 [0] : vector<8x512xf32> to vector<512xf32>
      %22 = vector.shape_cast %21 : vector<512xf32> to vector<1x512xf32>
      %23 = arith.addf %20, %22 : vector<1x512xf32>
      %c0_19 = arith.constant 0 : index
      %c0_20 = arith.constant 0 : index
      %24 = vector.load %arg6[%c0_19, %c0_20] : memref<1x512xf32, #tpu.memory_space<vmem>>, vector<1x512xf32>
      tpu.vector_store %arg6[%c0_19, %c0_20], %23 {strides = array<i32>} : memref<1x512xf32, #tpu.memory_space<vmem>>, vector<1x512xf32>,
      %c0_21 = arith.constant 0 : index
      %c0_22 = arith.constant 0 : index
      %25 = vector.load %arg7[%c0_21, %c0_22] : memref<1x512xf32, #tpu.memory_space<vmem>>, vector<1x512xf32>
      %26 = arith.mulf %17, %17 : vector<8x512xf32>
      %cst_23 = arith.constant dense<0.000000e+00> : vector<512xf32>
      %27 = vector.multi_reduction <add>, %26, %cst_23 [0] : vector<8x512xf32> to vector<512xf32>
      %28 = vector.shape_cast %27 : vector<512xf32> to vector<1x512xf32>
      %29 = arith.addf %25, %28 : vector<1x512xf32>
      %c0_24 = arith.constant 0 : index
      %c0_25 = arith.constant 0 : index
      %30 = vector.load %arg7[%c0_24, %c0_25] : memref<1x512xf32, #tpu.memory_space<vmem>>, vector<1x512xf32>
      tpu.vector_store %arg7[%c0_24, %c0_25], %29 {strides = array<i32>} : memref<1x512xf32, #tpu.memory_space<vmem>>, vector<1x512xf32>,
    } else {
    }
    return
  }
  func.func @transform_0(%arg0: i32, %arg1: i32, %arg2: i32) -> (i32, i32) {
    %c0_i32 = arith.constant 0 : i32
    return %arg1, %arg2 : i32, i32
  }
  func.func @transform_1(%arg0: i32, %arg1: i32, %arg2: i32) -> (i32, i32) {
    %c0_i32 = arith.constant 0 : i32
    return %arg2, %arg0 : i32, i32
  }
  func.func @transform_2(%arg0: i32, %arg1: i32, %arg2: i32) -> (i32, i32) {
    %c0_i32 = arith.constant 0 : i32
    return %arg1, %arg0 : i32, i32
  }
  func.func @transform_3(%arg0: i32, %arg1: i32, %arg2: i32) -> (i32, i32) {
    %c0_i32 = arith.constant 0 : i32
    %c0_i32_0 = arith.constant 0 : i32
    return %c0_i32, %arg0 : i32, i32
  }
  func.func @transform_4(%arg0: i32, %arg1: i32, %arg2: i32) -> (i32, i32) {
    %c0_i32 = arith.constant 0 : i32
    %c0_i32_0 = arith.constant 0 : i32
    return %c0_i32, %arg0 : i32, i32
  }
}

module attributes {stable_mosaic.version = 11 : i64} {
  func.func @_mm_stats_kernel(%arg0: i32, %arg1: i32, %arg2: i32, %arg3: memref<8x512xbf16, #tpu.memory_space<vmem>>, %arg4: memref<512x512xbf16, #tpu.memory_space<vmem>>, %arg5: memref<8x512xbf16, #tpu.memory_space<vmem>>, %arg6: memref<1x512xf32, #tpu.memory_space<vmem>>, %arg7: memref<1x512xf32, #tpu.memory_space<vmem>>, %arg8: memref<8x512xf32, #tpu.memory_space<vmem>>) attributes {dimension_semantics = [#tpu.dimension_semantics<parallel>, #tpu.dimension_semantics<arbitrary>, #tpu.dimension_semantics<arbitrary>], iteration_bounds = array<i64: 1, 1, 9>, scalar_prefetch = 0 : i64, scratch_operands = 1 : i64, tpu.core_type = #tpu.core_type<tc>, window_params = [{transform_indices = @transform_0, window_bounds = array<i64: 8, 512>}, {transform_indices = @transform_1, window_bounds = array<i64: 512, 512>}, {transform_indices = @transform_2, window_bounds = array<i64: 8, 512>}, {transform_indices = @transform_3, window_bounds = array<i64: 1, 512>}, {transform_indices = @transform_4, window_bounds = array<i64: 1, 512>}]} {
    %c0_i32 = arith.constant 0 : i32
    %0 = arith.cmpi eq, %arg2, %c0_i32 : i32
    %1 = arith.extui %0 : i1 to i32
    %c0_i32_0 = arith.constant 0 : i32
    %2 = arith.cmpi ne, %1, %c0_i32_0 : i32
    scf.if %2 {
      %cst_12 = arith.constant 0.000000e+00 : f32
      %17 = vector.broadcast %cst_12 : f32 to vector<8x512xf32>
      %c0_13 = arith.constant 0 : index
      %c0_14 = arith.constant 0 : index
      %18 = vector.load %arg8[%c0_13, %c0_14] : memref<8x512xf32, #tpu.memory_space<vmem>>, vector<8x512xf32>
      tpu.vector_store %arg8[%c0_13, %c0_14], %17 {strides = array<i32>} : memref<8x512xf32, #tpu.memory_space<vmem>>, vector<8x512xf32>,
    } else {
    }
    %c0_i32_1 = arith.constant 0 : i32
    %3 = arith.cmpi eq, %arg1, %c0_i32_1 : i32
    %c0_i32_2 = arith.constant 0 : i32
    %4 = arith.cmpi eq, %arg2, %c0_i32_2 : i32
    %5 = arith.andi %3, %4 : i1
    %6 = arith.extui %5 : i1 to i32
    %c0_i32_3 = arith.constant 0 : i32
    %7 = arith.cmpi ne, %6, %c0_i32_3 : i32
    scf.if %7 {
      %cst_12 = arith.constant 0.000000e+00 : f32
      %17 = vector.broadcast %cst_12 : f32 to vector<1x512xf32>
      %c0_13 = arith.constant 0 : index
      %c0_14 = arith.constant 0 : index
      %18 = vector.load %arg6[%c0_13, %c0_14] : memref<1x512xf32, #tpu.memory_space<vmem>>, vector<1x512xf32>
      tpu.vector_store %arg6[%c0_13, %c0_14], %17 {strides = array<i32>} : memref<1x512xf32, #tpu.memory_space<vmem>>, vector<1x512xf32>,
      %cst_15 = arith.constant 0.000000e+00 : f32
      %19 = vector.broadcast %cst_15 : f32 to vector<1x512xf32>
      %c0_16 = arith.constant 0 : index
      %c0_17 = arith.constant 0 : index
      %20 = vector.load %arg7[%c0_16, %c0_17] : memref<1x512xf32, #tpu.memory_space<vmem>>, vector<1x512xf32>
      tpu.vector_store %arg7[%c0_16, %c0_17], %19 {strides = array<i32>} : memref<1x512xf32, #tpu.memory_space<vmem>>, vector<1x512xf32>,
    } else {
    }
    %c0 = arith.constant 0 : index
    %c0_4 = arith.constant 0 : index
    %8 = vector.load %arg8[%c0, %c0_4] : memref<8x512xf32, #tpu.memory_space<vmem>>, vector<8x512xf32>
    %c0_5 = arith.constant 0 : index
    %c0_6 = arith.constant 0 : index
    %9 = vector.load %arg3[%c0_5, %c0_6] : memref<8x512xbf16, #tpu.memory_space<vmem>>, vector<8x512xbf16>
    %c0_7 = arith.constant 0 : index
    %c0_8 = arith.constant 0 : index
    %10 = vector.load %arg4[%c0_7, %c0_8] : memref<512x512xbf16, #tpu.memory_space<vmem>>, vector<512x512xbf16>
    %cst = arith.constant dense<0.000000e+00> : vector<8x512xf32>
    %11 = tpu.matmul %9, %10, %cst {dimension_numbers = #tpu.dot_dimension_numbers<[1], [0], [0], [1], [0, 0, 1, 1], [], []>} : vector<8x512xbf16>, vector<512x512xbf16>, vector<8x512xf32> -> vector<8x512xf32>
    %12 = arith.addf %8, %11 : vector<8x512xf32>
    %c0_9 = arith.constant 0 : index
    %c0_10 = arith.constant 0 : index
    %13 = vector.load %arg8[%c0_9, %c0_10] : memref<8x512xf32, #tpu.memory_space<vmem>>, vector<8x512xf32>
    tpu.vector_store %arg8[%c0_9, %c0_10], %12 {strides = array<i32>} : memref<8x512xf32, #tpu.memory_space<vmem>>, vector<8x512xf32>,
    %c8_i32 = arith.constant 8 : i32
    %14 = arith.cmpi eq, %arg2, %c8_i32 : i32
    %15 = arith.extui %14 : i1 to i32
    %c0_i32_11 = arith.constant 0 : i32
    %16 = arith.cmpi ne, %15, %c0_i32_11 : i32
    scf.if %16 {
      %c0_12 = arith.constant 0 : index
      %c0_13 = arith.constant 0 : index
      %17 = vector.load %arg8[%c0_12, %c0_13] : memref<8x512xf32, #tpu.memory_space<vmem>>, vector<8x512xf32>
      %18 = arith.truncf %17 : vector<8x512xf32> to vector<8x512xbf16>
      %c0_14 = arith.constant 0 : index
      %c0_15 = arith.constant 0 : index
      %19 = vector.load %arg5[%c0_14, %c0_15] : memref<8x512xbf16, #tpu.memory_space<vmem>>, vector<8x512xbf16>
      tpu.vector_store %arg5[%c0_14, %c0_15], %18 {strides = array<i32>} : memref<8x512xbf16, #tpu.memory_space<vmem>>, vector<8x512xbf16>,
      %c0_16 = arith.constant 0 : index
      %c0_17 = arith.constant 0 : index
      %20 = vector.load %arg6[%c0_16, %c0_17] : memref<1x512xf32, #tpu.memory_space<vmem>>, vector<1x512xf32>
      %cst_18 = arith.constant dense<0.000000e+00> : vector<512xf32>
      %21 = vector.multi_reduction <add>, %17, %cst_18 [0] : vector<8x512xf32> to vector<512xf32>
      %22 = vector.shape_cast %21 : vector<512xf32> to vector<1x512xf32>
      %23 = arith.addf %20, %22 : vector<1x512xf32>
      %c0_19 = arith.constant 0 : index
      %c0_20 = arith.constant 0 : index
      %24 = vector.load %arg6[%c0_19, %c0_20] : memref<1x512xf32, #tpu.memory_space<vmem>>, vector<1x512xf32>
      tpu.vector_store %arg6[%c0_19, %c0_20], %23 {strides = array<i32>} : memref<1x512xf32, #tpu.memory_space<vmem>>, vector<1x512xf32>,
      %c0_21 = arith.constant 0 : index
      %c0_22 = arith.constant 0 : index
      %25 = vector.load %arg7[%c0_21, %c0_22] : memref<1x512xf32, #tpu.memory_space<vmem>>, vector<1x512xf32>
      %26 = arith.mulf %17, %17 : vector<8x512xf32>
      %cst_23 = arith.constant dense<0.000000e+00> : vector<512xf32>
      %27 = vector.multi_reduction <add>, %26, %cst_23 [0] : vector<8x512xf32> to vector<512xf32>
      %28 = vector.shape_cast %27 : vector<512xf32> to vector<1x512xf32>
      %29 = arith.addf %25, %28 : vector<1x512xf32>
      %c0_24 = arith.constant 0 : index
      %c0_25 = arith.constant 0 : index
      %30 = vector.load %arg7[%c0_24, %c0_25] : memref<1x512xf32, #tpu.memory_space<vmem>>, vector<1x512xf32>
      tpu.vector_store %arg7[%c0_24, %c0_25], %29 {strides = array<i32>} : memref<1x512xf32, #tpu.memory_space<vmem>>, vector<1x512xf32>,
    } else {
    }
    return
  }
  func.func @transform_0(%arg0: i32, %arg1: i32, %arg2: i32) -> (i32, i32) {
    %c0_i32 = arith.constant 0 : i32
    return %arg1, %arg2 : i32, i32
  }
  func.func @transform_1(%arg0: i32, %arg1: i32, %arg2: i32) -> (i32, i32) {
    %c0_i32 = arith.constant 0 : i32
    return %arg2, %arg0 : i32, i32
  }
  func.func @transform_2(%arg0: i32, %arg1: i32, %arg2: i32) -> (i32, i32) {
    %c0_i32 = arith.constant 0 : i32
    return %arg1, %arg0 : i32, i32
  }
  func.func @transform_3(%arg0: i32, %arg1: i32, %arg2: i32) -> (i32, i32) {
    %c0_i32 = arith.constant 0 : i32
    %c0_i32_0 = arith.constant 0 : i32
    return %c0_i32, %arg0 : i32, i32
  }
  func.func @transform_4(%arg0: i32, %arg1: i32, %arg2: i32) -> (i32, i32) {
    %c0_i32 = arith.constant 0 : i32
    %c0_i32_0 = arith.constant 0 : i32
    return %c0_i32, %arg0 : i32, i32
  }
}

module attributes {stable_mosaic.version = 11 : i64} {
  func.func @_dual_affine_kernel(%arg0: memref<8x512xbf16, #tpu.memory_space<vmem>>, %arg1: memref<1x512xf32, #tpu.memory_space<vmem>>, %arg2: memref<1x512xf32, #tpu.memory_space<vmem>>, %arg3: memref<8x512xbf16, #tpu.memory_space<vmem>>, %arg4: memref<1x512xf32, #tpu.memory_space<vmem>>, %arg5: memref<1x512xf32, #tpu.memory_space<vmem>>, %arg6: memref<8x512xbf16, #tpu.memory_space<vmem>>) attributes {dimension_semantics = [], scalar_prefetch = 0 : i64, scratch_operands = 0 : i64, tpu.core_type = #tpu.core_type<tc>} {
    %c0 = arith.constant 0 : index
    %c0_0 = arith.constant 0 : index
    %0 = vector.load %arg0[%c0, %c0_0] : memref<8x512xbf16, #tpu.memory_space<vmem>>, vector<8x512xbf16>
    %1 = arith.extf %0 : vector<8x512xbf16> to vector<8x512xf32>
    %c0_1 = arith.constant 0 : index
    %c0_2 = arith.constant 0 : index
    %2 = vector.load %arg1[%c0_1, %c0_2] : memref<1x512xf32, #tpu.memory_space<vmem>>, vector<1x512xf32>
    %3 = vector.broadcast %2 : vector<1x512xf32> to vector<8x512xf32>
    %4 = arith.mulf %1, %3 : vector<8x512xf32>
    %c0_3 = arith.constant 0 : index
    %c0_4 = arith.constant 0 : index
    %5 = vector.load %arg2[%c0_3, %c0_4] : memref<1x512xf32, #tpu.memory_space<vmem>>, vector<1x512xf32>
    %6 = vector.broadcast %5 : vector<1x512xf32> to vector<8x512xf32>
    %7 = arith.addf %4, %6 : vector<8x512xf32>
    %c0_5 = arith.constant 0 : index
    %c0_6 = arith.constant 0 : index
    %8 = vector.load %arg3[%c0_5, %c0_6] : memref<8x512xbf16, #tpu.memory_space<vmem>>, vector<8x512xbf16>
    %9 = arith.extf %8 : vector<8x512xbf16> to vector<8x512xf32>
    %c0_7 = arith.constant 0 : index
    %c0_8 = arith.constant 0 : index
    %10 = vector.load %arg4[%c0_7, %c0_8] : memref<1x512xf32, #tpu.memory_space<vmem>>, vector<1x512xf32>
    %11 = vector.broadcast %10 : vector<1x512xf32> to vector<8x512xf32>
    %12 = arith.mulf %9, %11 : vector<8x512xf32>
    %13 = arith.addf %7, %12 : vector<8x512xf32>
    %c0_9 = arith.constant 0 : index
    %c0_10 = arith.constant 0 : index
    %14 = vector.load %arg5[%c0_9, %c0_10] : memref<1x512xf32, #tpu.memory_space<vmem>>, vector<1x512xf32>
    %15 = vector.broadcast %14 : vector<1x512xf32> to vector<8x512xf32>
    %16 = arith.addf %13, %15 : vector<8x512xf32>
    %cst = arith.constant 0.000000e+00 : f32
    %17 = vector.broadcast %cst : f32 to vector<8x512xf32>
    %18 = arith.maximumf %16, %17 : vector<8x512xf32>
    %19 = arith.truncf %18 : vector<8x512xf32> to vector<8x512xbf16>
    %c0_11 = arith.constant 0 : index
    %c0_12 = arith.constant 0 : index
    %20 = vector.load %arg6[%c0_11, %c0_12] : memref<8x512xbf16, #tpu.memory_space<vmem>>, vector<8x512xbf16>
    tpu.vector_store %arg6[%c0_11, %c0_12], %19 {strides = array<i32>} : memref<8x512xbf16, #tpu.memory_space<vmem>>, vector<8x512xbf16>,
    return
  }
}

module attributes {stable_mosaic.version = 11 : i64} {
  func.func @_affine_res_gap_kernel(%arg0: memref<2x1x512xbf16, #tpu.memory_space<vmem>>, %arg1: memref<1x1x512xf32, #tpu.memory_space<vmem>>, %arg2: memref<1x1x512xf32, #tpu.memory_space<vmem>>, %arg3: memref<2x1x512xbf16, #tpu.memory_space<vmem>>, %arg4: memref<2x512xbf16, #tpu.memory_space<vmem>>) attributes {dimension_semantics = [], scalar_prefetch = 0 : i64, scratch_operands = 0 : i64, tpu.core_type = #tpu.core_type<tc>} {
    %c0 = arith.constant 0 : index
    %c0_0 = arith.constant 0 : index
    %c0_1 = arith.constant 0 : index
    %0 = vector.load %arg0[%c0, %c0_0, %c0_1] : memref<2x1x512xbf16, #tpu.memory_space<vmem>>, vector<2x1x512xbf16>
    %1 = arith.extf %0 : vector<2x1x512xbf16> to vector<2x1x512xf32>
    %c0_2 = arith.constant 0 : index
    %c0_3 = arith.constant 0 : index
    %c0_4 = arith.constant 0 : index
    %2 = vector.load %arg1[%c0_2, %c0_3, %c0_4] : memref<1x1x512xf32, #tpu.memory_space<vmem>>, vector<1x1x512xf32>
    %3 = vector.broadcast %2 : vector<1x1x512xf32> to vector<2x1x512xf32>
    %4 = arith.mulf %1, %3 : vector<2x1x512xf32>
    %c0_5 = arith.constant 0 : index
    %c0_6 = arith.constant 0 : index
    %c0_7 = arith.constant 0 : index
    %5 = vector.load %arg2[%c0_5, %c0_6, %c0_7] : memref<1x1x512xf32, #tpu.memory_space<vmem>>, vector<1x1x512xf32>
    %6 = vector.broadcast %5 : vector<1x1x512xf32> to vector<2x1x512xf32>
    %7 = arith.addf %4, %6 : vector<2x1x512xf32>
    %c0_8 = arith.constant 0 : index
    %c0_9 = arith.constant 0 : index
    %c0_10 = arith.constant 0 : index
    %8 = vector.load %arg3[%c0_8, %c0_9, %c0_10] : memref<2x1x512xbf16, #tpu.memory_space<vmem>>, vector<2x1x512xbf16>
    %9 = arith.extf %8 : vector<2x1x512xbf16> to vector<2x1x512xf32>
    %10 = arith.addf %7, %9 : vector<2x1x512xf32>
    %cst = arith.constant 0.000000e+00 : f32
    %11 = vector.broadcast %cst : f32 to vector<2x1x512xf32>
    %12 = arith.maximumf %10, %11 : vector<2x1x512xf32>
    %cst_11 = arith.constant dense<0.000000e+00> : vector<2x512xf32>
    %13 = vector.multi_reduction <add>, %12, %cst_11 [1] : vector<2x1x512xf32> to vector<2x512xf32>
    %cst_12 = arith.constant 1.000000e+00 : f32
    %14 = vector.broadcast %cst_12 : f32 to vector<2x512xf32>
    %15 = arith.divf %13, %14 : vector<2x512xf32>
    %16 = arith.truncf %15 : vector<2x512xf32> to vector<2x512xbf16>
    %c0_13 = arith.constant 0 : index
    %c0_14 = arith.constant 0 : index
    %17 = vector.load %arg4[%c0_13, %c0_14] : memref<2x512xbf16, #tpu.memory_space<vmem>>, vector<2x512xbf16>
    tpu.vector_store %arg4[%c0_13, %c0_14], %16 {strides = array<i32>} : memref<2x512xbf16, #tpu.memory_space<vmem>>, vector<2x512xbf16>,
    return
  }
}

module attributes {stable_mosaic.version = 11 : i64} {
  func.func @_mlp_kernel(%arg0: memref<8x512xbf16, #tpu.memory_space<vmem>>, %arg1: memref<512x128xbf16, #tpu.memory_space<vmem>>, %arg2: memref<1x128xf32, #tpu.memory_space<vmem>>, %arg3: memref<128x128xbf16, #tpu.memory_space<vmem>>, %arg4: memref<1x128xf32, #tpu.memory_space<vmem>>, %arg5: memref<8x128xf32, #tpu.memory_space<vmem>>) attributes {dimension_semantics = [], scalar_prefetch = 0 : i64, scratch_operands = 0 : i64, tpu.core_type = #tpu.core_type<tc>} {
    %c0 = arith.constant 0 : index
    %c0_0 = arith.constant 0 : index
    %0 = vector.load %arg0[%c0, %c0_0] : memref<8x512xbf16, #tpu.memory_space<vmem>>, vector<8x512xbf16>
    %c0_1 = arith.constant 0 : index
    %c0_2 = arith.constant 0 : index
    %1 = vector.load %arg1[%c0_1, %c0_2] : memref<512x128xbf16, #tpu.memory_space<vmem>>, vector<512x128xbf16>
    %cst = arith.constant dense<0.000000e+00> : vector<8x128xf32>
    %2 = tpu.matmul %0, %1, %cst {dimension_numbers = #tpu.dot_dimension_numbers<[1], [0], [0], [1], [0, 0, 1, 1], [], []>} : vector<8x512xbf16>, vector<512x128xbf16>, vector<8x128xf32> -> vector<8x128xf32>
    %c0_3 = arith.constant 0 : index
    %c0_4 = arith.constant 0 : index
    %3 = vector.load %arg2[%c0_3, %c0_4] : memref<1x128xf32, #tpu.memory_space<vmem>>, vector<1x128xf32>
    %4 = vector.broadcast %3 : vector<1x128xf32> to vector<8x128xf32>
    %5 = arith.addf %2, %4 : vector<8x128xf32>
    %cst_5 = arith.constant 0.000000e+00 : f32
    %6 = vector.broadcast %cst_5 : f32 to vector<8x128xf32>
    %7 = arith.maximumf %5, %6 : vector<8x128xf32>
    %8 = arith.truncf %7 : vector<8x128xf32> to vector<8x128xbf16>
    %c0_6 = arith.constant 0 : index
    %c0_7 = arith.constant 0 : index
    %9 = vector.load %arg3[%c0_6, %c0_7] : memref<128x128xbf16, #tpu.memory_space<vmem>>, vector<128x128xbf16>
    %cst_8 = arith.constant dense<0.000000e+00> : vector<8x128xf32>
    %10 = tpu.matmul %8, %9, %cst_8 {dimension_numbers = #tpu.dot_dimension_numbers<[1], [0], [0], [1], [0, 0, 1, 1], [], []>} : vector<8x128xbf16>, vector<128x128xbf16>, vector<8x128xf32> -> vector<8x128xf32>
    %c0_9 = arith.constant 0 : index
    %c0_10 = arith.constant 0 : index
    %11 = vector.load %arg4[%c0_9, %c0_10] : memref<1x128xf32, #tpu.memory_space<vmem>>, vector<1x128xf32>
    %12 = vector.broadcast %11 : vector<1x128xf32> to vector<8x128xf32>
    %13 = arith.addf %10, %12 : vector<8x128xf32>
    %c0_11 = arith.constant 0 : index
    %c0_12 = arith.constant 0 : index
    %14 = vector.load %arg5[%c0_11, %c0_12] : memref<8x128xf32, #tpu.memory_space<vmem>>, vector<8x128xf32>
    tpu.vector_store %arg5[%c0_11, %c0_12], %13 {strides = array<i32>} : memref<8x128xf32, #tpu.memory_space<vmem>>, vector<8x128xf32>,
    return
  }
}

</mosaic_0001>

<bundles_post_ra>
// kernel: cnn_forward.41
= control target key start
LH: loop header
LB: loop body
LE: loop exit
PB: predicated region body
PF: predicated region fallthrough
CT: control target
= control target key end

     0   :  { %8 = vsyncpa [#allocation4], 0  ;;  %s2310_s0 = inlined_call_operand.vmem [shape: bf16[512,128], index: 0, kind: input, shape index: {}]   ;;  %s2311_s1 = inlined_call_operand.hbm [shape: bf16[128,128], index: 1, kind: input, shape index: {}]   ;;  %s2312_s2 = inlined_call_operand.hbm [shape: f32[1,128], index: 2, kind: input, shape index: {}]   ;;  %s2313_s3 = inlined_call_operand.vmem [shape: bf16[512,128], index: 3, kind: output, shape index: {}]  }
   0x1   :  { %9 = vsyncpa [#allocation6], 0  ;;  %s2022_s12 = smov [#allocation3]  }
   0x2   :  { %s17_s13 = sshll.u32 %s2022_s12, 4  ;;  %s18_s13 = int_to_ptr.vmem [resolvable:$true] %s17_s13 }
   0x3   :  { %s1986_s14 = scalar_lea.vmem %s18_s13, 1024  ;;  %p1991_p1 = scmp.lt.s32.totalorder %s18_s13, %s18_s13 }
   0x4   :  { %p1987_p0 = scmp.ne.s32.totalorder %s18_s13, %s1986_s14  ;;  %p1992_p2 = scmp.lt.s32.totalorder %s1986_s14, %s1986_s14 }
   0x6   :  { %p1993_p3 = por %p1992_p2, %p1991_p1 }
   0x8   :  { %p1994_p4 = pnand %p1993_p3, %p1987_p0 }
   0xa   :  { %1997 = shalt.err (!%p1994_p4)
}
   0xb   :  { %s2023_s15 = smov 64   ;;  %s2024_s16 = smov 4  }
   0xc   :  { %23 = dma.hbm_to_vmem [thread:$0]  %s2311_s1, 1024, %s18_s13, [#allocation4], %s2023_s15, %s2023_s15, %s2024_s16  }
   0xd   :  { %s2025_s19 = smov [#allocation5]  }
   0xe   :  { %s30_s20 = sshll.u32 %s2025_s19, 4  ;;  %s31_s20 = int_to_ptr.vmem [resolvable:$true] %s30_s20 }
   0xf   :  { %s2006_s21 = scalar_lea.vmem %s31_s20, 16  ;;  %s2010_s22 = scalar_lea.vmem %s31_s20, 32 }
  0x10   :  { %p2007_p5 = scmp.ne.s32.totalorder %s31_s20, %s2006_s21  ;;  %p2011_p6 = scmp.lt.s32.totalorder %s31_s20, %s31_s20 }
  0x11   :  { %p2012_p7 = scmp.lt.s32.totalorder %s2010_s22, %s2006_s21 }
  0x13   :  { %p2013_p8 = por %p2012_p7, %p2011_p6 }
  0x15   :  { %p2014_p9 = pnand %p2013_p8, %p2007_p5 }
  0x17   :  { %2017 = shalt.err (!%p2014_p9)
}
  0x18   :  { %33 = dma.hbm_to_vmem [thread:$0]  %s2312_s2, 16, %s31_s20, [#allocation6]  }
  0x19   :  { %2018 = dma.done.wait [#allocation4], 1024  }
  0x1a   :  { %2019 = vsyncadd [#allocation4], 4294966272 }
  0x1b   :  { %2020 = dma.done.wait [#allocation6], 16  }
  0x1c   :  { %2021 = vsyncadd [#allocation6], 4294967280  ;;  %v1938_v0 = vld [vmem:[#allocation3 + $0x38] sm:$0xff]   ;;  %v1939_v1 = vld [vmem:[#allocation3 + $0x30] sm:$0xff]  }
  0x1d   :  { %1838 = vmatprep.subr.bf16.mxu0 %v1938_v0  ;;  %1918 = vmatprep.subr.bf16.mxu1 %v1938_v0  ;;  %v1940_v2 = vld [vmem:[#allocation3 + $0x28] sm:$0xff]   ;;  %v1941_v3 = vld [vmem:[#allocation3 + $0x20] sm:$0xff]   ;;  %v1942_v6 = vld [vmem:[#allocation3 + $0x18] sm:$0xff]  }
  0x1e   :  { %1839 = vmatpush3.bf16.msra.mxu0 %v1938_v0  ;;  %1926 = vmatpush3.bf16.msra.mxu1 %v1938_v0  ;;  %v1946_v4 = vld [vmem:[%s2310_s0] sm:$0xff]   ;;  %v1943_v7 = vld [vmem:[#allocation3 + $0x10] sm:$0xff]   ;;  %v1944_v8 = vld [vmem:[#allocation3 + $0x8] sm:$0xff]  }
  0x1f   :  { %1840 = vmatprep.subr.bf16.mxu0 %v1939_v1  ;;  %1919 = vmatprep.subr.bf16.mxu1 %v1939_v1  ;;  %v1947_v5 = vld [vmem:[%s2310_s0 + $0x80] sm:$0xff]   ;;  %v1948_v10 = vld [vmem:[%s2310_s0 + $0x8] sm:$0xff]   ;;  %v1950_v12 = vld [vmem:[%s2310_s0 + $0x10] sm:$0xff]  }
  0x20   :  { %1854 = vmatprep.mubr.bf16.mxu0 %v1946_v4  ;;  %1886 = vmatprep.mubr.bf16.mxu1 %v1947_v5  ;;  %v1945_v9 = vld [vmem:[#allocation3] sm:$0xff]   ;;  %v1949_v11 = vld [vmem:[%s2310_s0 + $0x88] sm:$0xff]   ;;  %v1951_v13 = vld [vmem:[%s2310_s0 + $0x90] sm:$0xff]  }
  0x21   :  { %v1952_v14 = vld [vmem:[%s2310_s0 + $0x18] sm:$0xff]   ;;  %v1954_v16 = vld [vmem:[%s2310_s0 + $0x20] sm:$0xff]   ;;  %v1956_v18 = vld [vmem:[%s2310_s0 + $0x28] sm:$0xff]  }
  0x22   :  { %1841 = vmatpush3.bf16.msra.mxu0 %v1939_v1  ;;  %1927 = vmatpush3.bf16.msra.mxu1 %v1939_v1  ;;  %v1953_v15 = vld [vmem:[%s2310_s0 + $0x98] sm:$0xff]   ;;  %v1955_v17 = vld [vmem:[%s2310_s0 + $0xa0] sm:$0xff]   ;;  %v1957_v19 = vld [vmem:[%s2310_s0 + $0xa8] sm:$0xff]  }
  0x23   :  { %1842 = vmatprep.subr.bf16.mxu0 %v1940_v2  ;;  %1920 = vmatprep.subr.bf16.mxu1 %v1940_v2  ;;  %v1958_v20 = vld [vmem:[%s2310_s0 + $0x30] sm:$0xff]   ;;  %v1960_v22 = vld [vmem:[%s2310_s0 + $0x38] sm:$0xff]   ;;  %v1962_v24 = vld [vmem:[%s2310_s0 + $0x40] sm:$0xff]  }
  0x24   :  { %v1959_v21 = vld [vmem:[%s2310_s0 + $0xb0] sm:$0xff]   ;;  %v1961_v23 = vld [vmem:[%s2310_s0 + $0xb8] sm:$0xff]   ;;  %v1963_v25 = vld [vmem:[%s2310_s0 + $0xc0] sm:$0xff]  }
  0x25   :  { %v1964_v26 = vld [vmem:[%s2310_s0 + $0x48] sm:$0xff]   ;;  %v1966_v28 = vld [vmem:[%s2310_s0 + $0x50] sm:$0xff]   ;;  %v1968_v30 = vld [vmem:[%s2310_s0 + $0x58] sm:$0xff]  }
  0x26   :  { %1843 = vmatpush3.bf16.msra.mxu0 %v1940_v2  ;;  %1928 = vmatpush3.bf16.msra.mxu1 %v1940_v2  ;;  %v1965_v27 = vld [vmem:[%s2310_s0 + $0xc8] sm:$0xff]   ;;  %v1967_v29 = vld [vmem:[%s2310_s0 + $0xd0] sm:$0xff]   ;;  %v1969_v31 = vld [vmem:[%s2310_s0 + $0xd8] sm:$0xff]  }
  0x27   :  { %1844 = vmatprep.subr.bf16.mxu0 %v1941_v3  ;;  %1921 = vmatprep.subr.bf16.mxu1 %v1941_v3  ;;  %v1970_v32 = vld [vmem:[%s2310_s0 + $0x60] sm:$0xff]   ;;  %v1972_v34 = vld [vmem:[%s2310_s0 + $0x68] sm:$0xff]   ;;  %v1974_v36 = vld [vmem:[%s2310_s0 + $0x70] sm:$0xff]  }
  0x28   :  { %v1971_v33 = vld [vmem:[%s2310_s0 + $0xe0] sm:$0xff]   ;;  %v1973_v35 = vld [vmem:[%s2310_s0 + $0xe8] sm:$0xff]   ;;  %v1975_v37 = vld [vmem:[%s2310_s0 + $0xf0] sm:$0xff]  }
  0x29   :  { %v1976_v38 = vld [vmem:[%s2310_s0 + $0x78] sm:$0xff]   ;;  %v2148_v40 = vld [vmem:[#allocation5] ss:$0 sm:$0xff] }
  0x2a   :  { %1845 = vmatpush3.bf16.msra.mxu0 %v1941_v3  ;;  %1929 = vmatpush3.bf16.msra.mxu1 %v1941_v3  ;;  %v1977_v39 = vld [vmem:[%s2310_s0 + $0xf8] sm:$0xff]  }
  0x2b   :  { %1846 = vmatprep.subr.bf16.mxu0 %v1942_v6  ;;  %1922 = vmatprep.subr.bf16.mxu1 %v1942_v6 }
  0x2e   :  { %1847 = vmatpush3.bf16.msra.mxu0 %v1942_v6  ;;  %1930 = vmatpush3.bf16.msra.mxu1 %v1942_v6 }
  0x2f   :  { %1848 = vmatprep.subr.bf16.mxu0 %v1943_v7  ;;  %1923 = vmatprep.subr.bf16.mxu1 %v1943_v7 }
  0x32   :  { %1849 = vmatpush3.bf16.msra.mxu0 %v1943_v7  ;;  %1931 = vmatpush3.bf16.msra.mxu1 %v1943_v7 }
  0x33   :  { %1850 = vmatprep.subr.bf16.mxu0 %v1944_v8  ;;  %1924 = vmatprep.subr.bf16.mxu1 %v1944_v8 }
  0x36   :  { %1851 = vmatpush3.bf16.msra.mxu0 %v1944_v8  ;;  %1932 = vmatpush3.bf16.msra.mxu1 %v1944_v8 }
  0x37   :  { %1852 = vmatprep.subr.bf16.mxu0 %v1945_v9  ;;  %1925 = vmatprep.subr.bf16.mxu1 %v1945_v9 }
  0x3a   :  { %1853 = vmatpush3.bf16.msra.mxu0 %v1945_v9  ;;  %1933 = vmatpush3.bf16.msra.mxu1 %v1945_v9 }
  0x3d   :  { %1855 = vmatmul.mubr.bf16.vlgmr.msra.gmra.mxu0 %v1948_v10  ;;  %1887 = vmatmul.mubr.bf16.vlgmr.msra.gmra.mxu1 %v1949_v11 }
  0x3e   :  { %1858 = vmatprep.mubr.bf16.mxu0 %v1950_v12  ;;  %1890 = vmatprep.mubr.bf16.mxu1 %v1951_v13 }
  0x45   :  { %1859 = vmatmul.mubr.bf16.gmra.mxu0 %v1952_v14  ;;  %1891 = vmatmul.mubr.bf16.gmra.mxu1 %v1953_v15 }
  0x46   :  { %1862 = vmatprep.mubr.bf16.mxu0 %v1954_v16  ;;  %1894 = vmatprep.mubr.bf16.mxu1 %v1955_v17 }
  0x4d   :  { %1863 = vmatmul.mubr.bf16.gmra.mxu0 %v1956_v18  ;;  %1895 = vmatmul.mubr.bf16.gmra.mxu1 %v1957_v19 }
  0x4e   :  { %1866 = vmatprep.mubr.bf16.mxu0 %v1958_v20  ;;  %1898 = vmatprep.mubr.bf16.mxu1 %v1959_v21 }
  0x55   :  { %1867 = vmatmul.mubr.bf16.gmra.mxu0 %v1960_v22  ;;  %1899 = vmatmul.mubr.bf16.gmra.mxu1 %v1961_v23 }
  0x56   :  { %1870 = vmatprep.mubr.bf16.mxu0 %v1962_v24  ;;  %1902 = vmatprep.mubr.bf16.mxu1 %v1963_v25 }
  0x5d   :  { %1871 = vmatmul.mubr.bf16.gmra.mxu0 %v1964_v26  ;;  %1903 = vmatmul.mubr.bf16.gmra.mxu1 %v1965_v27 }
  0x5e   :  { %1874 = vmatprep.mubr.bf16.mxu0 %v1966_v28  ;;  %1906 = vmatprep.mubr.bf16.mxu1 %v1967_v29 }
  0x65   :  { %1875 = vmatmul.mubr.bf16.gmra.mxu0 %v1968_v30  ;;  %1907 = vmatmul.mubr.bf16.gmra.mxu1 %v1969_v31 }
  0x66   :  { %1878 = vmatprep.mubr.bf16.mxu0 %v1970_v32  ;;  %1910 = vmatprep.mubr.bf16.mxu1 %v1971_v33 }
  0x6d   :  { %1879 = vmatmul.mubr.bf16.gmra.mxu0 %v1972_v34  ;;  %1911 = vmatmul.mubr.bf16.gmra.mxu1 %v1973_v35 }
  0x6e   :  { %1882 = vmatprep.mubr.bf16.mxu0 %v1974_v36  ;;  %1914 = vmatprep.mubr.bf16.mxu1 %v1975_v37 }
  0x75   :  { %1883 = vmatmul.mubr.bf16.gmra.mxu0 %v1976_v38  ;;  %1915 = vmatmul.mubr.bf16.gmra.mxu1 %v1977_v39 }
  0xfd   :  { %v1856_v41 = vpop.f32.mrf.mxu0  ;;  %v1888_v42 = vpop.f32.mrf.mxu1 }
  0xfe   :  { %v986_v43 = vadd.f32 %v1856_v41, %v2148_v40  ;;  %v1018_v44 = vadd.f32 %v1888_v42, %v2148_v40 }
  0xff   :  { %v527_v45 = vpop.f32.mrf.mxu0  ;;  %v655_v46 = vpop.f32.mrf.mxu1 }
 0x100   :  { %v984_v47 = vadd.f32 %v2148_v40, %v527_v45  ;;  %v1016_v48 = vadd.f32 %v2148_v40, %v655_v46  ;;  %v1050_v53 = vmax.f32 %v986_v43, 0.0  ;;  %v1082_v54 = vmax.f32 %v1018_v44, 0.0 }
 0x101   :  { %v1857_v49 = vpop.f32.mrf.mxu0  ;;  %v1889_v50 = vpop.f32.mrf.mxu1 }
 0x102   :  { %v987_v51 = vadd.f32 %v1857_v49, %v2148_v40  ;;  %v1019_v52 = vadd.f32 %v1889_v50, %v2148_v40  ;;  %v1048_v61 = vmax.f32 %v984_v47, 0.0  ;;  %v1080_v62 = vmax.f32 %v1016_v48, 0.0 }
 0x103   :  { %v530_v55 = vpop.f32.mrf.mxu0  ;;  %v658_v56 = vpop.f32.mrf.mxu1 }
 0x104   :  { %v1051_v57 = vmax.f32 %v987_v51, 0.0  ;;  %v1083_v58 = vmax.f32 %v1019_v52, 0.0  ;;  %v985_v59 = vadd.f32 %v2148_v40, %v530_v55  ;;  %v1017_v60 = vadd.f32 %v2148_v40, %v658_v56 }
 0x105   :  { %v1860_v63 = vpop.f32.mrf.mxu0  ;;  %v1892_v0 = vpop.f32.mrf.mxu1 }
 0x106   :  { %v1615_v1 = vpack.c.bf16 %v1051_v57, %v1050_v53  ;;  %v1695_v2 = vpack.c.bf16 %v1083_v58, %v1082_v54  ;;  %v1049_v3 = vmax.f32 %v985_v59, 0.0  ;;  %v1081_v4 = vmax.f32 %v1017_v60, 0.0 }
 0x107   :  { %v990_v5 = vadd.f32 %v1860_v63, %v2148_v40  ;;  %v1022_v6 = vadd.f32 %v1892_v0, %v2148_v40  ;;  %v543_v7 = vpop.f32.mrf.mxu0  ;;  %v671_v8 = vpop.f32.mrf.mxu1 }
 0x108   :  { %1767 = vst [vmem:[%s2313_s3 + $0x8] sm:$0xff] %v1615_v1   ;;  %1783 = vst [vmem:[%s2313_s3 + $0x88] sm:$0xff] %v1695_v2   ;;  %v1610_v9 = vpack.c.bf16 %v1049_v3, %v1048_v61  ;;  %v1690_v10 = vpack.c.bf16 %v1081_v4, %v1080_v62  ;;  %v988_v11 = vadd.f32 %v2148_v40, %v543_v7 }
 0x109   :  { %v1020_v12 = vadd.f32 %v2148_v40, %v671_v8  ;;  %v1861_v13 = vpop.f32.mrf.mxu0  ;;  %v1893_v14 = vpop.f32.mrf.mxu1  ;;  %v1054_v17 = vmax.f32 %v990_v5, 0.0  ;;  %v1086_v18 = vmax.f32 %v1022_v6, 0.0 }
 0x10a   :  { %1611 = vst [vmem:[%s2313_s3] sm:$0xff] %v1610_v9   ;;  %1782 = vst [vmem:[%s2313_s3 + $0x80] sm:$0xff] %v1690_v10   ;;  %v991_v15 = vadd.f32 %v1861_v13, %v2148_v40  ;;  %v1023_v16 = vadd.f32 %v1893_v14, %v2148_v40  ;;  %v1052_v25 = vmax.f32 %v988_v11, 0.0 }
 0x10b   :  { %v546_v19 = vpop.f32.mrf.mxu0  ;;  %v674_v20 = vpop.f32.mrf.mxu1  ;;  %v1084_v26 = vmax.f32 %v1020_v12, 0.0 }
 0x10c   :  { %v1055_v21 = vmax.f32 %v991_v15, 0.0  ;;  %v1087_v22 = vmax.f32 %v1023_v16, 0.0  ;;  %v989_v23 = vadd.f32 %v2148_v40, %v546_v19  ;;  %v1021_v24 = vadd.f32 %v2148_v40, %v674_v20 }
 0x10d   :  { %v1864_v27 = vpop.f32.mrf.mxu0  ;;  %v1896_v28 = vpop.f32.mrf.mxu1 }
 0x10e   :  { %v1625_v29 = vpack.c.bf16 %v1055_v21, %v1054_v17  ;;  %v1705_v30 = vpack.c.bf16 %v1087_v22, %v1086_v18  ;;  %v1053_v31 = vmax.f32 %v989_v23, 0.0  ;;  %v1085_v32 = vmax.f32 %v1021_v24, 0.0 }
 0x10f   :  { %v994_v33 = vadd.f32 %v1864_v27, %v2148_v40  ;;  %v1026_v34 = vadd.f32 %v1896_v28, %v2148_v40  ;;  %v559_v35 = vpop.f32.mrf.mxu0  ;;  %v687_v36 = vpop.f32.mrf.mxu1 }
 0x110   :  { %1769 = vst [vmem:[%s2313_s3 + $0x18] sm:$0xff] %v1625_v29   ;;  %1785 = vst [vmem:[%s2313_s3 + $0x98] sm:$0xff] %v1705_v30   ;;  %v1620_v37 = vpack.c.bf16 %v1053_v31, %v1052_v25  ;;  %v1700_v38 = vpack.c.bf16 %v1085_v32, %v1084_v26  ;;  %v992_v39 = vadd.f32 %v2148_v40, %v559_v35 }
 0x111   :  { %v1024_v41 = vadd.f32 %v2148_v40, %v687_v36  ;;  %v1865_v42 = vpop.f32.mrf.mxu0  ;;  %v1897_v43 = vpop.f32.mrf.mxu1  ;;  %v1058_v46 = vmax.f32 %v994_v33, 0.0  ;;  %v1090_v47 = vmax.f32 %v1026_v34, 0.0 }
 0x112   :  { %1768 = vst [vmem:[%s2313_s3 + $0x10] sm:$0xff] %v1620_v37   ;;  %1784 = vst [vmem:[%s2313_s3 + $0x90] sm:$0xff] %v1700_v38   ;;  %v995_v44 = vadd.f32 %v1865_v42, %v2148_v40  ;;  %v1027_v45 = vadd.f32 %v1897_v43, %v2148_v40  ;;  %v1056_v54 = vmax.f32 %v992_v39, 0.0 }
 0x113   :  { %v562_v48 = vpop.f32.mrf.mxu0  ;;  %v690_v49 = vpop.f32.mrf.mxu1  ;;  %v1088_v55 = vmax.f32 %v1024_v41, 0.0 }
 0x114   :  { %v1059_v50 = vmax.f32 %v995_v44, 0.0  ;;  %v1091_v51 = vmax.f32 %v1027_v45, 0.0  ;;  %v993_v52 = vadd.f32 %v2148_v40, %v562_v48  ;;  %v1025_v53 = vadd.f32 %v2148_v40, %v690_v49 }
 0x115   :  { %v1868_v56 = vpop.f32.mrf.mxu0  ;;  %v1900_v57 = vpop.f32.mrf.mxu1 }
 0x116   :  { %v1635_v58 = vpack.c.bf16 %v1059_v50, %v1058_v46  ;;  %v1715_v59 = vpack.c.bf16 %v1091_v51, %v1090_v47  ;;  %v1057_v60 = vmax.f32 %v993_v52, 0.0  ;;  %v1089_v61 = vmax.f32 %v1025_v53, 0.0 }
 0x117   :  { %v998_v62 = vadd.f32 %v1868_v56, %v2148_v40  ;;  %v1030_v63 = vadd.f32 %v1900_v57, %v2148_v40  ;;  %v575_v0 = vpop.f32.mrf.mxu0  ;;  %v703_v1 = vpop.f32.mrf.mxu1 }
 0x118   :  { %1771 = vst [vmem:[%s2313_s3 + $0x28] sm:$0xff] %v1635_v58   ;;  %1787 = vst [vmem:[%s2313_s3 + $0xa8] sm:$0xff] %v1715_v59   ;;  %v1630_v2 = vpack.c.bf16 %v1057_v60, %v1056_v54  ;;  %v1710_v3 = vpack.c.bf16 %v1089_v61, %v1088_v55  ;;  %v996_v4 = vadd.f32 %v2148_v40, %v575_v0 }
 0x119   :  { %v1028_v5 = vadd.f32 %v2148_v40, %v703_v1  ;;  %v1869_v6 = vpop.f32.mrf.mxu0  ;;  %v1901_v7 = vpop.f32.mrf.mxu1  ;;  %v1062_v10 = vmax.f32 %v998_v62, 0.0  ;;  %v1094_v11 = vmax.f32 %v1030_v63, 0.0 }
 0x11a   :  { %1770 = vst [vmem:[%s2313_s3 + $0x20] sm:$0xff] %v1630_v2   ;;  %1786 = vst [vmem:[%s2313_s3 + $0xa0] sm:$0xff] %v1710_v3   ;;  %v999_v8 = vadd.f32 %v1869_v6, %v2148_v40  ;;  %v1031_v9 = vadd.f32 %v1901_v7, %v2148_v40  ;;  %v1060_v18 = vmax.f32 %v996_v4, 0.0 }
 0x11b   :  { %v578_v12 = vpop.f32.mrf.mxu0  ;;  %v706_v13 = vpop.f32.mrf.mxu1  ;;  %v1092_v19 = vmax.f32 %v1028_v5, 0.0 }
 0x11c   :  { %v1063_v14 = vmax.f32 %v999_v8, 0.0  ;;  %v1095_v15 = vmax.f32 %v1031_v9, 0.0  ;;  %v997_v16 = vadd.f32 %v2148_v40, %v578_v12  ;;  %v1029_v17 = vadd.f32 %v2148_v40, %v706_v13 }
 0x11d   :  { %v1872_v20 = vpop.f32.mrf.mxu0  ;;  %v1904_v21 = vpop.f32.mrf.mxu1 }
 0x11e   :  { %v1645_v22 = vpack.c.bf16 %v1063_v14, %v1062_v10  ;;  %v1725_v23 = vpack.c.bf16 %v1095_v15, %v1094_v11  ;;  %v1061_v24 = vmax.f32 %v997_v16, 0.0  ;;  %v1093_v25 = vmax.f32 %v1029_v17, 0.0 }
 0x11f   :  { %v1002_v26 = vadd.f32 %v1872_v20, %v2148_v40  ;;  %v1034_v27 = vadd.f32 %v1904_v21, %v2148_v40  ;;  %v591_v28 = vpop.f32.mrf.mxu0  ;;  %v719_v29 = vpop.f32.mrf.mxu1 }
 0x120   :  { %1773 = vst [vmem:[%s2313_s3 + $0x38] sm:$0xff] %v1645_v22   ;;  %1789 = vst [vmem:[%s2313_s3 + $0xb8] sm:$0xff] %v1725_v23   ;;  %v1640_v30 = vpack.c.bf16 %v1061_v24, %v1060_v18  ;;  %v1720_v31 = vpack.c.bf16 %v1093_v25, %v1092_v19  ;;  %v1000_v32 = vadd.f32 %v2148_v40, %v591_v28 }
 0x121   :  { %v1032_v33 = vadd.f32 %v2148_v40, %v719_v29  ;;  %v1873_v34 = vpop.f32.mrf.mxu0  ;;  %v1905_v35 = vpop.f32.mrf.mxu1  ;;  %v1066_v38 = vmax.f32 %v1002_v26, 0.0  ;;  %v1098_v39 = vmax.f32 %v1034_v27, 0.0 }
 0x122   :  { %1772 = vst [vmem:[%s2313_s3 + $0x30] sm:$0xff] %v1640_v30   ;;  %1788 = vst [vmem:[%s2313_s3 + $0xb0] sm:$0xff] %v1720_v31   ;;  %v1003_v36 = vadd.f32 %v1873_v34, %v2148_v40  ;;  %v1035_v37 = vadd.f32 %v1905_v35, %v2148_v40  ;;  %v1064_v47 = vmax.f32 %v1000_v32, 0.0 }
 0x123   :  { %v594_v41 = vpop.f32.mrf.mxu0  ;;  %v722_v42 = vpop.f32.mrf.mxu1  ;;  %v1096_v48 = vmax.f32 %v1032_v33, 0.0 }
 0x124   :  { %v1067_v43 = vmax.f32 %v1003_v36, 0.0  ;;  %v1099_v44 = vmax.f32 %v1035_v37, 0.0  ;;  %v1001_v45 = vadd.f32 %v2148_v40, %v594_v41  ;;  %v1033_v46 = vadd.f32 %v2148_v40, %v722_v42 }
 0x125   :  { %v1876_v49 = vpop.f32.mrf.mxu0  ;;  %v1908_v50 = vpop.f32.mrf.mxu1 }
 0x126   :  { %v1655_v51 = vpack.c.bf16 %v1067_v43, %v1066_v38  ;;  %v1735_v52 = vpack.c.bf16 %v1099_v44, %v1098_v39  ;;  %v1065_v53 = vmax.f32 %v1001_v45, 0.0  ;;  %v1097_v54 = vmax.f32 %v1033_v46, 0.0 }
 0x127   :  { %v1006_v55 = vadd.f32 %v1876_v49, %v2148_v40  ;;  %v1038_v56 = vadd.f32 %v1908_v50, %v2148_v40  ;;  %v607_v57 = vpop.f32.mrf.mxu0  ;;  %v735_v58 = vpop.f32.mrf.mxu1 }
 0x128   :  { %1775 = vst [vmem:[%s2313_s3 + $0x48] sm:$0xff] %v1655_v51   ;;  %1791 = vst [vmem:[%s2313_s3 + $0xc8] sm:$0xff] %v1735_v52   ;;  %v1650_v59 = vpack.c.bf16 %v1065_v53, %v1064_v47  ;;  %v1730_v60 = vpack.c.bf16 %v1097_v54, %v1096_v48  ;;  %v1004_v61 = vadd.f32 %v2148_v40, %v607_v57 }
 0x129   :  { %v1036_v62 = vadd.f32 %v2148_v40, %v735_v58  ;;  %v1877_v63 = vpop.f32.mrf.mxu0  ;;  %v1909_v0 = vpop.f32.mrf.mxu1  ;;  %v1070_v3 = vmax.f32 %v1006_v55, 0.0  ;;  %v1102_v4 = vmax.f32 %v1038_v56, 0.0 }
 0x12a   :  { %1774 = vst [vmem:[%s2313_s3 + $0x40] sm:$0xff] %v1650_v59   ;;  %1790 = vst [vmem:[%s2313_s3 + $0xc0] sm:$0xff] %v1730_v60   ;;  %v1007_v1 = vadd.f32 %v1877_v63, %v2148_v40  ;;  %v1039_v2 = vadd.f32 %v1909_v0, %v2148_v40  ;;  %v1068_v11 = vmax.f32 %v1004_v61, 0.0 }
 0x12b   :  { %v610_v5 = vpop.f32.mrf.mxu0  ;;  %v738_v6 = vpop.f32.mrf.mxu1  ;;  %v1100_v12 = vmax.f32 %v1036_v62, 0.0 }
 0x12c   :  { %v1071_v7 = vmax.f32 %v1007_v1, 0.0  ;;  %v1103_v8 = vmax.f32 %v1039_v2, 0.0  ;;  %v1005_v9 = vadd.f32 %v2148_v40, %v610_v5  ;;  %v1037_v10 = vadd.f32 %v2148_v40, %v738_v6 }
 0x12d   :  { %v1880_v13 = vpop.f32.mrf.mxu0  ;;  %v1912_v14 = vpop.f32.mrf.mxu1 }
 0x12e   :  { %v1665_v15 = vpack.c.bf16 %v1071_v7, %v1070_v3  ;;  %v1745_v16 = vpack.c.bf16 %v1103_v8, %v1102_v4  ;;  %v1069_v17 = vmax.f32 %v1005_v9, 0.0  ;;  %v1101_v18 = vmax.f32 %v1037_v10, 0.0 }
 0x12f   :  { %v1010_v19 = vadd.f32 %v1880_v13, %v2148_v40  ;;  %v1042_v20 = vadd.f32 %v1912_v14, %v2148_v40  ;;  %v623_v21 = vpop.f32.mrf.mxu0  ;;  %v751_v22 = vpop.f32.mrf.mxu1 }
 0x130   :  { %1777 = vst [vmem:[%s2313_s3 + $0x58] sm:$0xff] %v1665_v15   ;;  %1793 = vst [vmem:[%s2313_s3 + $0xd8] sm:$0xff] %v1745_v16   ;;  %v1660_v23 = vpack.c.bf16 %v1069_v17, %v1068_v11  ;;  %v1740_v24 = vpack.c.bf16 %v1101_v18, %v1100_v12  ;;  %v1008_v25 = vadd.f32 %v2148_v40, %v623_v21 }
 0x131   :  { %v1040_v26 = vadd.f32 %v2148_v40, %v751_v22  ;;  %v1881_v27 = vpop.f32.mrf.mxu0  ;;  %v1913_v28 = vpop.f32.mrf.mxu1  ;;  %v1074_v31 = vmax.f32 %v1010_v19, 0.0  ;;  %v1106_v32 = vmax.f32 %v1042_v20, 0.0 }
 0x132   :  { %1776 = vst [vmem:[%s2313_s3 + $0x50] sm:$0xff] %v1660_v23   ;;  %1792 = vst [vmem:[%s2313_s3 + $0xd0] sm:$0xff] %v1740_v24   ;;  %v1011_v29 = vadd.f32 %v1881_v27, %v2148_v40  ;;  %v1043_v30 = vadd.f32 %v1913_v28, %v2148_v40  ;;  %v1072_v39 = vmax.f32 %v1008_v25, 0.0 }
 0x133   :  { %v626_v33 = vpop.f32.mrf.mxu0  ;;  %v754_v34 = vpop.f32.mrf.mxu1  ;;  %v1104_v41 = vmax.f32 %v1040_v26, 0.0 }
 0x134   :  { %v1075_v35 = vmax.f32 %v1011_v29, 0.0  ;;  %v1107_v36 = vmax.f32 %v1043_v30, 0.0  ;;  %v1009_v37 = vadd.f32 %v2148_v40, %v626_v33  ;;  %v1041_v38 = vadd.f32 %v2148_v40, %v754_v34 }
 0x135   :  { %v1884_v42 = vpop.f32.mrf.mxu0  ;;  %v1916_v43 = vpop.f32.mrf.mxu1 }
 0x136   :  { %v1675_v44 = vpack.c.bf16 %v1075_v35, %v1074_v31  ;;  %v1755_v45 = vpack.c.bf16 %v1107_v36, %v1106_v32  ;;  %v1073_v46 = vmax.f32 %v1009_v37, 0.0  ;;  %v1105_v47 = vmax.f32 %v1041_v38, 0.0 }
 0x137   :  { %v1014_v48 = vadd.f32 %v1884_v42, %v2148_v40  ;;  %v1046_v49 = vadd.f32 %v1916_v43, %v2148_v40  ;;  %v639_v50 = vpop.f32.mrf.mxu0  ;;  %v767_v51 = vpop.f32.mrf.mxu1 }
 0x138   :  { %1779 = vst [vmem:[%s2313_s3 + $0x68] sm:$0xff] %v1675_v44   ;;  %1795 = vst [vmem:[%s2313_s3 + $0xe8] sm:$0xff] %v1755_v45   ;;  %v1670_v52 = vpack.c.bf16 %v1073_v46, %v1072_v39  ;;  %v1750_v53 = vpack.c.bf16 %v1105_v47, %v1104_v41  ;;  %v1012_v54 = vadd.f32 %v2148_v40, %v639_v50 }
 0x139   :  { %v1044_v55 = vadd.f32 %v2148_v40, %v767_v51  ;;  %v1885_v56 = vpop.f32.mrf.mxu0  ;;  %v1917_v57 = vpop.f32.mrf.mxu1  ;;  %v1078_v60 = vmax.f32 %v1014_v48, 0.0  ;;  %v1110_v61 = vmax.f32 %v1046_v49, 0.0 }
 0x13a   :  { %1778 = vst [vmem:[%s2313_s3 + $0x60] sm:$0xff] %v1670_v52   ;;  %1794 = vst [vmem:[%s2313_s3 + $0xe0] sm:$0xff] %v1750_v53   ;;  %v1015_v58 = vadd.f32 %v1885_v56, %v2148_v40  ;;  %v1047_v59 = vadd.f32 %v1917_v57, %v2148_v40  ;;  %v1076_v4 = vmax.f32 %v1012_v54, 0.0 }
 0x13b   :  { %v642_v62 = vpop.f32.mrf.mxu0  ;;  %v770_v63 = vpop.f32.mrf.mxu1  ;;  %v1108_v5 = vmax.f32 %v1044_v55, 0.0 }
 0x13c   :  { %v1079_v0 = vmax.f32 %v1015_v58, 0.0  ;;  %v1111_v1 = vmax.f32 %v1047_v59, 0.0  ;;  %v1013_v2 = vadd.f32 %v2148_v40, %v642_v62  ;;  %v1045_v3 = vadd.f32 %v2148_v40, %v770_v63 }
 0x13e   :  { %v1685_v6 = vpack.c.bf16 %v1079_v0, %v1078_v60  ;;  %v1765_v7 = vpack.c.bf16 %v1111_v1, %v1110_v61  ;;  %v1077_v8 = vmax.f32 %v1013_v2, 0.0  ;;  %v1109_v9 = vmax.f32 %v1045_v3, 0.0 }
 0x140   :  { %1781 = vst [vmem:[%s2313_s3 + $0x78] sm:$0xff] %v1685_v6   ;;  %1797 = vst [vmem:[%s2313_s3 + $0xf8] sm:$0xff] %v1765_v7   ;;  %v1680_v10 = vpack.c.bf16 %v1077_v8, %v1076_v4  ;;  %v1760_v11 = vpack.c.bf16 %v1109_v9, %v1108_v5 }
 0x142   :  { %1780 = vst [vmem:[%s2313_s3 + $0x70] sm:$0xff] %v1680_v10   ;;  %1796 = vst [vmem:[%s2313_s3 + $0xf0] sm:$0xff] %v1760_v11  }
 0x143   :  { %1436 = vsyncpa [#allocation4], 1 }
 0x144   :  { %1437 = vsyncpa [#allocation6], 1 }

// kernel: cnn_forward.43
= control target key start
LH: loop header
LB: loop body
LE: loop exit
PB: predicated region body
PF: predicated region fallthrough
CT: control target
= control target key end

     0   :  { %s69_s0 = inlined_call_operand.vmem [shape: bf16[8,128], index: 0, kind: input, shape index: {}]   ;;  %s70_s1 = inlined_call_operand.vmem [shape: bf16[8,128], index: 1, kind: input, shape index: {}]   ;;  %s71_s2 = inlined_call_operand.vmem [shape: bf16[8,128], index: 2, kind: input, shape index: {}]   ;;  %s72_s3 = inlined_call_operand.vmem [shape: bf16[8,128], index: 3, kind: input, shape index: {}]   ;;  %s73_s4 = inlined_call_operand.vmem [shape: bf16[8,128], index: 4, kind: output, shape index: {}]  }
   0x1   :  { %v17_v0 = vld [vmem:[%s69_s0] sm:$0xf] }
   0x2   :  { %v18_v1 = vld [vmem:[%s70_s1] sm:$0xf] }
   0x3   :  { %v20_v2 = vld [vmem:[%s71_s2] sm:$0xf]  ;;  %v19_v3 = vmax.bf16 %v18_v1, %v17_v0 }
   0x4   :  { %v22_v4 = vld [vmem:[%s72_s3] sm:$0xf] }
   0x5   :  { %v21_v5 = vmax.bf16 %v20_v2, %v19_v3 }
   0x7   :  { %v23_v6 = vmax.bf16 %v22_v4, %v21_v5 }
   0x9   :  { %24 = vst [vmem:[%s73_s4] sm:$0xf] %v23_v6 }

// kernel: cnn_forward.42
= control target key start
LH: loop header
LB: loop body
LE: loop exit
PB: predicated region body
PF: predicated region fallthrough
CT: control target
= control target key end

     0   :  { %s2251_s1 = inlined_call_operand.vmem [shape: bf16[128,128], index: 1, kind: input, shape index: {}]   ;;  %s2252_s0 = inlined_call_operand.vmem [shape: bf16[512,128], index: 0, kind: input, shape index: {}]   ;;  %s2253_s2 = inlined_call_operand.vmem [shape: f32[1,128], index: 2, kind: input, shape index: {}]   ;;  %s2254_s3 = inlined_call_operand.vmem [shape: bf16[512,128], index: 3, kind: output, shape index: {}]  }
   0x1   :  { %v1906_v0 = vld [vmem:[%s2251_s1 + $0x38] sm:$0xff]   ;;  %v1907_v1 = vld [vmem:[%s2251_s1 + $0x30] sm:$0xff]   ;;  %v1908_v2 = vld [vmem:[%s2251_s1 + $0x28] sm:$0xff]  }
   0x2   :  { %1810 = vmatprep.subr.bf16.mxu0 %v1906_v0  ;;  %1890 = vmatprep.subr.bf16.mxu1 %v1906_v0  ;;  %v1909_v3 = vld [vmem:[%s2251_s1 + $0x20] sm:$0xff]   ;;  %v1910_v6 = vld [vmem:[%s2251_s1 + $0x18] sm:$0xff]   ;;  %v1911_v7 = vld [vmem:[%s2251_s1 + $0x10] sm:$0xff]  }
   0x3   :  { %1811 = vmatpush3.bf16.msra.mxu0 %v1906_v0  ;;  %1898 = vmatpush3.bf16.msra.mxu1 %v1906_v0  ;;  %v1914_v4 = vld [vmem:[%s2252_s0] sm:$0xff]   ;;  %v1912_v8 = vld [vmem:[%s2251_s1 + $0x8] sm:$0xff]   ;;  %v1918_v12 = vld [vmem:[%s2252_s0 + $0x10] sm:$0xff]  }
   0x4   :  { %1812 = vmatprep.subr.bf16.mxu0 %v1907_v1  ;;  %1891 = vmatprep.subr.bf16.mxu1 %v1907_v1  ;;  %v1915_v5 = vld [vmem:[%s2252_s0 + $0x80] sm:$0xff]   ;;  %v1916_v10 = vld [vmem:[%s2252_s0 + $0x8] sm:$0xff]   ;;  %v1919_v13 = vld [vmem:[%s2252_s0 + $0x90] sm:$0xff]  }
   0x5   :  { %1826 = vmatprep.mubr.bf16.mxu0 %v1914_v4  ;;  %1858 = vmatprep.mubr.bf16.mxu1 %v1915_v5  ;;  %v1913_v9 = vld [vmem:[%s2251_s1] sm:$0xff]   ;;  %v1917_v11 = vld [vmem:[%s2252_s0 + $0x88] sm:$0xff]   ;;  %v1920_v14 = vld [vmem:[%s2252_s0 + $0x18] sm:$0xff]  }
   0x6   :  { %v1921_v15 = vld [vmem:[%s2252_s0 + $0x98] sm:$0xff]   ;;  %v1922_v16 = vld [vmem:[%s2252_s0 + $0x20] sm:$0xff]   ;;  %v1924_v18 = vld [vmem:[%s2252_s0 + $0x28] sm:$0xff]  }
   0x7   :  { %1813 = vmatpush3.bf16.msra.mxu0 %v1907_v1  ;;  %1899 = vmatpush3.bf16.msra.mxu1 %v1907_v1  ;;  %v1923_v17 = vld [vmem:[%s2252_s0 + $0xa0] sm:$0xff]   ;;  %v1925_v19 = vld [vmem:[%s2252_s0 + $0xa8] sm:$0xff]   ;;  %v1926_v20 = vld [vmem:[%s2252_s0 + $0x30] sm:$0xff]  }
   0x8   :  { %1814 = vmatprep.subr.bf16.mxu0 %v1908_v2  ;;  %1892 = vmatprep.subr.bf16.mxu1 %v1908_v2  ;;  %v1927_v21 = vld [vmem:[%s2252_s0 + $0xb0] sm:$0xff]   ;;  %v1928_v22 = vld [vmem:[%s2252_s0 + $0x38] sm:$0xff]   ;;  %v1930_v24 = vld [vmem:[%s2252_s0 + $0x40] sm:$0xff]  }
   0x9   :  { %v1929_v23 = vld [vmem:[%s2252_s0 + $0xb8] sm:$0xff]   ;;  %v1931_v25 = vld [vmem:[%s2252_s0 + $0xc0] sm:$0xff]   ;;  %v1932_v26 = vld [vmem:[%s2252_s0 + $0x48] sm:$0xff]  }
   0xa   :  { %v1933_v27 = vld [vmem:[%s2252_s0 + $0xc8] sm:$0xff]   ;;  %v1934_v28 = vld [vmem:[%s2252_s0 + $0x50] sm:$0xff]   ;;  %v1936_v30 = vld [vmem:[%s2252_s0 + $0x58] sm:$0xff]  }
   0xb   :  { %1815 = vmatpush3.bf16.msra.mxu0 %v1908_v2  ;;  %1900 = vmatpush3.bf16.msra.mxu1 %v1908_v2  ;;  %v1935_v29 = vld [vmem:[%s2252_s0 + $0xd0] sm:$0xff]   ;;  %v1937_v31 = vld [vmem:[%s2252_s0 + $0xd8] sm:$0xff]   ;;  %v1938_v32 = vld [vmem:[%s2252_s0 + $0x60] sm:$0xff]  }
   0xc   :  { %1816 = vmatprep.subr.bf16.mxu0 %v1909_v3  ;;  %1893 = vmatprep.subr.bf16.mxu1 %v1909_v3  ;;  %v1939_v33 = vld [vmem:[%s2252_s0 + $0xe0] sm:$0xff]   ;;  %v1940_v34 = vld [vmem:[%s2252_s0 + $0x68] sm:$0xff]   ;;  %v1942_v36 = vld [vmem:[%s2252_s0 + $0x70] sm:$0xff]  }
   0xd   :  { %v1941_v35 = vld [vmem:[%s2252_s0 + $0xe8] sm:$0xff]   ;;  %v1943_v37 = vld [vmem:[%s2252_s0 + $0xf0] sm:$0xff]   ;;  %v1944_v38 = vld [vmem:[%s2252_s0 + $0x78] sm:$0xff]  }
   0xe   :  { %v1945_v39 = vld [vmem:[%s2252_s0 + $0xf8] sm:$0xff]   ;;  %v2089_v40 = vld [vmem:[%s2253_s2] ss:$0 sm:$0xff] }
   0xf   :  { %1817 = vmatpush3.bf16.msra.mxu0 %v1909_v3  ;;  %1901 = vmatpush3.bf16.msra.mxu1 %v1909_v3 }
  0x10   :  { %1818 = vmatprep.subr.bf16.mxu0 %v1910_v6  ;;  %1894 = vmatprep.subr.bf16.mxu1 %v1910_v6 }
  0x13   :  { %1819 = vmatpush3.bf16.msra.mxu0 %v1910_v6  ;;  %1902 = vmatpush3.bf16.msra.mxu1 %v1910_v6 }
  0x14   :  { %1820 = vmatprep.subr.bf16.mxu0 %v1911_v7  ;;  %1895 = vmatprep.subr.bf16.mxu1 %v1911_v7 }
  0x17   :  { %1821 = vmatpush3.bf16.msra.mxu0 %v1911_v7  ;;  %1903 = vmatpush3.bf16.msra.mxu1 %v1911_v7 }
  0x18   :  { %1822 = vmatprep.subr.bf16.mxu0 %v1912_v8  ;;  %1896 = vmatprep.subr.bf16.mxu1 %v1912_v8 }
  0x1b   :  { %1823 = vmatpush3.bf16.msra.mxu0 %v1912_v8  ;;  %1904 = vmatpush3.bf16.msra.mxu1 %v1912_v8 }
  0x1c   :  { %1824 = vmatprep.subr.bf16.mxu0 %v1913_v9  ;;  %1897 = vmatprep.subr.bf16.mxu1 %v1913_v9 }
  0x1f   :  { %1825 = vmatpush3.bf16.msra.mxu0 %v1913_v9  ;;  %1905 = vmatpush3.bf16.msra.mxu1 %v1913_v9 }
  0x22   :  { %1827 = vmatmul.mubr.bf16.vlgmr.msra.gmra.mxu0 %v1916_v10  ;;  %1859 = vmatmul.mubr.bf16.vlgmr.msra.gmra.mxu1 %v1917_v11 }
  0x23   :  { %1830 = vmatprep.mubr.bf16.mxu0 %v1918_v12  ;;  %1862 = vmatprep.mubr.bf16.mxu1 %v1919_v13 }
  0x2a   :  { %1831 = vmatmul.mubr.bf16.gmra.mxu0 %v1920_v14  ;;  %1863 = vmatmul.mubr.bf16.gmra.mxu1 %v1921_v15 }
  0x2b   :  { %1834 = vmatprep.mubr.bf16.mxu0 %v1922_v16  ;;  %1866 = vmatprep.mubr.bf16.mxu1 %v1923_v17 }
  0x32   :  { %1835 = vmatmul.mubr.bf16.gmra.mxu0 %v1924_v18  ;;  %1867 = vmatmul.mubr.bf16.gmra.mxu1 %v1925_v19 }
  0x33   :  { %1838 = vmatprep.mubr.bf16.mxu0 %v1926_v20  ;;  %1870 = vmatprep.mubr.bf16.mxu1 %v1927_v21 }
  0x3a   :  { %1839 = vmatmul.mubr.bf16.gmra.mxu0 %v1928_v22  ;;  %1871 = vmatmul.mubr.bf16.gmra.mxu1 %v1929_v23 }
  0x3b   :  { %1842 = vmatprep.mubr.bf16.mxu0 %v1930_v24  ;;  %1874 = vmatprep.mubr.bf16.mxu1 %v1931_v25 }
  0x42   :  { %1843 = vmatmul.mubr.bf16.gmra.mxu0 %v1932_v26  ;;  %1875 = vmatmul.mubr.bf16.gmra.mxu1 %v1933_v27 }
  0x43   :  { %1846 = vmatprep.mubr.bf16.mxu0 %v1934_v28  ;;  %1878 = vmatprep.mubr.bf16.mxu1 %v1935_v29 }
  0x4a   :  { %1847 = vmatmul.mubr.bf16.gmra.mxu0 %v1936_v30  ;;  %1879 = vmatmul.mubr.bf16.gmra.mxu1 %v1937_v31 }
  0x4b   :  { %1850 = vmatprep.mubr.bf16.mxu0 %v1938_v32  ;;  %1882 = vmatprep.mubr.bf16.mxu1 %v1939_v33 }
  0x52   :  { %1851 = vmatmul.mubr.bf16.gmra.mxu0 %v1940_v34  ;;  %1883 = vmatmul.mubr.bf16.gmra.mxu1 %v1941_v35 }
  0x53   :  { %1854 = vmatprep.mubr.bf16.mxu0 %v1942_v36  ;;  %1886 = vmatprep.mubr.bf16.mxu1 %v1943_v37 }
  0x5a   :  { %1855 = vmatmul.mubr.bf16.gmra.mxu0 %v1944_v38  ;;  %1887 = vmatmul.mubr.bf16.gmra.mxu1 %v1945_v39 }
  0xe2   :  { %v1828_v41 = vpop.f32.mrf.mxu0  ;;  %v1860_v42 = vpop.f32.mrf.mxu1 }
  0xe3   :  { %v960_v43 = vadd.f32 %v1828_v41, %v2089_v40  ;;  %v992_v44 = vadd.f32 %v1860_v42, %v2089_v40 }
  0xe4   :  { %v501_v45 = vpop.f32.mrf.mxu0  ;;  %v629_v46 = vpop.f32.mrf.mxu1 }
  0xe5   :  { %v958_v47 = vadd.f32 %v2089_v40, %v501_v45  ;;  %v990_v48 = vadd.f32 %v2089_v40, %v629_v46  ;;  %v1024_v53 = vmax.f32 %v960_v43, 0.0  ;;  %v1056_v54 = vmax.f32 %v992_v44, 0.0 }
  0xe6   :  { %v1829_v49 = vpop.f32.mrf.mxu0  ;;  %v1861_v50 = vpop.f32.mrf.mxu1 }
  0xe7   :  { %v961_v51 = vadd.f32 %v1829_v49, %v2089_v40  ;;  %v993_v52 = vadd.f32 %v1861_v50, %v2089_v40  ;;  %v1022_v61 = vmax.f32 %v958_v47, 0.0  ;;  %v1054_v62 = vmax.f32 %v990_v48, 0.0 }
  0xe8   :  { %v504_v55 = vpop.f32.mrf.mxu0  ;;  %v632_v56 = vpop.f32.mrf.mxu1 }
  0xe9   :  { %v1025_v57 = vmax.f32 %v961_v51, 0.0  ;;  %v1057_v58 = vmax.f32 %v993_v52, 0.0  ;;  %v959_v59 = vadd.f32 %v2089_v40, %v504_v55  ;;  %v991_v60 = vadd.f32 %v2089_v40, %v632_v56 }
  0xea   :  { %v1832_v63 = vpop.f32.mrf.mxu0  ;;  %v1864_v0 = vpop.f32.mrf.mxu1 }
  0xeb   :  { %v1587_v1 = vpack.c.bf16 %v1025_v57, %v1024_v53  ;;  %v1667_v2 = vpack.c.bf16 %v1057_v58, %v1056_v54  ;;  %v1023_v3 = vmax.f32 %v959_v59, 0.0  ;;  %v1055_v4 = vmax.f32 %v991_v60, 0.0 }
  0xec   :  { %v964_v5 = vadd.f32 %v1832_v63, %v2089_v40  ;;  %v996_v6 = vadd.f32 %v1864_v0, %v2089_v40  ;;  %v517_v7 = vpop.f32.mrf.mxu0  ;;  %v645_v8 = vpop.f32.mrf.mxu1 }
  0xed   :  { %1739 = vst [vmem:[%s2254_s3 + $0x8] sm:$0xff] %v1587_v1   ;;  %1755 = vst [vmem:[%s2254_s3 + $0x88] sm:$0xff] %v1667_v2   ;;  %v1582_v9 = vpack.c.bf16 %v1023_v3, %v1022_v61  ;;  %v1662_v10 = vpack.c.bf16 %v1055_v4, %v1054_v62  ;;  %v962_v11 = vadd.f32 %v2089_v40, %v517_v7 }
  0xee   :  { %v994_v12 = vadd.f32 %v2089_v40, %v645_v8  ;;  %v1833_v13 = vpop.f32.mrf.mxu0  ;;  %v1865_v14 = vpop.f32.mrf.mxu1  ;;  %v1028_v17 = vmax.f32 %v964_v5, 0.0  ;;  %v1060_v18 = vmax.f32 %v996_v6, 0.0 }
  0xef   :  { %1583 = vst [vmem:[%s2254_s3] sm:$0xff] %v1582_v9   ;;  %1754 = vst [vmem:[%s2254_s3 + $0x80] sm:$0xff] %v1662_v10   ;;  %v965_v15 = vadd.f32 %v1833_v13, %v2089_v40  ;;  %v997_v16 = vadd.f32 %v1865_v14, %v2089_v40  ;;  %v1026_v25 = vmax.f32 %v962_v11, 0.0 }
  0xf0   :  { %v520_v19 = vpop.f32.mrf.mxu0  ;;  %v648_v20 = vpop.f32.mrf.mxu1  ;;  %v1058_v26 = vmax.f32 %v994_v12, 0.0 }
  0xf1   :  { %v1029_v21 = vmax.f32 %v965_v15, 0.0  ;;  %v1061_v22 = vmax.f32 %v997_v16, 0.0  ;;  %v963_v23 = vadd.f32 %v2089_v40, %v520_v19  ;;  %v995_v24 = vadd.f32 %v2089_v40, %v648_v20 }
  0xf2   :  { %v1836_v27 = vpop.f32.mrf.mxu0  ;;  %v1868_v28 = vpop.f32.mrf.mxu1 }
  0xf3   :  { %v1597_v29 = vpack.c.bf16 %v1029_v21, %v1028_v17  ;;  %v1677_v30 = vpack.c.bf16 %v1061_v22, %v1060_v18  ;;  %v1027_v31 = vmax.f32 %v963_v23, 0.0  ;;  %v1059_v32 = vmax.f32 %v995_v24, 0.0 }
  0xf4   :  { %v968_v33 = vadd.f32 %v1836_v27, %v2089_v40  ;;  %v1000_v34 = vadd.f32 %v1868_v28, %v2089_v40  ;;  %v533_v35 = vpop.f32.mrf.mxu0  ;;  %v661_v36 = vpop.f32.mrf.mxu1 }
  0xf5   :  { %1741 = vst [vmem:[%s2254_s3 + $0x18] sm:$0xff] %v1597_v29   ;;  %1757 = vst [vmem:[%s2254_s3 + $0x98] sm:$0xff] %v1677_v30   ;;  %v1592_v37 = vpack.c.bf16 %v1027_v31, %v1026_v25  ;;  %v1672_v38 = vpack.c.bf16 %v1059_v32, %v1058_v26  ;;  %v966_v39 = vadd.f32 %v2089_v40, %v533_v35 }
  0xf6   :  { %v998_v41 = vadd.f32 %v2089_v40, %v661_v36  ;;  %v1837_v42 = vpop.f32.mrf.mxu0  ;;  %v1869_v43 = vpop.f32.mrf.mxu1  ;;  %v1032_v46 = vmax.f32 %v968_v33, 0.0  ;;  %v1064_v47 = vmax.f32 %v1000_v34, 0.0 }
  0xf7   :  { %1740 = vst [vmem:[%s2254_s3 + $0x10] sm:$0xff] %v1592_v37   ;;  %1756 = vst [vmem:[%s2254_s3 + $0x90] sm:$0xff] %v1672_v38   ;;  %v969_v44 = vadd.f32 %v1837_v42, %v2089_v40  ;;  %v1001_v45 = vadd.f32 %v1869_v43, %v2089_v40  ;;  %v1030_v54 = vmax.f32 %v966_v39, 0.0 }
  0xf8   :  { %v536_v48 = vpop.f32.mrf.mxu0  ;;  %v664_v49 = vpop.f32.mrf.mxu1  ;;  %v1062_v55 = vmax.f32 %v998_v41, 0.0 }
  0xf9   :  { %v1033_v50 = vmax.f32 %v969_v44, 0.0  ;;  %v1065_v51 = vmax.f32 %v1001_v45, 0.0  ;;  %v967_v52 = vadd.f32 %v2089_v40, %v536_v48  ;;  %v999_v53 = vadd.f32 %v2089_v40, %v664_v49 }
  0xfa   :  { %v1840_v56 = vpop.f32.mrf.mxu0  ;;  %v1872_v57 = vpop.f32.mrf.mxu1 }
  0xfb   :  { %v1607_v58 = vpack.c.bf16 %v1033_v50, %v1032_v46  ;;  %v1687_v59 = vpack.c.bf16 %v1065_v51, %v1064_v47  ;;  %v1031_v60 = vmax.f32 %v967_v52, 0.0  ;;  %v1063_v61 = vmax.f32 %v999_v53, 0.0 }
  0xfc   :  { %v972_v62 = vadd.f32 %v1840_v56, %v2089_v40  ;;  %v1004_v63 = vadd.f32 %v1872_v57, %v2089_v40  ;;  %v549_v0 = vpop.f32.mrf.mxu0  ;;  %v677_v1 = vpop.f32.mrf.mxu1 }
  0xfd   :  { %1743 = vst [vmem:[%s2254_s3 + $0x28] sm:$0xff] %v1607_v58   ;;  %1759 = vst [vmem:[%s2254_s3 + $0xa8] sm:$0xff] %v1687_v59   ;;  %v1602_v2 = vpack.c.bf16 %v1031_v60, %v1030_v54  ;;  %v1682_v3 = vpack.c.bf16 %v1063_v61, %v1062_v55  ;;  %v970_v4 = vadd.f32 %v2089_v40, %v549_v0 }
  0xfe   :  { %v1002_v5 = vadd.f32 %v2089_v40, %v677_v1  ;;  %v1841_v6 = vpop.f32.mrf.mxu0  ;;  %v1873_v7 = vpop.f32.mrf.mxu1  ;;  %v1036_v10 = vmax.f32 %v972_v62, 0.0  ;;  %v1068_v11 = vmax.f32 %v1004_v63, 0.0 }
  0xff   :  { %1742 = vst [vmem:[%s2254_s3 + $0x20] sm:$0xff] %v1602_v2   ;;  %1758 = vst [vmem:[%s2254_s3 + $0xa0] sm:$0xff] %v1682_v3   ;;  %v973_v8 = vadd.f32 %v1841_v6, %v2089_v40  ;;  %v1005_v9 = vadd.f32 %v1873_v7, %v2089_v40  ;;  %v1034_v18 = vmax.f32 %v970_v4, 0.0 }
 0x100   :  { %v552_v12 = vpop.f32.mrf.mxu0  ;;  %v680_v13 = vpop.f32.mrf.mxu1  ;;  %v1066_v19 = vmax.f32 %v1002_v5, 0.0 }
 0x101   :  { %v1037_v14 = vmax.f32 %v973_v8, 0.0  ;;  %v1069_v15 = vmax.f32 %v1005_v9, 0.0  ;;  %v971_v16 = vadd.f32 %v2089_v40, %v552_v12  ;;  %v1003_v17 = vadd.f32 %v2089_v40, %v680_v13 }
 0x102   :  { %v1844_v20 = vpop.f32.mrf.mxu0  ;;  %v1876_v21 = vpop.f32.mrf.mxu1 }
 0x103   :  { %v1617_v22 = vpack.c.bf16 %v1037_v14, %v1036_v10  ;;  %v1697_v23 = vpack.c.bf16 %v1069_v15, %v1068_v11  ;;  %v1035_v24 = vmax.f32 %v971_v16, 0.0  ;;  %v1067_v25 = vmax.f32 %v1003_v17, 0.0 }
 0x104   :  { %v976_v26 = vadd.f32 %v1844_v20, %v2089_v40  ;;  %v1008_v27 = vadd.f32 %v1876_v21, %v2089_v40  ;;  %v565_v28 = vpop.f32.mrf.mxu0  ;;  %v693_v29 = vpop.f32.mrf.mxu1 }
 0x105   :  { %1745 = vst [vmem:[%s2254_s3 + $0x38] sm:$0xff] %v1617_v22   ;;  %1761 = vst [vmem:[%s2254_s3 + $0xb8] sm:$0xff] %v1697_v23   ;;  %v1612_v30 = vpack.c.bf16 %v1035_v24, %v1034_v18  ;;  %v1692_v31 = vpack.c.bf16 %v1067_v25, %v1066_v19  ;;  %v974_v32 = vadd.f32 %v2089_v40, %v565_v28 }
 0x106   :  { %v1006_v33 = vadd.f32 %v2089_v40, %v693_v29  ;;  %v1845_v34 = vpop.f32.mrf.mxu0  ;;  %v1877_v35 = vpop.f32.mrf.mxu1  ;;  %v1040_v38 = vmax.f32 %v976_v26, 0.0  ;;  %v1072_v39 = vmax.f32 %v1008_v27, 0.0 }
 0x107   :  { %1744 = vst [vmem:[%s2254_s3 + $0x30] sm:$0xff] %v1612_v30   ;;  %1760 = vst [vmem:[%s2254_s3 + $0xb0] sm:$0xff] %v1692_v31   ;;  %v977_v36 = vadd.f32 %v1845_v34, %v2089_v40  ;;  %v1009_v37 = vadd.f32 %v1877_v35, %v2089_v40  ;;  %v1038_v47 = vmax.f32 %v974_v32, 0.0 }
 0x108   :  { %v568_v41 = vpop.f32.mrf.mxu0  ;;  %v696_v42 = vpop.f32.mrf.mxu1  ;;  %v1070_v48 = vmax.f32 %v1006_v33, 0.0 }
 0x109   :  { %v1041_v43 = vmax.f32 %v977_v36, 0.0  ;;  %v1073_v44 = vmax.f32 %v1009_v37, 0.0  ;;  %v975_v45 = vadd.f32 %v2089_v40, %v568_v41  ;;  %v1007_v46 = vadd.f32 %v2089_v40, %v696_v42 }
 0x10a   :  { %v1848_v49 = vpop.f32.mrf.mxu0  ;;  %v1880_v50 = vpop.f32.mrf.mxu1 }
 0x10b   :  { %v1627_v51 = vpack.c.bf16 %v1041_v43, %v1040_v38  ;;  %v1707_v52 = vpack.c.bf16 %v1073_v44, %v1072_v39  ;;  %v1039_v53 = vmax.f32 %v975_v45, 0.0  ;;  %v1071_v54 = vmax.f32 %v1007_v46, 0.0 }
 0x10c   :  { %v980_v55 = vadd.f32 %v1848_v49, %v2089_v40  ;;  %v1012_v56 = vadd.f32 %v1880_v50, %v2089_v40  ;;  %v581_v57 = vpop.f32.mrf.mxu0  ;;  %v709_v58 = vpop.f32.mrf.mxu1 }
 0x10d   :  { %1747 = vst [vmem:[%s2254_s3 + $0x48] sm:$0xff] %v1627_v51   ;;  %1763 = vst [vmem:[%s2254_s3 + $0xc8] sm:$0xff] %v1707_v52   ;;  %v1622_v59 = vpack.c.bf16 %v1039_v53, %v1038_v47  ;;  %v1702_v60 = vpack.c.bf16 %v1071_v54, %v1070_v48  ;;  %v978_v61 = vadd.f32 %v2089_v40, %v581_v57 }
 0x10e   :  { %v1010_v62 = vadd.f32 %v2089_v40, %v709_v58  ;;  %v1849_v63 = vpop.f32.mrf.mxu0  ;;  %v1881_v0 = vpop.f32.mrf.mxu1  ;;  %v1044_v3 = vmax.f32 %v980_v55, 0.0  ;;  %v1076_v4 = vmax.f32 %v1012_v56, 0.0 }
 0x10f   :  { %1746 = vst [vmem:[%s2254_s3 + $0x40] sm:$0xff] %v1622_v59   ;;  %1762 = vst [vmem:[%s2254_s3 + $0xc0] sm:$0xff] %v1702_v60   ;;  %v981_v1 = vadd.f32 %v1849_v63, %v2089_v40  ;;  %v1013_v2 = vadd.f32 %v1881_v0, %v2089_v40  ;;  %v1042_v11 = vmax.f32 %v978_v61, 0.0 }
 0x110   :  { %v584_v5 = vpop.f32.mrf.mxu0  ;;  %v712_v6 = vpop.f32.mrf.mxu1  ;;  %v1074_v12 = vmax.f32 %v1010_v62, 0.0 }
 0x111   :  { %v1045_v7 = vmax.f32 %v981_v1, 0.0  ;;  %v1077_v8 = vmax.f32 %v1013_v2, 0.0  ;;  %v979_v9 = vadd.f32 %v2089_v40, %v584_v5  ;;  %v1011_v10 = vadd.f32 %v2089_v40, %v712_v6 }
 0x112   :  { %v1852_v13 = vpop.f32.mrf.mxu0  ;;  %v1884_v14 = vpop.f32.mrf.mxu1 }
 0x113   :  { %v1637_v15 = vpack.c.bf16 %v1045_v7, %v1044_v3  ;;  %v1717_v16 = vpack.c.bf16 %v1077_v8, %v1076_v4  ;;  %v1043_v17 = vmax.f32 %v979_v9, 0.0  ;;  %v1075_v18 = vmax.f32 %v1011_v10, 0.0 }
 0x114   :  { %v984_v19 = vadd.f32 %v1852_v13, %v2089_v40  ;;  %v1016_v20 = vadd.f32 %v1884_v14, %v2089_v40  ;;  %v597_v21 = vpop.f32.mrf.mxu0  ;;  %v725_v22 = vpop.f32.mrf.mxu1 }
 0x115   :  { %1749 = vst [vmem:[%s2254_s3 + $0x58] sm:$0xff] %v1637_v15   ;;  %1765 = vst [vmem:[%s2254_s3 + $0xd8] sm:$0xff] %v1717_v16   ;;  %v1632_v23 = vpack.c.bf16 %v1043_v17, %v1042_v11  ;;  %v1712_v24 = vpack.c.bf16 %v1075_v18, %v1074_v12  ;;  %v982_v25 = vadd.f32 %v2089_v40, %v597_v21 }
 0x116   :  { %v1014_v26 = vadd.f32 %v2089_v40, %v725_v22  ;;  %v1853_v27 = vpop.f32.mrf.mxu0  ;;  %v1885_v28 = vpop.f32.mrf.mxu1  ;;  %v1048_v31 = vmax.f32 %v984_v19, 0.0  ;;  %v1080_v32 = vmax.f32 %v1016_v20, 0.0 }
 0x117   :  { %1748 = vst [vmem:[%s2254_s3 + $0x50] sm:$0xff] %v1632_v23   ;;  %1764 = vst [vmem:[%s2254_s3 + $0xd0] sm:$0xff] %v1712_v24   ;;  %v985_v29 = vadd.f32 %v1853_v27, %v2089_v40  ;;  %v1017_v30 = vadd.f32 %v1885_v28, %v2089_v40  ;;  %v1046_v39 = vmax.f32 %v982_v25, 0.0 }
 0x118   :  { %v600_v33 = vpop.f32.mrf.mxu0  ;;  %v728_v34 = vpop.f32.mrf.mxu1  ;;  %v1078_v41 = vmax.f32 %v1014_v26, 0.0 }
 0x119   :  { %v1049_v35 = vmax.f32 %v985_v29, 0.0  ;;  %v1081_v36 = vmax.f32 %v1017_v30, 0.0  ;;  %v983_v37 = vadd.f32 %v2089_v40, %v600_v33  ;;  %v1015_v38 = vadd.f32 %v2089_v40, %v728_v34 }
 0x11a   :  { %v1856_v42 = vpop.f32.mrf.mxu0  ;;  %v1888_v43 = vpop.f32.mrf.mxu1 }
 0x11b   :  { %v1647_v44 = vpack.c.bf16 %v1049_v35, %v1048_v31  ;;  %v1727_v45 = vpack.c.bf16 %v1081_v36, %v1080_v32  ;;  %v1047_v46 = vmax.f32 %v983_v37, 0.0  ;;  %v1079_v47 = vmax.f32 %v1015_v38, 0.0 }
 0x11c   :  { %v988_v48 = vadd.f32 %v1856_v42, %v2089_v40  ;;  %v1020_v49 = vadd.f32 %v1888_v43, %v2089_v40  ;;  %v613_v50 = vpop.f32.mrf.mxu0  ;;  %v741_v51 = vpop.f32.mrf.mxu1 }
 0x11d   :  { %1751 = vst [vmem:[%s2254_s3 + $0x68] sm:$0xff] %v1647_v44   ;;  %1767 = vst [vmem:[%s2254_s3 + $0xe8] sm:$0xff] %v1727_v45   ;;  %v1642_v52 = vpack.c.bf16 %v1047_v46, %v1046_v39  ;;  %v1722_v53 = vpack.c.bf16 %v1079_v47, %v1078_v41  ;;  %v986_v54 = vadd.f32 %v2089_v40, %v613_v50 }
 0x11e   :  { %v1018_v55 = vadd.f32 %v2089_v40, %v741_v51  ;;  %v1857_v56 = vpop.f32.mrf.mxu0  ;;  %v1889_v57 = vpop.f32.mrf.mxu1  ;;  %v1052_v60 = vmax.f32 %v988_v48, 0.0  ;;  %v1084_v61 = vmax.f32 %v1020_v49, 0.0 }
 0x11f   :  { %1750 = vst [vmem:[%s2254_s3 + $0x60] sm:$0xff] %v1642_v52   ;;  %1766 = vst [vmem:[%s2254_s3 + $0xe0] sm:$0xff] %v1722_v53   ;;  %v989_v58 = vadd.f32 %v1857_v56, %v2089_v40  ;;  %v1021_v59 = vadd.f32 %v1889_v57, %v2089_v40  ;;  %v1050_v4 = vmax.f32 %v986_v54, 0.0 }
 0x120   :  { %v616_v62 = vpop.f32.mrf.mxu0  ;;  %v744_v63 = vpop.f32.mrf.mxu1  ;;  %v1082_v5 = vmax.f32 %v1018_v55, 0.0 }
 0x121   :  { %v1053_v0 = vmax.f32 %v989_v58, 0.0  ;;  %v1085_v1 = vmax.f32 %v1021_v59, 0.0  ;;  %v987_v2 = vadd.f32 %v2089_v40, %v616_v62  ;;  %v1019_v3 = vadd.f32 %v2089_v40, %v744_v63 }
 0x123   :  { %v1657_v6 = vpack.c.bf16 %v1053_v0, %v1052_v60  ;;  %v1737_v7 = vpack.c.bf16 %v1085_v1, %v1084_v61  ;;  %v1051_v8 = vmax.f32 %v987_v2, 0.0  ;;  %v1083_v9 = vmax.f32 %v1019_v3, 0.0 }
 0x125   :  { %1753 = vst [vmem:[%s2254_s3 + $0x78] sm:$0xff] %v1657_v6   ;;  %1769 = vst [vmem:[%s2254_s3 + $0xf8] sm:$0xff] %v1737_v7   ;;  %v1652_v10 = vpack.c.bf16 %v1051_v8, %v1050_v4  ;;  %v1732_v11 = vpack.c.bf16 %v1083_v9, %v1082_v5 }
 0x127   :  { %1752 = vst [vmem:[%s2254_s3 + $0x70] sm:$0xff] %v1652_v10   ;;  %1768 = vst [vmem:[%s2254_s3 + $0xf0] sm:$0xff] %v1732_v11  }

// kernel: cnn_forward.45
= control target key start
LH: loop header
LB: loop body
LE: loop exit
PB: predicated region body
PF: predicated region fallthrough
CT: control target
= control target key end

     0   :  { %s140_s0 = inlined_call_operand.vmem [shape: bf16[32,128], index: 0, kind: input, shape index: {}]   ;;  %s141_s1 = inlined_call_operand.vmem [shape: f32[1,128], index: 1, kind: input, shape index: {}]   ;;  %s142_s2 = inlined_call_operand.vmem [shape: f32[1,128], index: 2, kind: input, shape index: {}]   ;;  %s143_s3 = inlined_call_operand.vmem [shape: bf16[32,128], index: 3, kind: output, shape index: {}]  }
   0x1   :  { %v83_v0 = vld [vmem:[%s140_s0] sm:$0xff]   ;;  %v100_v4 = vld [vmem:[%s140_s0 + $0x8] sm:$0xff]  }
   0x2   :  { %v72_v1 = vld [vmem:[%s141_s1] ss:$0 sm:$0xff]  ;;  %v84_v2 = vunpack.c.l.bf16 %v83_v0  ;;  %v85_v3 = vunpack.c.h.bf16 %v83_v0  ;;  %v88_v6 = vunpack.c.l.bf16 %v100_v4  ;;  %v89_v7 = vunpack.c.h.bf16 %v100_v4 }
   0x3   :  { %v73_v5 = vld [vmem:[%s142_s2] ss:$0 sm:$0xff] }
   0x4   :  { %v29_v8 = vmul.f32 %v84_v2, %v72_v1  ;;  %v30_v9 = vmul.f32 %v85_v3, %v72_v1  ;;  %v31_v10 = vmul.f32 %v88_v6, %v72_v1  ;;  %v32_v11 = vmul.f32 %v89_v7, %v72_v1 }
   0x6   :  { %v40_v12 = vadd.f32 %v73_v5, %v29_v8  ;;  %v41_v13 = vadd.f32 %v73_v5, %v30_v9  ;;  %v42_v14 = vadd.f32 %v73_v5, %v31_v10  ;;  %v43_v15 = vadd.f32 %v73_v5, %v32_v11 }
   0x8   :  { %v44_v16 = vmax.f32 %v40_v12, 0.0  ;;  %v45_v17 = vmax.f32 %v41_v13, 0.0  ;;  %v46_v18 = vmax.f32 %v42_v14, 0.0  ;;  %v47_v19 = vmax.f32 %v43_v15, 0.0 }
   0xa   :  { %v93_v20 = vpack.c.bf16 %v45_v17, %v44_v16  ;;  %v98_v21 = vpack.c.bf16 %v47_v19, %v46_v18 }
   0xc   :  { %94 = vst [vmem:[%s143_s3] sm:$0xff] %v93_v20   ;;  %101 = vst [vmem:[%s143_s3 + $0x8] sm:$0xff] %v98_v21  }

// kernel: cnn_forward.49
= control target key start
LH: loop header
LB: loop body
LE: loop exit
PB: predicated region body
PF: predicated region fallthrough
CT: control target
= control target key end

     0   :  { %s175_s0 = inlined_call_operand.vmem [shape: bf16[32,128], index: 0, kind: input, shape index: {}]   ;;  %s176_s1 = inlined_call_operand.vmem [shape: f32[1,128], index: 1, kind: input, shape index: {}]   ;;  %s177_s2 = inlined_call_operand.vmem [shape: f32[1,128], index: 2, kind: input, shape index: {}]   ;;  %s178_s3 = inlined_call_operand.vmem [shape: bf16[32,128], index: 3, kind: input, shape index: {}]   ;;  %s179_s4 = inlined_call_operand.vmem [shape: bf16[32,128], index: 4, kind: output, shape index: {}]  }
   0x1   :  { %v98_v0 = vld [vmem:[%s175_s0] sm:$0xff]   ;;  %v123_v5 = vld [vmem:[%s175_s0 + $0x8] sm:$0xff]  }
   0x2   :  { %v87_v1 = vld [vmem:[%s176_s1] ss:$0 sm:$0xff]  ;;  %v99_v2 = vunpack.c.l.bf16 %v98_v0  ;;  %v100_v3 = vunpack.c.h.bf16 %v98_v0  ;;  %v124_v6 = vld [vmem:[%s178_s3 + $0x8] sm:$0xff]   ;;  %v103_v8 = vunpack.c.l.bf16 %v123_v5  ;;  %v104_v9 = vunpack.c.h.bf16 %v123_v5 }
   0x3   :  { %v106_v4 = vld [vmem:[%s178_s3] sm:$0xff]   ;;  %v111_v16 = vunpack.c.l.bf16 %v124_v6  ;;  %v112_v17 = vunpack.c.h.bf16 %v124_v6 }
   0x4   :  { %v88_v7 = vld [vmem:[%s177_s2] ss:$0 sm:$0xff]  ;;  %v32_v10 = vmul.f32 %v99_v2, %v87_v1  ;;  %v33_v11 = vmul.f32 %v100_v3, %v87_v1  ;;  %v107_v12 = vunpack.c.l.bf16 %v106_v4  ;;  %v108_v13 = vunpack.c.h.bf16 %v106_v4 }
   0x5   :  { %v34_v14 = vmul.f32 %v103_v8, %v87_v1  ;;  %v35_v15 = vmul.f32 %v104_v9, %v87_v1 }
   0x6   :  { %v43_v18 = vadd.f32 %v88_v7, %v32_v10  ;;  %v44_v19 = vadd.f32 %v88_v7, %v33_v11 }
   0x7   :  { %v45_v20 = vadd.f32 %v88_v7, %v34_v14  ;;  %v46_v21 = vadd.f32 %v88_v7, %v35_v15 }
   0x8   :  { %v55_v22 = vadd.f32 %v107_v12, %v43_v18  ;;  %v56_v23 = vadd.f32 %v108_v13, %v44_v19 }
   0x9   :  { %v57_v24 = vadd.f32 %v111_v16, %v45_v20  ;;  %v58_v25 = vadd.f32 %v112_v17, %v46_v21 }
   0xa   :  { %v59_v26 = vmax.f32 %v55_v22, 0.0  ;;  %v60_v27 = vmax.f32 %v56_v23, 0.0 }
   0xb   :  { %v61_v28 = vmax.f32 %v57_v24, 0.0  ;;  %v62_v29 = vmax.f32 %v58_v25, 0.0 }
   0xc   :  { %v116_v30 = vpack.c.bf16 %v60_v27, %v59_v26 }
   0xd   :  { %v121_v31 = vpack.c.bf16 %v62_v29, %v61_v28 }
   0xe   :  { %117 = vst [vmem:[%s179_s4] sm:$0xff] %v116_v30  }
   0xf   :  { %125 = vst [vmem:[%s179_s4 + $0x8] sm:$0xff] %v121_v31  }

// kernel: cnn_forward.46
= control target key start
LH: loop header
LB: loop body
LE: loop exit
PB: predicated region body
PF: predicated region fallthrough
CT: control target
= control target key end

     0   :  { %10 = vsyncpa [#allocation5], 0  ;;  %s1099_s0 = inlined_call_operand.vmem [shape: bf16[32,640], index: 0, kind: input, shape index: {}]   ;;  %s1100_s1 = inlined_call_operand.hbm [shape: bf16[640,128], index: 1, kind: input, shape index: {}]   ;;  %s1101_s2 = inlined_call_operand.vmem [shape: bf16[32,128], index: 2, kind: output, shape index: {0}]   ;;  %s1102_s3 = inlined_call_operand.vmem [shape: f32[1,128], index: 3, kind: output, shape index: {1}]   ;;  %s1103_s4 = inlined_call_operand.vmem [shape: f32[1,128], index: 4, kind: output, shape index: {2}]  }
   0x1   :  { %12 = vsyncpa [#allocation5 + $0x1], 0  ;;  %s966_s15 = smov 0   ;;  %s968_s16 = smov 0  }
   0x2   :  { %s970_s17 = smov 0   ;;  %s972_s18 = smov 0  }
   0x3   :  { %s974_s19 = smov 0   ;;  %s976_s20 = smov 0  }
   0x4 LB: > { %s713_s21 = sadd.s32 4294967295, %s934_s20   ;;  %s30_s22 = sadd.s32 1, %s930_s19  ;;  %s934_s20 = sphi %s976_s20, %s18_s20   ;;  %s930_s19 = sphi %s974_s19, %s1110_s19   ;;  %s926_s18 = sphi %s972_s18, %s1109_s18   ;;  %s922_s17 = sphi %s970_s17, %s1108_s17   ;;  %s918_s16 = sphi %s968_s16, %s1107_s16   ;;  %s914_s15 = sphi %s966_s15, %s1106_s15  }
   0x5   : > { %p31_p0 = scmp.ge.s32.totalorder %s30_s22, 5  ;;  %s46_s23 = sadd.s32 1, %s922_s17 }
   0x6   : > { %p53_p1 = scmp.ne.s32.totalorder %s922_s17, %s918_s16  ;;  %p54_p2 = scmp.eq.s32.totalorder %s934_s20, 0 }
   0x7   : > { %s1112_s22 = smov (%p31_p0, %s30_s22), 0  ;;  %p87_p4 = scmp.ne.s32.totalorder %s918_s16, %s914_s15 }
   0x8   : > { %p1002_p3 = por %p54_p2, %p53_p1  ;;  %s42_s25 = ssub.s32 %s930_s19, %s1112_s22 }
   0x9   : > { %p88_p5 = scmp.eq.s32.totalorder %s713_s21, 0  ;;  %p44_p6 = scmp.eq.s32.totalorder %s42_s25, 0 }
   0xa   : > { %p715_p8 = scmp.ge.s32.totalorder %s934_s20, 5 }
   0xb   : > { %p1009_p7 = por %p88_p5, %p87_p4 }
   0xc   : > { %s1014_s27 = scalar_select %p44_p6, %s922_s17, %s46_s23  }
   0xd   : > { %187 = sbr.rel (%p715_p8) target bundleno = 40 (0x28), region = 16 }
  0x12   : > { %190 = sbr.rel (!%p1002_p3) target bundleno = 24 (0x18), region = 20  ;;  %s192_s28 = sand.u32 (%p1002_p3), 1, %s922_s17  }
  0x13   : > { %s717_s29 = sshll.u32 (%p1002_p3), %s930_s19, 2  ;;  %s716_s30 = sshll.u32 (%p1002_p3), %s192_s28, 4 }
  0x14   : > { %s199_s7 = scalar_lea.vmem (%p1002_p3), %s1099_s0, %s717_s29  ;;  %s194_s8 = scalar_lea.vmem (%p1002_p3), [#allocation3], %s716_s30 }
  0x15   : > { %v216_v0 = vld [vmem:[%s199_s7] sm:$0xf] (%p1002_p3)  ;;  %v218_v1 = vld [vmem:[%s199_s7 + $0x14] sm:$0xf] (%p1002_p3)  ;;  %v220_v2 = vld [vmem:[%s199_s7 + $0x28] sm:$0xf] (%p1002_p3) }
  0x16   : > { %217 = vst [vmem:[%s194_s8] sm:$0xf] (%p1002_p3), %v216_v0  ;;  %219 = vst [vmem:[%s194_s8 + $0x4] sm:$0xf] (%p1002_p3), %v218_v1  ;;  %v222_v3 = vld [vmem:[%s199_s7 + $0x3c] sm:$0xf] (%p1002_p3) }
  0x17   : > { %221 = vst [vmem:[%s194_s8 + $0x8] sm:$0xf] %v220_v2  ;;  %223 = vst [vmem:[%s194_s8 + $0xc] sm:$0xf] %v222_v3 }
  0x18 PF: > { %s256_s9 = sand.u32 1, %s922_s17   ;;  %s747_s10 = sshll.u32 %s930_s19, 10 }
  0x19   : > { %s718_s11 = sshll.u32 %s256_s9, 6  ;;  %s267_s14 = scalar_lea.hbm %s1100_s1, %s747_s10 }
  0x1a   : > { %s260_s15 = scalar_lea.vmem [#allocation4], %s718_s11  ;;  %s257_s23 = scalar_lea.sflag [#allocation5], %s256_s9 }
  0x1b   : > { %s268_s21 = sshll.u32 %s260_s15, 4  ;;  %s936_s28 = smov [#allocation4]   ;;  %s269_s21 = int_to_ptr.vmem [resolvable:$true] %s268_s21 }
  0x1c   : > { %s870_s25 = scalar_lea.vmem %s269_s21, 1024  ;;  %s874_s29 = sshll.u32 %s936_s28, 4  ;;  %s875_s29 = int_to_ptr.vmem [resolvable:$false] %s874_s29 }
  0x1d   : > { %p871_p9 = scmp.ne.s32.totalorder %s269_s21, %s870_s25  ;;  %s876_s30 = scalar_lea.vmem %s875_s29, 2048 }
  0x1e   : > { %p877_p12 = scmp.lt.s32.totalorder %s269_s21, %s875_s29  ;;  %p878_p13 = scmp.lt.s32.totalorder %s876_s30, %s870_s25 }
  0x1f   : > { %p872_p10 = pnand %p871_p9, %p1002_p3 }
  0x20   : > { %p879_p0 = por %p878_p13, %p877_p12 }
  0x21   : > { %p873_p11 = pneg %p872_p10 }
  0x23   : > { %p880_p1 = pnand %p879_p0, %p873_p11 }
  0x25   : > { %883 = shalt.err (!%p880_p1)
}
  0x26   : > { %s937_s5 = smov 64   ;;  %s938_s6 = smov 4  }
  0x27   : > { %794 = dma.hbm_to_vmem [thread:$0]  (%p1002_p3), %s267_s14, 1024, %s269_s21, %s257_s23, %s937_s5, %s937_s5, %s938_s6  }
  0x28 PF: > { %p721_p2 = scmp.ge.s32.totalorder %s934_s20, 1  ;;  %p276_p4 = scmp.lt.s32.totalorder %s934_s20, 6 }
  0x2a   : > { %p277_p5 = pnand %p721_p2, %p276_p4 }
  0x2b   : > { %s283_s7 = sand.u32 (!%p277_p5), 1, %s918_s16  }
  0x2c   : > { %280 = sbr.rel (%p277_p5) target bundleno = 330 (0x14a), region = 65  ;;  %s722_s8 = sshll.u32 (!%p277_p5), %s283_s7, 4 }
  0x2d   : > { %s723_s9 = sshll.u32 (!%p277_p5), %s283_s7, 6  ;;  %s1036_s10 = scalar_lea.vmem (!%p277_p5), [#allocation3], %s722_s8 }
  0x2e   : > { %s290_s11 = scalar_lea.sflag (!%p277_p5), [#allocation5], %s283_s7  ;;  %s1038_s12 = scalar_lea.vmem (!%p277_p5), [#allocation4], %s723_s9 }
  0x31   : > { %909 = dma.done.wait (%p1009_p7), %s290_s11, 1024  }
  0x32   : > { %911 = vsyncadd (%p1009_p7), %s290_s11, 4294966272  ;;  %p349_p3 = scmp.eq.s32.totalorder %s926_s18, 0  ;;  %p724_p6 = scmp.ne.s32.totalorder %s926_s18, 0 }
  0x34   : > { %352 = sbr.rel (%p724_p6) target bundleno = 60 (0x3c), region = 77 }
  0x39   : > { %v939_v4 = vmov 0.0  }
  0x3a   : > { %353 = vst [vmem:[#allocation2 + $0x10] sm:$0xff] %v939_v4  ;;  %354 = vst [vmem:[#allocation2] sm:$0xff] %v939_v4 }
  0x3b   : > { %355 = vst [vmem:[#allocation2 + $0x18] sm:$0xff] %v939_v4  ;;  %356 = vst [vmem:[#allocation2 + $0x8] sm:$0xff] %v939_v4 }
  0x3c PF: > { %361 = sbr.rel (!%p349_p3) target bundleno = 65 (0x41), region = 81  ;;  %v940_v5 = vmov (%p349_p3), 0.0  }
  0x3d   : > { %362 = vst [vmem:[%s1102_s3] sm:$0x1] (%p349_p3), %v940_v5  ;;  %363 = vst [vmem:[%s1103_s4] sm:$0x1] (%p349_p3), %v940_v5 }
  0x41 PF: > { %v848_v6 = vld [vmem:[%s1038_s12 + $0x38] sm:$0xff]   ;;  %v849_v7 = vld [vmem:[%s1038_s12 + $0x30] sm:$0xff]   ;;  %v850_v8 = vld [vmem:[%s1038_s12 + $0x28] sm:$0xff]   ;;  %p736_p7 = scmp.ne.s32.totalorder %s926_s18, 4 }
  0x42   : > { %774 = vmatprep.subr.bf16.mxu0 %v848_v6  ;;  %v851_v9 = vld [vmem:[%s1038_s12 + $0x20] sm:$0xff]   ;;  %v852_v11 = vld [vmem:[%s1038_s12 + $0x18] sm:$0xff]   ;;  %v853_v12 = vld [vmem:[%s1038_s12 + $0x10] sm:$0xff]  }
  0x43   : > { %775 = vmatpush3.bf16.msra.mxu0 %v848_v6  ;;  %v856_v10 = vld [vmem:[%s1036_s10] sm:$0xff]   ;;  %v854_v13 = vld [vmem:[%s1038_s12 + $0x8] sm:$0xff]   ;;  %v366_v16 = vld [vmem:[#allocation2 + $0x18] sm:$0xff] }
  0x44   : > { %776 = vmatprep.subr.bf16.mxu0 %v849_v7  ;;  %790 = vmatprep.mubr.bf16.mxu0 %v856_v10  ;;  %v855_v14 = vld [vmem:[%s1038_s12] sm:$0xff]   ;;  %v857_v15 = vld [vmem:[%s1036_s10 + $0x8] sm:$0xff]   ;;  %v364_v18 = vld [vmem:[#allocation2 + $0x10] sm:$0xff] }
  0x45   : > { %v367_v21 = vld [vmem:[#allocation2 + $0x8] sm:$0xff]  ;;  %v365_v24 = vld [vmem:[#allocation2] sm:$0xff] }
  0x47   : > { %777 = vmatpush3.bf16.msra.mxu0 %v849_v7 }
  0x48   : > { %778 = vmatprep.subr.bf16.mxu0 %v850_v8 }
  0x4b   : > { %779 = vmatpush3.bf16.msra.mxu0 %v850_v8 }
  0x4c   : > { %780 = vmatprep.subr.bf16.mxu0 %v851_v9 }
  0x4f   : > { %781 = vmatpush3.bf16.msra.mxu0 %v851_v9 }
  0x50   : > { %782 = vmatprep.subr.bf16.mxu0 %v852_v11 }
  0x53   : > { %783 = vmatpush3.bf16.msra.mxu0 %v852_v11 }
  0x54   : > { %784 = vmatprep.subr.bf16.mxu0 %v853_v12 }
  0x57   : > { %785 = vmatpush3.bf16.msra.mxu0 %v853_v12 }
  0x58   : > { %786 = vmatprep.subr.bf16.mxu0 %v854_v13 }
  0x5b   : > { %787 = vmatpush3.bf16.msra.mxu0 %v854_v13 }
  0x5c   : > { %788 = vmatprep.subr.bf16.mxu0 %v855_v14 }
  0x5f   : > { %789 = vmatpush3.bf16.msra.mxu0 %v855_v14 }
  0x62   : > { %791 = vmatmul.mubr.bf16.vlgmr.msra.gmra.mxu0 %v857_v15 }
 0x122   : > { %v792_v17 = vpop.f32.mrf.mxu0 }
 0x123   : > { %v499_v19 = vadd.f32 %v792_v17, %v366_v16 }
 0x124   : > { %v482_v20 = vpop.f32.mrf.mxu0 }
 0x125   : > { %503 = vst [vmem:[#allocation2 + $0x18] sm:$0xff] %v499_v19  ;;  %v497_v22 = vadd.f32 %v482_v20, %v364_v18 }
 0x126   : > { %v793_v23 = vpop.f32.mrf.mxu0 }
 0x127   : > { %501 = vst [vmem:[#allocation2 + $0x10] sm:$0xff] %v497_v22  ;;  %v500_v25 = vadd.f32 %v793_v23, %v367_v21  ;;  %508 = sbr.rel (%p736_p7) target bundleno = 330 (0x14a), region = 85 }
 0x128   : > { %v485_v26 = vpop.f32.mrf.mxu0 }
 0x129   : > { %504 = vst [vmem:[#allocation2 + $0x8] sm:$0xff] %v500_v25  ;;  %v498_v27 = vadd.f32 %v485_v26, %v365_v24 }
 0x12b   : > { %502 = vst [vmem:[#allocation2] sm:$0xff] %v498_v27 }
 0x12c   : > { %v511_v30 = vld [vmem:[#allocation2 + $0x18] sm:$0xff]  ;;  %v533_v53 = vld [vmem:[%s1102_s3] sm:$0x1] }
 0x12d   : > { %v548_v37 = vmul.f32 %v511_v30, %v511_v30  ;;  %v545_v56 = vld [vmem:[%s1103_s4] sm:$0x1] }
 0x12e   : > { %v509_v28 = vld [vmem:[#allocation2 + $0x10] sm:$0xff] }
 0x12f   : > { %v546_v33 = vmul.f32 %v509_v28, %v509_v28 }
 0x130   : > { %v512_v35 = vld [vmem:[#allocation2 + $0x8] sm:$0xff] }
 0x131   : > { %v761_v36 = vpack.c.bf16 %v512_v35, %v511_v30  ;;  %v549_v40 = vmul.f32 %v512_v35, %v512_v35 }
 0x132   : > { %v510_v29 = vld [vmem:[#allocation2] sm:$0xff] }
 0x133   : > { %v756_v31 = vpack.c.bf16 %v510_v29, %v509_v28  ;;  %v534_v32 = vadd.f32 %v510_v29, %v509_v28  ;;  %v547_v34 = vmul.f32 %v510_v29, %v510_v29  ;;  %763 = vst [vmem:[%s1101_s2 + $0x8] sm:$0xff] %v761_v36  }
 0x135   : > { %757 = vst [vmem:[%s1101_s2] sm:$0xff] %v756_v31   ;;  %v550_v38 = vadd.f32 %v547_v34, %v546_v33  ;;  %v535_v39 = vadd.f32 %v534_v32, %v511_v30 }
 0x137   : > { %v536_v41 = vadd.f32 %v535_v39, %v512_v35  ;;  %v551_v42 = vadd.f32 %v550_v38, %v548_v37 }
 0x139   : > { %v537_v43 = vrot.slane %v536_v41, 4  ;;  %v552_v44 = vadd.f32 %v551_v42, %v549_v40 }
 0x13b   : > { %v538_v45 = vadd.f32 %v537_v43, %v536_v41  ;;  %v553_v46 = vrot.slane %v552_v44, 4 }
 0x13d   : > { %v539_v47 = vrot.slane %v538_v45, 2  ;;  %v554_v48 = vadd.f32 %v553_v46, %v552_v44 }
 0x13f   : > { %v540_v49 = vadd.f32 %v539_v47, %v538_v45  ;;  %v555_v50 = vrot.slane %v554_v48, 2 }
 0x141   : > { %v541_v51 = vrot.slane %v540_v49, 1  ;;  %v556_v52 = vadd.f32 %v555_v50, %v554_v48 }
 0x143   : > { %v542_v54 = vadd.f32 %v541_v51, %v540_v49  ;;  %v557_v55 = vrot.slane %v556_v52, 1 }
 0x145   : > { %v543_v57 = vadd.f32 %v542_v54, %v533_v53  ;;  %v558_v58 = vadd.f32 %v557_v55, %v556_v52 }
 0x147   : > { %544 = vst [vmem:[%s1102_s3] sm:$0x1] %v543_v57  ;;  %v559_v59 = vadd.f32 %v558_v58, %v545_v56 }
 0x149   : > { %560 = vst [vmem:[%s1103_s4] sm:$0x1] %v559_v59 }
 0x14a PF: > { %s18_s20 = sadd.s32 1, %s934_s20   ;;  %s1106_s15 = smov %s918_s16 }
 0x14b   : > { %p15_p8 = scmp.ge.s32.totalorder %s18_s20, 7   ;;  %s1107_s16 = smov %s922_s17 }
 0x14c   : > { %s1108_s17 = smov %s1014_s27  ;;  %s1109_s18 = smov %s930_s19 }
 0x14d   : > { %s1110_s19 = smov %s1112_s22  ;;  %17 = sbr.rel (!%p15_p8) target bundleno = 4 (0x4), region = 153 }
 0x152   :  { %613 = vsyncpa [#allocation5], 1 }
 0x153   :  { %615 = vsyncpa [#allocation5 + $0x1], 1 }

// kernel: cnn_forward.44
= control target key start
LH: loop header
LB: loop body
LE: loop exit
PB: predicated region body
PF: predicated region fallthrough
CT: control target
= control target key end

     0   :  { %10 = vsyncpa [#allocation4], 0  ;;  %s711_s15 = smov [#allocation3]   ;;  %s791_s0 = inlined_call_operand.vmem [shape: bf16[32,512], index: 0, kind: input, shape index: {}]   ;;  %s792_s1 = inlined_call_operand.hbm [shape: bf16[512,128], index: 1, kind: input, shape index: {}]   ;;  %s793_s2 = inlined_call_operand.vmem [shape: bf16[32,128], index: 2, kind: output, shape index: {0}]   ;;  %s794_s3 = inlined_call_operand.vmem [shape: f32[1,128], index: 3, kind: output, shape index: {1}]   ;;  %s795_s4 = inlined_call_operand.vmem [shape: f32[1,128], index: 4, kind: output, shape index: {2}]  }
   0x1   :  { %s18_s16 = sshll.u32 %s711_s15, 4  ;;  %s19_s16 = int_to_ptr.vmem [resolvable:$true] %s18_s16 }
   0x2   :  { %s697_s17 = scalar_lea.vmem %s19_s16, 4096  ;;  %p702_p1 = scmp.lt.s32.totalorder %s19_s16, %s19_s16 }
   0x3   :  { %p698_p0 = scmp.ne.s32.totalorder %s19_s16, %s697_s17  ;;  %p703_p2 = scmp.lt.s32.totalorder %s697_s17, %s697_s17 }
   0x5   :  { %p704_p3 = por %p703_p2, %p702_p1 }
   0x7   :  { %p705_p4 = pnand %p704_p3, %p698_p0 }
   0x9   :  { %708 = shalt.err (!%p705_p4)
}
   0xa   :  { %s712_s18 = smov 64   ;;  %s713_s19 = smov 4  }
   0xb   :  { %24 = dma.hbm_to_vmem [thread:$0]  %s792_s1, 4096, %s19_s16, [#allocation4], %s712_s18, %s712_s18, %s713_s19  }
   0xc   :  { %709 = dma.done.wait [#allocation4], 4096  }
   0xd   :  { %710 = vsyncadd [#allocation4], 4294963200  ;;  %v645_v0 = vld [vmem:[#allocation3 + $0x78] sm:$0xff]   ;;  %v649_v4 = vld [vmem:[#allocation3 + $0x70] sm:$0xff]   ;;  %v714_v40 = vmov 0.0  }
   0xe   :  { %v646_v1 = vld [vmem:[#allocation3 + $0xf8] sm:$0xff]   ;;  %585 = vmatprep.subr.bf16.mxu0 %v645_v0  ;;  %v650_v5 = vld [vmem:[#allocation3 + $0xf0] sm:$0xff]   ;;  %v653_v8 = vld [vmem:[#allocation3 + $0x68] sm:$0xff]   ;;  %42 = vst [vmem:[%s794_s3] sm:$0x1] %v714_v40 }
   0xf   :  { %v647_v2 = vld [vmem:[#allocation3 + $0x38] sm:$0xff]   ;;  %613 = vmatprep.subr.bf16.mxu1 %v646_v1  ;;  %v651_v6 = vld [vmem:[#allocation3 + $0x30] sm:$0xff]   ;;  %v654_v9 = vld [vmem:[#allocation3 + $0xe8] sm:$0xff]   ;;  %43 = vst [vmem:[%s795_s4] sm:$0x1] %v714_v40 }
  0x10   :  { %v648_v3 = vld [vmem:[#allocation3 + $0xb8] sm:$0xff]   ;;  %586 = vmatpush3.bf16.msra.mxu0 %v647_v2  ;;  %v652_v7 = vld [vmem:[#allocation3 + $0xb0] sm:$0xff]   ;;  %v655_v10 = vld [vmem:[#allocation3 + $0x28] sm:$0xff]  }
  0x11   :  { %614 = vmatpush3.bf16.msra.mxu1 %v648_v3  ;;  %587 = vmatprep.subr.bf16.mxu0 %v649_v4  ;;  %v656_v11 = vld [vmem:[#allocation3 + $0xa8] sm:$0xff]   ;;  %v657_v12 = vld [vmem:[#allocation3 + $0x60] sm:$0xff]   ;;  %v661_v16 = vld [vmem:[#allocation3 + $0x58] sm:$0xff]  }
  0x12   :  { %615 = vmatprep.subr.bf16.mxu1 %v650_v5  ;;  %v658_v13 = vld [vmem:[#allocation3 + $0xe0] sm:$0xff]   ;;  %v662_v17 = vld [vmem:[#allocation3 + $0xd8] sm:$0xff]   ;;  %v665_v20 = vld [vmem:[#allocation3 + $0x50] sm:$0xff]  }
  0x13   :  { %v659_v14 = vld [vmem:[#allocation3 + $0x20] sm:$0xff]   ;;  %v663_v18 = vld [vmem:[#allocation3 + $0x18] sm:$0xff]   ;;  %v666_v21 = vld [vmem:[#allocation3 + $0xd0] sm:$0xff]  }
  0x14   :  { %588 = vmatpush3.bf16.msra.mxu0 %v651_v6  ;;  %v660_v15 = vld [vmem:[#allocation3 + $0xa0] sm:$0xff]   ;;  %v664_v19 = vld [vmem:[#allocation3 + $0x98] sm:$0xff]   ;;  %v667_v22 = vld [vmem:[#allocation3 + $0x10] sm:$0xff]  }
  0x15   :  { %616 = vmatpush3.bf16.msra.mxu1 %v652_v7  ;;  %589 = vmatprep.subr.bf16.mxu0 %v653_v8  ;;  %v668_v23 = vld [vmem:[#allocation3 + $0x90] sm:$0xff]   ;;  %v669_v24 = vld [vmem:[#allocation3 + $0x48] sm:$0xff]   ;;  %v673_v28 = vld [vmem:[#allocation3 + $0x40] sm:$0xff]  }
  0x16   :  { %617 = vmatprep.subr.bf16.mxu1 %v654_v9  ;;  %v670_v25 = vld [vmem:[#allocation3 + $0xc8] sm:$0xff]   ;;  %v674_v29 = vld [vmem:[#allocation3 + $0xc0] sm:$0xff]  }
  0x17   :  { %v671_v26 = vld [vmem:[#allocation3 + $0x8] sm:$0xff]   ;;  %v675_v30 = vld [vmem:[#allocation3] sm:$0xff]  }
  0x18   :  { %590 = vmatpush3.bf16.msra.mxu0 %v655_v10  ;;  %v672_v27 = vld [vmem:[#allocation3 + $0x88] sm:$0xff]   ;;  %v676_v31 = vld [vmem:[#allocation3 + $0x80] sm:$0xff]  }
  0x19   :  { %618 = vmatpush3.bf16.msra.mxu1 %v656_v11  ;;  %591 = vmatprep.subr.bf16.mxu0 %v657_v12  ;;  %v677_v32 = vld [vmem:[%s791_s0] ss:$16 sps:$4 sm:$0xff]   ;;  %v679_v33 = vld [vmem:[%s791_s0 + $0x4] ss:$16 sps:$4 sm:$0xff]   ;;  %v680_v34 = vld [vmem:[%s791_s0 + $0x8] ss:$16 sps:$4 sm:$0xff]  }
  0x1a   :  { %619 = vmatprep.subr.bf16.mxu1 %v658_v13  ;;  %v682_v35 = vld [vmem:[%s791_s0 + $0xc] ss:$16 sps:$4 sm:$0xff]   ;;  %384 = vmatprep.mubr.bf16.mxu0 %v679_v33  ;;  %v683_v36 = vld [vmem:[%s791_s0 + $0x24] ss:$16 sps:$4 sm:$0xff]   ;;  %v687_v38 = vld [vmem:[%s791_s0 + $0x20] ss:$16 sps:$4 sm:$0xff]  }
  0x1b   :  { %433 = vmatprep.mubr.bf16.mxu1 %v682_v35  ;;  %v685_v37 = vld [vmem:[%s791_s0 + $0x2c] ss:$16 sps:$4 sm:$0xff]   ;;  %v688_v39 = vld [vmem:[%s791_s0 + $0x28] ss:$16 sps:$4 sm:$0xff]  }
  0x1c   :  { %592 = vmatpush3.bf16.msra.mxu0 %v659_v14 }
  0x1d   :  { %620 = vmatpush3.bf16.msra.mxu1 %v660_v15  ;;  %593 = vmatprep.subr.bf16.mxu0 %v661_v16 }
  0x1e   :  { %621 = vmatprep.subr.bf16.mxu1 %v662_v17 }
  0x20   :  { %594 = vmatpush3.bf16.msra.mxu0 %v663_v18 }
  0x21   :  { %622 = vmatpush3.bf16.msra.mxu1 %v664_v19  ;;  %595 = vmatprep.subr.bf16.mxu0 %v665_v20 }
  0x22   :  { %623 = vmatprep.subr.bf16.mxu1 %v666_v21 }
  0x24   :  { %596 = vmatpush3.bf16.msra.mxu0 %v667_v22 }
  0x25   :  { %624 = vmatpush3.bf16.msra.mxu1 %v668_v23  ;;  %597 = vmatprep.subr.bf16.mxu0 %v669_v24 }
  0x26   :  { %625 = vmatprep.subr.bf16.mxu1 %v670_v25 }
  0x28   :  { %598 = vmatpush3.bf16.msra.mxu0 %v671_v26  ;;  %v485_v26 = vld [vmem:[%s794_s3] sm:$0x1] }
  0x29   :  { %626 = vmatpush3.bf16.msra.mxu1 %v672_v27  ;;  %599 = vmatprep.subr.bf16.mxu0 %v673_v28 }
  0x2a   :  { %627 = vmatprep.subr.bf16.mxu1 %v674_v29  ;;  %v497_v29 = vld [vmem:[%s795_s4] sm:$0x1] }
  0x2c   :  { %600 = vmatpush3.bf16.msra.mxu0 %v675_v30 }
  0x2d   :  { %628 = vmatpush3.bf16.msra.mxu1 %v676_v31 }
  0x2f   :  { %385 = vmatmul.mubr.bf16.vlgmr.msra.gmra.mxu0 %v677_v32 }
  0x30   :  { %434 = vmatmul.mubr.bf16.vlgmr.msra.gmra.mxu1 %v680_v34  ;;  %392 = vmatprep.mubr.bf16.mxu0 %v683_v36 }
  0x31   :  { %441 = vmatprep.mubr.bf16.mxu1 %v685_v37 }
  0x37   :  { %393 = vmatmul.mubr.bf16.gmra.mxu0 %v687_v38 }
  0x38   :  { %442 = vmatmul.mubr.bf16.gmra.mxu1 %v688_v39 }
  0xef   :  { %v601_v41 = vpop.f32.mrf.mxu0 }
  0xf0   :  { %v629_v42 = vpop.f32.mrf.mxu1 }
  0xf1   :  { %v602_v43 = vpop.f32.mrf.mxu0 }
  0xf2   :  { %v630_v44 = vpop.f32.mrf.mxu1  ;;  %v603_v47 = vadd.f32 %v602_v43, %v601_v41 }
  0xf3   :  { %v604_v45 = vpop.f32.mrf.mxu0  ;;  %v631_v48 = vadd.f32 %v630_v44, %v629_v42 }
  0xf4   :  { %v632_v46 = vpop.f32.mrf.mxu1 }
  0xf5   :  { %v605_v49 = vpop.f32.mrf.mxu0  ;;  %v436_v55 = vadd.f32 %v631_v48, %v603_v47 }
  0xf6   :  { %v606_v50 = vadd.f32 %v605_v49, %v604_v45  ;;  %v633_v51 = vpop.f32.mrf.mxu1 }
  0xf7   :  { %v634_v52 = vadd.f32 %v633_v51, %v632_v46  ;;  %v607_v53 = vpop.f32.mrf.mxu0  ;;  %v498_v5 = vmul.f32 %v436_v55, %v436_v55 }
  0xf8   :  { %v635_v54 = vpop.f32.mrf.mxu1 }
  0xf9   :  { %v439_v56 = vadd.f32 %v634_v52, %v606_v50  ;;  %v608_v57 = vpop.f32.mrf.mxu0 }
  0xfa   :  { %v609_v58 = vadd.f32 %v608_v57, %v607_v53  ;;  %v636_v59 = vpop.f32.mrf.mxu1 }
  0xfb   :  { %v577_v60 = vpack.c.bf16 %v439_v56, %v436_v55  ;;  %v637_v61 = vadd.f32 %v636_v59, %v635_v54  ;;  %v610_v62 = vpop.f32.mrf.mxu0  ;;  %v499_v0 = vmul.f32 %v439_v56, %v439_v56  ;;  %v486_v6 = vadd.f32 %v439_v56, %v436_v55 }
  0xfc   :  { %v638_v63 = vpop.f32.mrf.mxu1 }
  0xfd   :  { %578 = vst [vmem:[%s793_s2] sm:$0xff] %v577_v60   ;;  %v444_v1 = vadd.f32 %v637_v61, %v609_v58  ;;  %v611_v2 = vpop.f32.mrf.mxu0  ;;  %v502_v9 = vadd.f32 %v499_v0, %v498_v5 }
  0xfe   :  { %v612_v3 = vadd.f32 %v611_v2, %v610_v62  ;;  %v639_v4 = vpop.f32.mrf.mxu1 }
  0xff   :  { %v500_v7 = vmul.f32 %v444_v1, %v444_v1  ;;  %v640_v8 = vadd.f32 %v639_v4, %v638_v63  ;;  %v487_v10 = vadd.f32 %v486_v6, %v444_v1 }
 0x101   :  { %v447_v11 = vadd.f32 %v640_v8, %v612_v3  ;;  %v503_v12 = vadd.f32 %v502_v9, %v500_v7 }
 0x103   :  { %v582_v13 = vpack.c.bf16 %v447_v11, %v444_v1  ;;  %v488_v14 = vadd.f32 %v487_v10, %v447_v11  ;;  %v501_v15 = vmul.f32 %v447_v11, %v447_v11 }
 0x105   :  { %584 = vst [vmem:[%s793_s2 + $0x8] sm:$0xff] %v582_v13   ;;  %v489_v16 = vrot.slane %v488_v14, 4  ;;  %v504_v17 = vadd.f32 %v503_v12, %v501_v15 }
 0x107   :  { %v490_v18 = vadd.f32 %v489_v16, %v488_v14  ;;  %v505_v19 = vrot.slane %v504_v17, 4 }
 0x109   :  { %v491_v20 = vrot.slane %v490_v18, 2  ;;  %v506_v21 = vadd.f32 %v505_v19, %v504_v17 }
 0x10b   :  { %v492_v22 = vadd.f32 %v491_v20, %v490_v18  ;;  %v507_v23 = vrot.slane %v506_v21, 2 }
 0x10d   :  { %v493_v24 = vrot.slane %v492_v22, 1  ;;  %v508_v25 = vadd.f32 %v507_v23, %v506_v21 }
 0x10f   :  { %v494_v27 = vadd.f32 %v493_v24, %v492_v22  ;;  %v509_v28 = vrot.slane %v508_v25, 1 }
 0x111   :  { %v495_v30 = vadd.f32 %v494_v27, %v485_v26  ;;  %v510_v31 = vadd.f32 %v509_v28, %v508_v25 }
 0x113   :  { %496 = vst [vmem:[%s794_s3] sm:$0x1] %v495_v30  ;;  %v511_v32 = vadd.f32 %v510_v31, %v497_v29 }
 0x115   :  { %512 = vst [vmem:[%s795_s4] sm:$0x1] %v511_v32 }
 0x116   :  { %525 = vsyncpa [#allocation4], 1 }

// kernel: cnn_forward.55
= control target key start
LH: loop header
LB: loop body
LE: loop exit
PB: predicated region body
PF: predicated region fallthrough
CT: control target
= control target key end

     0   :  { %s73_s0 = inlined_call_operand.vmem [shape: bf16[8,128], index: 0, kind: input, shape index: {}]   ;;  %s74_s1 = inlined_call_operand.vmem [shape: f32[1,128], index: 1, kind: input, shape index: {}]   ;;  %s75_s2 = inlined_call_operand.vmem [shape: f32[1,128], index: 2, kind: input, shape index: {}]   ;;  %s76_s3 = inlined_call_operand.vmem [shape: bf16[8,128], index: 3, kind: output, shape index: {}]  }
   0x1   :  { %v14_v0 = vld [vmem:[%s73_s0] sm:$0xf] }
   0x2   :  { %v39_v1 = vld [vmem:[%s74_s1] ss:$0 sm:$0xff]  ;;  %v15_v2 = vunpack.c.l.bf16 %v14_v0 }
   0x3   :  { %v40_v3 = vld [vmem:[%s75_s2] ss:$0 sm:$0xff] }
   0x4   :  { %v23_v4 = vmul.f32 %v39_v1, %v15_v2 }
   0x6   :  { %v31_v5 = vadd.f32 %v40_v3, %v23_v4 }
   0x8   :  { %v32_v6 = vmax.f32 %v31_v5, 0.0 }
   0xa   :  { %v33_v7 = vpack.c.bf16 %v32_v6, %v32_v6 }
   0xc   :  { %34 = vst [vmem:[%s76_s3] sm:$0xf] %v33_v7 }

// kernel: cnn_forward.54
= control target key start
LH: loop header
LB: loop body
LE: loop exit
PB: predicated region body
PF: predicated region fallthrough
CT: control target
= control target key end

     0   :  { %10 = vsyncpa [#allocation4], 0  ;;  %s959_s0 = inlined_call_operand.vmem [shape: bf16[8,640], index: 0, kind: input, shape index: {}]   ;;  %s960_s1 = inlined_call_operand.hbm [shape: bf16[640,128], index: 1, kind: input, shape index: {}]   ;;  %s961_s2 = inlined_call_operand.vmem [shape: bf16[8,128], index: 2, kind: output, shape index: {0}]   ;;  %s962_s3 = inlined_call_operand.vmem [shape: f32[1,128], index: 3, kind: output, shape index: {1}]   ;;  %s963_s4 = inlined_call_operand.vmem [shape: f32[1,128], index: 4, kind: output, shape index: {2}]  }
   0x1   :  { %12 = vsyncpa [#allocation4 + $0x1], 0  ;;  %s826_s15 = smov 0   ;;  %s828_s16 = smov 0  }
   0x2   :  { %s830_s17 = smov 0   ;;  %s832_s18 = smov 0  }
   0x3   :  { %s834_s19 = smov 0   ;;  %s836_s20 = smov 0  }
   0x4 LB: > { %s589_s21 = sadd.s32 4294967295, %s792_s20   ;;  %s30_s22 = sadd.s32 1, %s788_s19  ;;  %s792_s20 = sphi %s836_s20, %s18_s20   ;;  %s788_s19 = sphi %s834_s19, %s971_s19   ;;  %s784_s18 = sphi %s832_s18, %s970_s18   ;;  %s780_s17 = sphi %s830_s17, %s969_s17   ;;  %s776_s16 = sphi %s828_s16, %s968_s16   ;;  %s772_s15 = sphi %s826_s15, %s967_s15  }
   0x5   : > { %p31_p0 = scmp.ge.s32.totalorder %s30_s22, 5  ;;  %s74_s23 = sadd.s32 1, %s780_s17 }
   0x6   : > { %p81_p1 = scmp.ne.s32.totalorder %s780_s17, %s776_s16  ;;  %p82_p2 = scmp.eq.s32.totalorder %s792_s20, 0 }
   0x7   : > { %s973_s22 = smov (%p31_p0, %s30_s22), 0  ;;  %p87_p4 = scmp.ne.s32.totalorder %s776_s16, %s772_s15 }
   0x8   : > { %p862_p3 = por %p82_p2, %p81_p1  ;;  %s69_s25 = ssub.s32 %s788_s19, %s973_s22 }
   0x9   : > { %p88_p5 = scmp.eq.s32.totalorder %s589_s21, 0  ;;  %p72_p6 = scmp.eq.s32.totalorder %s69_s25, 0 }
   0xa   : > { %p651_p8 = scmp.lt.s32.totalorder %s792_s20, 5  ;;  %s202_s28 = sand.u32 1, %s780_s17  }
   0xb   : > { %p869_p7 = por %p88_p5, %p87_p4  ;;  %s614_s29 = sshll.u32 %s788_s19, 10 }
   0xc   : > { %s875_s27 = scalar_select %p72_p6, %s780_s17, %s74_s23  }
   0xd   : > { %s592_s30 = sshll.u32 %s202_s28, 6  ;;  %s213_s7 = scalar_lea.hbm %s960_s1, %s614_s29 }
   0xe   : > { %s206_s8 = scalar_lea.vmem [#allocation3], %s592_s30  ;;  %p884_p9 = pnand %p651_p8, %p862_p3 }
   0xf   : > { %s214_s9 = sshll.u32 %s206_s8, 4  ;;  %s203_s11 = scalar_lea.sflag [#allocation4], %s202_s28  ;;  %s215_s9 = int_to_ptr.vmem [resolvable:$true] %s214_s9 }
  0x10   : > { %p716_p10 = pneg %p884_p9  ;;  %s727_s12 = scalar_lea.vmem %s215_s9, 1024 }
  0x11   : > { %p728_p11 = scmp.ne.s32.totalorder %s215_s9, %s727_s12  ;;  %s794_s13 = smov [#allocation3]  }
  0x12   : > { %s732_s14 = sshll.u32 %s794_s13, 4  ;;  %s733_s14 = int_to_ptr.vmem [resolvable:$false] %s732_s14 }
  0x13   : > { %p730_p12 = pnand %p728_p11, %p716_p10  ;;  %s734_s15 = scalar_lea.vmem %s733_s14, 2048 }
  0x14   : > { %p735_p0 = scmp.lt.s32.totalorder %s215_s9, %s733_s14  ;;  %p736_p1 = scmp.lt.s32.totalorder %s734_s15, %s727_s12 }
  0x15   : > { %p731_p13 = pneg %p730_p12 }
  0x16   : > { %p737_p2 = por %p736_p1, %p735_p0 }
  0x18   : > { %p738_p3 = pnand %p737_p2, %p731_p13 }
  0x1a   : > { %741 = shalt.err (!%p738_p3)
}
  0x1b   : > { %s795_s21 = smov 64   ;;  %s796_s23 = smov 4  }
  0x1c   : > { %650 = dma.hbm_to_vmem [thread:$0]  (!%p884_p9), %s213_s7, 1024, %s215_s9, %s203_s11, %s795_s21, %s795_s21, %s796_s23  }
  0x1d   : > { %p595_p4 = scmp.ge.s32.totalorder %s792_s20, 1  ;;  %p222_p5 = scmp.lt.s32.totalorder %s792_s20, 6 }
  0x1f   : > { %p223_p6 = pnand %p595_p4, %p222_p5 }
  0x20   : > { %s228_s24 = sand.u32 (!%p223_p6), 1, %s776_s16  }
  0x21   : > { %226 = sbr.rel (%p223_p6) target bundleno = 307 (0x133), region = 28  ;;  %s596_s25 = sshll.u32 (!%p223_p6), %s228_s24, 6 }
  0x22   : > { %s229_s28 = scalar_lea.sflag (!%p223_p6), [#allocation4], %s228_s24  ;;  %s895_s29 = scalar_lea.vmem (!%p223_p6), [#allocation3], %s596_s25 }
  0x26   : > { %767 = dma.done.wait (%p869_p7), %s229_s28, 1024  }
  0x27   : > { %769 = vsyncadd (%p869_p7), %s229_s28, 4294966272  ;;  %p275_p8 = scmp.lt.s32.totalorder %s784_s18, 4  ;;  %p296_p9 = scmp.eq.s32.totalorder %s784_s18, 0 }
  0x28   : > { %p598_p10 = scmp.ne.s32.totalorder %s784_s18, 0 }
  0x29   : > { %s276_s30 = scalar_select %p275_p8, %s784_s18, 4 }
  0x2a   : > { %299 = sbr.rel (%p598_p10) target bundleno = 49 (0x31), region = 36 }
  0x2b   : > { %s597_s5 = sshll.u32 %s276_s30, 2 }
  0x2c   : > { %s907_s8 = scalar_lea.vmem %s959_s0, %s597_s5 }
  0x2f   : > { %v797_v0 = vmov 0.0  }
  0x30   : > { %300 = vst [vmem:[#allocation2] sm:$0xff] %v797_v0 }
  0x31 PF: > { %305 = sbr.rel (!%p296_p9) target bundleno = 54 (0x36), region = 40  ;;  %v798_v1 = vmov (%p296_p9), 0.0  }
  0x32   : > { %306 = vst [vmem:[%s962_s3] sm:$0x1] (%p296_p9), %v798_v1  ;;  %307 = vst [vmem:[%s963_s4] sm:$0x1] (%p296_p9), %v798_v1 }
  0x36 PF: > { %v706_v2 = vld [vmem:[%s895_s29 + $0x38] sm:$0xff]   ;;  %v799_v3 = vmov 0.0   ;;  %v707_v4 = vld [vmem:[%s895_s29 + $0x30] sm:$0xff]   ;;  %vm800_vm0 = vmmov 0   ;;  %v708_v5 = vld [vmem:[%s895_s29 + $0x28] sm:$0xff]   ;;  %p608_p7 = scmp.ne.s32.totalorder %s784_s18, 4 }
  0x37   : > { %625 = vmatprep.subr.bf16.mxu0 %v799_v3  ;;  %641 = vmatprep.mubr.msk.bf16.mxu0 %vm800_vm0, %v799_v3  ;;  %v709_v6 = vld [vmem:[%s895_s29 + $0x20] sm:$0xff]   ;;  %v710_v7 = vld [vmem:[%s895_s29 + $0x18] sm:$0xff]   ;;  %v711_v8 = vld [vmem:[%s895_s29 + $0x10] sm:$0xff]  }
  0x38   : > { %626 = vmatpush3.bf16.msra.mxu0 %v706_v2  ;;  %v712_v9 = vld [vmem:[%s895_s29 + $0x8] sm:$0xff]   ;;  %v713_v10 = vld [vmem:[%s895_s29] sm:$0xff]   ;;  %v309_v11 = vld [vmem:[%s907_s8] sm:$0xf] }
  0x39   : > { %627 = vmatprep.subr.bf16.mxu0 %v799_v3  ;;  %v308_v12 = vld [vmem:[#allocation2] sm:$0xff] }
  0x3c   : > { %628 = vmatpush3.bf16.msra.mxu0 %v707_v4 }
  0x3d   : > { %629 = vmatprep.subr.bf16.mxu0 %v799_v3 }
  0x40   : > { %630 = vmatpush3.bf16.msra.mxu0 %v708_v5 }
  0x41   : > { %631 = vmatprep.subr.bf16.mxu0 %v799_v3 }
  0x44   : > { %632 = vmatpush3.bf16.msra.mxu0 %v709_v6 }
  0x45   : > { %633 = vmatprep.subr.bf16.mxu0 %v799_v3 }
  0x48   : > { %634 = vmatpush3.bf16.msra.mxu0 %v710_v7 }
  0x49   : > { %635 = vmatprep.subr.bf16.mxu0 %v799_v3 }
  0x4c   : > { %636 = vmatpush3.bf16.msra.mxu0 %v711_v8 }
  0x4d   : > { %637 = vmatprep.subr.bf16.mxu0 %v799_v3 }
  0x50   : > { %638 = vmatpush3.bf16.msra.mxu0 %v712_v9 }
  0x51   : > { %639 = vmatprep.subr.bf16.mxu0 %v799_v3 }
  0x54   : > { %640 = vmatpush3.bf16.msra.mxu0 %v713_v10 }
  0x57   : > { %642 = vmatmul.mubr.bf16.vlgmr.msra.gmra.mxu0 %v309_v11 }
 0x117   : > { %v408_v13 = vpop.f32.mrf.mxu0 }
 0x118   : > { %v414_v14 = vadd.f32 %v408_v13, %v308_v12 }
 0x119   : > { %v643_v15 = vpop.f32.mrf.mxu0  ;;  %419 = sbr.rel (%p608_p7) target bundleno = 307 (0x133), region = 44 }
 0x11a   : > { %415 = vst [vmem:[#allocation2] sm:$0xff] %v414_v14 }
 0x11b   : > { %v411_v16 = vpop.f32.mrf.mxu0 }
 0x11d   : > { %v644_v17 = vpop.f32.mrf.mxu0 }
 0x11e   : > { %v423_v30 = vld [vmem:[%s962_s3] sm:$0x1] }
 0x11f   : > { %v432_v33 = vld [vmem:[%s963_s4] sm:$0x1] }
 0x121   : > { %v420_v18 = vld [vmem:[#allocation2] sm:$0xff] }
 0x122   : > { %v421_v19 = vpack.c.bf16 %v420_v18, %v420_v18  ;;  %v424_v20 = vrot.slane %v420_v18, 4  ;;  %v433_v21 = vmul.f32 %v420_v18, %v420_v18 }
 0x124   : > { %422 = vst [vmem:[%s961_s2] sm:$0xf] %v421_v19  ;;  %v425_v22 = vadd.f32 %v424_v20, %v420_v18  ;;  %v434_v23 = vrot.slane %v433_v21, 4 }
 0x126   : > { %v426_v24 = vrot.slane %v425_v22, 2  ;;  %v435_v25 = vadd.f32 %v434_v23, %v433_v21 }
 0x128   : > { %v427_v26 = vadd.f32 %v426_v24, %v425_v22  ;;  %v436_v27 = vrot.slane %v435_v25, 2 }
 0x12a   : > { %v428_v28 = vrot.slane %v427_v26, 1  ;;  %v437_v29 = vadd.f32 %v436_v27, %v435_v25 }
 0x12c   : > { %v429_v31 = vadd.f32 %v428_v28, %v427_v26  ;;  %v438_v32 = vrot.slane %v437_v29, 1 }
 0x12e   : > { %v430_v34 = vadd.f32 %v429_v31, %v423_v30  ;;  %v439_v35 = vadd.f32 %v438_v32, %v437_v29 }
 0x130   : > { %431 = vst [vmem:[%s962_s3] sm:$0x1] %v430_v34  ;;  %v440_v36 = vadd.f32 %v439_v35, %v432_v33 }
 0x132   : > { %441 = vst [vmem:[%s963_s4] sm:$0x1] %v440_v36 }
 0x133 PF: > { %s18_s20 = sadd.s32 1, %s792_s20   ;;  %s967_s15 = smov %s776_s16 }
 0x134   : > { %p15_p11 = scmp.ge.s32.totalorder %s18_s20, 7   ;;  %s968_s16 = smov %s780_s17 }
 0x135   : > { %s969_s17 = smov %s875_s27  ;;  %s970_s18 = smov %s788_s19 }
 0x136   : > { %s971_s19 = smov %s973_s22  ;;  %17 = sbr.rel (!%p15_p11) target bundleno = 4 (0x4), region = 107 }
 0x13b   :  { %491 = vsyncpa [#allocation4], 1 }
 0x13c   :  { %493 = vsyncpa [#allocation4 + $0x1], 1 }

// kernel: cnn_forward.57
= control target key start
LH: loop header
LB: loop body
LE: loop exit
PB: predicated region body
PF: predicated region fallthrough
CT: control target
= control target key end

     0   :  { %10 = vsyncpa [#allocation4], 0  ;;  %s259_s15 = smov [#allocation3]   ;;  %s316_s0 = inlined_call_operand.vmem [shape: bf16[8,128], index: 0, kind: input, shape index: {}]   ;;  %s317_s1 = inlined_call_operand.hbm [shape: bf16[128,128], index: 1, kind: input, shape index: {}]   ;;  %s318_s2 = inlined_call_operand.vmem [shape: bf16[8,128], index: 2, kind: output, shape index: {0}]   ;;  %s319_s3 = inlined_call_operand.vmem [shape: f32[1,128], index: 3, kind: output, shape index: {1}]   ;;  %s320_s4 = inlined_call_operand.vmem [shape: f32[1,128], index: 4, kind: output, shape index: {2}]  }
   0x1   :  { %s18_s16 = sshll.u32 %s259_s15, 4  ;;  %s19_s16 = int_to_ptr.vmem [resolvable:$true] %s18_s16 }
   0x2   :  { %s245_s17 = scalar_lea.vmem %s19_s16, 1024  ;;  %p250_p1 = scmp.lt.s32.totalorder %s19_s16, %s19_s16 }
   0x3   :  { %p246_p0 = scmp.ne.s32.totalorder %s19_s16, %s245_s17  ;;  %p251_p2 = scmp.lt.s32.totalorder %s245_s17, %s245_s17 }
   0x5   :  { %p252_p3 = por %p251_p2, %p250_p1 }
   0x7   :  { %p253_p4 = pnand %p252_p3, %p246_p0 }
   0x9   :  { %256 = shalt.err (!%p253_p4)
}
   0xa   :  { %s260_s18 = smov 64   ;;  %s261_s19 = smov 4  }
   0xb   :  { %24 = dma.hbm_to_vmem [thread:$0]  %s317_s1, 1024, %s19_s16, [#allocation4], %s260_s18, %s260_s18, %s261_s19  }
   0xc   :  { %257 = dma.done.wait [#allocation4], 1024  }
   0xd   :  { %258 = vsyncadd [#allocation4], 4294966272  ;;  %v262_v0 = vmov 0.0   ;;  %vm263_vm0 = vmmov 0   ;;  %v229_v1 = vld [vmem:[#allocation3 + $0x38] sm:$0xff]   ;;  %v230_v2 = vld [vmem:[#allocation3 + $0x30] sm:$0xff]  }
   0xe   :  { %204 = vmatprep.subr.bf16.mxu0 %v262_v0  ;;  %39 = vst [vmem:[%s319_s3] sm:$0x1] %v262_v0  ;;  %40 = vst [vmem:[%s320_s4] sm:$0x1] %v262_v0  ;;  %220 = vmatprep.mubr.msk.bf16.mxu0 %vm263_vm0, %v262_v0  ;;  %v231_v3 = vld [vmem:[#allocation3 + $0x28] sm:$0xff]   ;;  %v232_v4 = vld [vmem:[#allocation3 + $0x20] sm:$0xff]  }
   0xf   :  { %205 = vmatpush3.bf16.msra.mxu0 %v229_v1  ;;  %v233_v5 = vld [vmem:[#allocation3 + $0x18] sm:$0xff]   ;;  %v234_v6 = vld [vmem:[#allocation3 + $0x10] sm:$0xff]   ;;  %v235_v7 = vld [vmem:[#allocation3 + $0x8] sm:$0xff]  }
  0x10   :  { %206 = vmatprep.subr.bf16.mxu0 %v262_v0  ;;  %v236_v8 = vld [vmem:[#allocation3] sm:$0xff]  }
  0x11   :  { %v42_v9 = vld [vmem:[%s316_s0] sm:$0xf] }
  0x13   :  { %207 = vmatpush3.bf16.msra.mxu0 %v230_v2 }
  0x14   :  { %208 = vmatprep.subr.bf16.mxu0 %v262_v0 }
  0x15   :  { %v155_v25 = vld [vmem:[%s319_s3] sm:$0x1] }
  0x16   :  { %v164_v28 = vld [vmem:[%s320_s4] sm:$0x1] }
  0x17   :  { %209 = vmatpush3.bf16.msra.mxu0 %v231_v3 }
  0x18   :  { %210 = vmatprep.subr.bf16.mxu0 %v262_v0 }
  0x1b   :  { %211 = vmatpush3.bf16.msra.mxu0 %v232_v4 }
  0x1c   :  { %212 = vmatprep.subr.bf16.mxu0 %v262_v0 }
  0x1f   :  { %213 = vmatpush3.bf16.msra.mxu0 %v233_v5 }
  0x20   :  { %214 = vmatprep.subr.bf16.mxu0 %v262_v0 }
  0x23   :  { %215 = vmatpush3.bf16.msra.mxu0 %v234_v6 }
  0x24   :  { %216 = vmatprep.subr.bf16.mxu0 %v262_v0 }
  0x27   :  { %217 = vmatpush3.bf16.msra.mxu0 %v235_v7 }
  0x28   :  { %218 = vmatprep.subr.bf16.mxu0 %v262_v0 }
  0x2b   :  { %219 = vmatpush3.bf16.msra.mxu0 %v236_v8 }
  0x2e   :  { %221 = vmatmul.mubr.bf16.vlgmr.msra.gmra.mxu0 %v42_v9 }
  0xee   :  { %v141_v10 = vpop.f32.mrf.mxu0 }
  0xef   :  { %v153_v11 = vpack.c.bf16 %v141_v10, %v141_v10  ;;  %v156_v12 = vrot.slane %v141_v10, 4  ;;  %v165_v13 = vmul.f32 %v141_v10, %v141_v10 }
  0xf0   :  { %v222_v14 = vpop.f32.mrf.mxu0 }
  0xf1   :  { %154 = vst [vmem:[%s318_s2] sm:$0xf] %v153_v11  ;;  %v157_v15 = vadd.f32 %v156_v12, %v141_v10  ;;  %v166_v16 = vrot.slane %v165_v13, 4 }
  0xf2   :  { %v144_v17 = vpop.f32.mrf.mxu0 }
  0xf3   :  { %v158_v18 = vrot.slane %v157_v15, 2  ;;  %v167_v19 = vadd.f32 %v166_v16, %v165_v13 }
  0xf4   :  { %v223_v20 = vpop.f32.mrf.mxu0 }
  0xf5   :  { %v159_v21 = vadd.f32 %v158_v18, %v157_v15  ;;  %v168_v22 = vrot.slane %v167_v19, 2 }
  0xf7   :  { %v160_v23 = vrot.slane %v159_v21, 1  ;;  %v169_v24 = vadd.f32 %v168_v22, %v167_v19 }
  0xf9   :  { %v161_v26 = vadd.f32 %v160_v23, %v159_v21  ;;  %v170_v27 = vrot.slane %v169_v24, 1 }
  0xfb   :  { %v162_v29 = vadd.f32 %v161_v26, %v155_v25  ;;  %v171_v30 = vadd.f32 %v170_v27, %v169_v24 }
  0xfd   :  { %163 = vst [vmem:[%s319_s3] sm:$0x1] %v162_v29  ;;  %v172_v31 = vadd.f32 %v171_v30, %v164_v28 }
  0xff   :  { %173 = vst [vmem:[%s320_s4] sm:$0x1] %v172_v31 }
 0x100   :  { %186 = vsyncpa [#allocation4], 1 }

// kernel: cnn_forward.58
= control target key start
LH: loop header
LB: loop body
LE: loop exit
PB: predicated region body
PF: predicated region fallthrough
CT: control target
= control target key end

     0   :  { %s127_s0 = inlined_call_operand.vmem [shape: bf16[8,128], index: 0, kind: input, shape index: {}]   ;;  %s128_s1 = inlined_call_operand.vmem [shape: f32[1,128], index: 1, kind: input, shape index: {}]   ;;  %s129_s2 = inlined_call_operand.vmem [shape: f32[1,128], index: 2, kind: input, shape index: {}]   ;;  %s130_s3 = inlined_call_operand.vmem [shape: bf16[8,128], index: 3, kind: input, shape index: {}]   ;;  %s131_s4 = inlined_call_operand.vmem [shape: f32[1,128], index: 4, kind: input, shape index: {}]   ;;  %s132_s5 = inlined_call_operand.vmem [shape: f32[1,128], index: 5, kind: input, shape index: {}]   ;;  %s133_s6 = inlined_call_operand.vmem [shape: bf16[8,128], index: 6, kind: output, shape index: {}]  }
   0x1   :  { %v23_v0 = vld [vmem:[%s127_s0] sm:$0xf] }
   0x2   :  { %v67_v1 = vld [vmem:[%s128_s1] ss:$0 sm:$0xff]  ;;  %v24_v2 = vunpack.c.l.bf16 %v23_v0 }
   0x3   :  { %v41_v3 = vld [vmem:[%s130_s3] sm:$0xf] }
   0x4   :  { %v69_v4 = vld [vmem:[%s131_s4] ss:$0 sm:$0xff]  ;;  %v42_v6 = vunpack.c.l.bf16 %v41_v3  ;;  %v32_v7 = vmul.f32 %v67_v1, %v24_v2 }
   0x5   :  { %v68_v5 = vld [vmem:[%s129_s2] ss:$0 sm:$0xff] }
   0x6   :  { %v50_v8 = vmul.f32 %v69_v4, %v42_v6  ;;  %v40_v9 = vadd.f32 %v68_v5, %v32_v7  ;;  %v70_v10 = vld [vmem:[%s132_s5] ss:$0 sm:$0xff] }
   0x8   :  { %v51_v11 = vadd.f32 %v50_v8, %v40_v9 }
   0xa   :  { %v59_v12 = vadd.f32 %v70_v10, %v51_v11 }
   0xc   :  { %v60_v13 = vmax.f32 %v59_v12, 0.0 }
   0xe   :  { %v61_v14 = vpack.c.bf16 %v60_v13, %v60_v13 }
  0x10   :  { %62 = vst [vmem:[%s133_s6] sm:$0xf] %v61_v14 }

// kernel: cnn_forward.56
= control target key start
LH: loop header
LB: loop body
LE: loop exit
PB: predicated region body
PF: predicated region fallthrough
CT: control target
= control target key end

     0   :  { %10 = vsyncpa [#allocation4], 0  ;;  %s959_s0 = inlined_call_operand.vmem [shape: bf16[8,1152], index: 0, kind: input, shape index: {}]   ;;  %s960_s1 = inlined_call_operand.hbm [shape: bf16[1152,128], index: 1, kind: input, shape index: {}]   ;;  %s961_s2 = inlined_call_operand.vmem [shape: bf16[8,128], index: 2, kind: output, shape index: {0}]   ;;  %s962_s3 = inlined_call_operand.vmem [shape: f32[1,128], index: 3, kind: output, shape index: {1}]   ;;  %s963_s4 = inlined_call_operand.vmem [shape: f32[1,128], index: 4, kind: output, shape index: {2}]  }
   0x1   :  { %12 = vsyncpa [#allocation4 + $0x1], 0  ;;  %s826_s15 = smov 0   ;;  %s828_s16 = smov 0  }
   0x2   :  { %s830_s17 = smov 0   ;;  %s832_s18 = smov 0  }
   0x3   :  { %s834_s19 = smov 0   ;;  %s836_s20 = smov 0  }
   0x4 LB: > { %s589_s21 = sadd.s32 4294967295, %s792_s20   ;;  %s30_s22 = sadd.s32 1, %s788_s19  ;;  %s792_s20 = sphi %s836_s20, %s18_s20   ;;  %s788_s19 = sphi %s834_s19, %s971_s19   ;;  %s784_s18 = sphi %s832_s18, %s970_s18   ;;  %s780_s17 = sphi %s830_s17, %s969_s17   ;;  %s776_s16 = sphi %s828_s16, %s968_s16   ;;  %s772_s15 = sphi %s826_s15, %s967_s15  }
   0x5   : > { %p31_p0 = scmp.ge.s32.totalorder %s30_s22, 9  ;;  %s74_s23 = sadd.s32 1, %s780_s17 }
   0x6   : > { %p81_p1 = scmp.ne.s32.totalorder %s780_s17, %s776_s16  ;;  %p82_p2 = scmp.eq.s32.totalorder %s792_s20, 0 }
   0x7   : > { %s973_s22 = smov (%p31_p0, %s30_s22), 0  ;;  %p87_p4 = scmp.ne.s32.totalorder %s776_s16, %s772_s15 }
   0x8   : > { %p862_p3 = por %p82_p2, %p81_p1  ;;  %s69_s25 = ssub.s32 %s788_s19, %s973_s22 }
   0x9   : > { %p88_p5 = scmp.eq.s32.totalorder %s589_s21, 0  ;;  %p72_p6 = scmp.eq.s32.totalorder %s69_s25, 0 }
   0xa   : > { %p651_p8 = scmp.lt.s32.totalorder %s792_s20, 9  ;;  %s202_s28 = sand.u32 1, %s780_s17  }
   0xb   : > { %p869_p7 = por %p88_p5, %p87_p4  ;;  %s614_s29 = sshll.u32 %s788_s19, 10 }
   0xc   : > { %s875_s27 = scalar_select %p72_p6, %s780_s17, %s74_s23  }
   0xd   : > { %s592_s30 = sshll.u32 %s202_s28, 6  ;;  %s213_s7 = scalar_lea.hbm %s960_s1, %s614_s29 }
   0xe   : > { %s206_s8 = scalar_lea.vmem [#allocation3], %s592_s30  ;;  %p884_p9 = pnand %p651_p8, %p862_p3 }
   0xf   : > { %s214_s9 = sshll.u32 %s206_s8, 4  ;;  %s203_s11 = scalar_lea.sflag [#allocation4], %s202_s28  ;;  %s215_s9 = int_to_ptr.vmem [resolvable:$true] %s214_s9 }
  0x10   : > { %p716_p10 = pneg %p884_p9  ;;  %s727_s12 = scalar_lea.vmem %s215_s9, 1024 }
  0x11   : > { %p728_p11 = scmp.ne.s32.totalorder %s215_s9, %s727_s12  ;;  %s794_s13 = smov [#allocation3]  }
  0x12   : > { %s732_s14 = sshll.u32 %s794_s13, 4  ;;  %s733_s14 = int_to_ptr.vmem [resolvable:$false] %s732_s14 }
  0x13   : > { %p730_p12 = pnand %p728_p11, %p716_p10  ;;  %s734_s15 = scalar_lea.vmem %s733_s14, 2048 }
  0x14   : > { %p735_p0 = scmp.lt.s32.totalorder %s215_s9, %s733_s14  ;;  %p736_p1 = scmp.lt.s32.totalorder %s734_s15, %s727_s12 }
  0x15   : > { %p731_p13 = pneg %p730_p12 }
  0x16   : > { %p737_p2 = por %p736_p1, %p735_p0 }
  0x18   : > { %p738_p3 = pnand %p737_p2, %p731_p13 }
  0x1a   : > { %741 = shalt.err (!%p738_p3)
}
  0x1b   : > { %s795_s21 = smov 64   ;;  %s796_s23 = smov 4  }
  0x1c   : > { %650 = dma.hbm_to_vmem [thread:$0]  (!%p884_p9), %s213_s7, 1024, %s215_s9, %s203_s11, %s795_s21, %s795_s21, %s796_s23  }
  0x1d   : > { %p595_p4 = scmp.ge.s32.totalorder %s792_s20, 1  ;;  %p222_p5 = scmp.lt.s32.totalorder %s792_s20, 10 }
  0x1f   : > { %p223_p6 = pnand %p595_p4, %p222_p5 }
  0x20   : > { %s228_s24 = sand.u32 (!%p223_p6), 1, %s776_s16  }
  0x21   : > { %226 = sbr.rel (%p223_p6) target bundleno = 307 (0x133), region = 28  ;;  %s596_s25 = sshll.u32 (!%p223_p6), %s228_s24, 6 }
  0x22   : > { %s229_s28 = scalar_lea.sflag (!%p223_p6), [#allocation4], %s228_s24  ;;  %s895_s29 = scalar_lea.vmem (!%p223_p6), [#allocation3], %s596_s25 }
  0x26   : > { %767 = dma.done.wait (%p869_p7), %s229_s28, 1024  }
  0x27   : > { %769 = vsyncadd (%p869_p7), %s229_s28, 4294966272  ;;  %p275_p8 = scmp.lt.s32.totalorder %s784_s18, 8  ;;  %p296_p9 = scmp.eq.s32.totalorder %s784_s18, 0 }
  0x28   : > { %p598_p10 = scmp.ne.s32.totalorder %s784_s18, 0 }
  0x29   : > { %s276_s30 = scalar_select %p275_p8, %s784_s18, 8 }
  0x2a   : > { %299 = sbr.rel (%p598_p10) target bundleno = 49 (0x31), region = 36 }
  0x2b   : > { %s597_s5 = sshll.u32 %s276_s30, 2 }
  0x2c   : > { %s907_s8 = scalar_lea.vmem %s959_s0, %s597_s5 }
  0x2f   : > { %v797_v0 = vmov 0.0  }
  0x30   : > { %300 = vst [vmem:[#allocation2] sm:$0xff] %v797_v0 }
  0x31 PF: > { %305 = sbr.rel (!%p296_p9) target bundleno = 54 (0x36), region = 40  ;;  %v798_v1 = vmov (%p296_p9), 0.0  }
  0x32   : > { %306 = vst [vmem:[%s962_s3] sm:$0x1] (%p296_p9), %v798_v1  ;;  %307 = vst [vmem:[%s963_s4] sm:$0x1] (%p296_p9), %v798_v1 }
  0x36 PF: > { %v706_v2 = vld [vmem:[%s895_s29 + $0x38] sm:$0xff]   ;;  %v799_v3 = vmov 0.0   ;;  %v707_v4 = vld [vmem:[%s895_s29 + $0x30] sm:$0xff]   ;;  %vm800_vm0 = vmmov 0   ;;  %v708_v5 = vld [vmem:[%s895_s29 + $0x28] sm:$0xff]   ;;  %p608_p7 = scmp.ne.s32.totalorder %s784_s18, 8 }
  0x37   : > { %625 = vmatprep.subr.bf16.mxu0 %v799_v3  ;;  %641 = vmatprep.mubr.msk.bf16.mxu0 %vm800_vm0, %v799_v3  ;;  %v709_v6 = vld [vmem:[%s895_s29 + $0x20] sm:$0xff]   ;;  %v710_v7 = vld [vmem:[%s895_s29 + $0x18] sm:$0xff]   ;;  %v711_v8 = vld [vmem:[%s895_s29 + $0x10] sm:$0xff]  }
  0x38   : > { %626 = vmatpush3.bf16.msra.mxu0 %v706_v2  ;;  %v712_v9 = vld [vmem:[%s895_s29 + $0x8] sm:$0xff]   ;;  %v713_v10 = vld [vmem:[%s895_s29] sm:$0xff]   ;;  %v309_v11 = vld [vmem:[%s907_s8] sm:$0xf] }
  0x39   : > { %627 = vmatprep.subr.bf16.mxu0 %v799_v3  ;;  %v308_v12 = vld [vmem:[#allocation2] sm:$0xff] }
  0x3c   : > { %628 = vmatpush3.bf16.msra.mxu0 %v707_v4 }
  0x3d   : > { %629 = vmatprep.subr.bf16.mxu0 %v799_v3 }
  0x40   : > { %630 = vmatpush3.bf16.msra.mxu0 %v708_v5 }
  0x41   : > { %631 = vmatprep.subr.bf16.mxu0 %v799_v3 }
  0x44   : > { %632 = vmatpush3.bf16.msra.mxu0 %v709_v6 }
  0x45   : > { %633 = vmatprep.subr.bf16.mxu0 %v799_v3 }
  0x48   : > { %634 = vmatpush3.bf16.msra.mxu0 %v710_v7 }
  0x49   : > { %635 = vmatprep.subr.bf16.mxu0 %v799_v3 }
  0x4c   : > { %636 = vmatpush3.bf16.msra.mxu0 %v711_v8 }
  0x4d   : > { %637 = vmatprep.subr.bf16.mxu0 %v799_v3 }
  0x50   : > { %638 = vmatpush3.bf16.msra.mxu0 %v712_v9 }
  0x51   : > { %639 = vmatprep.subr.bf16.mxu0 %v799_v3 }
  0x54   : > { %640 = vmatpush3.bf16.msra.mxu0 %v713_v10 }
  0x57   : > { %642 = vmatmul.mubr.bf16.vlgmr.msra.gmra.mxu0 %v309_v11 }
 0x117   : > { %v408_v13 = vpop.f32.mrf.mxu0 }
 0x118   : > { %v414_v14 = vadd.f32 %v408_v13, %v308_v12 }
 0x119   : > { %v643_v15 = vpop.f32.mrf.mxu0  ;;  %419 = sbr.rel (%p608_p7) target bundleno = 307 (0x133), region = 44 }
 0x11a   : > { %415 = vst [vmem:[#allocation2] sm:$0xff] %v414_v14 }
 0x11b   : > { %v411_v16 = vpop.f32.mrf.mxu0 }
 0x11d   : > { %v644_v17 = vpop.f32.mrf.mxu0 }
 0x11e   : > { %v423_v30 = vld [vmem:[%s962_s3] sm:$0x1] }
 0x11f   : > { %v432_v33 = vld [vmem:[%s963_s4] sm:$0x1] }
 0x121   : > { %v420_v18 = vld [vmem:[#allocation2] sm:$0xff] }
 0x122   : > { %v421_v19 = vpack.c.bf16 %v420_v18, %v420_v18  ;;  %v424_v20 = vrot.slane %v420_v18, 4  ;;  %v433_v21 = vmul.f32 %v420_v18, %v420_v18 }
 0x124   : > { %422 = vst [vmem:[%s961_s2] sm:$0xf] %v421_v19  ;;  %v425_v22 = vadd.f32 %v424_v20, %v420_v18  ;;  %v434_v23 = vrot.slane %v433_v21, 4 }
 0x126   : > { %v426_v24 = vrot.slane %v425_v22, 2  ;;  %v435_v25 = vadd.f32 %v434_v23, %v433_v21 }
 0x128   : > { %v427_v26 = vadd.f32 %v426_v24, %v425_v22  ;;  %v436_v27 = vrot.slane %v435_v25, 2 }
 0x12a   : > { %v428_v28 = vrot.slane %v427_v26, 1  ;;  %v437_v29 = vadd.f32 %v436_v27, %v435_v25 }
 0x12c   : > { %v429_v31 = vadd.f32 %v428_v28, %v427_v26  ;;  %v438_v32 = vrot.slane %v437_v29, 1 }
 0x12e   : > { %v430_v34 = vadd.f32 %v429_v31, %v423_v30  ;;  %v439_v35 = vadd.f32 %v438_v32, %v437_v29 }
 0x130   : > { %431 = vst [vmem:[%s962_s3] sm:$0x1] %v430_v34  ;;  %v440_v36 = vadd.f32 %v439_v35, %v432_v33 }
 0x132   : > { %441 = vst [vmem:[%s963_s4] sm:$0x1] %v440_v36 }
 0x133 PF: > { %s18_s20 = sadd.s32 1, %s792_s20   ;;  %s967_s15 = smov %s776_s16 }
 0x134   : > { %p15_p11 = scmp.ge.s32.totalorder %s18_s20, 11   ;;  %s968_s16 = smov %s780_s17 }
 0x135   : > { %s969_s17 = smov %s875_s27  ;;  %s970_s18 = smov %s788_s19 }
 0x136   : > { %s971_s19 = smov %s973_s22  ;;  %17 = sbr.rel (!%p15_p11) target bundleno = 4 (0x4), region = 107 }
 0x13b   :  { %491 = vsyncpa [#allocation4], 1 }
 0x13c   :  { %493 = vsyncpa [#allocation4 + $0x1], 1 }

// kernel: cnn_forward.62
= control target key start
LH: loop header
LB: loop body
LE: loop exit
PB: predicated region body
PF: predicated region fallthrough
CT: control target
= control target key end

     0   :  { %s87_s0 = inlined_call_operand.vmem [shape: bf16[8,128], index: 0, kind: input, shape index: {}]   ;;  %s88_s1 = inlined_call_operand.vmem [shape: f32[1,128], index: 1, kind: input, shape index: {}]   ;;  %s89_s2 = inlined_call_operand.vmem [shape: f32[1,128], index: 2, kind: input, shape index: {}]   ;;  %s90_s3 = inlined_call_operand.vmem [shape: bf16[8,128], index: 3, kind: input, shape index: {}]   ;;  %s91_s4 = inlined_call_operand.vmem [shape: bf16[8,128], index: 4, kind: output, shape index: {}]  }
   0x1   :  { %v17_v0 = vld [vmem:[%s87_s0] sm:$0xf] }
   0x2   :  { %v45_v1 = vld [vmem:[%s88_s1] ss:$0 sm:$0xff]  ;;  %v18_v2 = vunpack.c.l.bf16 %v17_v0 }
   0x3   :  { %v35_v3 = vld [vmem:[%s90_s3] sm:$0xf] }
   0x4   :  { %v46_v4 = vld [vmem:[%s89_s2] ss:$0 sm:$0xff]  ;;  %v26_v5 = vmul.f32 %v45_v1, %v18_v2  ;;  %v36_v6 = vunpack.c.l.bf16 %v35_v3 }
   0x6   :  { %v34_v7 = vadd.f32 %v46_v4, %v26_v5 }
   0x8   :  { %v37_v8 = vadd.f32 %v36_v6, %v34_v7 }
   0xa   :  { %v38_v9 = vmax.f32 %v37_v8, 0.0 }
   0xc   :  { %v39_v10 = vpack.c.bf16 %v38_v9, %v38_v9 }
   0xe   :  { %40 = vst [vmem:[%s91_s4] sm:$0xf] %v39_v10 }

// kernel: cnn_forward.64
= control target key start
LH: loop header
LB: loop body
LE: loop exit
PB: predicated region body
PF: predicated region fallthrough
CT: control target
= control target key end

     0   :  { %v19_v0 = vlaneseq  ;;  %s94_s0 = inlined_call_operand.vmem [shape: bf16[8,256], index: 0, kind: input, shape index: {}]   ;;  %s95_s1 = inlined_call_operand.vmem [shape: f32[1,256], index: 1, kind: input, shape index: {}]   ;;  %s96_s2 = inlined_call_operand.vmem [shape: f32[1,256], index: 2, kind: input, shape index: {}]   ;;  %s97_s3 = inlined_call_operand.vmem [shape: bf16[8,256], index: 3, kind: output, shape index: {}]  }
   0x1   :  { %v14_v1 = vld [vmem:[%s94_s0] sm:$0xff] }
   0x2   :  { %v20_v2 = vshrl.u32 %v19_v0, 7  ;;  %v17_v3 = vld [vmem:[%s95_s1] sm:$0x3]  ;;  %v15_v5 = vunpack.c.l.bf16 %v14_v1  ;;  %v16_v6 = vunpack.c.h.bf16 %v14_v1 }
   0x3   :  { %v31_v4 = vld [vmem:[%s96_s2] sm:$0x3] }
   0x4   :  { %v21_v7 = vsub.s32 0, %v20_v2  ;;  %v25_v8 = vsub.s32 1, %v20_v2 }
   0x6   :  { %v22_v9 = vrot.slane %v17_v3, %v21_v7  ;;  %v26_v10 = vrot.slane %v17_v3, %v25_v8  ;;  %v36_v11 = vrot.slane %v31_v4, %v21_v7  ;;  %v40_v12 = vrot.slane %v31_v4, %v25_v8 }
   0x8   :  { %v29_v13 = vmul.f32 %v22_v9, %v15_v5  ;;  %v30_v14 = vmul.f32 %v26_v10, %v16_v6 }
   0xa   :  { %v43_v15 = vadd.f32 %v36_v11, %v29_v13  ;;  %v44_v16 = vadd.f32 %v40_v12, %v30_v14 }
   0xc   :  { %v45_v17 = vmax.f32 %v43_v15, 0.0  ;;  %v46_v18 = vmax.f32 %v44_v16, 0.0 }
   0xe   :  { %v61_v19 = vpack.c.bf16 %v46_v18, %v45_v17 }
  0x10   :  { %55 = vst [vmem:[%s97_s3] sm:$0xff] %v61_v19 }

// kernel: cnn_forward.66
= control target key start
LH: loop header
LB: loop body
LE: loop exit
PB: predicated region body
PF: predicated region fallthrough
CT: control target
= control target key end

     0   :  { %10 = vsyncpa [#allocation4], 0  ;;  %s359_s15 = smov [#allocation3]   ;;  %s429_s0 = inlined_call_operand.vmem [shape: bf16[8,128], index: 0, kind: input, shape index: {}]   ;;  %s430_s1 = inlined_call_operand.hbm [shape: bf16[128,256], index: 1, kind: input, shape index: {}]   ;;  %s431_s2 = inlined_call_operand.vmem [shape: bf16[8,256], index: 2, kind: output, shape index: {0}]   ;;  %s432_s3 = inlined_call_operand.vmem [shape: f32[1,256], index: 3, kind: output, shape index: {1}]   ;;  %s433_s4 = inlined_call_operand.vmem [shape: f32[1,256], index: 4, kind: output, shape index: {2}]  }
   0x1   :  { %s18_s16 = sshll.u32 %s359_s15, 4  ;;  %s19_s16 = int_to_ptr.vmem [resolvable:$true] %s18_s16 }
   0x2   :  { %s345_s17 = scalar_lea.vmem %s19_s16, 2048  ;;  %p350_p1 = scmp.lt.s32.totalorder %s19_s16, %s19_s16 }
   0x3   :  { %p346_p0 = scmp.ne.s32.totalorder %s19_s16, %s345_s17  ;;  %p351_p2 = scmp.lt.s32.totalorder %s345_s17, %s345_s17 }
   0x5   :  { %p352_p3 = por %p351_p2, %p350_p1 }
   0x7   :  { %p353_p4 = pnand %p352_p3, %p346_p0 }
   0x9   :  { %356 = shalt.err (!%p353_p4)
}
   0xa   :  { %s360_s18 = smov 128   ;;  %s361_s19 = smov 8  }
   0xb   :  { %24 = dma.hbm_to_vmem [thread:$0]  %s430_s1, 2048, %s19_s16, [#allocation4], %s360_s18, %s360_s18, %s361_s19  }
   0xc   :  { %357 = dma.done.wait [#allocation4], 2048  }
   0xd   :  { %358 = vsyncadd [#allocation4], 4294965248  ;;  %v362_v0 = vmov 0   ;;  %v313_v1 = vld [vmem:[#allocation3 + $0x74] ss:$8 sps:$4 sm:$0xff]   ;;  %v40_v18 = vlaneseq  ;;  %v363_v20 = vmov 0.0  }
   0xe   :  { %177 = vmatprep.mubr.bf16.mxu0 %v362_v0  ;;  %v315_v2 = vld [vmem:[#allocation3 + $0x70] ss:$8 sps:$4 sm:$0xff]   ;;  %145 = vmatprep.subr.bf16.mxu0 %v313_v1  ;;  %v316_v3 = vld [vmem:[#allocation3 + $0x64] ss:$8 sps:$4 sm:$0xff]   ;;  %v318_v4 = vld [vmem:[#allocation3 + $0x60] ss:$8 sps:$4 sm:$0xff]  }
   0xf   :  { %146 = vmatpush1.bf16.msra.mxu0 %v315_v2  ;;  %v319_v5 = vld [vmem:[#allocation3 + $0x54] ss:$8 sps:$4 sm:$0xff]   ;;  %v321_v6 = vld [vmem:[#allocation3 + $0x50] ss:$8 sps:$4 sm:$0xff]   ;;  %v322_v7 = vld [vmem:[#allocation3 + $0x44] ss:$8 sps:$4 sm:$0xff]  }
  0x10   :  { %147 = vmatprep.subr.bf16.mxu0 %v316_v3  ;;  %v324_v8 = vld [vmem:[#allocation3 + $0x40] ss:$8 sps:$4 sm:$0xff]   ;;  %v325_v9 = vld [vmem:[#allocation3 + $0x34] ss:$8 sps:$4 sm:$0xff]   ;;  %v327_v10 = vld [vmem:[#allocation3 + $0x30] ss:$8 sps:$4 sm:$0xff]  }
  0x11   :  { %v328_v11 = vld [vmem:[#allocation3 + $0x24] ss:$8 sps:$4 sm:$0xff]   ;;  %v330_v12 = vld [vmem:[#allocation3 + $0x20] ss:$8 sps:$4 sm:$0xff]   ;;  %v331_v13 = vld [vmem:[#allocation3 + $0x14] ss:$8 sps:$4 sm:$0xff]  }
  0x12   :  { %v333_v14 = vld [vmem:[#allocation3 + $0x10] ss:$8 sps:$4 sm:$0xff]   ;;  %v334_v15 = vld [vmem:[#allocation3 + $0x4] ss:$8 sps:$4 sm:$0xff]   ;;  %v336_v16 = vld [vmem:[#allocation3] ss:$8 sps:$4 sm:$0xff]  }
  0x13   :  { %148 = vmatpush1.bf16.msra.mxu0 %v318_v4  ;;  %v48_v17 = vld [vmem:[%s429_s0] sm:$0xf]  ;;  %vm396_vm0 = vcmp.lt.s32.totalorder %v40_v18, 256  ;;  %v364_v29 = vmov 1966171168   ;;  %v224_v46 = vshrl.u32 %v40_v18, 7 }
  0x14   :  { %149 = vmatprep.subr.bf16.mxu0 %v319_v5  ;;  %44 = vst.msk [vmem:[%s432_s3] sm:$0x3] %vm396_vm0, %v363_v20  ;;  %45 = vst.msk [vmem:[%s433_s4] sm:$0x3] %vm396_vm0, %v363_v20  ;;  %v221_v30 = vunpack.c.l.s4 %v364_v29 }
  0x16   :  { %v222_v41 = vunpack.c.0.s8 %v221_v30 }
  0x17   :  { %150 = vmatpush1.bf16.msra.mxu0 %v321_v6 }
  0x18   :  { %151 = vmatprep.subr.bf16.mxu0 %v322_v7  ;;  %v225_v53 = vsub.s32 %v222_v41, %v224_v46 }
  0x1b   :  { %152 = vmatpush1.bf16.msra.mxu0 %v324_v8  ;;  %v204_v59 = vld [vmem:[%s432_s3] sm:$0x3] }
  0x1c   :  { %153 = vmatprep.subr.bf16.mxu0 %v325_v9  ;;  %v241_v0 = vld [vmem:[%s433_s4] sm:$0x3] }
  0x1f   :  { %154 = vmatpush1.bf16.msra.mxu0 %v327_v10 }
  0x20   :  { %155 = vmatprep.subr.bf16.mxu0 %v328_v11 }
  0x23   :  { %156 = vmatpush1.bf16.msra.mxu0 %v330_v12 }
  0x24   :  { %157 = vmatprep.subr.bf16.mxu0 %v331_v13 }
  0x27   :  { %158 = vmatpush1.bf16.msra.mxu0 %v333_v14 }
  0x28   :  { %159 = vmatprep.subr.bf16.mxu0 %v334_v15 }
  0x2b   :  { %160 = vmatpush1.bf16.msra.mxu0 %v336_v16 }
  0x2e   :  { %178 = vmatmul.mubr.bf16.vlgmr.msra.gmra.mxu0 %v48_v17 }
  0xee   :  { %v179_v21 = vpop.f32.mrf.mxu0 }
  0xef   :  { %v205_v22 = vrot.slane %v179_v21, 4  ;;  %v242_v23 = vmul.f32 %v179_v21, %v179_v21 }
  0xf0   :  { %v181_v24 = vpop.f32.mrf.mxu0 }
  0xf1   :  { %v206_v25 = vadd.f32 %v205_v22, %v179_v21  ;;  %v244_v26 = vrot.slane %v242_v23, 4  ;;  %v306_v27 = vpack.c.bf16 %v181_v24, %v179_v21  ;;  %v211_v28 = vrot.slane %v181_v24, 4 }
  0xf2   :  { %v243_v31 = vmul.f32 %v181_v24, %v181_v24  ;;  %v183_v32 = vpop.f32.mrf.mxu0 }
  0xf3   :  { %v207_v33 = vrot.slane %v206_v25, 2  ;;  %v245_v34 = vadd.f32 %v244_v26, %v242_v23  ;;  %203 = vst [vmem:[%s431_s2] sm:$0xff] %v306_v27  ;;  %v212_v35 = vadd.f32 %v211_v28, %v181_v24 }
  0xf4   :  { %v250_v36 = vrot.slane %v243_v31, 4  ;;  %v184_v37 = vpop.f32.mrf.mxu0 }
  0xf5   :  { %v208_v38 = vadd.f32 %v207_v33, %v206_v25  ;;  %v246_v39 = vrot.slane %v245_v34, 2  ;;  %v213_v40 = vrot.slane %v212_v35, 2 }
  0xf6   :  { %v251_v42 = vadd.f32 %v250_v36, %v243_v31 }
  0xf7   :  { %v209_v43 = vrot.slane %v208_v38, 1  ;;  %v247_v44 = vadd.f32 %v246_v39, %v245_v34  ;;  %v214_v45 = vadd.f32 %v213_v40, %v212_v35 }
  0xf8   :  { %v252_v47 = vrot.slane %v251_v42, 2 }
  0xf9   :  { %v215_v48 = vrot.slane %v214_v45, 1  ;;  %v248_v49 = vrot.slane %v247_v44, 1  ;;  %v210_v51 = vadd.f32 %v209_v43, %v208_v38 }
  0xfa   :  { %v253_v50 = vadd.f32 %v252_v47, %v251_v42 }
  0xfb   :  { %v216_v52 = vadd.f32 %v215_v48, %v214_v45  ;;  %v249_v56 = vadd.f32 %v248_v49, %v247_v44 }
  0xfc   :  { %v254_v54 = vrot.slane %v253_v50, 1 }
  0xfd   :  { %v219_v55 = vcombine.low %v210_v51, %v216_v52 }
  0xfe   :  { %v255_v57 = vadd.f32 %v254_v54, %v253_v50 }
  0xff   :  { %v226_v58 = vrot.slane %v219_v55, %v225_v53 }
 0x100   :  { %v258_v60 = vcombine.low %v249_v56, %v255_v57 }
 0x101   :  { %v233_v61 = vrot.slane %v226_v58, %v225_v53 }
 0x102   :  { %v265_v62 = vrot.slane %v258_v60, %v225_v53 }
 0x103   :  { %v235_v63 = vadd.f32 %v233_v61, %v204_v59 }
 0x104   :  { %v272_v1 = vrot.slane %v265_v62, %v225_v53 }
 0x105   :  { %240 = vst.msk [vmem:[%s432_s3] sm:$0x3] %vm396_vm0, %v235_v63 }
 0x106   :  { %v274_v2 = vadd.f32 %v272_v1, %v241_v0 }
 0x108   :  { %275 = vst.msk [vmem:[%s433_s4] sm:$0x3] %vm396_vm0, %v274_v2 }
 0x109   :  { %288 = vsyncpa [#allocation4], 1 }

// kernel: cnn_forward.63
= control target key start
LH: loop header
LB: loop body
LE: loop exit
PB: predicated region body
PF: predicated region fallthrough
CT: control target
= control target key end

     0   :  { %s851_s15 = smov 0   ;;  %s853_s16 = smov 0   ;;  %s934_s0 = inlined_call_operand.vmem [shape: bf16[8,1152], index: 0, kind: input, shape index: {}]   ;;  %s935_s1 = inlined_call_operand.vmem [shape: bf16[1152,256], index: 1, kind: input, shape index: {}]   ;;  %s936_s2 = inlined_call_operand.vmem [shape: bf16[8,256], index: 2, kind: output, shape index: {0}]   ;;  %s937_s3 = inlined_call_operand.vmem [shape: f32[1,256], index: 3, kind: output, shape index: {1}]   ;;  %s938_s4 = inlined_call_operand.vmem [shape: f32[1,256], index: 4, kind: output, shape index: {2}]  }
   0x1   :  { %s855_s17 = smov 0  }
   0x2 LB: > { %s27_s18 = sadd.s32 1, %s816_s16  ;;  %p710_p0 = scmp.ge.s32.totalorder %s820_s17, 1  ;;  %s820_s17 = sphi %s855_s17, %s15_s17   ;;  %s816_s16 = sphi %s853_s16, %s940_s16   ;;  %s812_s15 = sphi %s851_s15, %s939_s15  }
   0x3   : > { %p28_p1 = scmp.ge.s32.totalorder %s27_s18, 9  ;;  %p212_p2 = scmp.lt.s32.totalorder %s820_s17, 10 }
   0x5   : > { %s942_s18 = smov (%p28_p1, %s27_s18), 0  ;;  %p213_p3 = pnand %p710_p0, %p212_p2 }
   0x6   : > { %p265_p4 = scmp.lt.s32.totalorder (!%p213_p3), %s812_s15, 8  ;;  %s712_s19 = sshll.u32 (!%p213_p3), %s812_s15, 4 }
   0x7   : > { %216 = sbr.rel (%p213_p3) target bundleno = 286 (0x11e), region = 28  ;;  %p273_p5 = scmp.lt.s32.totalorder (!%p213_p3), %s712_s19, 143 }
   0x8   : > { %p304_p6 = scmp.eq.s32.totalorder (!%p213_p3), %s812_s15, 0  ;;  %p715_p7 = scmp.ne.s32.totalorder (!%p213_p3), %s812_s15, 0 }
   0xc   : > { %s266_s20 = scalar_select %p265_p4, %s812_s15, 8 }
   0xd   : > { %s944_s19 = smov (!%p273_p5, %s712_s19), 143  ;;  %307 = sbr.rel (%p715_p7) target bundleno = 20 (0x14), region = 32 }
   0xe   : > { %s711_s21 = sshll.u32 %s266_s20, 2  ;;  %s743_s25 = sshll.u32 %s944_s19, 3 }
   0xf   : > { %s878_s24 = scalar_lea.vmem %s934_s0, %s711_s21  ;;  %s883_s28 = scalar_lea.vmem %s935_s1, %s743_s25 }
  0x12   : > { %v822_v0 = vmov 0.0  }
  0x13   : > { %308 = vst [vmem:[#allocation2] sm:$0xff] %v822_v0  ;;  %309 = vst [vmem:[#allocation2 + $0x8] sm:$0xff] %v822_v0 }
  0x14 PF: > { %314 = sbr.rel (!%p304_p6) target bundleno = 25 (0x19), region = 36  ;;  %v315_v1 = vlaneseq (%p304_p6)  ;;  %v823_v2 = vmov (%p304_p6), 0.0  }
  0x16   : > { %vm317_vm0 = vcmp.lt.s32.totalorder (%p304_p6), %v315_v1, 256 }
  0x17   : > { %319 = vst.msk [vmem:[%s937_s3] sm:$0x3] (%p304_p6), %vm317_vm0, %v823_v2  ;;  %320 = vst.msk [vmem:[%s938_s4] sm:$0x3] (%p304_p6), %vm317_vm0, %v823_v2 }
  0x19 PF: > { %v774_v3 = vld [vmem:[%s883_s28 + $0x74] ss:$8 sps:$4 sm:$0xff]   ;;  %v776_v4 = vld [vmem:[%s883_s28 + $0x70] ss:$8 sps:$4 sm:$0xff]   ;;  %v824_v5 = vmov 0   ;;  %p733_p8 = scmp.ne.s32.totalorder %s812_s15, 8 }
  0x1a   : > { %452 = vmatprep.mubr.bf16.mxu0 %v824_v5  ;;  %420 = vmatprep.subr.bf16.mxu0 %v774_v3  ;;  %v777_v6 = vld [vmem:[%s883_s28 + $0x64] ss:$8 sps:$4 sm:$0xff]   ;;  %v779_v7 = vld [vmem:[%s883_s28 + $0x60] ss:$8 sps:$4 sm:$0xff]   ;;  %v780_v8 = vld [vmem:[%s883_s28 + $0x54] ss:$8 sps:$4 sm:$0xff]  }
  0x1b   : > { %421 = vmatpush1.bf16.msra.mxu0 %v776_v4  ;;  %v782_v9 = vld [vmem:[%s883_s28 + $0x50] ss:$8 sps:$4 sm:$0xff]   ;;  %v783_v10 = vld [vmem:[%s883_s28 + $0x44] ss:$8 sps:$4 sm:$0xff]   ;;  %v785_v11 = vld [vmem:[%s883_s28 + $0x40] ss:$8 sps:$4 sm:$0xff]  }
  0x1c   : > { %422 = vmatprep.subr.bf16.mxu0 %v777_v6  ;;  %v786_v12 = vld [vmem:[%s883_s28 + $0x34] ss:$8 sps:$4 sm:$0xff]   ;;  %v788_v13 = vld [vmem:[%s883_s28 + $0x30] ss:$8 sps:$4 sm:$0xff]   ;;  %v789_v14 = vld [vmem:[%s883_s28 + $0x24] ss:$8 sps:$4 sm:$0xff]  }
  0x1d   : > { %v791_v15 = vld [vmem:[%s883_s28 + $0x20] ss:$8 sps:$4 sm:$0xff]   ;;  %v792_v16 = vld [vmem:[%s883_s28 + $0x14] ss:$8 sps:$4 sm:$0xff]   ;;  %v794_v17 = vld [vmem:[%s883_s28 + $0x10] ss:$8 sps:$4 sm:$0xff]  }
  0x1e   : > { %v795_v18 = vld [vmem:[%s883_s28 + $0x4] ss:$8 sps:$4 sm:$0xff]   ;;  %v797_v19 = vld [vmem:[%s883_s28] ss:$8 sps:$4 sm:$0xff]  }
  0x1f   : > { %423 = vmatpush1.bf16.msra.mxu0 %v779_v7  ;;  %v323_v20 = vld [vmem:[%s878_s24] sm:$0xf]  ;;  %v322_v23 = vld [vmem:[#allocation2 + $0x8] sm:$0xff] }
  0x20   : > { %424 = vmatprep.subr.bf16.mxu0 %v780_v8  ;;  %v321_v21 = vld [vmem:[#allocation2] sm:$0xff] }
  0x23   : > { %425 = vmatpush1.bf16.msra.mxu0 %v782_v9 }
  0x24   : > { %426 = vmatprep.subr.bf16.mxu0 %v783_v10 }
  0x27   : > { %427 = vmatpush1.bf16.msra.mxu0 %v785_v11 }
  0x28   : > { %428 = vmatprep.subr.bf16.mxu0 %v786_v12 }
  0x2b   : > { %429 = vmatpush1.bf16.msra.mxu0 %v788_v13 }
  0x2c   : > { %430 = vmatprep.subr.bf16.mxu0 %v789_v14 }
  0x2f   : > { %431 = vmatpush1.bf16.msra.mxu0 %v791_v15 }
  0x30   : > { %432 = vmatprep.subr.bf16.mxu0 %v792_v16 }
  0x33   : > { %433 = vmatpush1.bf16.msra.mxu0 %v794_v17 }
  0x34   : > { %434 = vmatprep.subr.bf16.mxu0 %v795_v18 }
  0x37   : > { %435 = vmatpush1.bf16.msra.mxu0 %v797_v19 }
  0x3a   : > { %453 = vmatmul.mubr.bf16.vlgmr.msra.gmra.mxu0 %v323_v20 }
  0xfa   : > { %v454_v22 = vpop.f32.mrf.mxu0 }
  0xfb   : > { %v461_v24 = vadd.f32 %v454_v22, %v321_v21 }
  0xfc   : > { %v456_v25 = vpop.f32.mrf.mxu0  ;;  %468 = sbr.rel (%p733_p8) target bundleno = 286 (0x11e), region = 40 }
  0xfd   : > { %463 = vst [vmem:[#allocation2] sm:$0xff] %v461_v24  ;;  %v462_v26 = vadd.f32 %v456_v25, %v322_v23 }
  0xfe   : > { %v458_v27 = vpop.f32.mrf.mxu0 }
  0xff   : > { %464 = vst [vmem:[#allocation2 + $0x8] sm:$0xff] %v462_v26 }
 0x100   : > { %v459_v28 = vpop.f32.mrf.mxu0 }
 0x101   : > { %v499_v36 = vlaneseq  ;;  %v825_v40 = vmov 1966171168   ;;  %v480_v2 = vld [vmem:[%s937_s3] sm:$0x3] }
 0x102   : > { %v497_v41 = vunpack.c.l.s4 %v825_v40  ;;  %v517_v7 = vld [vmem:[%s938_s4] sm:$0x3] }
 0x103   : > { %v500_v47 = vshrl.u32 %v499_v36, 7  ;;  %vm514_vm1 = vcmp.lt.s32.totalorder %v499_v36, 256 }
 0x104   : > { %v469_v29 = vld [vmem:[#allocation2] sm:$0xff]  ;;  %v498_v51 = vunpack.c.0.s8 %v497_v41 }
 0x105   : > { %v481_v32 = vrot.slane %v469_v29, 4  ;;  %v518_v34 = vmul.f32 %v469_v29, %v469_v29 }
 0x106   : > { %v470_v30 = vld [vmem:[#allocation2 + $0x8] sm:$0xff]  ;;  %v501_v59 = vsub.s32 %v498_v51, %v500_v47 }
 0x107   : > { %v745_v31 = vpack.c.bf16 %v470_v30, %v469_v29  ;;  %v487_v33 = vrot.slane %v470_v30, 4  ;;  %v519_v35 = vmul.f32 %v470_v30, %v470_v30  ;;  %v482_v37 = vadd.f32 %v481_v32, %v469_v29 }
 0x108   : > { %v520_v39 = vrot.slane %v518_v34, 4 }
 0x109   : > { %479 = vst [vmem:[%s936_s2] sm:$0xff] %v745_v31  ;;  %v488_v38 = vadd.f32 %v487_v33, %v470_v30  ;;  %v526_v42 = vrot.slane %v519_v35, 4  ;;  %v483_v43 = vrot.slane %v482_v37, 2 }
 0x10a   : > { %v521_v45 = vadd.f32 %v520_v39, %v518_v34 }
 0x10b   : > { %v489_v44 = vrot.slane %v488_v38, 2  ;;  %v527_v46 = vadd.f32 %v526_v42, %v519_v35  ;;  %v484_v48 = vadd.f32 %v483_v43, %v482_v37 }
 0x10c   : > { %v522_v50 = vrot.slane %v521_v45, 2 }
 0x10d   : > { %v490_v49 = vadd.f32 %v489_v44, %v488_v38  ;;  %v528_v52 = vrot.slane %v527_v46, 2  ;;  %v485_v53 = vrot.slane %v484_v48, 1 }
 0x10e   : > { %v523_v55 = vadd.f32 %v522_v50, %v521_v45 }
 0x10f   : > { %v491_v54 = vrot.slane %v490_v49, 1  ;;  %v529_v56 = vadd.f32 %v528_v52, %v527_v46  ;;  %v486_v57 = vadd.f32 %v485_v53, %v484_v48 }
 0x110   : > { %v524_v60 = vrot.slane %v523_v55, 1 }
 0x111   : > { %v492_v58 = vadd.f32 %v491_v54, %v490_v49  ;;  %v530_v61 = vrot.slane %v529_v56, 1 }
 0x112   : > { %v525_v63 = vadd.f32 %v524_v60, %v523_v55 }
 0x113   : > { %v495_v62 = vcombine.low %v486_v57, %v492_v58  ;;  %v531_v0 = vadd.f32 %v530_v61, %v529_v56 }
 0x115   : > { %v502_v1 = vrot.slane %v495_v62, %v501_v59  ;;  %v534_v3 = vcombine.low %v525_v63, %v531_v0 }
 0x117   : > { %v509_v4 = vrot.slane %v502_v1, %v501_v59  ;;  %v541_v5 = vrot.slane %v534_v3, %v501_v59 }
 0x119   : > { %v511_v6 = vadd.f32 %v509_v4, %v480_v2  ;;  %v548_v8 = vrot.slane %v541_v5, %v501_v59 }
 0x11b   : > { %516 = vst.msk [vmem:[%s937_s3] sm:$0x3] %vm514_vm1, %v511_v6  ;;  %v550_v9 = vadd.f32 %v548_v8, %v517_v7 }
 0x11d   : > { %551 = vst.msk [vmem:[%s938_s4] sm:$0x3] %vm514_vm1, %v550_v9 }
 0x11e PF: > { %s15_s17 = sadd.s32 1, %s820_s17   ;;  %s939_s15 = smov %s816_s16 }
 0x11f   : > { %p12_p9 = scmp.ge.s32.totalorder %s15_s17, 11   ;;  %s940_s16 = smov %s942_s18 }
 0x121   :  { %14 = sbr.rel (!%p12_p9) target bundleno = 2 (0x2), region = 97 }

// kernel: cnn_forward.67
= control target key start
LH: loop header
LB: loop body
LE: loop exit
PB: predicated region body
PF: predicated region fallthrough
CT: control target
= control target key end

     0   :  { %v28_v0 = vlaneseq  ;;  %s160_s0 = inlined_call_operand.vmem [shape: bf16[8,256], index: 0, kind: input, shape index: {}]   ;;  %s161_s1 = inlined_call_operand.vmem [shape: f32[1,256], index: 1, kind: input, shape index: {}]   ;;  %s162_s2 = inlined_call_operand.vmem [shape: f32[1,256], index: 2, kind: input, shape index: {}]   ;;  %s163_s3 = inlined_call_operand.vmem [shape: bf16[8,256], index: 3, kind: input, shape index: {}]   ;;  %s164_s4 = inlined_call_operand.vmem [shape: f32[1,256], index: 4, kind: input, shape index: {}]   ;;  %s165_s5 = inlined_call_operand.vmem [shape: f32[1,256], index: 5, kind: input, shape index: {}]   ;;  %s166_s6 = inlined_call_operand.vmem [shape: bf16[8,256], index: 6, kind: output, shape index: {}]  }
   0x1   :  { %v23_v1 = vld [vmem:[%s160_s0] sm:$0xff] }
   0x2   :  { %v29_v2 = vshrl.u32 %v28_v0, 7  ;;  %v54_v3 = vld [vmem:[%s163_s3] sm:$0xff]  ;;  %v24_v6 = vunpack.c.l.bf16 %v23_v1  ;;  %v25_v7 = vunpack.c.h.bf16 %v23_v1 }
   0x3   :  { %v26_v4 = vld [vmem:[%s161_s1] sm:$0x3]  ;;  %v55_v11 = vunpack.c.l.bf16 %v54_v3  ;;  %v56_v12 = vunpack.c.h.bf16 %v54_v3 }
   0x4   :  { %v40_v5 = vld [vmem:[%s162_s2] sm:$0x3]  ;;  %v30_v8 = vsub.s32 0, %v29_v2  ;;  %v34_v9 = vsub.s32 1, %v29_v2 }
   0x5   :  { %v57_v10 = vld [vmem:[%s164_s4] sm:$0x3] }
   0x6   :  { %v31_v13 = vrot.slane %v26_v4, %v30_v8  ;;  %v35_v14 = vrot.slane %v26_v4, %v34_v9  ;;  %v45_v15 = vrot.slane %v40_v5, %v30_v8  ;;  %v49_v16 = vrot.slane %v40_v5, %v34_v9  ;;  %v73_v19 = vld [vmem:[%s165_s5] sm:$0x3] }
   0x7   :  { %v62_v17 = vrot.slane %v57_v10, %v30_v8  ;;  %v66_v18 = vrot.slane %v57_v10, %v34_v9  ;;  %v78_v26 = vrot.slane %v73_v19, %v30_v8  ;;  %v82_v27 = vrot.slane %v73_v19, %v34_v9 }
   0x8   :  { %v38_v20 = vmul.f32 %v31_v13, %v24_v6  ;;  %v39_v21 = vmul.f32 %v35_v14, %v25_v7 }
   0x9   :  { %v69_v22 = vmul.f32 %v62_v17, %v55_v11  ;;  %v70_v23 = vmul.f32 %v66_v18, %v56_v12 }
   0xa   :  { %v52_v24 = vadd.f32 %v45_v15, %v38_v20  ;;  %v53_v25 = vadd.f32 %v49_v16, %v39_v21 }
   0xc   :  { %v71_v28 = vadd.f32 %v69_v22, %v52_v24  ;;  %v72_v29 = vadd.f32 %v70_v23, %v53_v25 }
   0xe   :  { %v85_v30 = vadd.f32 %v78_v26, %v71_v28  ;;  %v86_v31 = vadd.f32 %v82_v27, %v72_v29 }
  0x10   :  { %v87_v32 = vmax.f32 %v85_v30, 0.0  ;;  %v88_v33 = vmax.f32 %v86_v31, 0.0 }
  0x12   :  { %v103_v34 = vpack.c.bf16 %v88_v33, %v87_v32 }
  0x14   :  { %97 = vst [vmem:[%s166_s6] sm:$0xff] %v103_v34 }

// kernel: cnn_forward.65
= control target key start
LH: loop header
LB: loop body
LE: loop exit
PB: predicated region body
PF: predicated region fallthrough
CT: control target
= control target key end

     0   :  { %s1001_s15 = smov 0   ;;  %s1003_s16 = smov 0   ;;  %s1099_s0 = inlined_call_operand.vmem [shape: bf16[8,2304], index: 0, kind: input, shape index: {}]   ;;  %s1100_s1 = inlined_call_operand.vmem [shape: bf16[2304,256], index: 1, kind: input, shape index: {}]   ;;  %s1101_s2 = inlined_call_operand.vmem [shape: bf16[8,256], index: 2, kind: output, shape index: {0}]   ;;  %s1102_s3 = inlined_call_operand.vmem [shape: f32[1,256], index: 3, kind: output, shape index: {1}]   ;;  %s1103_s4 = inlined_call_operand.vmem [shape: f32[1,256], index: 4, kind: output, shape index: {2}]  }
   0x1   :  { %s1005_s17 = smov 0  }
   0x2 LB: > { %s27_s18 = sadd.s32 1, %s967_s16  ;;  %p817_p0 = scmp.ge.s32.totalorder %s971_s17, 1  ;;  %s971_s17 = sphi %s1005_s17, %s15_s17   ;;  %s967_s16 = sphi %s1003_s16, %s1105_s16   ;;  %s963_s15 = sphi %s1001_s15, %s1104_s15  }
   0x3   : > { %p28_p1 = scmp.ge.s32.totalorder %s27_s18, 9  ;;  %p214_p2 = scmp.lt.s32.totalorder %s971_s17, 10 }
   0x5   : > { %s1107_s18 = smov (%p28_p1, %s27_s18), 0  ;;  %p215_p3 = pnand %p817_p0, %p214_p2 }
   0x6   : > { %s818_s19 = sshll.u32 (!%p215_p3), %s963_s15, 1  ;;  %s820_s20 = sshll.u32 (!%p215_p3), %s963_s15, 5 }
   0x7   : > { %218 = sbr.rel (%p215_p3) target bundleno = 320 (0x140), region = 28  ;;  %p269_p4 = scmp.lt.s32.totalorder (!%p215_p3), %s818_s19, 17 }
   0x8   : > { %p278_p5 = scmp.lt.s32.totalorder (!%p215_p3), %s820_s20, 287  ;;  %p308_p6 = scmp.eq.s32.totalorder (!%p215_p3), %s963_s15, 0 }
   0x9   : > { %p823_p7 = scmp.ne.s32.totalorder (!%p215_p3), %s963_s15, 0 }
   0xc   : > { %s1109_s19 = smov (!%p269_p4, %s818_s19), 17  ;;  %s1111_s20 = smov (!%p278_p5, %s820_s20), 287 }
   0xd   : > { %s819_s21 = sshll.u32 %s1109_s19, 2  ;;  %s869_s25 = sshll.u32 %s1111_s20, 3 }
   0xe   : > { %s1027_s24 = scalar_lea.vmem %s1099_s0, %s819_s21  ;;  %s1032_s28 = scalar_lea.vmem %s1100_s1, %s869_s25 }
   0xf   : > { %311 = sbr.rel (%p823_p7) target bundleno = 22 (0x16), region = 32 }
  0x14   : > { %v973_v0 = vmov 0.0  }
  0x15   : > { %312 = vst [vmem:[#allocation2] sm:$0xff] %v973_v0  ;;  %313 = vst [vmem:[#allocation2 + $0x8] sm:$0xff] %v973_v0 }
  0x16 PF: > { %318 = sbr.rel (!%p308_p6) target bundleno = 27 (0x1b), region = 36  ;;  %v319_v1 = vlaneseq (%p308_p6)  ;;  %v974_v2 = vmov (%p308_p6), 0.0  }
  0x18   : > { %vm321_vm0 = vcmp.lt.s32.totalorder (%p308_p6), %v319_v1, 256 }
  0x19   : > { %323 = vst.msk [vmem:[%s1102_s3] sm:$0x3] (%p308_p6), %vm321_vm0, %v974_v2  ;;  %324 = vst.msk [vmem:[%s1103_s4] sm:$0x3] (%p308_p6), %vm321_vm0, %v974_v2 }
  0x1b PF: > { %v899_v3 = vld [vmem:[%s1032_s28 + $0x74] ss:$8 sps:$4 sm:$0xff]   ;;  %v901_v4 = vld [vmem:[%s1032_s28 + $0x70] ss:$8 sps:$4 sm:$0xff]   ;;  %v902_v5 = vld [vmem:[%s1032_s28 + $0x64] ss:$8 sps:$4 sm:$0xff]  }
  0x1c   : > { %527 = vmatprep.subr.bf16.mxu0 %v899_v3  ;;  %v904_v6 = vld [vmem:[%s1032_s28 + $0x60] ss:$8 sps:$4 sm:$0xff]   ;;  %v905_v7 = vld [vmem:[%s1032_s28 + $0x54] ss:$8 sps:$4 sm:$0xff]   ;;  %v907_v8 = vld [vmem:[%s1032_s28 + $0x50] ss:$8 sps:$4 sm:$0xff]  }
  0x1d   : > { %528 = vmatpush1.bf16.msra.mxu0 %v901_v4  ;;  %v908_v9 = vld [vmem:[%s1032_s28 + $0x44] ss:$8 sps:$4 sm:$0xff]   ;;  %v910_v10 = vld [vmem:[%s1032_s28 + $0x40] ss:$8 sps:$4 sm:$0xff]   ;;  %v911_v11 = vld [vmem:[%s1032_s28 + $0x34] ss:$8 sps:$4 sm:$0xff]  }
  0x1e   : > { %529 = vmatprep.subr.bf16.mxu0 %v902_v5  ;;  %v913_v12 = vld [vmem:[%s1032_s28 + $0x30] ss:$8 sps:$4 sm:$0xff]   ;;  %v914_v13 = vld [vmem:[%s1032_s28 + $0x24] ss:$8 sps:$4 sm:$0xff]   ;;  %v916_v14 = vld [vmem:[%s1032_s28 + $0x20] ss:$8 sps:$4 sm:$0xff]  }
  0x1f   : > { %v917_v15 = vld [vmem:[%s1032_s28 + $0x14] ss:$8 sps:$4 sm:$0xff]   ;;  %v327_v16 = vld [vmem:[%s1027_s24] sm:$0xff]  ;;  %v919_v18 = vld [vmem:[%s1032_s28 + $0x10] ss:$8 sps:$4 sm:$0xff]   ;;  %p859_p8 = scmp.ne.s32.totalorder %s963_s15, 8 }
  0x20   : > { %v826_v17 = vcombine.high %v327_v16, %v327_v16  ;;  %v920_v19 = vld [vmem:[%s1032_s28 + $0x4] ss:$8 sps:$4 sm:$0xff]   ;;  %v922_v20 = vld [vmem:[%s1032_s28] ss:$8 sps:$4 sm:$0xff]   ;;  %v923_v21 = vld [vmem:[%s1032_s28 + $0xf4] ss:$8 sps:$4 sm:$0xff]   ;;  %v825_v37 = vcombine.low %v327_v16, %v327_v16 }
  0x21   : > { %530 = vmatpush1.bf16.msra.mxu0 %v904_v6  ;;  %v925_v22 = vld [vmem:[%s1032_s28 + $0xf0] ss:$8 sps:$4 sm:$0xff]   ;;  %v926_v23 = vld [vmem:[%s1032_s28 + $0xe4] ss:$8 sps:$4 sm:$0xff]   ;;  %v928_v24 = vld [vmem:[%s1032_s28 + $0xe0] ss:$8 sps:$4 sm:$0xff]  }
  0x22   : > { %531 = vmatprep.subr.bf16.mxu0 %v905_v7  ;;  %559 = vmatprep.mubr.bf16.mxu0 %v826_v17  ;;  %v929_v25 = vld [vmem:[%s1032_s28 + $0xd4] ss:$8 sps:$4 sm:$0xff]   ;;  %v931_v26 = vld [vmem:[%s1032_s28 + $0xd0] ss:$8 sps:$4 sm:$0xff]   ;;  %v932_v27 = vld [vmem:[%s1032_s28 + $0xc4] ss:$8 sps:$4 sm:$0xff]  }
  0x23   : > { %v934_v28 = vld [vmem:[%s1032_s28 + $0xc0] ss:$8 sps:$4 sm:$0xff]   ;;  %v935_v29 = vld [vmem:[%s1032_s28 + $0xb4] ss:$8 sps:$4 sm:$0xff]   ;;  %v937_v30 = vld [vmem:[%s1032_s28 + $0xb0] ss:$8 sps:$4 sm:$0xff]  }
  0x24   : > { %v938_v31 = vld [vmem:[%s1032_s28 + $0xa4] ss:$8 sps:$4 sm:$0xff]   ;;  %v940_v32 = vld [vmem:[%s1032_s28 + $0xa0] ss:$8 sps:$4 sm:$0xff]   ;;  %v941_v33 = vld [vmem:[%s1032_s28 + $0x94] ss:$8 sps:$4 sm:$0xff]  }
  0x25   : > { %532 = vmatpush1.bf16.msra.mxu0 %v907_v8  ;;  %v943_v34 = vld [vmem:[%s1032_s28 + $0x90] ss:$8 sps:$4 sm:$0xff]   ;;  %v944_v35 = vld [vmem:[%s1032_s28 + $0x84] ss:$8 sps:$4 sm:$0xff]   ;;  %v946_v36 = vld [vmem:[%s1032_s28 + $0x80] ss:$8 sps:$4 sm:$0xff]  }
  0x26   : > { %533 = vmatprep.subr.bf16.mxu0 %v908_v9  ;;  %v325_v38 = vld [vmem:[#allocation2] sm:$0xff]  ;;  %v326_v40 = vld [vmem:[#allocation2 + $0x8] sm:$0xff] }
  0x29   : > { %534 = vmatpush1.bf16.msra.mxu0 %v910_v10 }
  0x2a   : > { %535 = vmatprep.subr.bf16.mxu0 %v911_v11 }
  0x2d   : > { %536 = vmatpush1.bf16.msra.mxu0 %v913_v12 }
  0x2e   : > { %537 = vmatprep.subr.bf16.mxu0 %v914_v13 }
  0x31   : > { %538 = vmatpush1.bf16.msra.mxu0 %v916_v14 }
  0x32   : > { %539 = vmatprep.subr.bf16.mxu0 %v917_v15 }
  0x35   : > { %540 = vmatpush1.bf16.msra.mxu0 %v919_v18 }
  0x36   : > { %541 = vmatprep.subr.bf16.mxu0 %v920_v19 }
  0x39   : > { %542 = vmatpush1.bf16.msra.mxu0 %v922_v20 }
  0x3a   : > { %543 = vmatprep.subr.bf16.mxu0 %v923_v21 }
  0x3d   : > { %544 = vmatpush2.bf16.msra.mxu0 %v925_v22 }
  0x3e   : > { %545 = vmatprep.subr.bf16.mxu0 %v926_v23 }
  0x41   : > { %546 = vmatpush2.bf16.msra.mxu0 %v928_v24 }
  0x42   : > { %547 = vmatprep.subr.bf16.mxu0 %v929_v25 }
  0x45   : > { %548 = vmatpush2.bf16.msra.mxu0 %v931_v26 }
  0x46   : > { %549 = vmatprep.subr.bf16.mxu0 %v932_v27 }
  0x49   : > { %550 = vmatpush2.bf16.msra.mxu0 %v934_v28 }
  0x4a   : > { %551 = vmatprep.subr.bf16.mxu0 %v935_v29 }
  0x4d   : > { %552 = vmatpush2.bf16.msra.mxu0 %v937_v30 }
  0x4e   : > { %553 = vmatprep.subr.bf16.mxu0 %v938_v31 }
  0x51   : > { %554 = vmatpush2.bf16.msra.mxu0 %v940_v32 }
  0x52   : > { %555 = vmatprep.subr.bf16.mxu0 %v941_v33 }
  0x55   : > { %556 = vmatpush2.bf16.msra.mxu0 %v943_v34 }
  0x56   : > { %557 = vmatprep.subr.bf16.mxu0 %v944_v35 }
  0x59   : > { %558 = vmatpush2.bf16.msra.mxu0 %v946_v36 }
  0x5c   : > { %560 = vmatmul.mubr.bf16.vlgmr.msra.gmra.mxu0 %v825_v37 }
 0x11c   : > { %v561_v39 = vpop.f32.mrf.mxu0 }
 0x11d   : > { %v568_v41 = vadd.f32 %v561_v39, %v325_v38 }
 0x11e   : > { %v563_v42 = vpop.f32.mrf.mxu0  ;;  %575 = sbr.rel (%p859_p8) target bundleno = 320 (0x140), region = 40 }
 0x11f   : > { %570 = vst [vmem:[#allocation2] sm:$0xff] %v568_v41  ;;  %v569_v43 = vadd.f32 %v563_v42, %v326_v40 }
 0x120   : > { %v565_v44 = vpop.f32.mrf.mxu0 }
 0x121   : > { %571 = vst [vmem:[#allocation2 + $0x8] sm:$0xff] %v569_v43 }
 0x122   : > { %v566_v45 = vpop.f32.mrf.mxu0 }
 0x123   : > { %v606_v53 = vlaneseq  ;;  %v975_v57 = vmov 1966171168   ;;  %v587_v19 = vld [vmem:[%s1102_s3] sm:$0x3] }
 0x124   : > { %v604_v58 = vunpack.c.l.s4 %v975_v57  ;;  %v624_v24 = vld [vmem:[%s1103_s4] sm:$0x3] }
 0x125   : > { %v607_v0 = vshrl.u32 %v606_v53, 7  ;;  %vm621_vm1 = vcmp.lt.s32.totalorder %v606_v53, 256 }
 0x126   : > { %v576_v46 = vld [vmem:[#allocation2] sm:$0xff]  ;;  %v605_v4 = vunpack.c.0.s8 %v604_v58 }
 0x127   : > { %v588_v49 = vrot.slane %v576_v46, 4  ;;  %v625_v51 = vmul.f32 %v576_v46, %v576_v46 }
 0x128   : > { %v577_v47 = vld [vmem:[#allocation2 + $0x8] sm:$0xff]  ;;  %v608_v12 = vsub.s32 %v605_v4, %v607_v0 }
 0x129   : > { %v871_v48 = vpack.c.bf16 %v577_v47, %v576_v46  ;;  %v594_v50 = vrot.slane %v577_v47, 4  ;;  %v626_v52 = vmul.f32 %v577_v47, %v577_v47  ;;  %v589_v54 = vadd.f32 %v588_v49, %v576_v46 }
 0x12a   : > { %v627_v56 = vrot.slane %v625_v51, 4 }
 0x12b   : > { %586 = vst [vmem:[%s1101_s2] sm:$0xff] %v871_v48  ;;  %v595_v55 = vadd.f32 %v594_v50, %v577_v47  ;;  %v633_v59 = vrot.slane %v626_v52, 4  ;;  %v590_v60 = vrot.slane %v589_v54, 2 }
 0x12c   : > { %v628_v62 = vadd.f32 %v627_v56, %v625_v51 }
 0x12d   : > { %v596_v61 = vrot.slane %v595_v55, 2  ;;  %v634_v63 = vadd.f32 %v633_v59, %v626_v52  ;;  %v591_v1 = vadd.f32 %v590_v60, %v589_v54 }
 0x12e   : > { %v629_v3 = vrot.slane %v628_v62, 2 }
 0x12f   : > { %v597_v2 = vadd.f32 %v596_v61, %v595_v55  ;;  %v635_v5 = vrot.slane %v634_v63, 2  ;;  %v592_v6 = vrot.slane %v591_v1, 1 }
 0x130   : > { %v630_v8 = vadd.f32 %v629_v3, %v628_v62 }
 0x131   : > { %v598_v7 = vrot.slane %v597_v2, 1  ;;  %v636_v9 = vadd.f32 %v635_v5, %v634_v63  ;;  %v593_v10 = vadd.f32 %v592_v6, %v591_v1 }
 0x132   : > { %v631_v13 = vrot.slane %v630_v8, 1 }
 0x133   : > { %v599_v11 = vadd.f32 %v598_v7, %v597_v2  ;;  %v637_v14 = vrot.slane %v636_v9, 1 }
 0x134   : > { %v632_v16 = vadd.f32 %v631_v13, %v630_v8 }
 0x135   : > { %v602_v15 = vcombine.low %v593_v10, %v599_v11  ;;  %v638_v17 = vadd.f32 %v637_v14, %v636_v9 }
 0x137   : > { %v609_v18 = vrot.slane %v602_v15, %v608_v12  ;;  %v641_v20 = vcombine.low %v632_v16, %v638_v17 }
 0x139   : > { %v616_v21 = vrot.slane %v609_v18, %v608_v12  ;;  %v648_v22 = vrot.slane %v641_v20, %v608_v12 }
 0x13b   : > { %v618_v23 = vadd.f32 %v616_v21, %v587_v19  ;;  %v655_v25 = vrot.slane %v648_v22, %v608_v12 }
 0x13d   : > { %623 = vst.msk [vmem:[%s1102_s3] sm:$0x3] %vm621_vm1, %v618_v23  ;;  %v657_v26 = vadd.f32 %v655_v25, %v624_v24 }
 0x13f   : > { %658 = vst.msk [vmem:[%s1103_s4] sm:$0x3] %vm621_vm1, %v657_v26 }
 0x140 PF: > { %s15_s17 = sadd.s32 1, %s971_s17   ;;  %s1104_s15 = smov %s967_s16 }
 0x141   : > { %p12_p9 = scmp.ge.s32.totalorder %s15_s17, 11   ;;  %s1105_s16 = smov %s1107_s18 }
 0x143   :  { %14 = sbr.rel (!%p12_p9) target bundleno = 2 (0x2), region = 97 }

// kernel: cnn_forward.71
= control target key start
LH: loop header
LB: loop body
LE: loop exit
PB: predicated region body
PF: predicated region fallthrough
CT: control target
= control target key end

     0   :  { %v22_v0 = vlaneseq  ;;  %s110_s0 = inlined_call_operand.vmem [shape: bf16[8,256], index: 0, kind: input, shape index: {}]   ;;  %s111_s1 = inlined_call_operand.vmem [shape: f32[1,256], index: 1, kind: input, shape index: {}]   ;;  %s112_s2 = inlined_call_operand.vmem [shape: f32[1,256], index: 2, kind: input, shape index: {}]   ;;  %s113_s3 = inlined_call_operand.vmem [shape: bf16[8,256], index: 3, kind: input, shape index: {}]   ;;  %s114_s4 = inlined_call_operand.vmem [shape: bf16[8,256], index: 4, kind: output, shape index: {}]  }
   0x1   :  { %v17_v1 = vld [vmem:[%s110_s0] sm:$0xff] }
   0x2   :  { %v23_v2 = vshrl.u32 %v22_v0, 7  ;;  %v20_v3 = vld [vmem:[%s111_s1] sm:$0x3]  ;;  %v18_v5 = vunpack.c.l.bf16 %v17_v1  ;;  %v19_v6 = vunpack.c.h.bf16 %v17_v1 }
   0x3   :  { %v34_v4 = vld [vmem:[%s112_s2] sm:$0x3] }
   0x4   :  { %v24_v7 = vsub.s32 0, %v23_v2  ;;  %v28_v8 = vsub.s32 1, %v23_v2  ;;  %v48_v9 = vld [vmem:[%s113_s3] sm:$0xff] }
   0x5   :  { %v49_v16 = vunpack.c.l.bf16 %v48_v9  ;;  %v50_v17 = vunpack.c.h.bf16 %v48_v9 }
   0x6   :  { %v25_v10 = vrot.slane %v20_v3, %v24_v7  ;;  %v29_v11 = vrot.slane %v20_v3, %v28_v8  ;;  %v39_v12 = vrot.slane %v34_v4, %v24_v7  ;;  %v43_v13 = vrot.slane %v34_v4, %v28_v8 }
   0x8   :  { %v32_v14 = vmul.f32 %v25_v10, %v18_v5  ;;  %v33_v15 = vmul.f32 %v29_v11, %v19_v6 }
   0xa   :  { %v46_v18 = vadd.f32 %v39_v12, %v32_v14  ;;  %v47_v19 = vadd.f32 %v43_v13, %v33_v15 }
   0xc   :  { %v51_v20 = vadd.f32 %v49_v16, %v46_v18  ;;  %v52_v21 = vadd.f32 %v50_v17, %v47_v19 }
   0xe   :  { %v53_v22 = vmax.f32 %v51_v20, 0.0  ;;  %v54_v23 = vmax.f32 %v52_v21, 0.0 }
  0x10   :  { %v69_v24 = vpack.c.bf16 %v54_v23, %v53_v22 }
  0x12   :  { %63 = vst [vmem:[%s114_s4] sm:$0xff] %v69_v24 }

// kernel: cnn_forward.73
= control target key start
LH: loop header
LB: loop body
LE: loop exit
PB: predicated region body
PF: predicated region fallthrough
CT: control target
= control target key end

     0   :  { %v22_v0 = vlaneseq  ;;  %s140_s0 = inlined_call_operand.vmem [shape: bf16[8,512], index: 0, kind: input, shape index: {}]   ;;  %s141_s1 = inlined_call_operand.vmem [shape: f32[1,512], index: 1, kind: input, shape index: {}]   ;;  %s142_s2 = inlined_call_operand.vmem [shape: f32[1,512], index: 2, kind: input, shape index: {}]   ;;  %s143_s3 = inlined_call_operand.vmem [shape: bf16[8,512], index: 3, kind: output, shape index: {}]  }
   0x1   :  { %v14_v1 = vld [vmem:[%s140_s0] sm:$0xff]  ;;  %v15_v3 = vld [vmem:[%s140_s0 + $0x8] sm:$0xff] }
   0x2   :  { %v23_v2 = vshrl.u32 %v22_v0, 7  ;;  %v16_v4 = vunpack.c.l.bf16 %v14_v1  ;;  %v17_v5 = vunpack.c.h.bf16 %v14_v1  ;;  %v20_v6 = vld [vmem:[%s141_s1] sm:$0xf]  ;;  %v18_v12 = vunpack.c.l.bf16 %v15_v3 }
   0x3   :  { %v46_v7 = vld [vmem:[%s142_s2] sm:$0xf]  ;;  %v19_v13 = vunpack.c.h.bf16 %v15_v3 }
   0x4   :  { %v24_v8 = vsub.s32 0, %v23_v2  ;;  %v28_v9 = vsub.s32 1, %v23_v2  ;;  %v32_v10 = vsub.s32 2, %v23_v2  ;;  %v36_v11 = vsub.s32 3, %v23_v2 }
   0x6   :  { %v25_v14 = vrot.slane %v20_v6, %v24_v8  ;;  %v29_v15 = vrot.slane %v20_v6, %v28_v9  ;;  %v51_v16 = vrot.slane %v46_v7, %v24_v8  ;;  %v55_v17 = vrot.slane %v46_v7, %v28_v9 }
   0x7   :  { %v33_v18 = vrot.slane %v20_v6, %v32_v10  ;;  %v37_v19 = vrot.slane %v20_v6, %v36_v11  ;;  %v59_v20 = vrot.slane %v46_v7, %v32_v10  ;;  %v63_v21 = vrot.slane %v46_v7, %v36_v11 }
   0x8   :  { %v42_v22 = vmul.f32 %v25_v14, %v16_v4  ;;  %v43_v23 = vmul.f32 %v29_v15, %v17_v5 }
   0x9   :  { %v44_v24 = vmul.f32 %v33_v18, %v18_v12  ;;  %v45_v25 = vmul.f32 %v37_v19, %v19_v13 }
   0xa   :  { %v68_v26 = vadd.f32 %v51_v16, %v42_v22  ;;  %v69_v27 = vadd.f32 %v55_v17, %v43_v23 }
   0xb   :  { %v70_v28 = vadd.f32 %v59_v20, %v44_v24  ;;  %v71_v29 = vadd.f32 %v63_v21, %v45_v25 }
   0xc   :  { %v72_v30 = vmax.f32 %v68_v26, 0.0  ;;  %v73_v31 = vmax.f32 %v69_v27, 0.0 }
   0xd   :  { %v74_v32 = vmax.f32 %v70_v28, 0.0  ;;  %v75_v33 = vmax.f32 %v71_v29, 0.0 }
   0xe   :  { %v100_v34 = vpack.c.bf16 %v73_v31, %v72_v30 }
   0xf   :  { %v101_v35 = vpack.c.bf16 %v75_v33, %v74_v32 }
  0x10   :  { %92 = vst [vmem:[%s143_s3] sm:$0xff] %v100_v34 }
  0x11   :  { %93 = vst [vmem:[%s143_s3 + $0x8] sm:$0xff] %v101_v35 }

// kernel: cnn_forward.75
= control target key start
LH: loop header
LB: loop body
LE: loop exit
PB: predicated region body
PF: predicated region fallthrough
CT: control target
= control target key end

     0   :  { %10 = vsyncpa [#allocation4], 0  ;;  %s886_s15 = smov [#allocation3]   ;;  %s958_s0 = inlined_call_operand.vmem [shape: bf16[8,256], index: 0, kind: input, shape index: {}]   ;;  %s959_s1 = inlined_call_operand.hbm [shape: bf16[256,512], index: 1, kind: input, shape index: {}]   ;;  %s960_s2 = inlined_call_operand.vmem [shape: bf16[8,512], index: 2, kind: output, shape index: {0}]   ;;  %s961_s3 = inlined_call_operand.vmem [shape: f32[1,512], index: 3, kind: output, shape index: {1}]   ;;  %s962_s4 = inlined_call_operand.vmem [shape: f32[1,512], index: 4, kind: output, shape index: {2}]  }
   0x1   :  { %s18_s16 = sshll.u32 %s886_s15, 4  ;;  %s19_s16 = int_to_ptr.vmem [resolvable:$true] %s18_s16 }
   0x2   :  { %s872_s17 = scalar_lea.vmem %s19_s16, 8192  ;;  %p877_p1 = scmp.lt.s32.totalorder %s19_s16, %s19_s16 }
   0x3   :  { %p873_p0 = scmp.ne.s32.totalorder %s19_s16, %s872_s17  ;;  %p878_p2 = scmp.lt.s32.totalorder %s872_s17, %s872_s17 }
   0x5   :  { %p879_p3 = por %p878_p2, %p877_p1 }
   0x7   :  { %p880_p4 = pnand %p879_p3, %p873_p0 }
   0x9   :  { %883 = shalt.err (!%p880_p4)
}
   0xa   :  { %s887_s18 = smov 256   ;;  %s888_s19 = smov 16  }
   0xb   :  { %24 = dma.hbm_to_vmem [thread:$0]  %s959_s1, 8192, %s19_s16, [#allocation4], %s887_s18, %s887_s18, %s888_s19  }
   0xc   :  { %884 = dma.done.wait [#allocation4], 8192  }
   0xd   :  { %885 = vsyncadd [#allocation4], 4294959104  ;;  %v766_v0 = vld [vmem:[#allocation3 + $0xe4] ss:$16 sps:$4 sm:$0xff]   ;;  %v768_v1 = vld [vmem:[#allocation3 + $0xec] ss:$16 sps:$4 sm:$0xff]  }
   0xe   :  { %443 = vmatprep.subr.bf16.mxu0 %v766_v0  ;;  %v770_v2 = vld [vmem:[#allocation3 + $0xe0] ss:$16 sps:$4 sm:$0xff]   ;;  %v771_v3 = vld [vmem:[#allocation3 + $0xe8] ss:$16 sps:$4 sm:$0xff]   ;;  %484 = vmatprep.subr.bf16.mxu1 %v768_v1  ;;  %v772_v4 = vld [vmem:[#allocation3 + $0xc4] ss:$16 sps:$4 sm:$0xff]  }
   0xf   :  { %444 = vmatpush1.bf16.msra.mxu0 %v770_v2  ;;  %485 = vmatpush1.bf16.msra.mxu1 %v771_v3  ;;  %v774_v5 = vld [vmem:[#allocation3 + $0xcc] ss:$16 sps:$4 sm:$0xff]   ;;  %v776_v6 = vld [vmem:[#allocation3 + $0xc0] ss:$16 sps:$4 sm:$0xff]   ;;  %v777_v7 = vld [vmem:[#allocation3 + $0xc8] ss:$16 sps:$4 sm:$0xff]   ;;  %v41_v3 = vlaneseq }
  0x10   :  { %445 = vmatprep.subr.bf16.mxu0 %v772_v4  ;;  %486 = vmatprep.subr.bf16.mxu1 %v774_v5  ;;  %v778_v8 = vld [vmem:[#allocation3 + $0xa4] ss:$16 sps:$4 sm:$0xff]   ;;  %v780_v9 = vld [vmem:[#allocation3 + $0xac] ss:$16 sps:$4 sm:$0xff]   ;;  %v782_v10 = vld [vmem:[#allocation3 + $0xa0] ss:$16 sps:$4 sm:$0xff]  }
  0x11   :  { %v783_v11 = vld [vmem:[#allocation3 + $0xa8] ss:$16 sps:$4 sm:$0xff]   ;;  %v784_v12 = vld [vmem:[#allocation3 + $0x84] ss:$16 sps:$4 sm:$0xff]   ;;  %v786_v13 = vld [vmem:[#allocation3 + $0x8c] ss:$16 sps:$4 sm:$0xff]  }
  0x12   :  { %v788_v14 = vld [vmem:[#allocation3 + $0x80] ss:$16 sps:$4 sm:$0xff]   ;;  %v789_v15 = vld [vmem:[#allocation3 + $0x88] ss:$16 sps:$4 sm:$0xff]   ;;  %v790_v16 = vld [vmem:[#allocation3 + $0x64] ss:$16 sps:$4 sm:$0xff]  }
  0x13   :  { %446 = vmatpush1.bf16.msra.mxu0 %v776_v6  ;;  %487 = vmatpush1.bf16.msra.mxu1 %v777_v7  ;;  %v792_v17 = vld [vmem:[#allocation3 + $0x6c] ss:$16 sps:$4 sm:$0xff]   ;;  %v794_v18 = vld [vmem:[#allocation3 + $0x60] ss:$16 sps:$4 sm:$0xff]   ;;  %v795_v19 = vld [vmem:[#allocation3 + $0x68] ss:$16 sps:$4 sm:$0xff]  }
  0x14   :  { %447 = vmatprep.subr.bf16.mxu0 %v778_v8  ;;  %488 = vmatprep.subr.bf16.mxu1 %v780_v9  ;;  %v796_v20 = vld [vmem:[#allocation3 + $0x44] ss:$16 sps:$4 sm:$0xff]   ;;  %v798_v21 = vld [vmem:[#allocation3 + $0x4c] ss:$16 sps:$4 sm:$0xff]   ;;  %v800_v22 = vld [vmem:[#allocation3 + $0x40] ss:$16 sps:$4 sm:$0xff]  }
  0x15   :  { %v801_v23 = vld [vmem:[#allocation3 + $0x48] ss:$16 sps:$4 sm:$0xff]   ;;  %v802_v24 = vld [vmem:[#allocation3 + $0x24] ss:$16 sps:$4 sm:$0xff]   ;;  %v804_v25 = vld [vmem:[#allocation3 + $0x2c] ss:$16 sps:$4 sm:$0xff]  }
  0x16   :  { %v806_v26 = vld [vmem:[#allocation3 + $0x20] ss:$16 sps:$4 sm:$0xff]   ;;  %v807_v27 = vld [vmem:[#allocation3 + $0x28] ss:$16 sps:$4 sm:$0xff]   ;;  %v808_v28 = vld [vmem:[#allocation3 + $0x4] ss:$16 sps:$4 sm:$0xff]  }
  0x17   :  { %448 = vmatpush1.bf16.msra.mxu0 %v782_v10  ;;  %489 = vmatpush1.bf16.msra.mxu1 %v783_v11  ;;  %v810_v29 = vld [vmem:[#allocation3 + $0xc] ss:$16 sps:$4 sm:$0xff]   ;;  %v812_v30 = vld [vmem:[#allocation3] ss:$16 sps:$4 sm:$0xff]   ;;  %v813_v31 = vld [vmem:[#allocation3 + $0x8] ss:$16 sps:$4 sm:$0xff]  }
  0x18   :  { %449 = vmatprep.subr.bf16.mxu0 %v784_v12  ;;  %490 = vmatprep.subr.bf16.mxu1 %v786_v13  ;;  %v814_v32 = vld [vmem:[#allocation3 + $0x1e4] ss:$16 sps:$4 sm:$0xff]   ;;  %v816_v33 = vld [vmem:[#allocation3 + $0x1ec] ss:$16 sps:$4 sm:$0xff]   ;;  %v818_v34 = vld [vmem:[#allocation3 + $0x1e0] ss:$16 sps:$4 sm:$0xff]  }
  0x19   :  { %v819_v35 = vld [vmem:[#allocation3 + $0x1e8] ss:$16 sps:$4 sm:$0xff]   ;;  %v820_v36 = vld [vmem:[#allocation3 + $0x1c4] ss:$16 sps:$4 sm:$0xff]   ;;  %v822_v37 = vld [vmem:[#allocation3 + $0x1cc] ss:$16 sps:$4 sm:$0xff]  }
  0x1a   :  { %v824_v38 = vld [vmem:[#allocation3 + $0x1c0] ss:$16 sps:$4 sm:$0xff]   ;;  %v825_v39 = vld [vmem:[#allocation3 + $0x1c8] ss:$16 sps:$4 sm:$0xff]   ;;  %v826_v40 = vld [vmem:[#allocation3 + $0x1a4] ss:$16 sps:$4 sm:$0xff]  }
  0x1b   :  { %450 = vmatpush1.bf16.msra.mxu0 %v788_v14  ;;  %491 = vmatpush1.bf16.msra.mxu1 %v789_v15  ;;  %v828_v41 = vld [vmem:[#allocation3 + $0x1ac] ss:$16 sps:$4 sm:$0xff]   ;;  %v830_v42 = vld [vmem:[#allocation3 + $0x1a0] ss:$16 sps:$4 sm:$0xff]   ;;  %v831_v43 = vld [vmem:[#allocation3 + $0x1a8] ss:$16 sps:$4 sm:$0xff]  }
  0x1c   :  { %451 = vmatprep.subr.bf16.mxu0 %v790_v16  ;;  %492 = vmatprep.subr.bf16.mxu1 %v792_v17  ;;  %v832_v44 = vld [vmem:[#allocation3 + $0x184] ss:$16 sps:$4 sm:$0xff]   ;;  %v834_v45 = vld [vmem:[#allocation3 + $0x18c] ss:$16 sps:$4 sm:$0xff]   ;;  %v836_v48 = vld [vmem:[#allocation3 + $0x180] ss:$16 sps:$4 sm:$0xff]  }
  0x1d   :  { %v51_v46 = vld [vmem:[%s958_s0] sm:$0xff]  ;;  %v837_v49 = vld [vmem:[#allocation3 + $0x188] ss:$16 sps:$4 sm:$0xff]   ;;  %v840_v51 = vld [vmem:[#allocation3 + $0x16c] ss:$16 sps:$4 sm:$0xff]   ;;  %vm922_vm0 = vcmp.lt.s32.totalorder %v41_v3, 512 }
  0x1e   :  { %v692_v47 = vcombine.high %v51_v46, %v51_v46  ;;  %v838_v50 = vld [vmem:[#allocation3 + $0x164] ss:$16 sps:$4 sm:$0xff]   ;;  %v842_v52 = vld [vmem:[#allocation3 + $0x160] ss:$16 sps:$4 sm:$0xff]   ;;  %v843_v53 = vld [vmem:[#allocation3 + $0x168] ss:$16 sps:$4 sm:$0xff]   ;;  %v691_v2 = vcombine.low %v51_v46, %v51_v46 }
  0x1f   :  { %452 = vmatpush1.bf16.msra.mxu0 %v794_v18  ;;  %493 = vmatpush1.bf16.msra.mxu1 %v795_v19  ;;  %v844_v54 = vld [vmem:[#allocation3 + $0x144] ss:$16 sps:$4 sm:$0xff]   ;;  %v846_v55 = vld [vmem:[#allocation3 + $0x14c] ss:$16 sps:$4 sm:$0xff]   ;;  %v848_v56 = vld [vmem:[#allocation3 + $0x140] ss:$16 sps:$4 sm:$0xff]  }
  0x20   :  { %453 = vmatprep.subr.bf16.mxu0 %v796_v20  ;;  %494 = vmatprep.subr.bf16.mxu1 %v798_v21  ;;  %v849_v57 = vld [vmem:[#allocation3 + $0x148] ss:$16 sps:$4 sm:$0xff]   ;;  %v850_v58 = vld [vmem:[#allocation3 + $0x124] ss:$16 sps:$4 sm:$0xff]   ;;  %v852_v59 = vld [vmem:[#allocation3 + $0x12c] ss:$16 sps:$4 sm:$0xff]  }
  0x21   :  { %475 = vmatprep.mubr.bf16.mxu0 %v692_v47  ;;  %516 = vmatprep.mubr.bf16.mxu1 %v692_v47  ;;  %v854_v60 = vld [vmem:[#allocation3 + $0x120] ss:$16 sps:$4 sm:$0xff]   ;;  %v855_v61 = vld [vmem:[#allocation3 + $0x128] ss:$16 sps:$4 sm:$0xff]   ;;  %v856_v62 = vld [vmem:[#allocation3 + $0x104] ss:$16 sps:$4 sm:$0xff]  }
  0x22   :  { %v858_v63 = vld [vmem:[#allocation3 + $0x10c] ss:$16 sps:$4 sm:$0xff]   ;;  %v860_v0 = vld [vmem:[#allocation3 + $0x100] ss:$16 sps:$4 sm:$0xff]   ;;  %v861_v1 = vld [vmem:[#allocation3 + $0x108] ss:$16 sps:$4 sm:$0xff]  }
  0x23   :  { %454 = vmatpush1.bf16.msra.mxu0 %v800_v22  ;;  %495 = vmatpush1.bf16.msra.mxu1 %v801_v23  ;;  %v889_v5 = vmov 0.0   ;;  %v890_v6 = vmov 1966171168  }
  0x24   :  { %455 = vmatprep.subr.bf16.mxu0 %v802_v24  ;;  %496 = vmatprep.subr.bf16.mxu1 %v804_v25  ;;  %45 = vst.msk [vmem:[%s961_s3] sm:$0xf] %vm922_vm0, %v889_v5  ;;  %46 = vst.msk [vmem:[%s962_s4] sm:$0xf] %vm922_vm0, %v889_v5  ;;  %v590_v7 = vunpack.c.l.s4 %v890_v6 }
  0x26   :  { %v591_v15 = vunpack.c.0.s8 %v590_v7 }
  0x27   :  { %456 = vmatpush1.bf16.msra.mxu0 %v806_v26  ;;  %497 = vmatpush1.bf16.msra.mxu1 %v807_v27 }
  0x28   :  { %457 = vmatprep.subr.bf16.mxu0 %v808_v28  ;;  %498 = vmatprep.subr.bf16.mxu1 %v810_v29 }
  0x2b   :  { %458 = vmatpush1.bf16.msra.mxu0 %v812_v30  ;;  %499 = vmatpush1.bf16.msra.mxu1 %v813_v31 }
  0x2c   :  { %459 = vmatprep.subr.bf16.mxu0 %v814_v32  ;;  %500 = vmatprep.subr.bf16.mxu1 %v816_v33 }
  0x2f   :  { %460 = vmatpush2.bf16.msra.mxu0 %v818_v34  ;;  %501 = vmatpush2.bf16.msra.mxu1 %v819_v35 }
  0x30   :  { %461 = vmatprep.subr.bf16.mxu0 %v820_v36  ;;  %502 = vmatprep.subr.bf16.mxu1 %v822_v37 }
  0x33   :  { %462 = vmatpush2.bf16.msra.mxu0 %v824_v38  ;;  %503 = vmatpush2.bf16.msra.mxu1 %v825_v39 }
  0x34   :  { %463 = vmatprep.subr.bf16.mxu0 %v826_v40  ;;  %504 = vmatprep.subr.bf16.mxu1 %v828_v41 }
  0x37   :  { %464 = vmatpush2.bf16.msra.mxu0 %v830_v42  ;;  %505 = vmatpush2.bf16.msra.mxu1 %v831_v43 }
  0x38   :  { %465 = vmatprep.subr.bf16.mxu0 %v832_v44  ;;  %506 = vmatprep.subr.bf16.mxu1 %v834_v45 }
  0x3b   :  { %466 = vmatpush2.bf16.msra.mxu0 %v836_v48  ;;  %507 = vmatpush2.bf16.msra.mxu1 %v837_v49  ;;  %v593_v48 = vshrl.u32 %v41_v3, 7 }
  0x3c   :  { %467 = vmatprep.subr.bf16.mxu0 %v838_v50  ;;  %508 = vmatprep.subr.bf16.mxu1 %v840_v51 }
  0x3f   :  { %468 = vmatpush2.bf16.msra.mxu0 %v842_v52  ;;  %509 = vmatpush2.bf16.msra.mxu1 %v843_v53 }
  0x40   :  { %469 = vmatprep.subr.bf16.mxu0 %v844_v54  ;;  %510 = vmatprep.subr.bf16.mxu1 %v846_v55 }
  0x43   :  { %470 = vmatpush2.bf16.msra.mxu0 %v848_v56  ;;  %511 = vmatpush2.bf16.msra.mxu1 %v849_v57 }
  0x44   :  { %471 = vmatprep.subr.bf16.mxu0 %v850_v58  ;;  %512 = vmatprep.subr.bf16.mxu1 %v852_v59 }
  0x47   :  { %472 = vmatpush2.bf16.msra.mxu0 %v854_v60  ;;  %513 = vmatpush2.bf16.msra.mxu1 %v855_v61  ;;  %v594_v61 = vsub.s32 %v591_v15, %v593_v48 }
  0x48   :  { %473 = vmatprep.subr.bf16.mxu0 %v856_v62  ;;  %514 = vmatprep.subr.bf16.mxu1 %v858_v63 }
  0x4b   :  { %474 = vmatpush2.bf16.msra.mxu0 %v860_v0  ;;  %515 = vmatpush2.bf16.msra.mxu1 %v861_v1 }
  0x4e   :  { %476 = vmatmul.mubr.bf16.vlgmr.msra.gmra.mxu0 %v691_v2  ;;  %517 = vmatmul.mubr.bf16.vlgmr.msra.gmra.mxu1 %v691_v2 }
 0x10e   :  { %v477_v8 = vpop.f32.mrf.mxu0  ;;  %v518_v9 = vpop.f32.mrf.mxu1 }
 0x10f   :  { %v559_v10 = vrot.slane %v477_v8, 4  ;;  %v619_v11 = vmul.f32 %v477_v8, %v477_v8  ;;  %v571_v12 = vrot.slane %v518_v9, 4  ;;  %v621_v13 = vmul.f32 %v518_v9, %v518_v9 }
 0x110   :  { %v479_v14 = vpop.f32.mrf.mxu0  ;;  %v520_v16 = vpop.f32.mrf.mxu1 }
 0x111   :  { %v560_v17 = vadd.f32 %v559_v10, %v477_v8  ;;  %v623_v18 = vrot.slane %v619_v11, 4  ;;  %v572_v19 = vadd.f32 %v571_v12, %v518_v9  ;;  %v635_v20 = vrot.slane %v621_v13, 4 }
 0x112   :  { %v759_v21 = vpack.c.bf16 %v479_v14, %v477_v8  ;;  %v565_v22 = vrot.slane %v479_v14, 4  ;;  %v620_v23 = vmul.f32 %v479_v14, %v479_v14  ;;  %v760_v24 = vpack.c.bf16 %v520_v16, %v518_v9  ;;  %v481_v25 = vpop.f32.mrf.mxu0  ;;  %v522_v26 = vpop.f32.mrf.mxu1 }
 0x113   :  { %v561_v27 = vrot.slane %v560_v17, 2  ;;  %v624_v28 = vadd.f32 %v623_v18, %v619_v11  ;;  %v573_v29 = vrot.slane %v572_v19, 2  ;;  %v636_v30 = vadd.f32 %v635_v20, %v621_v13 }
 0x114   :  { %556 = vst [vmem:[%s960_s2] sm:$0xff] %v759_v21  ;;  %v566_v31 = vadd.f32 %v565_v22, %v479_v14  ;;  %v629_v32 = vrot.slane %v620_v23, 4  ;;  %557 = vst [vmem:[%s960_s2 + $0x8] sm:$0xff] %v760_v24  ;;  %v577_v33 = vrot.slane %v520_v16, 4  ;;  %v622_v34 = vmul.f32 %v520_v16, %v520_v16  ;;  %v482_v35 = vpop.f32.mrf.mxu0  ;;  %v523_v36 = vpop.f32.mrf.mxu1  ;;  %v618_v22 = vld [vmem:[%s962_s4] sm:$0xf] }
 0x115   :  { %v562_v37 = vadd.f32 %v561_v27, %v560_v17  ;;  %v625_v38 = vrot.slane %v624_v28, 2  ;;  %v574_v39 = vadd.f32 %v573_v29, %v572_v19  ;;  %v637_v40 = vrot.slane %v636_v30, 2  ;;  %v558_v19 = vld [vmem:[%s961_s3] sm:$0xf] }
 0x116   :  { %v567_v41 = vrot.slane %v566_v31, 2  ;;  %v630_v42 = vadd.f32 %v629_v32, %v620_v23  ;;  %v578_v43 = vadd.f32 %v577_v33, %v520_v16  ;;  %v641_v44 = vrot.slane %v622_v34, 4 }
 0x117   :  { %v563_v45 = vrot.slane %v562_v37, 1  ;;  %v626_v46 = vadd.f32 %v625_v38, %v624_v28  ;;  %v638_v47 = vadd.f32 %v637_v40, %v636_v30  ;;  %v575_v54 = vrot.slane %v574_v39, 1 }
 0x118   :  { %v568_v49 = vadd.f32 %v567_v41, %v566_v31  ;;  %v631_v50 = vrot.slane %v630_v42, 2  ;;  %v579_v51 = vrot.slane %v578_v43, 2  ;;  %v642_v52 = vadd.f32 %v641_v44, %v622_v34 }
 0x119   :  { %v627_v53 = vrot.slane %v626_v46, 1  ;;  %v564_v59 = vadd.f32 %v563_v45, %v562_v37  ;;  %v639_v60 = vrot.slane %v638_v47, 1  ;;  %v576_v5 = vadd.f32 %v575_v54, %v574_v39 }
 0x11a   :  { %v569_v55 = vrot.slane %v568_v49, 1  ;;  %v632_v56 = vadd.f32 %v631_v50, %v630_v42  ;;  %v580_v57 = vadd.f32 %v579_v51, %v578_v43  ;;  %v643_v58 = vrot.slane %v642_v52, 2 }
 0x11b   :  { %v628_v2 = vadd.f32 %v627_v53, %v626_v46  ;;  %v640_v9 = vadd.f32 %v639_v60, %v638_v47 }
 0x11c   :  { %v570_v62 = vadd.f32 %v569_v55, %v568_v49  ;;  %v633_v63 = vrot.slane %v632_v56, 1  ;;  %v581_v0 = vrot.slane %v580_v57, 1  ;;  %v644_v1 = vadd.f32 %v643_v58, %v642_v52 }
 0x11e   :  { %v587_v3 = vcombine.low %v564_v59, %v570_v62  ;;  %v634_v6 = vadd.f32 %v633_v63, %v632_v56  ;;  %v582_v7 = vadd.f32 %v581_v0, %v580_v57  ;;  %v645_v8 = vrot.slane %v644_v1, 1 }
 0x120   :  { %v595_v10 = vrot.slane %v587_v3, %v594_v61  ;;  %v651_v11 = vcombine.low %v628_v2, %v634_v6  ;;  %v588_v12 = vcombine.low %v576_v5, %v582_v7  ;;  %v646_v13 = vadd.f32 %v645_v8, %v644_v1 }
 0x122   :  { %v659_v14 = vrot.slane %v651_v11, %v594_v61  ;;  %v602_v16 = vrot.slane %v588_v12, %v594_v61  ;;  %v652_v17 = vcombine.low %v640_v9, %v646_v13 }
 0x124   :  { %v603_v18 = vcombine.low %v595_v10, %v602_v16  ;;  %v666_v15 = vrot.slane %v652_v17, %v594_v61 }
 0x126   :  { %v610_v20 = vrot.slane %v603_v18, %v594_v61  ;;  %v667_v21 = vcombine.low %v659_v14, %v666_v15 }
 0x128   :  { %v612_v23 = vadd.f32 %v610_v20, %v558_v19  ;;  %v674_v24 = vrot.slane %v667_v21, %v594_v61 }
 0x12a   :  { %617 = vst.msk [vmem:[%s961_s3] sm:$0xf] %vm922_vm0, %v612_v23  ;;  %v676_v25 = vadd.f32 %v674_v24, %v618_v22 }
 0x12c   :  { %677 = vst.msk [vmem:[%s962_s4] sm:$0xf] %vm922_vm0, %v676_v25 }
 0x12d   :  { %690 = vsyncpa [#allocation4], 1 }

// kernel: cnn_forward.72
= control target key start
LH: loop header
LB: loop body
LE: loop exit
PB: predicated region body
PF: predicated region fallthrough
CT: control target
= control target key end

     0   :  { %s1383_s15 = smov 0   ;;  %s1385_s16 = smov 0   ;;  %s1520_s0 = inlined_call_operand.vmem [shape: bf16[8,2304], index: 0, kind: input, shape index: {}]   ;;  %s1521_s1 = inlined_call_operand.vmem [shape: bf16[2304,512], index: 1, kind: input, shape index: {}]   ;;  %s1522_s2 = inlined_call_operand.vmem [shape: bf16[8,512], index: 2, kind: output, shape index: {0}]   ;;  %s1523_s3 = inlined_call_operand.vmem [shape: f32[1,512], index: 3, kind: output, shape index: {1}]   ;;  %s1524_s4 = inlined_call_operand.vmem [shape: f32[1,512], index: 4, kind: output, shape index: {2}]  }
   0x1   :  { %s1387_s17 = smov 0  }
   0x2 LB: > { %s27_s18 = sadd.s32 1, %s1349_s16  ;;  %p1117_p0 = scmp.ge.s32.totalorder %s1353_s17, 1  ;;  %s1353_s17 = sphi %s1387_s17, %s15_s17   ;;  %s1349_s16 = sphi %s1385_s16, %s1526_s16   ;;  %s1345_s15 = sphi %s1383_s15, %s1525_s15  }
   0x3   : > { %p28_p1 = scmp.ge.s32.totalorder %s27_s18, 9  ;;  %p214_p2 = scmp.lt.s32.totalorder %s1353_s17, 10 }
   0x5   : > { %s1528_s18 = smov (%p28_p1, %s27_s18), 0  ;;  %p215_p3 = pnand %p1117_p0, %p214_p2 }
   0x6   : > { %s1118_s19 = sshll.u32 (!%p215_p3), %s1345_s15, 1  ;;  %s1120_s20 = sshll.u32 (!%p215_p3), %s1345_s15, 5 }
   0x7   : > { %218 = sbr.rel (%p215_p3) target bundleno = 325 (0x145), region = 28  ;;  %p269_p4 = scmp.lt.s32.totalorder (!%p215_p3), %s1118_s19, 17 }
   0x8   : > { %p278_p5 = scmp.lt.s32.totalorder (!%p215_p3), %s1120_s20, 287  ;;  %p308_p6 = scmp.eq.s32.totalorder (!%p215_p3), %s1345_s15, 0 }
   0x9   : > { %p1123_p7 = scmp.ne.s32.totalorder (!%p215_p3), %s1345_s15, 0 }
   0xc   : > { %s1530_s19 = smov (!%p269_p4, %s1118_s19), 17  ;;  %s1532_s20 = smov (!%p278_p5, %s1120_s20), 287 }
   0xd   : > { %s1119_s21 = sshll.u32 %s1530_s19, 2  ;;  %s1202_s25 = sshll.u32 %s1532_s20, 4 }
   0xe   : > { %s1409_s24 = scalar_lea.vmem %s1520_s0, %s1119_s21  ;;  %s1414_s28 = scalar_lea.vmem %s1521_s1, %s1202_s25 }
   0xf   : > { %311 = sbr.rel (%p1123_p7) target bundleno = 23 (0x17), region = 32 }
  0x14   : > { %v1355_v0 = vmov 0.0  }
  0x15   : > { %312 = vst [vmem:[#allocation2 + $0x10] sm:$0xff] %v1355_v0  ;;  %313 = vst [vmem:[#allocation2] sm:$0xff] %v1355_v0 }
  0x16   : > { %314 = vst [vmem:[#allocation2 + $0x18] sm:$0xff] %v1355_v0  ;;  %315 = vst [vmem:[#allocation2 + $0x8] sm:$0xff] %v1355_v0 }
  0x17 PF: > { %320 = sbr.rel (!%p308_p6) target bundleno = 28 (0x1c), region = 36  ;;  %v321_v1 = vlaneseq (%p308_p6)  ;;  %v1356_v2 = vmov (%p308_p6), 0.0  }
  0x19   : > { %vm323_vm0 = vcmp.lt.s32.totalorder (%p308_p6), %v321_v1, 512 }
  0x1a   : > { %325 = vst.msk [vmem:[%s1523_s3] sm:$0xf] (%p308_p6), %vm323_vm0, %v1356_v2  ;;  %326 = vst.msk [vmem:[%s1524_s4] sm:$0xf] (%p308_p6), %vm323_vm0, %v1356_v2 }
  0x1c PF: > { %v1233_v3 = vld [vmem:[%s1414_s28 + $0xe4] ss:$16 sps:$4 sm:$0xff]   ;;  %v1235_v4 = vld [vmem:[%s1414_s28 + $0xec] ss:$16 sps:$4 sm:$0xff]   ;;  %v1237_v5 = vld [vmem:[%s1414_s28 + $0xe0] ss:$16 sps:$4 sm:$0xff]  }
  0x1d   : > { %723 = vmatprep.subr.bf16.mxu0 %v1233_v3  ;;  %v1238_v6 = vld [vmem:[%s1414_s28 + $0xe8] ss:$16 sps:$4 sm:$0xff]   ;;  %764 = vmatprep.subr.bf16.mxu1 %v1235_v4  ;;  %v1239_v7 = vld [vmem:[%s1414_s28 + $0xc4] ss:$16 sps:$4 sm:$0xff]   ;;  %v1241_v8 = vld [vmem:[%s1414_s28 + $0xcc] ss:$16 sps:$4 sm:$0xff]  }
  0x1e   : > { %724 = vmatpush1.bf16.msra.mxu0 %v1237_v5  ;;  %765 = vmatpush1.bf16.msra.mxu1 %v1238_v6  ;;  %v1243_v9 = vld [vmem:[%s1414_s28 + $0xc0] ss:$16 sps:$4 sm:$0xff]   ;;  %v1244_v10 = vld [vmem:[%s1414_s28 + $0xc8] ss:$16 sps:$4 sm:$0xff]   ;;  %v1245_v11 = vld [vmem:[%s1414_s28 + $0xa4] ss:$16 sps:$4 sm:$0xff]  }
  0x1f   : > { %725 = vmatprep.subr.bf16.mxu0 %v1239_v7  ;;  %766 = vmatprep.subr.bf16.mxu1 %v1241_v8  ;;  %v1247_v12 = vld [vmem:[%s1414_s28 + $0xac] ss:$16 sps:$4 sm:$0xff]   ;;  %v1249_v13 = vld [vmem:[%s1414_s28 + $0xa0] ss:$16 sps:$4 sm:$0xff]   ;;  %v1250_v14 = vld [vmem:[%s1414_s28 + $0xa8] ss:$16 sps:$4 sm:$0xff]  }
  0x20   : > { %v1251_v15 = vld [vmem:[%s1414_s28 + $0x84] ss:$16 sps:$4 sm:$0xff]   ;;  %v1253_v16 = vld [vmem:[%s1414_s28 + $0x8c] ss:$16 sps:$4 sm:$0xff]   ;;  %v1255_v17 = vld [vmem:[%s1414_s28 + $0x80] ss:$16 sps:$4 sm:$0xff]  }
  0x21   : > { %v1256_v18 = vld [vmem:[%s1414_s28 + $0x88] ss:$16 sps:$4 sm:$0xff]   ;;  %v1257_v19 = vld [vmem:[%s1414_s28 + $0x64] ss:$16 sps:$4 sm:$0xff]   ;;  %v1259_v20 = vld [vmem:[%s1414_s28 + $0x6c] ss:$16 sps:$4 sm:$0xff]  }
  0x22   : > { %726 = vmatpush1.bf16.msra.mxu0 %v1243_v9  ;;  %767 = vmatpush1.bf16.msra.mxu1 %v1244_v10  ;;  %v1261_v21 = vld [vmem:[%s1414_s28 + $0x60] ss:$16 sps:$4 sm:$0xff]   ;;  %v1262_v22 = vld [vmem:[%s1414_s28 + $0x68] ss:$16 sps:$4 sm:$0xff]   ;;  %v1263_v23 = vld [vmem:[%s1414_s28 + $0x44] ss:$16 sps:$4 sm:$0xff]  }
  0x23   : > { %727 = vmatprep.subr.bf16.mxu0 %v1245_v11  ;;  %768 = vmatprep.subr.bf16.mxu1 %v1247_v12  ;;  %v1265_v24 = vld [vmem:[%s1414_s28 + $0x4c] ss:$16 sps:$4 sm:$0xff]   ;;  %v1267_v25 = vld [vmem:[%s1414_s28 + $0x40] ss:$16 sps:$4 sm:$0xff]   ;;  %v1268_v26 = vld [vmem:[%s1414_s28 + $0x48] ss:$16 sps:$4 sm:$0xff]  }
  0x24   : > { %v1269_v27 = vld [vmem:[%s1414_s28 + $0x24] ss:$16 sps:$4 sm:$0xff]   ;;  %v1271_v28 = vld [vmem:[%s1414_s28 + $0x2c] ss:$16 sps:$4 sm:$0xff]   ;;  %v1273_v29 = vld [vmem:[%s1414_s28 + $0x20] ss:$16 sps:$4 sm:$0xff]  }
  0x25   : > { %v1274_v30 = vld [vmem:[%s1414_s28 + $0x28] ss:$16 sps:$4 sm:$0xff]   ;;  %v1275_v31 = vld [vmem:[%s1414_s28 + $0x4] ss:$16 sps:$4 sm:$0xff]   ;;  %v1277_v32 = vld [vmem:[%s1414_s28 + $0xc] ss:$16 sps:$4 sm:$0xff]  }
  0x26   : > { %728 = vmatpush1.bf16.msra.mxu0 %v1249_v13  ;;  %769 = vmatpush1.bf16.msra.mxu1 %v1250_v14  ;;  %v1279_v33 = vld [vmem:[%s1414_s28] ss:$16 sps:$4 sm:$0xff]   ;;  %v1280_v34 = vld [vmem:[%s1414_s28 + $0x8] ss:$16 sps:$4 sm:$0xff]   ;;  %v1281_v35 = vld [vmem:[%s1414_s28 + $0x1e4] ss:$16 sps:$4 sm:$0xff]  }
  0x27   : > { %729 = vmatprep.subr.bf16.mxu0 %v1251_v15  ;;  %770 = vmatprep.subr.bf16.mxu1 %v1253_v16  ;;  %v1283_v36 = vld [vmem:[%s1414_s28 + $0x1ec] ss:$16 sps:$4 sm:$0xff]   ;;  %v1285_v37 = vld [vmem:[%s1414_s28 + $0x1e0] ss:$16 sps:$4 sm:$0xff]   ;;  %v1286_v38 = vld [vmem:[%s1414_s28 + $0x1e8] ss:$16 sps:$4 sm:$0xff]  }
  0x28   : > { %v1287_v39 = vld [vmem:[%s1414_s28 + $0x1c4] ss:$16 sps:$4 sm:$0xff]   ;;  %v1289_v40 = vld [vmem:[%s1414_s28 + $0x1cc] ss:$16 sps:$4 sm:$0xff]   ;;  %v1291_v41 = vld [vmem:[%s1414_s28 + $0x1c0] ss:$16 sps:$4 sm:$0xff]  }
  0x29   : > { %v1292_v42 = vld [vmem:[%s1414_s28 + $0x1c8] ss:$16 sps:$4 sm:$0xff]   ;;  %v1293_v43 = vld [vmem:[%s1414_s28 + $0x1a4] ss:$16 sps:$4 sm:$0xff]   ;;  %v1295_v44 = vld [vmem:[%s1414_s28 + $0x1ac] ss:$16 sps:$4 sm:$0xff]  }
  0x2a   : > { %730 = vmatpush1.bf16.msra.mxu0 %v1255_v17  ;;  %771 = vmatpush1.bf16.msra.mxu1 %v1256_v18  ;;  %v1297_v45 = vld [vmem:[%s1414_s28 + $0x1a0] ss:$16 sps:$4 sm:$0xff]   ;;  %v1298_v46 = vld [vmem:[%s1414_s28 + $0x1a8] ss:$16 sps:$4 sm:$0xff]   ;;  %v1299_v47 = vld [vmem:[%s1414_s28 + $0x184] ss:$16 sps:$4 sm:$0xff]  }
  0x2b   : > { %731 = vmatprep.subr.bf16.mxu0 %v1257_v19  ;;  %772 = vmatprep.subr.bf16.mxu1 %v1259_v20  ;;  %v1301_v48 = vld [vmem:[%s1414_s28 + $0x18c] ss:$16 sps:$4 sm:$0xff]   ;;  %v331_v49 = vld [vmem:[%s1409_s24] sm:$0xff]  ;;  %v1304_v52 = vld [vmem:[%s1414_s28 + $0x188] ss:$16 sps:$4 sm:$0xff]   ;;  %p1191_p8 = scmp.ne.s32.totalorder %s1345_s15, 8 }
  0x2c   : > { %v1126_v50 = vcombine.high %v331_v49, %v331_v49  ;;  %v1303_v51 = vld [vmem:[%s1414_s28 + $0x180] ss:$16 sps:$4 sm:$0xff]   ;;  %v1305_v53 = vld [vmem:[%s1414_s28 + $0x164] ss:$16 sps:$4 sm:$0xff]   ;;  %v1307_v54 = vld [vmem:[%s1414_s28 + $0x16c] ss:$16 sps:$4 sm:$0xff]   ;;  %v1125_v5 = vcombine.low %v331_v49, %v331_v49 }
  0x2d   : > { %v1309_v55 = vld [vmem:[%s1414_s28 + $0x160] ss:$16 sps:$4 sm:$0xff]   ;;  %v1310_v56 = vld [vmem:[%s1414_s28 + $0x168] ss:$16 sps:$4 sm:$0xff]   ;;  %v1311_v57 = vld [vmem:[%s1414_s28 + $0x144] ss:$16 sps:$4 sm:$0xff]  }
  0x2e   : > { %732 = vmatpush1.bf16.msra.mxu0 %v1261_v21  ;;  %773 = vmatpush1.bf16.msra.mxu1 %v1262_v22  ;;  %v1313_v58 = vld [vmem:[%s1414_s28 + $0x14c] ss:$16 sps:$4 sm:$0xff]   ;;  %v1315_v59 = vld [vmem:[%s1414_s28 + $0x140] ss:$16 sps:$4 sm:$0xff]   ;;  %v1316_v60 = vld [vmem:[%s1414_s28 + $0x148] ss:$16 sps:$4 sm:$0xff]  }
  0x2f   : > { %733 = vmatprep.subr.bf16.mxu0 %v1263_v23  ;;  %774 = vmatprep.subr.bf16.mxu1 %v1265_v24  ;;  %v1317_v61 = vld [vmem:[%s1414_s28 + $0x124] ss:$16 sps:$4 sm:$0xff]   ;;  %v1319_v62 = vld [vmem:[%s1414_s28 + $0x12c] ss:$16 sps:$4 sm:$0xff]   ;;  %v1321_v63 = vld [vmem:[%s1414_s28 + $0x120] ss:$16 sps:$4 sm:$0xff]  }
  0x30   : > { %755 = vmatprep.mubr.bf16.mxu0 %v1126_v50  ;;  %796 = vmatprep.mubr.bf16.mxu1 %v1126_v50  ;;  %v1322_v0 = vld [vmem:[%s1414_s28 + $0x128] ss:$16 sps:$4 sm:$0xff]   ;;  %v1323_v1 = vld [vmem:[%s1414_s28 + $0x104] ss:$16 sps:$4 sm:$0xff]   ;;  %v1325_v2 = vld [vmem:[%s1414_s28 + $0x10c] ss:$16 sps:$4 sm:$0xff]  }
  0x31   : > { %v1327_v3 = vld [vmem:[%s1414_s28 + $0x100] ss:$16 sps:$4 sm:$0xff]   ;;  %v1328_v4 = vld [vmem:[%s1414_s28 + $0x108] ss:$16 sps:$4 sm:$0xff]  }
  0x32   : > { %734 = vmatpush1.bf16.msra.mxu0 %v1267_v25  ;;  %775 = vmatpush1.bf16.msra.mxu1 %v1268_v26  ;;  %v327_v6 = vld [vmem:[#allocation2 + $0x10] sm:$0xff]  ;;  %v329_v7 = vld [vmem:[#allocation2 + $0x18] sm:$0xff]  ;;  %v328_v10 = vld [vmem:[#allocation2] sm:$0xff] }
  0x33   : > { %735 = vmatprep.subr.bf16.mxu0 %v1269_v27  ;;  %776 = vmatprep.subr.bf16.mxu1 %v1271_v28  ;;  %v330_v11 = vld [vmem:[#allocation2 + $0x8] sm:$0xff] }
  0x36   : > { %736 = vmatpush1.bf16.msra.mxu0 %v1273_v29  ;;  %777 = vmatpush1.bf16.msra.mxu1 %v1274_v30 }
  0x37   : > { %737 = vmatprep.subr.bf16.mxu0 %v1275_v31  ;;  %778 = vmatprep.subr.bf16.mxu1 %v1277_v32 }
  0x3a   : > { %738 = vmatpush1.bf16.msra.mxu0 %v1279_v33  ;;  %779 = vmatpush1.bf16.msra.mxu1 %v1280_v34 }
  0x3b   : > { %739 = vmatprep.subr.bf16.mxu0 %v1281_v35  ;;  %780 = vmatprep.subr.bf16.mxu1 %v1283_v36 }
  0x3e   : > { %740 = vmatpush2.bf16.msra.mxu0 %v1285_v37  ;;  %781 = vmatpush2.bf16.msra.mxu1 %v1286_v38 }
  0x3f   : > { %741 = vmatprep.subr.bf16.mxu0 %v1287_v39  ;;  %782 = vmatprep.subr.bf16.mxu1 %v1289_v40 }
  0x42   : > { %742 = vmatpush2.bf16.msra.mxu0 %v1291_v41  ;;  %783 = vmatpush2.bf16.msra.mxu1 %v1292_v42 }
  0x43   : > { %743 = vmatprep.subr.bf16.mxu0 %v1293_v43  ;;  %784 = vmatprep.subr.bf16.mxu1 %v1295_v44 }
  0x46   : > { %744 = vmatpush2.bf16.msra.mxu0 %v1297_v45  ;;  %785 = vmatpush2.bf16.msra.mxu1 %v1298_v46 }
  0x47   : > { %745 = vmatprep.subr.bf16.mxu0 %v1299_v47  ;;  %786 = vmatprep.subr.bf16.mxu1 %v1301_v48 }
  0x4a   : > { %746 = vmatpush2.bf16.msra.mxu0 %v1303_v51  ;;  %787 = vmatpush2.bf16.msra.mxu1 %v1304_v52 }
  0x4b   : > { %747 = vmatprep.subr.bf16.mxu0 %v1305_v53  ;;  %788 = vmatprep.subr.bf16.mxu1 %v1307_v54 }
  0x4e   : > { %748 = vmatpush2.bf16.msra.mxu0 %v1309_v55  ;;  %789 = vmatpush2.bf16.msra.mxu1 %v1310_v56 }
  0x4f   : > { %749 = vmatprep.subr.bf16.mxu0 %v1311_v57  ;;  %790 = vmatprep.subr.bf16.mxu1 %v1313_v58 }
  0x52   : > { %750 = vmatpush2.bf16.msra.mxu0 %v1315_v59  ;;  %791 = vmatpush2.bf16.msra.mxu1 %v1316_v60 }
  0x53   : > { %751 = vmatprep.subr.bf16.mxu0 %v1317_v61  ;;  %792 = vmatprep.subr.bf16.mxu1 %v1319_v62 }
  0x56   : > { %752 = vmatpush2.bf16.msra.mxu0 %v1321_v63  ;;  %793 = vmatpush2.bf16.msra.mxu1 %v1322_v0 }
  0x57   : > { %753 = vmatprep.subr.bf16.mxu0 %v1323_v1  ;;  %794 = vmatprep.subr.bf16.mxu1 %v1325_v2 }
  0x5a   : > { %754 = vmatpush2.bf16.msra.mxu0 %v1327_v3  ;;  %795 = vmatpush2.bf16.msra.mxu1 %v1328_v4 }
  0x5d   : > { %756 = vmatmul.mubr.bf16.vlgmr.msra.gmra.mxu0 %v1125_v5  ;;  %797 = vmatmul.mubr.bf16.vlgmr.msra.gmra.mxu1 %v1125_v5 }
 0x11d   : > { %v757_v8 = vpop.f32.mrf.mxu0  ;;  %v798_v9 = vpop.f32.mrf.mxu1 }
 0x11e   : > { %v805_v12 = vadd.f32 %v757_v8, %v327_v6  ;;  %v807_v13 = vadd.f32 %v798_v9, %v329_v7 }
 0x11f   : > { %v759_v14 = vpop.f32.mrf.mxu0  ;;  %v800_v15 = vpop.f32.mrf.mxu1  ;;  %816 = sbr.rel (%p1191_p8) target bundleno = 325 (0x145), region = 40 }
 0x120   : > { %809 = vst [vmem:[#allocation2 + $0x10] sm:$0xff] %v805_v12  ;;  %811 = vst [vmem:[#allocation2 + $0x18] sm:$0xff] %v807_v13  ;;  %v806_v16 = vadd.f32 %v759_v14, %v328_v10  ;;  %v808_v17 = vadd.f32 %v800_v15, %v330_v11 }
 0x121   : > { %v761_v18 = vpop.f32.mrf.mxu0  ;;  %v802_v19 = vpop.f32.mrf.mxu1 }
 0x122   : > { %810 = vst [vmem:[#allocation2] sm:$0xff] %v806_v16  ;;  %812 = vst [vmem:[#allocation2 + $0x8] sm:$0xff] %v808_v17 }
 0x123   : > { %v762_v20 = vpop.f32.mrf.mxu0  ;;  %v803_v21 = vpop.f32.mrf.mxu1 }
 0x124   : > { %v873_v25 = vlaneseq  ;;  %v1357_v12 = vmov 1966171168  }
 0x125   : > { %v871_v13 = vunpack.c.l.s4 %v1357_v12 }
 0x126   : > { %v874_v14 = vshrl.u32 %v873_v25, 7  ;;  %vm896_vm1 = vcmp.lt.s32.totalorder %v873_v25, 512 }
 0x127   : > { %v817_v22 = vld [vmem:[#allocation2 + $0x10] sm:$0xff]  ;;  %v819_v24 = vld [vmem:[#allocation2 + $0x18] sm:$0xff]  ;;  %v872_v19 = vunpack.c.0.s8 %v871_v13 }
 0x128   : > { %v840_v27 = vrot.slane %v817_v22, 4  ;;  %v900_v29 = vmul.f32 %v817_v22, %v817_v22  ;;  %v852_v33 = vrot.slane %v819_v24, 4  ;;  %v902_v38 = vmul.f32 %v819_v24, %v819_v24 }
 0x129   : > { %v818_v23 = vld [vmem:[#allocation2] sm:$0xff]  ;;  %v820_v30 = vld [vmem:[#allocation2 + $0x8] sm:$0xff] }
 0x12a   : > { %v1204_v26 = vpack.c.bf16 %v818_v23, %v817_v22  ;;  %v846_v28 = vrot.slane %v818_v23, 4  ;;  %v901_v31 = vmul.f32 %v818_v23, %v818_v23  ;;  %v1205_v32 = vpack.c.bf16 %v820_v30, %v819_v24 }
 0x12b   : > { %v858_v34 = vrot.slane %v820_v30, 4  ;;  %v841_v35 = vadd.f32 %v840_v27, %v817_v22  ;;  %v904_v37 = vrot.slane %v900_v29, 4  ;;  %v853_v40 = vadd.f32 %v852_v33, %v819_v24 }
 0x12c   : > { %837 = vst [vmem:[%s1522_s2] sm:$0xff] %v1204_v26  ;;  %v847_v36 = vadd.f32 %v846_v28, %v818_v23  ;;  %v910_v39 = vrot.slane %v901_v31, 4  ;;  %838 = vst [vmem:[%s1522_s2 + $0x8] sm:$0xff] %v1205_v32  ;;  %v903_v42 = vmul.f32 %v820_v30, %v820_v30  ;;  %v916_v46 = vrot.slane %v902_v38, 4  ;;  %v839_v32 = vld [vmem:[%s1523_s3] sm:$0xf] }
 0x12d   : > { %v859_v41 = vadd.f32 %v858_v34, %v820_v30  ;;  %v842_v43 = vrot.slane %v841_v35, 2  ;;  %v905_v45 = vadd.f32 %v904_v37, %v900_v29  ;;  %v854_v48 = vrot.slane %v853_v40, 2 }
 0x12e   : > { %v848_v44 = vrot.slane %v847_v36, 2  ;;  %v911_v47 = vadd.f32 %v910_v39, %v901_v31  ;;  %v922_v50 = vrot.slane %v903_v42, 4  ;;  %v917_v54 = vadd.f32 %v916_v46, %v902_v38 }
 0x12f   : > { %v860_v49 = vrot.slane %v859_v41, 2  ;;  %v843_v51 = vadd.f32 %v842_v43, %v841_v35  ;;  %v906_v53 = vrot.slane %v905_v45, 2  ;;  %v855_v56 = vadd.f32 %v854_v48, %v853_v40  ;;  %v899_v35 = vld [vmem:[%s1524_s4] sm:$0xf] }
 0x130   : > { %v849_v52 = vadd.f32 %v848_v44, %v847_v36  ;;  %v912_v55 = vrot.slane %v911_v47, 2  ;;  %v923_v58 = vadd.f32 %v922_v50, %v903_v42  ;;  %v918_v62 = vrot.slane %v917_v54, 2 }
 0x131   : > { %v861_v57 = vadd.f32 %v860_v49, %v859_v41  ;;  %v844_v59 = vrot.slane %v843_v51, 1  ;;  %v907_v61 = vadd.f32 %v906_v53, %v905_v45  ;;  %v856_v0 = vrot.slane %v855_v56, 1 }
 0x132   : > { %v850_v60 = vrot.slane %v849_v52, 1  ;;  %v913_v63 = vadd.f32 %v912_v55, %v911_v47  ;;  %v924_v2 = vrot.slane %v923_v58, 2  ;;  %v919_v6 = vadd.f32 %v918_v62, %v917_v54 }
 0x133   : > { %v862_v1 = vrot.slane %v861_v57, 1  ;;  %v845_v3 = vadd.f32 %v844_v59, %v843_v51  ;;  %v908_v5 = vrot.slane %v907_v61, 1  ;;  %v857_v8 = vadd.f32 %v856_v0, %v855_v56 }
 0x134   : > { %v851_v4 = vadd.f32 %v850_v60, %v849_v52  ;;  %v914_v7 = vrot.slane %v913_v63, 1  ;;  %v925_v10 = vadd.f32 %v924_v2, %v923_v58  ;;  %v920_v11 = vrot.slane %v919_v6, 1 }
 0x135   : > { %v863_v9 = vadd.f32 %v862_v1, %v861_v57  ;;  %v909_v17 = vadd.f32 %v908_v5, %v907_v61  ;;  %v875_v23 = vsub.s32 %v872_v19, %v874_v14 }
 0x136   : > { %v926_v15 = vrot.slane %v925_v10, 1  ;;  %v868_v16 = vcombine.low %v845_v3, %v851_v4  ;;  %v915_v20 = vadd.f32 %v914_v7, %v913_v63  ;;  %v921_v21 = vadd.f32 %v920_v11, %v919_v6 }
 0x137   : > { %v869_v18 = vcombine.low %v857_v8, %v863_v9 }
 0x138   : > { %v927_v22 = vadd.f32 %v926_v15, %v925_v10  ;;  %v932_v24 = vcombine.low %v909_v17, %v915_v20  ;;  %v876_v27 = vrot.slane %v868_v16, %v875_v23 }
 0x139   : > { %v883_v28 = vrot.slane %v869_v18, %v875_v23 }
 0x13a   : > { %v933_v26 = vcombine.low %v921_v21, %v927_v22  ;;  %v940_v29 = vrot.slane %v932_v24, %v875_v23 }
 0x13b   : > { %v884_v31 = vcombine.low %v876_v27, %v883_v28 }
 0x13c   : > { %v947_v30 = vrot.slane %v933_v26, %v875_v23 }
 0x13d   : > { %v891_v34 = vrot.slane %v884_v31, %v875_v23 }
 0x13e   : > { %v948_v33 = vcombine.low %v940_v29, %v947_v30 }
 0x13f   : > { %v893_v37 = vadd.f32 %v891_v34, %v839_v32 }
 0x140   : > { %v955_v36 = vrot.slane %v948_v33, %v875_v23 }
 0x141   : > { %898 = vst.msk [vmem:[%s1523_s3] sm:$0xf] %vm896_vm1, %v893_v37 }
 0x142   : > { %v957_v38 = vadd.f32 %v955_v36, %v899_v35 }
 0x144   : > { %958 = vst.msk [vmem:[%s1524_s4] sm:$0xf] %vm896_vm1, %v957_v38 }
 0x145 PF: > { %s15_s17 = sadd.s32 1, %s1353_s17   ;;  %s1525_s15 = smov %s1349_s16 }
 0x146   : > { %p12_p9 = scmp.ge.s32.totalorder %s15_s17, 11   ;;  %s1526_s16 = smov %s1528_s18 }
 0x148   :  { %14 = sbr.rel (!%p12_p9) target bundleno = 2 (0x2), region = 97 }

// kernel: cnn_forward.76
= control target key start
LH: loop header
LB: loop body
LE: loop exit
PB: predicated region body
PF: predicated region fallthrough
CT: control target
= control target key end

     0   :  { %v31_v0 = vlaneseq  ;;  %s238_s0 = inlined_call_operand.vmem [shape: bf16[8,512], index: 0, kind: input, shape index: {}]   ;;  %s239_s1 = inlined_call_operand.vmem [shape: f32[1,512], index: 1, kind: input, shape index: {}]   ;;  %s240_s2 = inlined_call_operand.vmem [shape: f32[1,512], index: 2, kind: input, shape index: {}]   ;;  %s241_s3 = inlined_call_operand.vmem [shape: bf16[8,512], index: 3, kind: input, shape index: {}]   ;;  %s242_s4 = inlined_call_operand.vmem [shape: f32[1,512], index: 4, kind: input, shape index: {}]   ;;  %s243_s5 = inlined_call_operand.vmem [shape: f32[1,512], index: 5, kind: input, shape index: {}]   ;;  %s244_s6 = inlined_call_operand.vmem [shape: bf16[8,512], index: 6, kind: output, shape index: {}]  }
   0x1   :  { %v23_v1 = vld [vmem:[%s238_s0] sm:$0xff]  ;;  %v24_v10 = vld [vmem:[%s238_s0 + $0x8] sm:$0xff] }
   0x2   :  { %v29_v2 = vld [vmem:[%s239_s1] sm:$0xf]  ;;  %v32_v3 = vshrl.u32 %v31_v0, 7  ;;  %v25_v5 = vunpack.c.l.bf16 %v23_v1  ;;  %v26_v6 = vunpack.c.h.bf16 %v23_v1  ;;  %v82_v11 = vld [vmem:[%s241_s3 + $0x8] sm:$0xff]  ;;  %v27_v16 = vunpack.c.l.bf16 %v24_v10 }
   0x3   :  { %v81_v4 = vld [vmem:[%s241_s3] sm:$0xff]  ;;  %v28_v17 = vunpack.c.h.bf16 %v24_v10  ;;  %v85_v20 = vunpack.c.l.bf16 %v82_v11  ;;  %v86_v21 = vunpack.c.h.bf16 %v82_v11 }
   0x4   :  { %v55_v7 = vld [vmem:[%s240_s2] sm:$0xf]  ;;  %v83_v8 = vunpack.c.l.bf16 %v81_v4  ;;  %v84_v9 = vunpack.c.h.bf16 %v81_v4  ;;  %v33_v12 = vsub.s32 0, %v32_v3  ;;  %v37_v13 = vsub.s32 1, %v32_v3 }
   0x5   :  { %v87_v14 = vld [vmem:[%s242_s4] sm:$0xf]  ;;  %v41_v18 = vsub.s32 2, %v32_v3  ;;  %v45_v19 = vsub.s32 3, %v32_v3 }
   0x6   :  { %v117_v15 = vld [vmem:[%s243_s5] sm:$0xf]  ;;  %v34_v22 = vrot.slane %v29_v2, %v33_v12  ;;  %v38_v23 = vrot.slane %v29_v2, %v37_v13  ;;  %v60_v24 = vrot.slane %v55_v7, %v33_v12  ;;  %v64_v25 = vrot.slane %v55_v7, %v37_v13 }
   0x7   :  { %v92_v26 = vrot.slane %v87_v14, %v33_v12  ;;  %v96_v27 = vrot.slane %v87_v14, %v37_v13  ;;  %v122_v28 = vrot.slane %v117_v15, %v33_v12  ;;  %v126_v29 = vrot.slane %v117_v15, %v37_v13 }
   0x8   :  { %v51_v30 = vmul.f32 %v34_v22, %v25_v5  ;;  %v52_v31 = vmul.f32 %v38_v23, %v26_v6  ;;  %v42_v32 = vrot.slane %v29_v2, %v41_v18  ;;  %v46_v33 = vrot.slane %v29_v2, %v45_v19 }
   0x9   :  { %v109_v34 = vmul.f32 %v92_v26, %v83_v8  ;;  %v110_v35 = vmul.f32 %v96_v27, %v84_v9  ;;  %v68_v36 = vrot.slane %v55_v7, %v41_v18  ;;  %v72_v37 = vrot.slane %v55_v7, %v45_v19 }
   0xa   :  { %v77_v38 = vadd.f32 %v60_v24, %v51_v30  ;;  %v78_v39 = vadd.f32 %v64_v25, %v52_v31  ;;  %v53_v40 = vmul.f32 %v42_v32, %v27_v16  ;;  %v54_v41 = vmul.f32 %v46_v33, %v28_v17 }
   0xb   :  { %v100_v42 = vrot.slane %v87_v14, %v41_v18  ;;  %v104_v43 = vrot.slane %v87_v14, %v45_v19  ;;  %v130_v50 = vrot.slane %v117_v15, %v41_v18  ;;  %v134_v51 = vrot.slane %v117_v15, %v45_v19 }
   0xc   :  { %v113_v44 = vadd.f32 %v109_v34, %v77_v38  ;;  %v114_v45 = vadd.f32 %v110_v35, %v78_v39  ;;  %v79_v46 = vadd.f32 %v68_v36, %v53_v40  ;;  %v80_v47 = vadd.f32 %v72_v37, %v54_v41 }
   0xd   :  { %v111_v48 = vmul.f32 %v100_v42, %v85_v20  ;;  %v112_v49 = vmul.f32 %v104_v43, %v86_v21 }
   0xe   :  { %v139_v52 = vadd.f32 %v122_v28, %v113_v44  ;;  %v140_v53 = vadd.f32 %v126_v29, %v114_v45 }
   0xf   :  { %v115_v54 = vadd.f32 %v111_v48, %v79_v46  ;;  %v116_v55 = vadd.f32 %v112_v49, %v80_v47 }
  0x10   :  { %v143_v56 = vmax.f32 %v139_v52, 0.0  ;;  %v144_v57 = vmax.f32 %v140_v53, 0.0 }
  0x11   :  { %v141_v58 = vadd.f32 %v130_v50, %v115_v54  ;;  %v142_v59 = vadd.f32 %v134_v51, %v116_v55 }
  0x12   :  { %v171_v60 = vpack.c.bf16 %v144_v57, %v143_v56 }
  0x13   :  { %v145_v61 = vmax.f32 %v141_v58, 0.0  ;;  %v146_v62 = vmax.f32 %v142_v59, 0.0 }
  0x14   :  { %163 = vst [vmem:[%s244_s6] sm:$0xff] %v171_v60 }
  0x15   :  { %v172_v63 = vpack.c.bf16 %v146_v62, %v145_v61 }
  0x17   :  { %164 = vst [vmem:[%s244_s6 + $0x8] sm:$0xff] %v172_v63 }

// kernel: cnn_forward.80
= control target key start
LH: loop header
LB: loop body
LE: loop exit
PB: predicated region body
PF: predicated region fallthrough
CT: control target
= control target key end

     0   :  { %v26_v0 = vlaneseq  ;;  %v268_v1 = vmov 857870592   ;;  %v269_v14 = vmov 1966171168   ;;  %v270_v32 = vmov 1935823168   ;;  %s311_s0 = inlined_call_operand.vmem [shape: bf16[2,1,512], index: 0, kind: input, shape index: {}]   ;;  %s312_s1 = inlined_call_operand.vmem [shape: f32[1,1,512], index: 1, kind: input, shape index: {}]   ;;  %s313_s2 = inlined_call_operand.vmem [shape: f32[1,1,512], index: 2, kind: input, shape index: {}]   ;;  %s314_s3 = inlined_call_operand.vmem [shape: bf16[2,1,512], index: 3, kind: input, shape index: {}]   ;;  %s315_s4 = inlined_call_operand.vmem [shape: bf16[2,512], index: 4, kind: output, shape index: {}]  }
   0x1   :  { %v24_v2 = vunpack.c.l.s4 %v268_v1  ;;  %v258_v3 = vld [vmem:[%s311_s0] sm:$0xff]   ;;  %v116_v15 = vunpack.c.l.s4 %v269_v14  ;;  %v162_v33 = vunpack.c.l.s4 %v270_v32  ;;  %vm214_vm0 = vcmask 1041409  }
   0x2   :  { %v27_v4 = vshrl.u32 %v26_v0, 7  ;;  %v21_v6 = vld [vmem:[%s312_s1] sm:$0xf]  ;;  %v259_v8 = vunpack.c.l.bf16 %v258_v3  ;;  %v260_v9 = vunpack.c.h.bf16 %v258_v3 }
   0x3   :  { %v25_v5 = vunpack.c.0.s8 %v24_v2  ;;  %v33_v7 = vld [vmem:[%s313_s2] sm:$0xf]  ;;  %v117_v22 = vunpack.c.0.s8 %v116_v15  ;;  %v163_v46 = vunpack.c.0.s8 %v162_v33 }
   0x4   :  { %v262_v11 = vld [vmem:[%s314_s3] sm:$0xff]   ;;  %v59_v25 = vsub.s32 0, %v27_v4  ;;  %v63_v26 = vsub.s32 2, %v27_v4  ;;  %v67_v27 = vsub.s32 4, %v27_v4  ;;  %v71_v28 = vsub.s32 6, %v27_v4 }
   0x5   :  { %v28_v10 = vsub.s32 %v25_v5, %v27_v4  ;;  %v263_v18 = vunpack.c.l.bf16 %v262_v11  ;;  %v264_v19 = vunpack.c.h.bf16 %v262_v11  ;;  %v120_v31 = vsub.s32 %v117_v22, %v27_v4 }
   0x6   :  { %v166_v53 = vsub.s32 %v163_v46, %v27_v4 }
   0x7   :  { %v29_v12 = vrot.slane %v21_v6, %v28_v10  ;;  %v41_v13 = vrot.slane %v33_v7, %v28_v10 }
   0x9   :  { %v31_v16 = vmul.f32 %v259_v8, %v29_v12  ;;  %v32_v17 = vmul.f32 %v260_v9, %v29_v12 }
   0xb   :  { %v43_v20 = vadd.f32 %v41_v13, %v31_v16  ;;  %v44_v21 = vadd.f32 %v41_v13, %v32_v17 }
   0xd   :  { %v49_v23 = vadd.f32 %v263_v18, %v43_v20  ;;  %v50_v24 = vadd.f32 %v264_v19, %v44_v21 }
   0xf   :  { %v51_v29 = vmax.f32 %v49_v23, 0.0  ;;  %v52_v30 = vmax.f32 %v50_v24, 0.0 }
  0x11   :  { %v60_v34 = vrot.slane %v51_v29, %v59_v25  ;;  %v64_v35 = vrot.slane %v51_v29, %v63_v26  ;;  %v68_v36 = vrot.slane %v51_v29, %v67_v27  ;;  %v72_v37 = vrot.slane %v51_v29, %v71_v28 }
  0x12   :  { %v76_v38 = vrot.slane %v52_v30, %v59_v25  ;;  %v80_v39 = vrot.slane %v52_v30, %v63_v26  ;;  %v84_v40 = vrot.slane %v52_v30, %v67_v27  ;;  %v88_v41 = vrot.slane %v52_v30, %v71_v28 }
  0x13   :  { %v252_v42 = vpack.c.bf16 %v64_v35, %v60_v34  ;;  %v253_v43 = vpack.c.bf16 %v72_v37, %v68_v36 }
  0x14   :  { %v254_v44 = vpack.c.bf16 %v80_v39, %v76_v38  ;;  %v255_v45 = vpack.c.bf16 %v88_v41, %v84_v40 }
  0x15   :  { %v121_v47 = vrot.slane %v252_v42, %v120_v31  ;;  %v128_v48 = vrot.slane %v253_v43, %v120_v31 }
  0x16   :  { %v145_v49 = vrot.slane %v254_v44, %v120_v31  ;;  %v152_v50 = vrot.slane %v255_v45, %v120_v31 }
  0x17   :  { %v129_v51 = vcombine.low %v121_v47, %v128_v48 }
  0x18   :  { %v153_v52 = vcombine.low %v145_v49, %v152_v50 }
  0x19   :  { %v136_v54 = vrot.slane %v129_v51, %v120_v31 }
  0x1a   :  { %v160_v55 = vrot.slane %v153_v52, %v120_v31 }
  0x1b   :  { %v167_v56 = vrot.slane %v136_v54, %v166_v53 }
  0x1c   :  { %v189_v57 = vrot.slane %v160_v55, %v166_v53 }
  0x1d   :  { %v168_v58 = vcombine.high %v167_v56, %v167_v56  ;;  %v175_v59 = vrot.slane %v167_v56, %v166_v53 }
  0x1e   :  { %v190_v60 = vcombine.high %v189_v57, %v189_v57  ;;  %v197_v61 = vrot.slane %v189_v57, %v166_v53 }
  0x1f   :  { %v182_v62 = vrot.slane %v168_v58, %v166_v53  ;;  %v205_v63 = vunpack.c.l.b16 %v175_v59  ;;  %v206_v1 = vunpack.c.h.b16 %v175_v59 }
  0x20   :  { %v204_v0 = vrot.slane %v190_v60, %v166_v53  ;;  %v209_v2 = vunpack.c.l.b16 %v197_v61  ;;  %v210_v3 = vunpack.c.h.b16 %v197_v61 }
  0x21   :  { %v207_v5 = vunpack.c.l.b16 %v182_v62  ;;  %v208_v6 = vunpack.c.h.b16 %v182_v62 }
  0x22   :  { %v211_v7 = vunpack.c.l.b16 %v204_v0  ;;  %v212_v8 = vunpack.c.h.b16 %v204_v0  ;;  %v213_v4 = vrot.slane %v209_v2, 7  ;;  %v216_v9 = vrot.slane %v210_v3, 7 }
  0x24   :  { %v215_v10 = vsel %vm214_vm0, %v213_v4, %v205_v63  ;;  %v217_v11 = vsel %vm214_vm0, %v216_v9, %v206_v1  ;;  %v218_v12 = vrot.slane %v211_v7, 7  ;;  %v220_v13 = vrot.slane %v212_v8, 7 }
  0x25   :  { %v222_v14 = vpack.c.b16 %v217_v11, %v215_v10 }
  0x26   :  { %v219_v15 = vsel %vm214_vm0, %v218_v12, %v207_v5  ;;  %v221_v16 = vsel %vm214_vm0, %v220_v13, %v208_v6 }
  0x27   :  { %v223_v17 = vpack.c.b16 %v221_v16, %v219_v15  ;;  %v230_v18 = vrot.slane %v222_v14, %v120_v31 }
  0x29   :  { %v237_v19 = vrot.slane %v223_v17, %v120_v31 }
  0x2b   :  { %v238_v20 = vcombine.low %v230_v18, %v237_v19 }
  0x2d   :  { %256 = vst.sshfl [vmem:[%s315_s4] sm:$0x55 pattern:$0x73625140] %v238_v20 }

// kernel: cnn_forward.74
= control target key start
LH: loop header
LB: loop body
LE: loop exit
PB: predicated region body
PF: predicated region fallthrough
CT: control target
= control target key end

     0   :  { %s2021_s15 = smov 0   ;;  %s2023_s16 = smov 0   ;;  %s2235_s0 = inlined_call_operand.vmem [shape: bf16[8,4608], index: 0, kind: input, shape index: {}]   ;;  %s2236_s1 = inlined_call_operand.vmem [shape: bf16[4608,512], index: 1, kind: input, shape index: {}]   ;;  %s2237_s2 = inlined_call_operand.vmem [shape: bf16[8,512], index: 2, kind: output, shape index: {0}]   ;;  %s2238_s3 = inlined_call_operand.vmem [shape: f32[1,512], index: 3, kind: output, shape index: {1}]   ;;  %s2239_s4 = inlined_call_operand.vmem [shape: f32[1,512], index: 4, kind: output, shape index: {2}]  }
   0x1   :  { %s2025_s17 = smov 0  }
   0x2 LB: > { %s27_s18 = sadd.s32 1, %s1987_s16  ;;  %p1591_p0 = scmp.ge.s32.totalorder %s1991_s17, 1  ;;  %s1991_s17 = sphi %s2025_s17, %s15_s17   ;;  %s1987_s16 = sphi %s2023_s16, %s2241_s16   ;;  %s1983_s15 = sphi %s2021_s15, %s2240_s15  }
   0x3   : > { %p28_p1 = scmp.ge.s32.totalorder %s27_s18, 9  ;;  %p214_p2 = scmp.lt.s32.totalorder %s1991_s17, 10 }
   0x5   : > { %s2243_s18 = smov (%p28_p1, %s27_s18), 0  ;;  %p215_p3 = pnand %p1591_p0, %p214_p2 }
   0x6   : > { %s1592_s19 = sshll.u32 (!%p215_p3), %s1983_s15, 2  ;;  %s1594_s20 = sshll.u32 (!%p215_p3), %s1983_s15, 6 }
   0x7   : > { %218 = sbr.rel (%p215_p3) target bundleno = 390 (0x186), region = 28  ;;  %p269_p4 = scmp.lt.s32.totalorder (!%p215_p3), %s1592_s19, 35 }
   0x8   : > { %p278_p5 = scmp.lt.s32.totalorder (!%p215_p3), %s1594_s20, 575  ;;  %p308_p6 = scmp.eq.s32.totalorder (!%p215_p3), %s1983_s15, 0 }
   0x9   : > { %p1597_p7 = scmp.ne.s32.totalorder (!%p215_p3), %s1983_s15, 0 }
   0xc   : > { %s2245_s19 = smov (!%p269_p4, %s1592_s19), 35  ;;  %s2247_s20 = smov (!%p278_p5, %s1594_s20), 575 }
   0xd   : > { %s1593_s21 = sshll.u32 %s2245_s19, 2  ;;  %s1742_s25 = sshll.u32 %s2247_s20, 4 }
   0xe   : > { %s2047_s24 = scalar_lea.vmem %s2235_s0, %s1593_s21  ;;  %s2052_s28 = scalar_lea.vmem %s2236_s1, %s1742_s25 }
   0xf   : > { %311 = sbr.rel (%p1597_p7) target bundleno = 23 (0x17), region = 32 }
  0x14   : > { %v1993_v0 = vmov 0.0  }
  0x15   : > { %312 = vst [vmem:[#allocation2 + $0x10] sm:$0xff] %v1993_v0  ;;  %313 = vst [vmem:[#allocation2] sm:$0xff] %v1993_v0 }
  0x16   : > { %314 = vst [vmem:[#allocation2 + $0x18] sm:$0xff] %v1993_v0  ;;  %315 = vst [vmem:[#allocation2 + $0x8] sm:$0xff] %v1993_v0 }
  0x17 PF: > { %320 = sbr.rel (!%p308_p6) target bundleno = 28 (0x1c), region = 36  ;;  %v321_v1 = vlaneseq (%p308_p6)  ;;  %v1994_v2 = vmov (%p308_p6), 0.0  }
  0x19   : > { %vm323_vm0 = vcmp.lt.s32.totalorder (%p308_p6), %v321_v1, 512 }
  0x1a   : > { %325 = vst.msk [vmem:[%s2238_s3] sm:$0xf] (%p308_p6), %vm323_vm0, %v1994_v2  ;;  %326 = vst.msk [vmem:[%s2239_s4] sm:$0xf] (%p308_p6), %vm323_vm0, %v1994_v2 }
  0x1c PF: > { %v1773_v3 = vld [vmem:[%s2052_s28 + $0xe4] ss:$16 sps:$4 sm:$0xff]   ;;  %v1777_v5 = vld [vmem:[%s2052_s28 + $0xe0] ss:$16 sps:$4 sm:$0xff]   ;;  %v332_v51 = vld [vmem:[%s2047_s24 + $0x8] sm:$0xff]  ;;  %p1731_p8 = scmp.ne.s32.totalorder %s1983_s15, 8 }
  0x1d   : > { %v1775_v4 = vld [vmem:[%s2052_s28 + $0x2e4] ss:$16 sps:$4 sm:$0xff]   ;;  %1115 = vmatprep.subr.bf16.mxu0 %v1773_v3  ;;  %v1778_v6 = vld [vmem:[%s2052_s28 + $0x2e0] ss:$16 sps:$4 sm:$0xff]   ;;  %v1602_v54 = vcombine.high %v332_v51, %v332_v51 }
  0x1e   : > { %1156 = vmatprep.subr.bf16.mxu1 %v1775_v4  ;;  %v1779_v7 = vld [vmem:[%s2052_s28 + $0xc4] ss:$16 sps:$4 sm:$0xff]   ;;  %1116 = vmatpush1.bf16.msra.mxu0 %v1777_v5  ;;  %v1783_v9 = vld [vmem:[%s2052_s28 + $0xc0] ss:$16 sps:$4 sm:$0xff]  }
  0x1f   : > { %1157 = vmatpush1.bf16.msra.mxu1 %v1778_v6  ;;  %v1781_v8 = vld [vmem:[%s2052_s28 + $0x2c4] ss:$16 sps:$4 sm:$0xff]   ;;  %1117 = vmatprep.subr.bf16.mxu0 %v1779_v7  ;;  %v1784_v10 = vld [vmem:[%s2052_s28 + $0x2c0] ss:$16 sps:$4 sm:$0xff]   ;;  %v1875_v7 = vld [vmem:[%s2052_s28 + $0xec] ss:$16 sps:$4 sm:$0xff]  }
  0x20   : > { %1158 = vmatprep.subr.bf16.mxu1 %v1781_v8  ;;  %v1785_v11 = vld [vmem:[%s2052_s28 + $0xa4] ss:$16 sps:$4 sm:$0xff]   ;;  %v1789_v13 = vld [vmem:[%s2052_s28 + $0xa0] ss:$16 sps:$4 sm:$0xff]   ;;  %1188 = vmatprep.mubr.bf16.mxu1 %v1602_v54  ;;  %v1878_v8 = vld [vmem:[%s2052_s28 + $0x2ec] ss:$16 sps:$4 sm:$0xff]  }
  0x21   : > { %v1787_v12 = vld [vmem:[%s2052_s28 + $0x2a4] ss:$16 sps:$4 sm:$0xff]   ;;  %v1790_v14 = vld [vmem:[%s2052_s28 + $0x2a0] ss:$16 sps:$4 sm:$0xff]  }
  0x22   : > { %1118 = vmatpush1.bf16.msra.mxu0 %v1783_v9  ;;  %v1791_v15 = vld [vmem:[%s2052_s28 + $0x84] ss:$16 sps:$4 sm:$0xff]   ;;  %v1795_v17 = vld [vmem:[%s2052_s28 + $0x80] ss:$16 sps:$4 sm:$0xff]  }
  0x23   : > { %1159 = vmatpush1.bf16.msra.mxu1 %v1784_v10  ;;  %1119 = vmatprep.subr.bf16.mxu0 %v1785_v11  ;;  %v1793_v16 = vld [vmem:[%s2052_s28 + $0x284] ss:$16 sps:$4 sm:$0xff]   ;;  %v1796_v18 = vld [vmem:[%s2052_s28 + $0x280] ss:$16 sps:$4 sm:$0xff]   ;;  %v2136_v10 = vcombine.low %v332_v51, %v332_v51  ;;  %v1873_v11 = vld [vmem:[%s2052_s28 + $0xe8] ss:$16 sps:$4 sm:$0xff]  }
  0x24   : > { %1160 = vmatprep.subr.bf16.mxu1 %v1787_v12  ;;  %v1797_v19 = vld [vmem:[%s2052_s28 + $0x64] ss:$16 sps:$4 sm:$0xff]   ;;  %v1801_v21 = vld [vmem:[%s2052_s28 + $0x60] ss:$16 sps:$4 sm:$0xff]   ;;  %v1876_v12 = vld [vmem:[%s2052_s28 + $0x2e8] ss:$16 sps:$4 sm:$0xff]  }
  0x25   : > { %v1799_v20 = vld [vmem:[%s2052_s28 + $0x264] ss:$16 sps:$4 sm:$0xff]   ;;  %v1802_v22 = vld [vmem:[%s2052_s28 + $0x260] ss:$16 sps:$4 sm:$0xff]   ;;  %v1933_v51 = vld [vmem:[%s2052_s28 + $0x1a8] ss:$16 sps:$4 sm:$0xff]  }
  0x26   : > { %1120 = vmatpush1.bf16.msra.mxu0 %v1789_v13  ;;  %v1803_v23 = vld [vmem:[%s2052_s28 + $0x44] ss:$16 sps:$4 sm:$0xff]   ;;  %v1807_v25 = vld [vmem:[%s2052_s28 + $0x40] ss:$16 sps:$4 sm:$0xff]   ;;  %v1881_v13 = vld [vmem:[%s2052_s28 + $0xcc] ss:$16 sps:$4 sm:$0xff]  }
  0x27   : > { %1161 = vmatpush1.bf16.msra.mxu1 %v1790_v14  ;;  %1121 = vmatprep.subr.bf16.mxu0 %v1791_v15  ;;  %v1805_v24 = vld [vmem:[%s2052_s28 + $0x244] ss:$16 sps:$4 sm:$0xff]   ;;  %v1808_v26 = vld [vmem:[%s2052_s28 + $0x240] ss:$16 sps:$4 sm:$0xff]   ;;  %v1884_v14 = vld [vmem:[%s2052_s28 + $0x2cc] ss:$16 sps:$4 sm:$0xff]  }
  0x28   : > { %1162 = vmatprep.subr.bf16.mxu1 %v1793_v16  ;;  %v1809_v27 = vld [vmem:[%s2052_s28 + $0x24] ss:$16 sps:$4 sm:$0xff]   ;;  %v1813_v29 = vld [vmem:[%s2052_s28 + $0x20] ss:$16 sps:$4 sm:$0xff]   ;;  %v1879_v15 = vld [vmem:[%s2052_s28 + $0xc8] ss:$16 sps:$4 sm:$0xff]  }
  0x29   : > { %v1811_v28 = vld [vmem:[%s2052_s28 + $0x224] ss:$16 sps:$4 sm:$0xff]   ;;  %v1814_v30 = vld [vmem:[%s2052_s28 + $0x220] ss:$16 sps:$4 sm:$0xff]   ;;  %v1882_v16 = vld [vmem:[%s2052_s28 + $0x2c8] ss:$16 sps:$4 sm:$0xff]  }
  0x2a   : > { %1122 = vmatpush1.bf16.msra.mxu0 %v1795_v17  ;;  %v1815_v31 = vld [vmem:[%s2052_s28 + $0x4] ss:$16 sps:$4 sm:$0xff]   ;;  %v1819_v33 = vld [vmem:[%s2052_s28] ss:$16 sps:$4 sm:$0xff]   ;;  %v1887_v17 = vld [vmem:[%s2052_s28 + $0xac] ss:$16 sps:$4 sm:$0xff]  }
  0x2b   : > { %1163 = vmatpush1.bf16.msra.mxu1 %v1796_v18  ;;  %1123 = vmatprep.subr.bf16.mxu0 %v1797_v19  ;;  %v1817_v32 = vld [vmem:[%s2052_s28 + $0x204] ss:$16 sps:$4 sm:$0xff]   ;;  %v1820_v34 = vld [vmem:[%s2052_s28 + $0x200] ss:$16 sps:$4 sm:$0xff]   ;;  %v1890_v18 = vld [vmem:[%s2052_s28 + $0x2ac] ss:$16 sps:$4 sm:$0xff]  }
  0x2c   : > { %1164 = vmatprep.subr.bf16.mxu1 %v1799_v20  ;;  %v1821_v35 = vld [vmem:[%s2052_s28 + $0x1e4] ss:$16 sps:$4 sm:$0xff]   ;;  %v1825_v37 = vld [vmem:[%s2052_s28 + $0x1e0] ss:$16 sps:$4 sm:$0xff]   ;;  %v1885_v19 = vld [vmem:[%s2052_s28 + $0xa8] ss:$16 sps:$4 sm:$0xff]  }
  0x2d   : > { %v1823_v36 = vld [vmem:[%s2052_s28 + $0x3e4] ss:$16 sps:$4 sm:$0xff]   ;;  %v1826_v38 = vld [vmem:[%s2052_s28 + $0x3e0] ss:$16 sps:$4 sm:$0xff]   ;;  %v1888_v20 = vld [vmem:[%s2052_s28 + $0x2a8] ss:$16 sps:$4 sm:$0xff]  }
  0x2e   : > { %1124 = vmatpush1.bf16.msra.mxu0 %v1801_v21  ;;  %v1827_v39 = vld [vmem:[%s2052_s28 + $0x1c4] ss:$16 sps:$4 sm:$0xff]   ;;  %v1831_v41 = vld [vmem:[%s2052_s28 + $0x1c0] ss:$16 sps:$4 sm:$0xff]   ;;  %v1893_v21 = vld [vmem:[%s2052_s28 + $0x8c] ss:$16 sps:$4 sm:$0xff]  }
  0x2f   : > { %1165 = vmatpush1.bf16.msra.mxu1 %v1802_v22  ;;  %1125 = vmatprep.subr.bf16.mxu0 %v1803_v23  ;;  %v1829_v40 = vld [vmem:[%s2052_s28 + $0x3c4] ss:$16 sps:$4 sm:$0xff]   ;;  %v1832_v42 = vld [vmem:[%s2052_s28 + $0x3c0] ss:$16 sps:$4 sm:$0xff]   ;;  %v1896_v22 = vld [vmem:[%s2052_s28 + $0x28c] ss:$16 sps:$4 sm:$0xff]  }
  0x30   : > { %1166 = vmatprep.subr.bf16.mxu1 %v1805_v24  ;;  %v1833_v43 = vld [vmem:[%s2052_s28 + $0x1a4] ss:$16 sps:$4 sm:$0xff]   ;;  %v1837_v45 = vld [vmem:[%s2052_s28 + $0x1a0] ss:$16 sps:$4 sm:$0xff]   ;;  %v1891_v23 = vld [vmem:[%s2052_s28 + $0x88] ss:$16 sps:$4 sm:$0xff]  }
  0x31   : > { %v1835_v44 = vld [vmem:[%s2052_s28 + $0x3a4] ss:$16 sps:$4 sm:$0xff]   ;;  %v1838_v46 = vld [vmem:[%s2052_s28 + $0x3a0] ss:$16 sps:$4 sm:$0xff]   ;;  %v1894_v24 = vld [vmem:[%s2052_s28 + $0x288] ss:$16 sps:$4 sm:$0xff]  }
  0x32   : > { %1126 = vmatpush1.bf16.msra.mxu0 %v1807_v25  ;;  %v1839_v47 = vld [vmem:[%s2052_s28 + $0x184] ss:$16 sps:$4 sm:$0xff]   ;;  %v1843_v52 = vld [vmem:[%s2052_s28 + $0x180] ss:$16 sps:$4 sm:$0xff]   ;;  %v1899_v25 = vld [vmem:[%s2052_s28 + $0x6c] ss:$16 sps:$4 sm:$0xff]  }
  0x33   : > { %1167 = vmatpush1.bf16.msra.mxu1 %v1808_v26  ;;  %1127 = vmatprep.subr.bf16.mxu0 %v1809_v27  ;;  %v1841_v48 = vld [vmem:[%s2052_s28 + $0x384] ss:$16 sps:$4 sm:$0xff]   ;;  %v1844_v53 = vld [vmem:[%s2052_s28 + $0x380] ss:$16 sps:$4 sm:$0xff]   ;;  %v1902_v26 = vld [vmem:[%s2052_s28 + $0x26c] ss:$16 sps:$4 sm:$0xff]  }
  0x34   : > { %1168 = vmatprep.subr.bf16.mxu1 %v1811_v28  ;;  %v331_v49 = vld [vmem:[%s2047_s24] sm:$0xff]  ;;  %v1897_v27 = vld [vmem:[%s2052_s28 + $0x68] ss:$16 sps:$4 sm:$0xff]  }
  0x35   : > { %v2110_v50 = vcombine.high %v331_v49, %v331_v49  ;;  %v1845_v55 = vld [vmem:[%s2052_s28 + $0x164] ss:$16 sps:$4 sm:$0xff]   ;;  %v1849_v57 = vld [vmem:[%s2052_s28 + $0x160] ss:$16 sps:$4 sm:$0xff]   ;;  %v2134_v9 = vcombine.low %v331_v49, %v331_v49  ;;  %v1900_v28 = vld [vmem:[%s2052_s28 + $0x268] ss:$16 sps:$4 sm:$0xff]  }
  0x36   : > { %1128 = vmatpush1.bf16.msra.mxu0 %v1813_v29  ;;  %v1847_v56 = vld [vmem:[%s2052_s28 + $0x364] ss:$16 sps:$4 sm:$0xff]   ;;  %v1850_v58 = vld [vmem:[%s2052_s28 + $0x360] ss:$16 sps:$4 sm:$0xff]   ;;  %v1905_v29 = vld [vmem:[%s2052_s28 + $0x4c] ss:$16 sps:$4 sm:$0xff]  }
  0x37   : > { %1169 = vmatpush1.bf16.msra.mxu1 %v1814_v30  ;;  %1129 = vmatprep.subr.bf16.mxu0 %v1815_v31  ;;  %v1851_v59 = vld [vmem:[%s2052_s28 + $0x144] ss:$16 sps:$4 sm:$0xff]   ;;  %v1855_v61 = vld [vmem:[%s2052_s28 + $0x140] ss:$16 sps:$4 sm:$0xff]   ;;  %v1908_v30 = vld [vmem:[%s2052_s28 + $0x24c] ss:$16 sps:$4 sm:$0xff]  }
  0x38   : > { %1170 = vmatprep.subr.bf16.mxu1 %v1817_v32  ;;  %1147 = vmatprep.mubr.bf16.mxu0 %v2110_v50  ;;  %v1853_v60 = vld [vmem:[%s2052_s28 + $0x344] ss:$16 sps:$4 sm:$0xff]   ;;  %v1856_v62 = vld [vmem:[%s2052_s28 + $0x340] ss:$16 sps:$4 sm:$0xff]   ;;  %v1903_v31 = vld [vmem:[%s2052_s28 + $0x48] ss:$16 sps:$4 sm:$0xff]  }
  0x39   : > { %v1857_v63 = vld [vmem:[%s2052_s28 + $0x124] ss:$16 sps:$4 sm:$0xff]   ;;  %v1861_v1 = vld [vmem:[%s2052_s28 + $0x120] ss:$16 sps:$4 sm:$0xff]   ;;  %v1906_v32 = vld [vmem:[%s2052_s28 + $0x248] ss:$16 sps:$4 sm:$0xff]  }
  0x3a   : > { %1130 = vmatpush1.bf16.msra.mxu0 %v1819_v33  ;;  %v1859_v0 = vld [vmem:[%s2052_s28 + $0x324] ss:$16 sps:$4 sm:$0xff]   ;;  %v1862_v2 = vld [vmem:[%s2052_s28 + $0x320] ss:$16 sps:$4 sm:$0xff]   ;;  %v1911_v33 = vld [vmem:[%s2052_s28 + $0x2c] ss:$16 sps:$4 sm:$0xff]  }
  0x3b   : > { %1171 = vmatpush1.bf16.msra.mxu1 %v1820_v34  ;;  %1131 = vmatprep.subr.bf16.mxu0 %v1821_v35  ;;  %v1863_v3 = vld [vmem:[%s2052_s28 + $0x104] ss:$16 sps:$4 sm:$0xff]   ;;  %v1867_v5 = vld [vmem:[%s2052_s28 + $0x100] ss:$16 sps:$4 sm:$0xff]   ;;  %v1914_v34 = vld [vmem:[%s2052_s28 + $0x22c] ss:$16 sps:$4 sm:$0xff]  }
  0x3c   : > { %1172 = vmatprep.subr.bf16.mxu1 %v1823_v36  ;;  %v1865_v4 = vld [vmem:[%s2052_s28 + $0x304] ss:$16 sps:$4 sm:$0xff]   ;;  %v1868_v6 = vld [vmem:[%s2052_s28 + $0x300] ss:$16 sps:$4 sm:$0xff]   ;;  %v1909_v35 = vld [vmem:[%s2052_s28 + $0x28] ss:$16 sps:$4 sm:$0xff]  }
  0x3d   : > { %v1912_v36 = vld [vmem:[%s2052_s28 + $0x228] ss:$16 sps:$4 sm:$0xff]   ;;  %v1935_v49 = vld [vmem:[%s2052_s28 + $0x1ac] ss:$16 sps:$4 sm:$0xff]  }
  0x3e   : > { %1132 = vmatpush2.bf16.msra.mxu0 %v1825_v37  ;;  %v1917_v37 = vld [vmem:[%s2052_s28 + $0xc] ss:$16 sps:$4 sm:$0xff]  }
  0x3f   : > { %1173 = vmatpush2.bf16.msra.mxu1 %v1826_v38  ;;  %1133 = vmatprep.subr.bf16.mxu0 %v1827_v39  ;;  %v1920_v38 = vld [vmem:[%s2052_s28 + $0x20c] ss:$16 sps:$4 sm:$0xff]   ;;  %v1915_v39 = vld [vmem:[%s2052_s28 + $0x8] ss:$16 sps:$4 sm:$0xff]  }
  0x40   : > { %1174 = vmatprep.subr.bf16.mxu1 %v1829_v40  ;;  %v1918_v40 = vld [vmem:[%s2052_s28 + $0x208] ss:$16 sps:$4 sm:$0xff]  }
  0x42   : > { %1134 = vmatpush2.bf16.msra.mxu0 %v1831_v41  ;;  %v1923_v41 = vld [vmem:[%s2052_s28 + $0x1ec] ss:$16 sps:$4 sm:$0xff]  }
  0x43   : > { %1175 = vmatpush2.bf16.msra.mxu1 %v1832_v42  ;;  %1135 = vmatprep.subr.bf16.mxu0 %v1833_v43  ;;  %v1926_v42 = vld [vmem:[%s2052_s28 + $0x3ec] ss:$16 sps:$4 sm:$0xff]   ;;  %v1921_v43 = vld [vmem:[%s2052_s28 + $0x1e8] ss:$16 sps:$4 sm:$0xff]  }
  0x44   : > { %1176 = vmatprep.subr.bf16.mxu1 %v1835_v44  ;;  %v1924_v44 = vld [vmem:[%s2052_s28 + $0x3e8] ss:$16 sps:$4 sm:$0xff]  }
  0x46   : > { %1136 = vmatpush2.bf16.msra.mxu0 %v1837_v45  ;;  %v1929_v45 = vld [vmem:[%s2052_s28 + $0x1cc] ss:$16 sps:$4 sm:$0xff]  }
  0x47   : > { %1177 = vmatpush2.bf16.msra.mxu1 %v1838_v46  ;;  %1137 = vmatprep.subr.bf16.mxu0 %v1839_v47  ;;  %v1932_v46 = vld [vmem:[%s2052_s28 + $0x3cc] ss:$16 sps:$4 sm:$0xff]   ;;  %v1927_v47 = vld [vmem:[%s2052_s28 + $0x1c8] ss:$16 sps:$4 sm:$0xff]  }
  0x48   : > { %1178 = vmatprep.subr.bf16.mxu1 %v1841_v48  ;;  %v1930_v48 = vld [vmem:[%s2052_s28 + $0x3c8] ss:$16 sps:$4 sm:$0xff]  }
  0x4a   : > { %1138 = vmatpush2.bf16.msra.mxu0 %v1843_v52  ;;  %v1936_v52 = vld [vmem:[%s2052_s28 + $0x3a8] ss:$16 sps:$4 sm:$0xff]  }
  0x4b   : > { %1179 = vmatpush2.bf16.msra.mxu1 %v1844_v53  ;;  %1139 = vmatprep.subr.bf16.mxu0 %v1845_v55  ;;  %v1941_v53 = vld [vmem:[%s2052_s28 + $0x18c] ss:$16 sps:$4 sm:$0xff]   ;;  %v1939_v55 = vld [vmem:[%s2052_s28 + $0x188] ss:$16 sps:$4 sm:$0xff]  }
  0x4c   : > { %1180 = vmatprep.subr.bf16.mxu1 %v1847_v56  ;;  %v1942_v56 = vld [vmem:[%s2052_s28 + $0x388] ss:$16 sps:$4 sm:$0xff]  }
  0x4e   : > { %1140 = vmatpush2.bf16.msra.mxu0 %v1849_v57  ;;  %v1947_v57 = vld [vmem:[%s2052_s28 + $0x16c] ss:$16 sps:$4 sm:$0xff]  }
  0x4f   : > { %1181 = vmatpush2.bf16.msra.mxu1 %v1850_v58  ;;  %1141 = vmatprep.subr.bf16.mxu0 %v1851_v59  ;;  %v1950_v58 = vld [vmem:[%s2052_s28 + $0x36c] ss:$16 sps:$4 sm:$0xff]   ;;  %v1945_v59 = vld [vmem:[%s2052_s28 + $0x168] ss:$16 sps:$4 sm:$0xff]  }
  0x50   : > { %1182 = vmatprep.subr.bf16.mxu1 %v1853_v60  ;;  %v1948_v60 = vld [vmem:[%s2052_s28 + $0x368] ss:$16 sps:$4 sm:$0xff]  }
  0x52   : > { %1142 = vmatpush2.bf16.msra.mxu0 %v1855_v61  ;;  %v1953_v61 = vld [vmem:[%s2052_s28 + $0x14c] ss:$16 sps:$4 sm:$0xff]  }
  0x53   : > { %1183 = vmatpush2.bf16.msra.mxu1 %v1856_v62  ;;  %1143 = vmatprep.subr.bf16.mxu0 %v1857_v63  ;;  %v1956_v62 = vld [vmem:[%s2052_s28 + $0x34c] ss:$16 sps:$4 sm:$0xff]   ;;  %v1951_v63 = vld [vmem:[%s2052_s28 + $0x148] ss:$16 sps:$4 sm:$0xff]  }
  0x54   : > { %1184 = vmatprep.subr.bf16.mxu1 %v1859_v0  ;;  %v1954_v0 = vld [vmem:[%s2052_s28 + $0x348] ss:$16 sps:$4 sm:$0xff]  }
  0x56   : > { %1144 = vmatpush2.bf16.msra.mxu0 %v1861_v1  ;;  %v1959_v1 = vld [vmem:[%s2052_s28 + $0x12c] ss:$16 sps:$4 sm:$0xff]  }
  0x57   : > { %1185 = vmatpush2.bf16.msra.mxu1 %v1862_v2  ;;  %1145 = vmatprep.subr.bf16.mxu0 %v1863_v3  ;;  %v1962_v2 = vld [vmem:[%s2052_s28 + $0x32c] ss:$16 sps:$4 sm:$0xff]   ;;  %v1957_v3 = vld [vmem:[%s2052_s28 + $0x128] ss:$16 sps:$4 sm:$0xff]  }
  0x58   : > { %1186 = vmatprep.subr.bf16.mxu1 %v1865_v4  ;;  %v1960_v4 = vld [vmem:[%s2052_s28 + $0x328] ss:$16 sps:$4 sm:$0xff]  }
  0x5a   : > { %1146 = vmatpush2.bf16.msra.mxu0 %v1867_v5  ;;  %v1965_v5 = vld [vmem:[%s2052_s28 + $0x10c] ss:$16 sps:$4 sm:$0xff]  }
  0x5b   : > { %1187 = vmatpush2.bf16.msra.mxu1 %v1868_v6  ;;  %1197 = vmatprep.subr.bf16.mxu0 %v1875_v7  ;;  %v1968_v6 = vld [vmem:[%s2052_s28 + $0x30c] ss:$16 sps:$4 sm:$0xff]   ;;  %v1963_v7 = vld [vmem:[%s2052_s28 + $0x108] ss:$16 sps:$4 sm:$0xff]  }
  0x5c   : > { %1238 = vmatprep.subr.bf16.mxu1 %v1878_v8  ;;  %v1966_v8 = vld [vmem:[%s2052_s28 + $0x308] ss:$16 sps:$4 sm:$0xff]  }
  0x5d   : > { %1148 = vmatmul.mubr.bf16.vlgmr.msra.gmra.mxu0 %v2134_v9 }
  0x5e   : > { %1189 = vmatmul.mubr.bf16.vlgmr.msra.gmra.mxu1 %v2136_v10  ;;  %1198 = vmatpush1.bf16.msra.mxu0 %v1873_v11 }
  0x5f   : > { %1239 = vmatpush1.bf16.msra.mxu1 %v1876_v12  ;;  %1199 = vmatprep.subr.bf16.mxu0 %v1881_v13  ;;  %v327_v12 = vld [vmem:[#allocation2 + $0x10] sm:$0xff] }
  0x60   : > { %1240 = vmatprep.subr.bf16.mxu1 %v1884_v14  ;;  %1229 = vmatprep.mubr.bf16.mxu0 %v2110_v50  ;;  %v1938_v50 = vld [vmem:[%s2052_s28 + $0x3ac] ss:$16 sps:$4 sm:$0xff]  }
  0x61   : > { %1270 = vmatprep.mubr.bf16.mxu1 %v1602_v54  ;;  %v1944_v54 = vld [vmem:[%s2052_s28 + $0x38c] ss:$16 sps:$4 sm:$0xff]  }
  0x62   : > { %1200 = vmatpush1.bf16.msra.mxu0 %v1879_v15 }
  0x63   : > { %1241 = vmatpush1.bf16.msra.mxu1 %v1882_v16  ;;  %1201 = vmatprep.subr.bf16.mxu0 %v1887_v17  ;;  %v328_v16 = vld [vmem:[#allocation2] sm:$0xff] }
  0x64   : > { %1242 = vmatprep.subr.bf16.mxu1 %v1890_v18 }
  0x66   : > { %1202 = vmatpush1.bf16.msra.mxu0 %v1885_v19 }
  0x67   : > { %1243 = vmatpush1.bf16.msra.mxu1 %v1888_v20  ;;  %1203 = vmatprep.subr.bf16.mxu0 %v1893_v21 }
  0x68   : > { %1244 = vmatprep.subr.bf16.mxu1 %v1896_v22 }
  0x6a   : > { %1204 = vmatpush1.bf16.msra.mxu0 %v1891_v23 }
  0x6b   : > { %1245 = vmatpush1.bf16.msra.mxu1 %v1894_v24  ;;  %1205 = vmatprep.subr.bf16.mxu0 %v1899_v25 }
  0x6c   : > { %1246 = vmatprep.subr.bf16.mxu1 %v1902_v26 }
  0x6e   : > { %1206 = vmatpush1.bf16.msra.mxu0 %v1897_v27 }
  0x6f   : > { %1247 = vmatpush1.bf16.msra.mxu1 %v1900_v28  ;;  %1207 = vmatprep.subr.bf16.mxu0 %v1905_v29  ;;  %v330_v28 = vld [vmem:[#allocation2 + $0x8] sm:$0xff] }
  0x70   : > { %1248 = vmatprep.subr.bf16.mxu1 %v1908_v30 }
  0x72   : > { %1208 = vmatpush1.bf16.msra.mxu0 %v1903_v31 }
  0x73   : > { %1249 = vmatpush1.bf16.msra.mxu1 %v1906_v32  ;;  %1209 = vmatprep.subr.bf16.mxu0 %v1911_v33 }
  0x74   : > { %1250 = vmatprep.subr.bf16.mxu1 %v1914_v34 }
  0x76   : > { %1210 = vmatpush1.bf16.msra.mxu0 %v1909_v35 }
  0x77   : > { %1251 = vmatpush1.bf16.msra.mxu1 %v1912_v36  ;;  %1211 = vmatprep.subr.bf16.mxu0 %v1917_v37 }
  0x78   : > { %1252 = vmatprep.subr.bf16.mxu1 %v1920_v38 }
  0x7a   : > { %1212 = vmatpush1.bf16.msra.mxu0 %v1915_v39 }
  0x7b   : > { %1253 = vmatpush1.bf16.msra.mxu1 %v1918_v40  ;;  %1213 = vmatprep.subr.bf16.mxu0 %v1923_v41 }
  0x7c   : > { %1254 = vmatprep.subr.bf16.mxu1 %v1926_v42 }
  0x7e   : > { %1214 = vmatpush2.bf16.msra.mxu0 %v1921_v43 }
  0x7f   : > { %1255 = vmatpush2.bf16.msra.mxu1 %v1924_v44  ;;  %1215 = vmatprep.subr.bf16.mxu0 %v1929_v45 }
  0x80   : > { %1256 = vmatprep.subr.bf16.mxu1 %v1932_v46 }
  0x82   : > { %1216 = vmatpush2.bf16.msra.mxu0 %v1927_v47 }
  0x83   : > { %1257 = vmatpush2.bf16.msra.mxu1 %v1930_v48  ;;  %1217 = vmatprep.subr.bf16.mxu0 %v1935_v49 }
  0x84   : > { %1258 = vmatprep.subr.bf16.mxu1 %v1938_v50 }
  0x86   : > { %1218 = vmatpush2.bf16.msra.mxu0 %v1933_v51 }
  0x87   : > { %1259 = vmatpush2.bf16.msra.mxu1 %v1936_v52  ;;  %1219 = vmatprep.subr.bf16.mxu0 %v1941_v53 }
  0x88   : > { %1260 = vmatprep.subr.bf16.mxu1 %v1944_v54 }
  0x8a   : > { %1220 = vmatpush2.bf16.msra.mxu0 %v1939_v55 }
  0x8b   : > { %1261 = vmatpush2.bf16.msra.mxu1 %v1942_v56  ;;  %1221 = vmatprep.subr.bf16.mxu0 %v1947_v57 }
  0x8c   : > { %1262 = vmatprep.subr.bf16.mxu1 %v1950_v58 }
  0x8e   : > { %1222 = vmatpush2.bf16.msra.mxu0 %v1945_v59 }
  0x8f   : > { %1263 = vmatpush2.bf16.msra.mxu1 %v1948_v60  ;;  %1223 = vmatprep.subr.bf16.mxu0 %v1953_v61 }
  0x90   : > { %1264 = vmatprep.subr.bf16.mxu1 %v1956_v62 }
  0x92   : > { %1224 = vmatpush2.bf16.msra.mxu0 %v1951_v63 }
  0x93   : > { %1265 = vmatpush2.bf16.msra.mxu1 %v1954_v0  ;;  %1225 = vmatprep.subr.bf16.mxu0 %v1959_v1 }
  0x94   : > { %1266 = vmatprep.subr.bf16.mxu1 %v1962_v2 }
  0x96   : > { %1226 = vmatpush2.bf16.msra.mxu0 %v1957_v3 }
  0x97   : > { %1267 = vmatpush2.bf16.msra.mxu1 %v1960_v4  ;;  %1227 = vmatprep.subr.bf16.mxu0 %v1965_v5 }
  0x98   : > { %1268 = vmatprep.subr.bf16.mxu1 %v1968_v6 }
  0x9a   : > { %1228 = vmatpush2.bf16.msra.mxu0 %v1963_v7 }
  0x9b   : > { %1269 = vmatpush2.bf16.msra.mxu1 %v1966_v8 }
  0x9d   : > { %1230 = vmatmul.mubr.bf16.vlgmr.msra.gmra.mxu0 %v2134_v9  ;;  %v329_v9 = vld [vmem:[#allocation2 + $0x18] sm:$0xff] }
  0x9e   : > { %1271 = vmatmul.mubr.bf16.vlgmr.msra.gmra.mxu1 %v2136_v10 }
 0x11d   : > { %v1149_v11 = vpop.f32.mrf.mxu0 }
 0x11e   : > { %v1190_v13 = vpop.f32.mrf.mxu1 }
 0x11f   : > { %v1191_v14 = vadd.f32 %v1190_v13, %v1149_v11  ;;  %v1151_v15 = vpop.f32.mrf.mxu0 }
 0x120   : > { %v1192_v17 = vpop.f32.mrf.mxu1 }
 0x121   : > { %v1279_v18 = vadd.f32 %v1191_v14, %v327_v12  ;;  %v1193_v19 = vadd.f32 %v1192_v17, %v1151_v15  ;;  %v1153_v20 = vpop.f32.mrf.mxu0 }
 0x122   : > { %v1194_v21 = vpop.f32.mrf.mxu1 }
 0x123   : > { %1283 = vst [vmem:[#allocation2 + $0x10] sm:$0xff] %v1279_v18  ;;  %v1280_v22 = vadd.f32 %v1193_v19, %v328_v16  ;;  %v1154_v23 = vpop.f32.mrf.mxu0 }
 0x124   : > { %v1195_v24 = vpop.f32.mrf.mxu1 }
 0x125   : > { %1284 = vst [vmem:[#allocation2] sm:$0xff] %v1280_v22 }
 0x15d   : > { %v1231_v25 = vpop.f32.mrf.mxu0 }
 0x15e   : > { %v1272_v26 = vpop.f32.mrf.mxu1 }
 0x15f   : > { %v1273_v10 = vadd.f32 %v1272_v26, %v1231_v25  ;;  %v1233_v27 = vpop.f32.mrf.mxu0 }
 0x160   : > { %v1274_v29 = vpop.f32.mrf.mxu1 }
 0x161   : > { %v1281_v30 = vadd.f32 %v1273_v10, %v329_v9  ;;  %v1275_v31 = vadd.f32 %v1274_v29, %v1233_v27  ;;  %v1235_v32 = vpop.f32.mrf.mxu0  ;;  %1290 = sbr.rel (%p1731_p8) target bundleno = 390 (0x186), region = 40 }
 0x162   : > { %v1276_v33 = vpop.f32.mrf.mxu1 }
 0x163   : > { %1285 = vst [vmem:[#allocation2 + $0x18] sm:$0xff] %v1281_v30  ;;  %v1282_v34 = vadd.f32 %v1275_v31, %v330_v28  ;;  %v1236_v35 = vpop.f32.mrf.mxu0 }
 0x164   : > { %v1277_v36 = vpop.f32.mrf.mxu1 }
 0x165   : > { %1286 = vst [vmem:[#allocation2 + $0x8] sm:$0xff] %v1282_v34 }
 0x166   : > { %v1291_v37 = vld [vmem:[#allocation2 + $0x10] sm:$0xff]  ;;  %v1292_v38 = vld [vmem:[#allocation2] sm:$0xff]  ;;  %v1347_v40 = vlaneseq  ;;  %v1995_v27 = vmov 1966171168  }
 0x167   : > { %v1744_v41 = vpack.c.bf16 %v1292_v38, %v1291_v37  ;;  %v1314_v42 = vrot.slane %v1291_v37, 4  ;;  %v1320_v43 = vrot.slane %v1292_v38, 4  ;;  %v1374_v44 = vmul.f32 %v1291_v37, %v1291_v37 }
 0x168   : > { %v1375_v46 = vmul.f32 %v1292_v38, %v1292_v38  ;;  %v1345_v28 = vunpack.c.l.s4 %v1995_v27  ;;  %v1348_v29 = vshrl.u32 %v1347_v40, 7  ;;  %vm1370_vm1 = vcmp.lt.s32.totalorder %v1347_v40, 512 }
 0x169   : > { %1311 = vst [vmem:[%s2237_s2] sm:$0xff] %v1744_v41  ;;  %v1315_v50 = vadd.f32 %v1314_v42, %v1291_v37  ;;  %v1321_v51 = vadd.f32 %v1320_v43, %v1292_v38  ;;  %v1378_v52 = vrot.slane %v1374_v44, 4 }
 0x16a   : > { %v1293_v39 = vld [vmem:[#allocation2 + $0x18] sm:$0xff]  ;;  %v1384_v54 = vrot.slane %v1375_v46, 4  ;;  %v1346_v34 = vunpack.c.0.s8 %v1345_v28 }
 0x16b   : > { %v1326_v48 = vrot.slane %v1293_v39, 4  ;;  %v1376_v53 = vmul.f32 %v1293_v39, %v1293_v39  ;;  %v1316_v58 = vrot.slane %v1315_v50, 2  ;;  %v1322_v59 = vrot.slane %v1321_v51, 2 }
 0x16c   : > { %v1294_v45 = vld [vmem:[#allocation2 + $0x8] sm:$0xff]  ;;  %v1379_v60 = vadd.f32 %v1378_v52, %v1374_v44  ;;  %v1385_v62 = vadd.f32 %v1384_v54, %v1375_v46  ;;  %v1349_v38 = vsub.s32 %v1346_v34, %v1348_v29 }
 0x16d   : > { %v1745_v47 = vpack.c.bf16 %v1294_v45, %v1293_v39  ;;  %v1332_v49 = vrot.slane %v1294_v45, 4  ;;  %v1327_v55 = vadd.f32 %v1326_v48, %v1293_v39  ;;  %v1377_v57 = vmul.f32 %v1294_v45, %v1294_v45 }
 0x16e   : > { %v1390_v61 = vrot.slane %v1376_v53, 4  ;;  %v1317_v2 = vadd.f32 %v1316_v58, %v1315_v50  ;;  %v1323_v3 = vadd.f32 %v1322_v59, %v1321_v51  ;;  %v1380_v4 = vrot.slane %v1379_v60, 2  ;;  %v1373_v50 = vld [vmem:[%s2239_s4] sm:$0xf] }
 0x16f   : > { %1312 = vst [vmem:[%s2237_s2 + $0x8] sm:$0xff] %v1745_v47  ;;  %v1333_v56 = vadd.f32 %v1332_v49, %v1294_v45  ;;  %v1328_v63 = vrot.slane %v1327_v55, 2  ;;  %v1396_v1 = vrot.slane %v1377_v57, 4  ;;  %v1386_v6 = vrot.slane %v1385_v62, 2  ;;  %v1313_v47 = vld [vmem:[%s2238_s3] sm:$0xf] }
 0x170   : > { %v1391_v5 = vadd.f32 %v1390_v61, %v1376_v53  ;;  %v1318_v12 = vrot.slane %v1317_v2, 1  ;;  %v1324_v13 = vrot.slane %v1323_v3, 1  ;;  %v1381_v14 = vadd.f32 %v1380_v4, %v1379_v60 }
 0x171   : > { %v1334_v0 = vrot.slane %v1333_v56, 2  ;;  %v1329_v7 = vadd.f32 %v1328_v63, %v1327_v55  ;;  %v1397_v11 = vadd.f32 %v1396_v1, %v1377_v57  ;;  %v1387_v16 = vadd.f32 %v1386_v6, %v1385_v62 }
 0x172   : > { %v1392_v15 = vrot.slane %v1391_v5, 2  ;;  %v1319_v20 = vadd.f32 %v1318_v12, %v1317_v2  ;;  %v1325_v21 = vadd.f32 %v1324_v13, %v1323_v3  ;;  %v1382_v22 = vrot.slane %v1381_v14, 1 }
 0x173   : > { %v1335_v8 = vadd.f32 %v1334_v0, %v1333_v56  ;;  %v1330_v17 = vrot.slane %v1329_v7, 1  ;;  %v1398_v19 = vrot.slane %v1397_v11, 2  ;;  %v1388_v24 = vrot.slane %v1387_v16, 1 }
 0x174   : > { %v1393_v23 = vadd.f32 %v1392_v15, %v1391_v5  ;;  %v1342_v31 = vcombine.low %v1319_v20, %v1325_v21  ;;  %v1383_v32 = vadd.f32 %v1382_v22, %v1381_v14 }
 0x175   : > { %v1336_v18 = vrot.slane %v1335_v8, 1  ;;  %v1331_v25 = vadd.f32 %v1330_v17, %v1329_v7  ;;  %v1399_v26 = vadd.f32 %v1398_v19, %v1397_v11  ;;  %v1389_v35 = vadd.f32 %v1388_v24, %v1387_v16 }
 0x176   : > { %v1394_v10 = vrot.slane %v1393_v23, 1  ;;  %v1350_v42 = vrot.slane %v1342_v31, %v1349_v38 }
 0x177   : > { %v1337_v9 = vadd.f32 %v1336_v18, %v1335_v8  ;;  %v1400_v30 = vrot.slane %v1399_v26, 1  ;;  %v1406_v39 = vcombine.low %v1383_v32, %v1389_v35 }
 0x178   : > { %v1395_v36 = vadd.f32 %v1394_v10, %v1393_v23 }
 0x179   : > { %v1343_v33 = vcombine.low %v1331_v25, %v1337_v9  ;;  %v1401_v37 = vadd.f32 %v1400_v30, %v1399_v26  ;;  %v1414_v44 = vrot.slane %v1406_v39, %v1349_v38 }
 0x17b   : > { %v1407_v41 = vcombine.low %v1395_v36, %v1401_v37  ;;  %v1357_v43 = vrot.slane %v1343_v33, %v1349_v38 }
 0x17d   : > { %v1421_v45 = vrot.slane %v1407_v41, %v1349_v38  ;;  %v1358_v46 = vcombine.low %v1350_v42, %v1357_v43 }
 0x17f   : > { %v1422_v48 = vcombine.low %v1414_v44, %v1421_v45  ;;  %v1365_v49 = vrot.slane %v1358_v46, %v1349_v38 }
 0x181   : > { %v1429_v51 = vrot.slane %v1422_v48, %v1349_v38  ;;  %v1367_v52 = vadd.f32 %v1365_v49, %v1313_v47 }
 0x183   : > { %v1431_v53 = vadd.f32 %v1429_v51, %v1373_v50  ;;  %1372 = vst.msk [vmem:[%s2238_s3] sm:$0xf] %vm1370_vm1, %v1367_v52 }
 0x185   : > { %1432 = vst.msk [vmem:[%s2239_s4] sm:$0xf] %vm1370_vm1, %v1431_v53 }
 0x186 PF: > { %s15_s17 = sadd.s32 1, %s1991_s17   ;;  %s2240_s15 = smov %s1987_s16 }
 0x187   : > { %p12_p9 = scmp.ge.s32.totalorder %s15_s17, 11   ;;  %s2241_s16 = smov %s2243_s18 }
 0x189   :  { %14 = sbr.rel (!%p12_p9) target bundleno = 2 (0x2), region = 97 }

// kernel: cnn_forward.81
= control target key start
LH: loop header
LB: loop body
LE: loop exit
PB: predicated region body
PF: predicated region fallthrough
CT: control target
= control target key end

     0   :  { %v663_v39 = vmov 0.0   ;;  %vm664_vm0 = vmmov 0   ;;  %s830_s1 = inlined_call_operand.vmem [shape: bf16[512,128], index: 1, kind: input, shape index: {}]   ;;  %s831_s0 = inlined_call_operand.vmem [shape: bf16[8,512], index: 0, kind: input, shape index: {}]   ;;  %s832_s3 = inlined_call_operand.vmem [shape: bf16[128,128], index: 3, kind: input, shape index: {}]   ;;  %s833_s2 = inlined_call_operand.vmem [shape: f32[1,128], index: 2, kind: input, shape index: {}]   ;;  %s834_s4 = inlined_call_operand.vmem [shape: f32[1,128], index: 4, kind: input, shape index: {}]   ;;  %s835_s5 = inlined_call_operand.vmem [shape: f32[8,128], index: 5, kind: output, shape index: {}]  }
   0x1   :  { %v619_v0 = vld [vmem:[%s830_s1 + $0x78] sm:$0xff]   ;;  %v623_v4 = vld [vmem:[%s830_s1 + $0x70] sm:$0xff]   ;;  %v627_v8 = vld [vmem:[%s830_s1 + $0x68] sm:$0xff]  }
   0x2   :  { %v620_v1 = vld [vmem:[%s830_s1 + $0xf8] sm:$0xff]   ;;  %544 = vmatprep.subr.bf16.mxu0 %v619_v0  ;;  %v624_v5 = vld [vmem:[%s830_s1 + $0xf0] sm:$0xff]   ;;  %v628_v9 = vld [vmem:[%s830_s1 + $0xe8] sm:$0xff]  }
   0x3   :  { %v621_v2 = vld [vmem:[%s830_s1 + $0x38] sm:$0xff]   ;;  %566 = vmatprep.subr.bf16.mxu1 %v620_v1  ;;  %v625_v6 = vld [vmem:[%s830_s1 + $0x30] sm:$0xff]   ;;  %v629_v10 = vld [vmem:[%s830_s1 + $0x28] sm:$0xff]  }
   0x4   :  { %v622_v3 = vld [vmem:[%s830_s1 + $0xb8] sm:$0xff]   ;;  %545 = vmatpush3.bf16.msra.mxu0 %v621_v2  ;;  %v626_v7 = vld [vmem:[%s830_s1 + $0xb0] sm:$0xff]   ;;  %v630_v11 = vld [vmem:[%s830_s1 + $0xa8] sm:$0xff]  }
   0x5   :  { %567 = vmatpush3.bf16.msra.mxu1 %v622_v3  ;;  %546 = vmatprep.subr.bf16.mxu0 %v623_v4  ;;  %v631_v12 = vld [vmem:[%s830_s1 + $0x60] sm:$0xff]   ;;  %v635_v16 = vld [vmem:[%s830_s1 + $0x58] sm:$0xff]   ;;  %v639_v20 = vld [vmem:[%s830_s1 + $0x50] sm:$0xff]  }
   0x6   :  { %568 = vmatprep.subr.bf16.mxu1 %v624_v5  ;;  %v632_v13 = vld [vmem:[%s830_s1 + $0xe0] sm:$0xff]   ;;  %v636_v17 = vld [vmem:[%s830_s1 + $0xd8] sm:$0xff]   ;;  %v640_v21 = vld [vmem:[%s830_s1 + $0xd0] sm:$0xff]  }
   0x7   :  { %v633_v14 = vld [vmem:[%s830_s1 + $0x20] sm:$0xff]   ;;  %v637_v18 = vld [vmem:[%s830_s1 + $0x18] sm:$0xff]   ;;  %v641_v22 = vld [vmem:[%s830_s1 + $0x10] sm:$0xff]  }
   0x8   :  { %547 = vmatpush3.bf16.msra.mxu0 %v625_v6  ;;  %v634_v15 = vld [vmem:[%s830_s1 + $0xa0] sm:$0xff]   ;;  %v638_v19 = vld [vmem:[%s830_s1 + $0x98] sm:$0xff]   ;;  %v642_v23 = vld [vmem:[%s830_s1 + $0x90] sm:$0xff]  }
   0x9   :  { %569 = vmatpush3.bf16.msra.mxu1 %v626_v7  ;;  %548 = vmatprep.subr.bf16.mxu0 %v627_v8  ;;  %v643_v24 = vld [vmem:[%s830_s1 + $0x48] sm:$0xff]   ;;  %v647_v28 = vld [vmem:[%s830_s1 + $0x40] sm:$0xff]   ;;  %v655_v38 = vld [vmem:[%s832_s3 + $0x38] sm:$0xff]  }
   0xa   :  { %570 = vmatprep.subr.bf16.mxu1 %v628_v9  ;;  %v644_v25 = vld [vmem:[%s830_s1 + $0xc8] sm:$0xff]   ;;  %v648_v29 = vld [vmem:[%s830_s1 + $0xc0] sm:$0xff]   ;;  %v656_v40 = vld [vmem:[%s832_s3 + $0x30] sm:$0xff]  }
   0xb   :  { %v645_v26 = vld [vmem:[%s830_s1 + $0x8] sm:$0xff]   ;;  %v649_v30 = vld [vmem:[%s830_s1] sm:$0xff]   ;;  %v659_v43 = vld [vmem:[%s832_s3 + $0x18] sm:$0xff]  }
   0xc   :  { %549 = vmatpush3.bf16.msra.mxu0 %v629_v10  ;;  %v646_v27 = vld [vmem:[%s830_s1 + $0x88] sm:$0xff]   ;;  %v650_v31 = vld [vmem:[%s830_s1 + $0x80] sm:$0xff]   ;;  %v660_v44 = vld [vmem:[%s832_s3 + $0x10] sm:$0xff]  }
   0xd   :  { %571 = vmatpush3.bf16.msra.mxu1 %v630_v11  ;;  %550 = vmatprep.subr.bf16.mxu0 %v631_v12  ;;  %v21_v32 = vld [vmem:[%s831_s0] sm:$0xff]  ;;  %v22_v33 = vld [vmem:[%s831_s0 + $0x8] sm:$0xff] }
   0xe   :  { %572 = vmatprep.subr.bf16.mxu1 %v632_v13  ;;  %v499_v34 = vcombine.low %v21_v32, %v21_v32  ;;  %v500_v35 = vcombine.high %v21_v32, %v21_v32  ;;  %v501_v36 = vcombine.low %v22_v33, %v22_v33  ;;  %v502_v37 = vcombine.high %v22_v33, %v22_v33  ;;  %v657_v41 = vld [vmem:[%s832_s3 + $0x28] sm:$0xff]   ;;  %v658_v42 = vld [vmem:[%s832_s3 + $0x20] sm:$0xff]  }
   0xf   :  { %v661_v45 = vld [vmem:[%s832_s3 + $0x8] sm:$0xff]   ;;  %v662_v46 = vld [vmem:[%s832_s3] sm:$0xff]  }
  0x10   :  { %551 = vmatpush3.bf16.msra.mxu0 %v633_v14  ;;  %332 = vmatprep.mubr.bf16.mxu0 %v500_v35  ;;  %v498_v49 = vld [vmem:[%s833_s2] ss:$0 sm:$0xff] }
  0x11   :  { %573 = vmatpush3.bf16.msra.mxu1 %v634_v15  ;;  %552 = vmatprep.subr.bf16.mxu0 %v635_v16  ;;  %v535_v62 = vld [vmem:[%s834_s4] ss:$0 sm:$0xff] }
  0x12   :  { %574 = vmatprep.subr.bf16.mxu1 %v636_v17  ;;  %372 = vmatprep.mubr.bf16.mxu1 %v502_v37 }
  0x14   :  { %553 = vmatpush3.bf16.msra.mxu0 %v637_v18 }
  0x15   :  { %575 = vmatpush3.bf16.msra.mxu1 %v638_v19  ;;  %554 = vmatprep.subr.bf16.mxu0 %v639_v20 }
  0x16   :  { %576 = vmatprep.subr.bf16.mxu1 %v640_v21 }
  0x18   :  { %555 = vmatpush3.bf16.msra.mxu0 %v641_v22 }
  0x19   :  { %577 = vmatpush3.bf16.msra.mxu1 %v642_v23  ;;  %556 = vmatprep.subr.bf16.mxu0 %v643_v24 }
  0x1a   :  { %578 = vmatprep.subr.bf16.mxu1 %v644_v25 }
  0x1c   :  { %557 = vmatpush3.bf16.msra.mxu0 %v645_v26 }
  0x1d   :  { %579 = vmatpush3.bf16.msra.mxu1 %v646_v27  ;;  %558 = vmatprep.subr.bf16.mxu0 %v647_v28 }
  0x1e   :  { %580 = vmatprep.subr.bf16.mxu1 %v648_v29 }
  0x20   :  { %559 = vmatpush3.bf16.msra.mxu0 %v649_v30 }
  0x21   :  { %581 = vmatpush3.bf16.msra.mxu1 %v650_v31  ;;  %597 = vmatprep.subr.bf16.mxu0 %v663_v39 }
  0x23   :  { %333 = vmatmul.mubr.bf16.vlgmr.msra.gmra.mxu0 %v499_v34 }
  0x24   :  { %373 = vmatmul.mubr.bf16.vlgmr.msra.gmra.mxu1 %v501_v36  ;;  %598 = vmatpush3.bf16.msra.mxu0 %v655_v38 }
  0x25   :  { %599 = vmatprep.subr.bf16.mxu0 %v663_v39  ;;  %613 = vmatprep.mubr.msk.bf16.mxu0 %vm664_vm0, %v663_v39 }
  0x28   :  { %600 = vmatpush3.bf16.msra.mxu0 %v656_v40 }
  0x29   :  { %601 = vmatprep.subr.bf16.mxu0 %v663_v39 }
  0x2c   :  { %602 = vmatpush3.bf16.msra.mxu0 %v657_v41 }
  0x2d   :  { %603 = vmatprep.subr.bf16.mxu0 %v663_v39 }
  0x30   :  { %604 = vmatpush3.bf16.msra.mxu0 %v658_v42 }
  0x31   :  { %605 = vmatprep.subr.bf16.mxu0 %v663_v39 }
  0x34   :  { %606 = vmatpush3.bf16.msra.mxu0 %v659_v43 }
  0x35   :  { %607 = vmatprep.subr.bf16.mxu0 %v663_v39 }
  0x38   :  { %608 = vmatpush3.bf16.msra.mxu0 %v660_v44 }
  0x39   :  { %609 = vmatprep.subr.bf16.mxu0 %v663_v39 }
  0x3c   :  { %610 = vmatpush3.bf16.msra.mxu0 %v661_v45 }
  0x3d   :  { %611 = vmatprep.subr.bf16.mxu0 %v663_v39 }
  0x40   :  { %612 = vmatpush3.bf16.msra.mxu0 %v662_v46 }
  0xe3   :  { %v560_v47 = vpop.f32.mrf.mxu0 }
  0xe4   :  { %v582_v48 = vpop.f32.mrf.mxu1 }
  0xe5   :  { %v561_v50 = vpop.f32.mrf.mxu0 }
  0xe6   :  { %v583_v51 = vpop.f32.mrf.mxu1  ;;  %v562_v52 = vadd.f32 %v561_v50, %v560_v47 }
  0xe7   :  { %v563_v53 = vpop.f32.mrf.mxu0  ;;  %v584_v56 = vadd.f32 %v583_v51, %v582_v48 }
  0xe8   :  { %v585_v54 = vpop.f32.mrf.mxu1  ;;  %v335_v55 = vadd.f32 %v562_v52, %v498_v49 }
  0xe9   :  { %v564_v57 = vpop.f32.mrf.mxu0 }
  0xea   :  { %v586_v58 = vpop.f32.mrf.mxu1  ;;  %v375_v59 = vadd.f32 %v584_v56, %v335_v55 }
  0xec   :  { %v380_v60 = vmax.f32 %v375_v59, 0.0 }
  0xee   :  { %v381_v61 = vpack.c.bf16 %v380_v60, %v380_v60 }
  0xf0   :  { %614 = vmatmul.mubr.bf16.vlgmr.msra.gmra.mxu0 %v381_v61 }
 0x1b0   :  { %v487_v63 = vpop.f32.mrf.mxu0 }
 0x1b1   :  { %v488_v0 = vadd.f32 %v535_v62, %v487_v63 }
 0x1b2   :  { %v615_v1 = vpop.f32.mrf.mxu0 }
 0x1b3   :  { %493 = vst [vmem:[%s835_s5] sm:$0xff] %v488_v0 }
 0x1b4   :  { %v490_v2 = vpop.f32.mrf.mxu0 }
 0x1b6   :  { %v616_v3 = vpop.f32.mrf.mxu0 }

</bundles_post_ra>
